<compile_context>
chip_gen: v5e
topology: v5e:2x2
jax: 0.10.0
libtpu: 0.0.40
codegen_flags: <defaults>
</compile_context>

<pallas_src>
import math
import functools

import numpy as np
import jax
import jax.numpy as jnp
from jax.experimental import pallas as pl
from jax.experimental.pallas import tpu as pltpu


# ----------------------------- host-side slab packing ------------------------------

class _SlabBuilder:
    """Packs many small 2D f32 tensors into one (rows, 128) slab.

    Each tensor starts at a sublane-aligned row offset (multiple of 8) and occupies
    columns [0, cols).  Returns a static (offset, rows, cols) spec per tensor.
    """
    LANES = 128
    SUBLANES = 8

    def __init__(self):
        self._tensors = []
        self._rows = 0

    def add(self, arr):
        a = np.asarray(arr, np.float32)
        if a.ndim == 1:
            a = a[None, :]
        assert a.ndim == 2 and a.shape[1] <= self.LANES, a.shape
        off = self._rows
        self._tensors.append((off, a))
        self._rows += -(-a.shape[0] // self.SUBLANES) * self.SUBLANES
        return (off, a.shape[0], a.shape[1])

    def build(self):
        slab = np.zeros((max(self._rows, self.SUBLANES), self.LANES), np.float32)
        for off, a in self._tensors:
            slab[off:off + a.shape[0], :a.shape[1]] = a
        return jnp.asarray(slab)


def pack_params(params):
    """Flattens the nested param dict into one slab + a mirrored layout of specs."""
    sb = _SlabBuilder()

    def rec(obj):
        if isinstance(obj, dict):
            return {k: rec(v) for k, v in obj.items()}
        if isinstance(obj, (list, tuple)):
            return [rec(v) for v in obj]
        return sb.add(obj)

    layout = rec(params)
    return sb.build(), layout


# ------------------------------------ fused kernel ---------------------------------

def _fused_kernel(src_ref, tgt_ref, var_ref, slab_ref, out_ref, *, layout, n_heads):
    f32 = jnp.float32

    def L(spec):
        off, r, c = spec
        return slab_ref[off:off + r, :c]

    def linear(x, wspec, bspec):
        return jnp.dot(x, L(wspec), preferred_element_type=f32) + L(bspec)

    def layer_norm(y, gspec, bspec, eps=1e-5):
        mu = jnp.mean(y, axis=-1, keepdims=True)
        var = jnp.mean((y - mu) ** 2, axis=-1, keepdims=True)
        return (y - mu) * jax.lax.rsqrt(var + eps) * L(gspec) + L(bspec)

    def attention(x_q, x_kv, p, causal):
        """nn.MultiheadAttention (batch_first) semantics for one batch element."""
        Sq, D = x_q.shape
        Sk = x_kv.shape[0]
        dh = D // n_heads
        hsk = n_heads * Sk
        scale = 1.0 / math.sqrt(dh)

        q = linear(x_q, p["wq"], p["bq"])          # (Sq, D)
        k = linear(x_kv, p["wk"], p["bk"])         # (Sk, D)
        v = linear(x_kv, p["wv"], p["bv"])         # (Sk, D)

        # Pack all heads along the lane axis with a block-diagonal select so QK^T,
        # P@V and the output projection are ONE matmul each (no dh=8 lane sub-slices,
        # no per-head K=8 matmuls).  Head labels are built by concatenating constant
        # blocks (no integer division in-kernel).
        key_head = jnp.concatenate(                                    # (hsk, 1)
            [jnp.full((Sk, 1), h, jnp.int32) for h in range(n_heads)], axis=0)
        dim_head = jnp.concatenate(                                    # (1, D)
            [jnp.full((1, dh), h, jnp.int32) for h in range(n_heads)], axis=1)
        head_sel = (key_head == dim_head).astype(f32)                  # (hsk, D)

        k_blk = jnp.concatenate([k] * n_heads, axis=0) * head_sel      # (hsk, D)
        v_blk = jnp.concatenate([v] * n_heads, axis=0) * head_sel      # (hsk, D)

        # scores for all heads: s[:, h*Sk:(h+1)*Sk] == Q_h @ K_h^T
        s = jax.lax.dot_general(q, k_blk, (((1,), (1,)), ((), ())),
                                preferred_element_type=f32) * scale    # (Sq, hsk)
        if causal:
            rr = jax.lax.broadcasted_iota(jnp.int32, (Sq, Sk), 0)
            cc = jax.lax.broadcasted_iota(jnp.int32, (Sq, Sk), 1)
            neg = jnp.where(cc > rr, f32(-1e30), f32(0.0))
            s = s + jnp.concatenate([neg] * n_heads, axis=1)

        # Per-head softmax.  Subtracting the global row max is numerically valid
        # because the shift cancels inside each head's normalization.
        e = jnp.exp(s - jnp.max(s, axis=-1, keepdims=True))            # (Sq, hsk)
        ctx = jnp.dot(e, v_blk, preferred_element_type=f32)            # (Sq, D)
        # head_sel doubles as the per-head denominator reducer (broadcast over the
        # head's dh output lanes).
        denom = jnp.dot(e, head_sel, preferred_element_type=f32)       # (Sq, D)
        ctx = ctx / denom                                              # exact divide

        return jnp.dot(ctx, L(p["wo"]), preferred_element_type=f32) + L(p["bo"])

    src = src_ref[0].astype(f32)      # (Se, F)
    tgt = tgt_ref[0].astype(f32)      # (St, F)
    var = var_ref[0].astype(f32)      # (1, num_var)
    Se = src.shape[0]
    St = tgt.shape[0]

    pe_off, _, pe_cols = layout["pe"]

    # ---- encoder input layer (Linear -> Tanh -> Linear) + positional encoding ----
    enc_in = layout["enc_in"]
    x = jnp.tanh(linear(src, enc_in["w1"], enc_in["b1"]))
    x = linear(x, enc_in["w2"], enc_in["b2"])
    x = x + slab_ref[pe_off:pe_off + Se, :pe_cols]

    # ---- encoder stack (post-norm, ReLU FFN) ----
    # TODO(synk): if n_encoder_layers grows past ~2, stack layer weights in the slab
    # and iterate with lax.fori_loop instead of full unrolling.
    for lp in layout["enc_layers"]:
        sa = attention(x, x, lp["attn"], causal=False)
        x = layer_norm(x + sa, lp["ln1g"], lp["ln1b"])
        h = jnp.maximum(linear(x, lp["f1w"], lp["f1b"]), 0.0)
        h = linear(h, lp["f2w"], lp["f2b"])
        x = layer_norm(x + h, lp["ln2g"], lp["ln2b"])

    # ---- projector on cat([x, var_repeated]) == x @ Wx + var @ Wv (+ bias) ----
    # NOTE: the reference hardcodes enc_seq_len=128; here the projector uses the
    # actual encoder length Se (identical for Se=128).
    pr = layout["proj"]
    m = (jnp.dot(x, L(pr["wx"]), preferred_element_type=f32)
         + jnp.dot(var, L(pr["wv"]), preferred_element_type=f32) + L(pr["b1"]))
    m = jnp.tanh(m)
    m = jnp.tanh(linear(m, pr["w2"], pr["b2"]))
    memory = linear(m, pr["w3"], pr["b3"])

    # ---- decoder input layer + positional encoding ----
    dec_in = layout["dec_in"]
    y = jnp.tanh(linear(tgt, dec_in["w1"], dec_in["b1"]))
    y = linear(y, dec_in["w2"], dec_in["b2"])
    y = y + slab_ref[pe_off:pe_off + St, :pe_cols]

    # ---- decoder stack (causal self-attn, cross-attn, FFN; post-norm) ----
    for lp in layout["dec_layers"]:
        sa = attention(y, y, lp["self_attn"], causal=True)
        y = layer_norm(y + sa, lp["ln1g"], lp["ln1b"])
        ca = attention(y, memory, lp["cross_attn"], causal=False)
        y = layer_norm(y + ca, lp["ln2g"], lp["ln2b"])
        h = jnp.maximum(linear(y, lp["f1w"], lp["f1b"]), 0.0)
        h = linear(h, lp["f2w"], lp["f2b"])
        y = layer_norm(y + h, lp["ln3g"], lp["ln3b"])

    # ---- linear_mapping: Linear -> Tanh -> Linear ----
    mp = layout["mapping"]
    o = jnp.tanh(linear(y, mp["w1"], mp["b1"]))
    o = linear(o, mp["w2"], mp["b2"])
    out_ref[0] = o.astype(out_ref.dtype)


# ----------------------------------- host wrapper -----------------------------------

def transformer_forward(slab, src, tgt, var, *, layout, n_heads):
    B, Se, F = src.shape
    St = tgt.shape[1]
    num_var = var.shape[-1]
    var3 = var.reshape(B, 1, num_var)

    kernel = functools.partial(_fused_kernel, layout=layout, n_heads=n_heads)

    return pl.pallas_call(
        kernel,
        out_shape=jax.ShapeDtypeStruct((B, St, F), src.dtype),
        grid=(B,),
        in_specs=[
            pl.BlockSpec((1, Se, F), lambda b: (b, 0, 0)),
            pl.BlockSpec((1, St, F), lambda b: (b, 0, 0)),
            pl.BlockSpec((1, 1, num_var), lambda b: (b, 0, 0)),
            # Single parameter slab, constant block index => fetched once, resident.
            pl.BlockSpec(slab.shape, lambda b: (0, 0)),
        ],
        out_specs=pl.BlockSpec((1, St, F), lambda b: (b, 0, 0)),
        compiler_params=pltpu.CompilerParams(dimension_semantics=("parallel",)),
    )(src, tgt, var3, slab)


# ----------------------------------- parameter init ---------------------------------

def _init_linear(key, fan_in, fan_out):
    kw, kb = jax.random.split(key)
    bound = 1.0 / math.sqrt(fan_in)
    w = jax.random.uniform(kw, (fan_in, fan_out), jnp.float32, -bound, bound)
    b = jax.random.uniform(kb, (1, fan_out), jnp.float32, -bound, bound)
    return w, b


def _init_mha(key, d):
    ks = jax.random.split(key, 4)
    wq, bq = _init_linear(ks[0], d, d)
    wk, bk = _init_linear(ks[1], d, d)
    wv, bv = _init_linear(ks[2], d, d)
    wo, bo = _init_linear(ks[3], d, d)
    return dict(wq=wq, bq=bq, wk=wk, bk=bk, wv=wv, bv=bv, wo=wo, bo=bo)


def _ln():
    return jnp.ones((1,), jnp.float32), jnp.zeros((1,), jnp.float32)


def _init_encoder_layer(key, d, dff):
    k1, k2, k3 = jax.random.split(key, 3)
    f1w, f1b = _init_linear(k2, d, dff)
    f2w, f2b = _init_linear(k3, dff, d)
    return dict(attn=_init_mha(k1, d),
                ln1g=jnp.ones((1, d), jnp.float32), ln1b=jnp.zeros((1, d), jnp.float32),
                f1w=f1w, f1b=f1b, f2w=f2w, f2b=f2b,
                ln2g=jnp.ones((1, d), jnp.float32), ln2b=jnp.zeros((1, d), jnp.float32))


def _init_decoder_layer(key, d, dff):
    k1, k2, k3, k4 = jax.random.split(key, 4)
    f1w, f1b = _init_linear(k3, d, dff)
    f2w, f2b = _init_linear(k4, dff, d)
    return dict(self_attn=_init_mha(k1, d),
                ln1g=jnp.ones((1, d), jnp.float32), ln1b=jnp.zeros((1, d), jnp.float32),
                cross_attn=_init_mha(k2, d),
                ln2g=jnp.ones((1, d), jnp.float32), ln2b=jnp.zeros((1, d), jnp.float32),
                f1w=f1w, f1b=f1b, f2w=f2w, f2b=f2b,
                ln3g=jnp.ones((1, d), jnp.float32), ln3b=jnp.zeros((1, d), jnp.float32))


def _init_projector(key, d, num_var, dffp):
    kx, kv, kb, k2, k3 = jax.random.split(key, 5)
    bound = 1.0 / math.sqrt(d + num_var)
    wx = jax.random.uniform(kx, (d, dffp), jnp.float32, -bound, bound)
    wv = jax.random.uniform(kv, (num_var, dffp), jnp.float32, -bound, bound)
    b1 = jax.random.uniform(kb, (1, dffp), jnp.float32, -bound, bound)
    w2, b2 = _init_linear(k2, dffp, dffp)
    w3, b3 = _init_linear(k3, dffp, d)
    return dict(wx=wx, wv=wv, b1=b1, w2=w2, b2=b2, w3=w3, b3=b3)


def make_positional_encoding(max_len, d):
    pos = jnp.arange(max_len, dtype=jnp.float32)[:, None]
    div = jnp.exp(jnp.arange(0, d, 2, dtype=jnp.float32) * (-math.log(10000.0) / d))
    pe = jnp.zeros((max_len, d), jnp.float32)
    pe = pe.at[:, 0::2].set(jnp.sin(pos * div))
    pe = pe.at[:, 1::2].set(jnp.cos(pos * div))
    return pe


def init_params(key, cfg):
    d = cfg["dim_val"]
    F = cfg["input_size"]
    n_enc = cfg["n_encoder_layers"]
    n_dec = cfg["n_decoder_layers"]
    keys = jax.random.split(key, 7 + n_enc + n_dec)
    ei_w1, ei_b1 = _init_linear(keys[0], F, d)
    ei_w2, ei_b2 = _init_linear(keys[1], d, d)
    di_w1, di_b1 = _init_linear(keys[2], F, d)
    di_w2, di_b2 = _init_linear(keys[3], d, d)
    m_w1, m_b1 = _init_linear(keys[4], d, d)
    m_w2, m_b2 = _init_linear(keys[5], d, F)
    return dict(
        pe=make_positional_encoding(cfg["max_seq_len"], d),
        enc_in=dict(w1=ei_w1, b1=ei_b1, w2=ei_w2, b2=ei_b2),
        dec_in=dict(w1=di_w1, b1=di_b1, w2=di_w2, b2=di_b2),
        mapping=dict(w1=m_w1, b1=m_b1, w2=m_w2, b2=m_b2),
        proj=_init_projector(keys[6], d, cfg["num_var"], cfg["dim_feedforward_projecter"]),
        enc_layers=[_init_encoder_layer(keys[7 + i], d, cfg["dim_feedforward_encoder"])
                    for i in range(n_enc)],
        dec_layers=[_init_decoder_layer(keys[7 + n_enc + i], d, cfg["dim_feedforward_decoder"])
                    for i in range(n_dec)],
    )


# ---------------------------------------- main ---------------------------------------

if __name__ == "__main__":
    cfg = dict(
        input_size=4, dec_seq_len=16, max_seq_len=256, out_seq_len=16,
        dim_val=32, n_encoder_layers=1, n_decoder_layers=1, n_heads=4,
        dim_feedforward_encoder=64, dim_feedforward_decoder=64,
        dim_feedforward_projecter=64, num_var=2,
    )
    B = 2
    ENC_SEQ_LEN = 128  # hardcoded inside the reference forward()

    key = jax.random.PRNGKey(0)
    kp, ks, kt, kv = jax.random.split(key, 4)
    params = init_params(kp, cfg)
    slab, layout = pack_params(params)   # single contiguous parameter slab

    src = jax.random.normal(ks, (B, ENC_SEQ_LEN, cfg["input_size"]), jnp.float32)
    tgt = jax.random.normal(kt, (B, cfg["out_seq_len"], cfg["input_size"]), jnp.float32)
    var = jax.random.normal(kv, (B, cfg["num_var"]), jnp.float32)

    # TODO(synk): dropout layers are identity (eval mode); training-mode dropout is
    # not implemented.
    fwd = jax.jit(functools.partial(transformer_forward,
                                    layout=layout, n_heads=cfg["n_heads"]))
    out = fwd(slab, src, tgt, var)
    jax.block_until_ready(out)

    assert out.shape == (B, cfg["out_seq_len"], cfg["input_size"])
    assert bool(jnp.all(jnp.isfinite(out)))
    print("KERNEL_OK")
</pallas_src>

<mosaic_0001>
module attributes {stable_mosaic.version = 11 : i64} {
  func.func @_fused_kernel(%arg0: i32, %arg1: memref<1x128x4xf32, #tpu.memory_space<vmem>>, %arg2: memref<1x16x4xf32, #tpu.memory_space<vmem>>, %arg3: memref<1x1x2xf32, #tpu.memory_space<vmem>>, %arg4: memref<1424x128xf32, #tpu.memory_space<vmem>>, %arg5: memref<1x16x4xf32, #tpu.memory_space<vmem>>) attributes {dimension_semantics = [#tpu.dimension_semantics<parallel>], iteration_bounds = array<i64: 2>, scalar_prefetch = 0 : i64, scratch_operands = 0 : i64, tpu.core_type = #tpu.core_type<tc>, window_params = [{transform_indices = @transform_0, window_bounds = array<i64: 1, 128, 4>}, {transform_indices = @transform_1, window_bounds = array<i64: 1, 16, 4>}, {transform_indices = @transform_2, window_bounds = array<i64: 1, 1, 2>}, {pipeline_mode = #tpu.pipeline_mode<synchronous>, transform_indices = @transform_3, window_bounds = array<i64: 1424, 128>}, {transform_indices = @transform_4, window_bounds = array<i64: 1, 16, 4>}]} {
    %c0 = arith.constant 0 : index
    %c0_0 = arith.constant 0 : index
    %c0_1 = arith.constant 0 : index
    %0 = vector.load %arg1[%c0, %c0_0, %c0_1] : memref<1x128x4xf32, #tpu.memory_space<vmem>>, vector<1x128x4xf32>
    %1 = vector.shape_cast %0 : vector<1x128x4xf32> to vector<128x4xf32>
    %c0_2 = arith.constant 0 : index
    %c0_3 = arith.constant 0 : index
    %c0_4 = arith.constant 0 : index
    %2 = vector.load %arg2[%c0_2, %c0_3, %c0_4] : memref<1x16x4xf32, #tpu.memory_space<vmem>>, vector<1x16x4xf32>
    %3 = vector.shape_cast %2 : vector<1x16x4xf32> to vector<16x4xf32>
    %c0_5 = arith.constant 0 : index
    %c0_6 = arith.constant 0 : index
    %c0_7 = arith.constant 0 : index
    %4 = vector.load %arg3[%c0_5, %c0_6, %c0_7] : memref<1x1x2xf32, #tpu.memory_space<vmem>>, vector<1x1x2xf32>
    %5 = vector.shape_cast %4 : vector<1x1x2xf32> to vector<1x2xf32>
    %c256 = arith.constant 256 : index
    %c0_8 = arith.constant 0 : index
    %6 = vector.load %arg4[%c256, %c0_8] : memref<1424x128xf32, #tpu.memory_space<vmem>>, vector<4x32xf32>
    %cst = arith.constant dense<0.000000e+00> : vector<128x32xf32>
    %7 = tpu.matmul %1, %6, %cst {dimension_numbers = #tpu.dot_dimension_numbers<[1], [0], [0], [1], [0, 0, 1, 1], [], []>} : vector<128x4xf32>, vector<4x32xf32>, vector<128x32xf32> -> vector<128x32xf32>
    %c264 = arith.constant 264 : index
    %c0_9 = arith.constant 0 : index
    %8 = vector.load %arg4[%c264, %c0_9] : memref<1424x128xf32, #tpu.memory_space<vmem>>, vector<1x32xf32>
    %9 = vector.broadcast %8 : vector<1x32xf32> to vector<128x32xf32>
    %10 = arith.addf %7, %9 : vector<128x32xf32>
    %11 = math.tanh %10 : vector<128x32xf32>
    %c272 = arith.constant 272 : index
    %c0_10 = arith.constant 0 : index
    %12 = vector.load %arg4[%c272, %c0_10] : memref<1424x128xf32, #tpu.memory_space<vmem>>, vector<32x32xf32>
    %cst_11 = arith.constant dense<0.000000e+00> : vector<128x32xf32>
    %13 = tpu.matmul %11, %12, %cst_11 {dimension_numbers = #tpu.dot_dimension_numbers<[1], [0], [0], [1], [0, 0, 1, 1], [], []>} : vector<128x32xf32>, vector<32x32xf32>, vector<128x32xf32> -> vector<128x32xf32>
    %c304 = arith.constant 304 : index
    %c0_12 = arith.constant 0 : index
    %14 = vector.load %arg4[%c304, %c0_12] : memref<1424x128xf32, #tpu.memory_space<vmem>>, vector<1x32xf32>
    %15 = vector.broadcast %14 : vector<1x32xf32> to vector<128x32xf32>
    %16 = arith.addf %13, %15 : vector<128x32xf32>
    %c0_13 = arith.constant 0 : index
    %c0_14 = arith.constant 0 : index
    %17 = vector.load %arg4[%c0_13, %c0_14] : memref<1424x128xf32, #tpu.memory_space<vmem>>, vector<128x32xf32>
    %18 = arith.addf %16, %17 : vector<128x32xf32>
    %c640 = arith.constant 640 : index
    %c0_15 = arith.constant 0 : index
    %19 = vector.load %arg4[%c640, %c0_15] : memref<1424x128xf32, #tpu.memory_space<vmem>>, vector<32x32xf32>
    %cst_16 = arith.constant dense<0.000000e+00> : vector<128x32xf32>
    %20 = tpu.matmul %18, %19, %cst_16 {dimension_numbers = #tpu.dot_dimension_numbers<[1], [0], [0], [1], [0, 0, 1, 1], [], []>} : vector<128x32xf32>, vector<32x32xf32>, vector<128x32xf32> -> vector<128x32xf32>
    %c672 = arith.constant 672 : index
    %c0_17 = arith.constant 0 : index
    %21 = vector.load %arg4[%c672, %c0_17] : memref<1424x128xf32, #tpu.memory_space<vmem>>, vector<1x32xf32>
    %22 = vector.broadcast %21 : vector<1x32xf32> to vector<128x32xf32>
    %23 = arith.addf %20, %22 : vector<128x32xf32>
    %c680 = arith.constant 680 : index
    %c0_18 = arith.constant 0 : index
    %24 = vector.load %arg4[%c680, %c0_18] : memref<1424x128xf32, #tpu.memory_space<vmem>>, vector<32x32xf32>
    %cst_19 = arith.constant dense<0.000000e+00> : vector<128x32xf32>
    %25 = tpu.matmul %18, %24, %cst_19 {dimension_numbers = #tpu.dot_dimension_numbers<[1], [0], [0], [1], [0, 0, 1, 1], [], []>} : vector<128x32xf32>, vector<32x32xf32>, vector<128x32xf32> -> vector<128x32xf32>
    %c712 = arith.constant 712 : index
    %c0_20 = arith.constant 0 : index
    %26 = vector.load %arg4[%c712, %c0_20] : memref<1424x128xf32, #tpu.memory_space<vmem>>, vector<1x32xf32>
    %27 = vector.broadcast %26 : vector<1x32xf32> to vector<128x32xf32>
    %28 = arith.addf %25, %27 : vector<128x32xf32>
    %c720 = arith.constant 720 : index
    %c0_21 = arith.constant 0 : index
    %29 = vector.load %arg4[%c720, %c0_21] : memref<1424x128xf32, #tpu.memory_space<vmem>>, vector<32x32xf32>
    %cst_22 = arith.constant dense<0.000000e+00> : vector<128x32xf32>
    %30 = tpu.matmul %18, %29, %cst_22 {dimension_numbers = #tpu.dot_dimension_numbers<[1], [0], [0], [1], [0, 0, 1, 1], [], []>} : vector<128x32xf32>, vector<32x32xf32>, vector<128x32xf32> -> vector<128x32xf32>
    %c752 = arith.constant 752 : index
    %c0_23 = arith.constant 0 : index
    %31 = vector.load %arg4[%c752, %c0_23] : memref<1424x128xf32, #tpu.memory_space<vmem>>, vector<1x32xf32>
    %32 = vector.broadcast %31 : vector<1x32xf32> to vector<128x32xf32>
    %33 = arith.addf %30, %32 : vector<128x32xf32>
    %c0_i32 = arith.constant 0 : i32
    %34 = vector.broadcast %c0_i32 : i32 to vector<128x1xi32>
    %c1_i32 = arith.constant 1 : i32
    %35 = vector.broadcast %c1_i32 : i32 to vector<128x1xi32>
    %c2_i32 = arith.constant 2 : i32
    %36 = vector.broadcast %c2_i32 : i32 to vector<128x1xi32>
    %c3_i32 = arith.constant 3 : i32
    %37 = vector.broadcast %c3_i32 : i32 to vector<128x1xi32>
    %38 = tpu.concatenate %34, %35, %36, %37 in 0 : vector<128x1xi32>, vector<128x1xi32>, vector<128x1xi32>, vector<128x1xi32> -> vector<512x1xi32>
    %c0_i32_24 = arith.constant 0 : i32
    %39 = vector.broadcast %c0_i32_24 : i32 to vector<1x8xi32>
    %c1_i32_25 = arith.constant 1 : i32
    %40 = vector.broadcast %c1_i32_25 : i32 to vector<1x8xi32>
    %c2_i32_26 = arith.constant 2 : i32
    %41 = vector.broadcast %c2_i32_26 : i32 to vector<1x8xi32>
    %c3_i32_27 = arith.constant 3 : i32
    %42 = vector.broadcast %c3_i32_27 : i32 to vector<1x8xi32>
    %43 = tpu.concatenate %39, %40, %41, %42 in 1 : vector<1x8xi32>, vector<1x8xi32>, vector<1x8xi32>, vector<1x8xi32> -> vector<1x32xi32>
    %44 = vector.broadcast %38 : vector<512x1xi32> to vector<512x32xi32>
    %45 = vector.broadcast %43 : vector<1x32xi32> to vector<512x32xi32>
    %46 = arith.cmpi eq, %44, %45 : vector<512x32xi32>
    %47 = arith.extui %46 : vector<512x32xi1> to vector<512x32xi32>
    %48 = arith.sitofp %47 : vector<512x32xi32> to vector<512x32xf32>
    %49 = tpu.concatenate %28, %28, %28, %28 in 0 : vector<128x32xf32>, vector<128x32xf32>, vector<128x32xf32>, vector<128x32xf32> -> vector<512x32xf32>
    %50 = arith.mulf %49, %48 : vector<512x32xf32>
    %51 = tpu.concatenate %33, %33, %33, %33 in 0 : vector<128x32xf32>, vector<128x32xf32>, vector<128x32xf32>, vector<128x32xf32> -> vector<512x32xf32>
    %52 = arith.mulf %51, %48 : vector<512x32xf32>
    %cst_28 = arith.constant dense<0.000000e+00> : vector<128x512xf32>
    %53 = tpu.matmul %23, %50, %cst_28 {dimension_numbers = #tpu.dot_dimension_numbers<[1], [1], [0], [0], [0, 0, 1, 0], [], []>} : vector<128x32xf32>, vector<512x32xf32>, vector<128x512xf32> -> vector<128x512xf32>
    %cst_29 = arith.constant 0.353553385 : f32
    %54 = vector.broadcast %cst_29 : f32 to vector<128x512xf32>
    %55 = arith.mulf %53, %54 : vector<128x512xf32>
    %cst_30 = arith.constant dense<0xFF800000> : vector<128xf32>
    %56 = vector.multi_reduction <maximumf>, %55, %cst_30 [1] : vector<128x512xf32> to vector<128xf32>
    %57 = vector.shape_cast %56 : vector<128xf32> to vector<128x1xf32>
    %58 = vector.broadcast %57 : vector<128x1xf32> to vector<128x512xf32>
    %59 = arith.subf %55, %58 : vector<128x512xf32>
    %60 = math.exp %59 : vector<128x512xf32>
    %cst_31 = arith.constant dense<0.000000e+00> : vector<128x32xf32>
    %61 = tpu.matmul %60, %52, %cst_31 {dimension_numbers = #tpu.dot_dimension_numbers<[1], [0], [0], [1], [0, 0, 1, 1], [], []>} : vector<128x512xf32>, vector<512x32xf32>, vector<128x32xf32> -> vector<128x32xf32>
    %cst_32 = arith.constant dense<0.000000e+00> : vector<128x32xf32>
    %62 = tpu.matmul %60, %48, %cst_32 {dimension_numbers = #tpu.dot_dimension_numbers<[1], [0], [0], [1], [0, 0, 1, 1], [], []>} : vector<128x512xf32>, vector<512x32xf32>, vector<128x32xf32> -> vector<128x32xf32>
    %63 = arith.divf %61, %62 : vector<128x32xf32>
    %c760 = arith.constant 760 : index
    %c0_33 = arith.constant 0 : index
    %64 = vector.load %arg4[%c760, %c0_33] : memref<1424x128xf32, #tpu.memory_space<vmem>>, vector<32x32xf32>
    %cst_34 = arith.constant dense<0.000000e+00> : vector<128x32xf32>
    %65 = tpu.matmul %63, %64, %cst_34 {dimension_numbers = #tpu.dot_dimension_numbers<[1], [0], [0], [1], [0, 0, 1, 1], [], []>} : vector<128x32xf32>, vector<32x32xf32>, vector<128x32xf32> -> vector<128x32xf32>
    %c792 = arith.constant 792 : index
    %c0_35 = arith.constant 0 : index
    %66 = vector.load %arg4[%c792, %c0_35] : memref<1424x128xf32, #tpu.memory_space<vmem>>, vector<1x32xf32>
    %67 = vector.broadcast %66 : vector<1x32xf32> to vector<128x32xf32>
    %68 = arith.addf %65, %67 : vector<128x32xf32>
    %69 = arith.addf %18, %68 : vector<128x32xf32>
    %cst_36 = arith.constant dense<0.000000e+00> : vector<128xf32>
    %70 = vector.multi_reduction <add>, %69, %cst_36 [1] : vector<128x32xf32> to vector<128xf32>
    %71 = vector.shape_cast %70 : vector<128xf32> to vector<128x1xf32>
    %cst_37 = arith.constant 3.200000e+01 : f32
    %72 = vector.broadcast %cst_37 : f32 to vector<128x1xf32>
    %73 = arith.divf %71, %72 : vector<128x1xf32>
    %74 = vector.broadcast %73 : vector<128x1xf32> to vector<128x32xf32>
    %75 = arith.subf %69, %74 : vector<128x32xf32>
    %76 = arith.mulf %75, %75 : vector<128x32xf32>
    %cst_38 = arith.constant dense<0.000000e+00> : vector<128xf32>
    %77 = vector.multi_reduction <add>, %76, %cst_38 [1] : vector<128x32xf32> to vector<128xf32>
    %78 = vector.shape_cast %77 : vector<128xf32> to vector<128x1xf32>
    %cst_39 = arith.constant 3.200000e+01 : f32
    %79 = vector.broadcast %cst_39 : f32 to vector<128x1xf32>
    %80 = arith.divf %78, %79 : vector<128x1xf32>
    %81 = vector.broadcast %73 : vector<128x1xf32> to vector<128x32xf32>
    %82 = arith.subf %69, %81 : vector<128x32xf32>
    %cst_40 = arith.constant 9.99999974E-6 : f32
    %83 = vector.broadcast %cst_40 : f32 to vector<128x1xf32>
    %84 = arith.addf %80, %83 : vector<128x1xf32>
    %85 = math.rsqrt %84 : vector<128x1xf32>
    %86 = vector.broadcast %85 : vector<128x1xf32> to vector<128x32xf32>
    %87 = arith.mulf %82, %86 : vector<128x32xf32>
    %c800 = arith.constant 800 : index
    %c0_41 = arith.constant 0 : index
    %88 = vector.load %arg4[%c800, %c0_41] : memref<1424x128xf32, #tpu.memory_space<vmem>>, vector<1x32xf32>
    %89 = vector.broadcast %88 : vector<1x32xf32> to vector<128x32xf32>
    %90 = arith.mulf %87, %89 : vector<128x32xf32>
    %c808 = arith.constant 808 : index
    %c0_42 = arith.constant 0 : index
    %91 = vector.load %arg4[%c808, %c0_42] : memref<1424x128xf32, #tpu.memory_space<vmem>>, vector<1x32xf32>
    %92 = vector.broadcast %91 : vector<1x32xf32> to vector<128x32xf32>
    %93 = arith.addf %90, %92 : vector<128x32xf32>
    %c816 = arith.constant 816 : index
    %c0_43 = arith.constant 0 : index
    %94 = vector.load %arg4[%c816, %c0_43] : memref<1424x128xf32, #tpu.memory_space<vmem>>, vector<32x64xf32>
    %cst_44 = arith.constant dense<0.000000e+00> : vector<128x64xf32>
    %95 = tpu.matmul %93, %94, %cst_44 {dimension_numbers = #tpu.dot_dimension_numbers<[1], [0], [0], [1], [0, 0, 1, 1], [], []>} : vector<128x32xf32>, vector<32x64xf32>, vector<128x64xf32> -> vector<128x64xf32>
    %c848 = arith.constant 848 : index
    %c0_45 = arith.constant 0 : index
    %96 = vector.load %arg4[%c848, %c0_45] : memref<1424x128xf32, #tpu.memory_space<vmem>>, vector<1x64xf32>
    %97 = vector.broadcast %96 : vector<1x64xf32> to vector<128x64xf32>
    %98 = arith.addf %95, %97 : vector<128x64xf32>
    %cst_46 = arith.constant 0.000000e+00 : f32
    %99 = vector.broadcast %cst_46 : f32 to vector<128x64xf32>
    %100 = arith.maximumf %98, %99 : vector<128x64xf32>
    %c856 = arith.constant 856 : index
    %c0_47 = arith.constant 0 : index
    %101 = vector.load %arg4[%c856, %c0_47] : memref<1424x128xf32, #tpu.memory_space<vmem>>, vector<64x32xf32>
    %cst_48 = arith.constant dense<0.000000e+00> : vector<128x32xf32>
    %102 = tpu.matmul %100, %101, %cst_48 {dimension_numbers = #tpu.dot_dimension_numbers<[1], [0], [0], [1], [0, 0, 1, 1], [], []>} : vector<128x64xf32>, vector<64x32xf32>, vector<128x32xf32> -> vector<128x32xf32>
    %c920 = arith.constant 920 : index
    %c0_49 = arith.constant 0 : index
    %103 = vector.load %arg4[%c920, %c0_49] : memref<1424x128xf32, #tpu.memory_space<vmem>>, vector<1x32xf32>
    %104 = vector.broadcast %103 : vector<1x32xf32> to vector<128x32xf32>
    %105 = arith.addf %102, %104 : vector<128x32xf32>
    %106 = arith.addf %93, %105 : vector<128x32xf32>
    %cst_50 = arith.constant dense<0.000000e+00> : vector<128xf32>
    %107 = vector.multi_reduction <add>, %106, %cst_50 [1] : vector<128x32xf32> to vector<128xf32>
    %108 = vector.shape_cast %107 : vector<128xf32> to vector<128x1xf32>
    %cst_51 = arith.constant 3.200000e+01 : f32
    %109 = vector.broadcast %cst_51 : f32 to vector<128x1xf32>
    %110 = arith.divf %108, %109 : vector<128x1xf32>
    %111 = vector.broadcast %110 : vector<128x1xf32> to vector<128x32xf32>
    %112 = arith.subf %106, %111 : vector<128x32xf32>
    %113 = arith.mulf %112, %112 : vector<128x32xf32>
    %cst_52 = arith.constant dense<0.000000e+00> : vector<128xf32>
    %114 = vector.multi_reduction <add>, %113, %cst_52 [1] : vector<128x32xf32> to vector<128xf32>
    %115 = vector.shape_cast %114 : vector<128xf32> to vector<128x1xf32>
    %cst_53 = arith.constant 3.200000e+01 : f32
    %116 = vector.broadcast %cst_53 : f32 to vector<128x1xf32>
    %117 = arith.divf %115, %116 : vector<128x1xf32>
    %118 = vector.broadcast %110 : vector<128x1xf32> to vector<128x32xf32>
    %119 = arith.subf %106, %118 : vector<128x32xf32>
    %cst_54 = arith.constant 9.99999974E-6 : f32
    %120 = vector.broadcast %cst_54 : f32 to vector<128x1xf32>
    %121 = arith.addf %117, %120 : vector<128x1xf32>
    %122 = math.rsqrt %121 : vector<128x1xf32>
    %123 = vector.broadcast %122 : vector<128x1xf32> to vector<128x32xf32>
    %124 = arith.mulf %119, %123 : vector<128x32xf32>
    %c928 = arith.constant 928 : index
    %c0_55 = arith.constant 0 : index
    %125 = vector.load %arg4[%c928, %c0_55] : memref<1424x128xf32, #tpu.memory_space<vmem>>, vector<1x32xf32>
    %126 = vector.broadcast %125 : vector<1x32xf32> to vector<128x32xf32>
    %127 = arith.mulf %124, %126 : vector<128x32xf32>
    %c936 = arith.constant 936 : index
    %c0_56 = arith.constant 0 : index
    %128 = vector.load %arg4[%c936, %c0_56] : memref<1424x128xf32, #tpu.memory_space<vmem>>, vector<1x32xf32>
    %129 = vector.broadcast %128 : vector<1x32xf32> to vector<128x32xf32>
    %130 = arith.addf %127, %129 : vector<128x32xf32>
    %c448 = arith.constant 448 : index
    %c0_57 = arith.constant 0 : index
    %131 = vector.load %arg4[%c448, %c0_57] : memref<1424x128xf32, #tpu.memory_space<vmem>>, vector<32x64xf32>
    %cst_58 = arith.constant dense<0.000000e+00> : vector<128x64xf32>
    %132 = tpu.matmul %130, %131, %cst_58 {dimension_numbers = #tpu.dot_dimension_numbers<[1], [0], [0], [1], [0, 0, 1, 1], [], []>} : vector<128x32xf32>, vector<32x64xf32>, vector<128x64xf32> -> vector<128x64xf32>
    %c480 = arith.constant 480 : index
    %c0_59 = arith.constant 0 : index
    %133 = vector.load %arg4[%c480, %c0_59] : memref<1424x128xf32, #tpu.memory_space<vmem>>, vector<2x64xf32>
    %cst_60 = arith.constant dense<0.000000e+00> : vector<1x64xf32>
    %134 = tpu.matmul %5, %133, %cst_60 {dimension_numbers = #tpu.dot_dimension_numbers<[1], [0], [0], [1], [0, 0, 1, 1], [], []>} : vector<1x2xf32>, vector<2x64xf32>, vector<1x64xf32> -> vector<1x64xf32>
    %135 = vector.broadcast %134 : vector<1x64xf32> to vector<128x64xf32>
    %136 = arith.addf %132, %135 : vector<128x64xf32>
    %c488 = arith.constant 488 : index
    %c0_61 = arith.constant 0 : index
    %137 = vector.load %arg4[%c488, %c0_61] : memref<1424x128xf32, #tpu.memory_space<vmem>>, vector<1x64xf32>
    %138 = vector.broadcast %137 : vector<1x64xf32> to vector<128x64xf32>
    %139 = arith.addf %136, %138 : vector<128x64xf32>
    %140 = math.tanh %139 : vector<128x64xf32>
    %c496 = arith.constant 496 : index
    %c0_62 = arith.constant 0 : index
    %141 = vector.load %arg4[%c496, %c0_62] : memref<1424x128xf32, #tpu.memory_space<vmem>>, vector<64x64xf32>
    %cst_63 = arith.constant dense<0.000000e+00> : vector<128x64xf32>
    %142 = tpu.matmul %140, %141, %cst_63 {dimension_numbers = #tpu.dot_dimension_numbers<[1], [0], [0], [1], [0, 0, 1, 1], [], []>} : vector<128x64xf32>, vector<64x64xf32>, vector<128x64xf32> -> vector<128x64xf32>
    %c560 = arith.constant 560 : index
    %c0_64 = arith.constant 0 : index
    %143 = vector.load %arg4[%c560, %c0_64] : memref<1424x128xf32, #tpu.memory_space<vmem>>, vector<1x64xf32>
    %144 = vector.broadcast %143 : vector<1x64xf32> to vector<128x64xf32>
    %145 = arith.addf %142, %144 : vector<128x64xf32>
    %146 = math.tanh %145 : vector<128x64xf32>
    %c568 = arith.constant 568 : index
    %c0_65 = arith.constant 0 : index
    %147 = vector.load %arg4[%c568, %c0_65] : memref<1424x128xf32, #tpu.memory_space<vmem>>, vector<64x32xf32>
    %cst_66 = arith.constant dense<0.000000e+00> : vector<128x32xf32>
    %148 = tpu.matmul %146, %147, %cst_66 {dimension_numbers = #tpu.dot_dimension_numbers<[1], [0], [0], [1], [0, 0, 1, 1], [], []>} : vector<128x64xf32>, vector<64x32xf32>, vector<128x32xf32> -> vector<128x32xf32>
    %c632 = arith.constant 632 : index
    %c0_67 = arith.constant 0 : index
    %149 = vector.load %arg4[%c632, %c0_67] : memref<1424x128xf32, #tpu.memory_space<vmem>>, vector<1x32xf32>
    %150 = vector.broadcast %149 : vector<1x32xf32> to vector<128x32xf32>
    %151 = arith.addf %148, %150 : vector<128x32xf32>
    %c312 = arith.constant 312 : index
    %c0_68 = arith.constant 0 : index
    %152 = vector.load %arg4[%c312, %c0_68] : memref<1424x128xf32, #tpu.memory_space<vmem>>, vector<4x32xf32>
    %cst_69 = arith.constant dense<0.000000e+00> : vector<16x32xf32>
    %153 = tpu.matmul %3, %152, %cst_69 {dimension_numbers = #tpu.dot_dimension_numbers<[1], [0], [0], [1], [0, 0, 1, 1], [], []>} : vector<16x4xf32>, vector<4x32xf32>, vector<16x32xf32> -> vector<16x32xf32>
    %c320 = arith.constant 320 : index
    %c0_70 = arith.constant 0 : index
    %154 = vector.load %arg4[%c320, %c0_70] : memref<1424x128xf32, #tpu.memory_space<vmem>>, vector<1x32xf32>
    %155 = vector.broadcast %154 : vector<1x32xf32> to vector<16x32xf32>
    %156 = arith.addf %153, %155 : vector<16x32xf32>
    %157 = math.tanh %156 : vector<16x32xf32>
    %c328 = arith.constant 328 : index
    %c0_71 = arith.constant 0 : index
    %158 = vector.load %arg4[%c328, %c0_71] : memref<1424x128xf32, #tpu.memory_space<vmem>>, vector<32x32xf32>
    %cst_72 = arith.constant dense<0.000000e+00> : vector<16x32xf32>
    %159 = tpu.matmul %157, %158, %cst_72 {dimension_numbers = #tpu.dot_dimension_numbers<[1], [0], [0], [1], [0, 0, 1, 1], [], []>} : vector<16x32xf32>, vector<32x32xf32>, vector<16x32xf32> -> vector<16x32xf32>
    %c360 = arith.constant 360 : index
    %c0_73 = arith.constant 0 : index
    %160 = vector.load %arg4[%c360, %c0_73] : memref<1424x128xf32, #tpu.memory_space<vmem>>, vector<1x32xf32>
    %161 = vector.broadcast %160 : vector<1x32xf32> to vector<16x32xf32>
    %162 = arith.addf %159, %161 : vector<16x32xf32>
    %c0_74 = arith.constant 0 : index
    %c0_75 = arith.constant 0 : index
    %163 = vector.load %arg4[%c0_74, %c0_75] : memref<1424x128xf32, #tpu.memory_space<vmem>>, vector<16x32xf32>
    %164 = arith.addf %162, %163 : vector<16x32xf32>
    %c944 = arith.constant 944 : index
    %c0_76 = arith.constant 0 : index
    %165 = vector.load %arg4[%c944, %c0_76] : memref<1424x128xf32, #tpu.memory_space<vmem>>, vector<32x32xf32>
    %cst_77 = arith.constant dense<0.000000e+00> : vector<16x32xf32>
    %166 = tpu.matmul %164, %165, %cst_77 {dimension_numbers = #tpu.dot_dimension_numbers<[1], [0], [0], [1], [0, 0, 1, 1], [], []>} : vector<16x32xf32>, vector<32x32xf32>, vector<16x32xf32> -> vector<16x32xf32>
    %c976 = arith.constant 976 : index
    %c0_78 = arith.constant 0 : index
    %167 = vector.load %arg4[%c976, %c0_78] : memref<1424x128xf32, #tpu.memory_space<vmem>>, vector<1x32xf32>
    %168 = vector.broadcast %167 : vector<1x32xf32> to vector<16x32xf32>
    %169 = arith.addf %166, %168 : vector<16x32xf32>
    %c984 = arith.constant 984 : index
    %c0_79 = arith.constant 0 : index
    %170 = vector.load %arg4[%c984, %c0_79] : memref<1424x128xf32, #tpu.memory_space<vmem>>, vector<32x32xf32>
    %cst_80 = arith.constant dense<0.000000e+00> : vector<16x32xf32>
    %171 = tpu.matmul %164, %170, %cst_80 {dimension_numbers = #tpu.dot_dimension_numbers<[1], [0], [0], [1], [0, 0, 1, 1], [], []>} : vector<16x32xf32>, vector<32x32xf32>, vector<16x32xf32> -> vector<16x32xf32>
    %c1016 = arith.constant 1016 : index
    %c0_81 = arith.constant 0 : index
    %172 = vector.load %arg4[%c1016, %c0_81] : memref<1424x128xf32, #tpu.memory_space<vmem>>, vector<1x32xf32>
    %173 = vector.broadcast %172 : vector<1x32xf32> to vector<16x32xf32>
    %174 = arith.addf %171, %173 : vector<16x32xf32>
    %c1024 = arith.constant 1024 : index
    %c0_82 = arith.constant 0 : index
    %175 = vector.load %arg4[%c1024, %c0_82] : memref<1424x128xf32, #tpu.memory_space<vmem>>, vector<32x32xf32>
    %cst_83 = arith.constant dense<0.000000e+00> : vector<16x32xf32>
    %176 = tpu.matmul %164, %175, %cst_83 {dimension_numbers = #tpu.dot_dimension_numbers<[1], [0], [0], [1], [0, 0, 1, 1], [], []>} : vector<16x32xf32>, vector<32x32xf32>, vector<16x32xf32> -> vector<16x32xf32>
    %c1056 = arith.constant 1056 : index
    %c0_84 = arith.constant 0 : index
    %177 = vector.load %arg4[%c1056, %c0_84] : memref<1424x128xf32, #tpu.memory_space<vmem>>, vector<1x32xf32>
    %178 = vector.broadcast %177 : vector<1x32xf32> to vector<16x32xf32>
    %179 = arith.addf %176, %178 : vector<16x32xf32>
    %c0_i32_85 = arith.constant 0 : i32
    %180 = vector.broadcast %c0_i32_85 : i32 to vector<16x1xi32>
    %c1_i32_86 = arith.constant 1 : i32
    %181 = vector.broadcast %c1_i32_86 : i32 to vector<16x1xi32>
    %c2_i32_87 = arith.constant 2 : i32
    %182 = vector.broadcast %c2_i32_87 : i32 to vector<16x1xi32>
    %c3_i32_88 = arith.constant 3 : i32
    %183 = vector.broadcast %c3_i32_88 : i32 to vector<16x1xi32>
    %184 = tpu.concatenate %180, %181, %182, %183 in 0 : vector<16x1xi32>, vector<16x1xi32>, vector<16x1xi32>, vector<16x1xi32> -> vector<64x1xi32>
    %c0_i32_89 = arith.constant 0 : i32
    %185 = vector.broadcast %c0_i32_89 : i32 to vector<1x8xi32>
    %c1_i32_90 = arith.constant 1 : i32
    %186 = vector.broadcast %c1_i32_90 : i32 to vector<1x8xi32>
    %c2_i32_91 = arith.constant 2 : i32
    %187 = vector.broadcast %c2_i32_91 : i32 to vector<1x8xi32>
    %c3_i32_92 = arith.constant 3 : i32
    %188 = vector.broadcast %c3_i32_92 : i32 to vector<1x8xi32>
    %189 = tpu.concatenate %185, %186, %187, %188 in 1 : vector<1x8xi32>, vector<1x8xi32>, vector<1x8xi32>, vector<1x8xi32> -> vector<1x32xi32>
    %190 = vector.broadcast %184 : vector<64x1xi32> to vector<64x32xi32>
    %191 = vector.broadcast %189 : vector<1x32xi32> to vector<64x32xi32>
    %192 = arith.cmpi eq, %190, %191 : vector<64x32xi32>
    %193 = arith.extui %192 : vector<64x32xi1> to vector<64x32xi32>
    %194 = arith.sitofp %193 : vector<64x32xi32> to vector<64x32xf32>
    %195 = tpu.concatenate %174, %174, %174, %174 in 0 : vector<16x32xf32>, vector<16x32xf32>, vector<16x32xf32>, vector<16x32xf32> -> vector<64x32xf32>
    %196 = arith.mulf %195, %194 : vector<64x32xf32>
    %197 = tpu.concatenate %179, %179, %179, %179 in 0 : vector<16x32xf32>, vector<16x32xf32>, vector<16x32xf32>, vector<16x32xf32> -> vector<64x32xf32>
    %198 = arith.mulf %197, %194 : vector<64x32xf32>
    %cst_93 = arith.constant dense<0.000000e+00> : vector<16x64xf32>
    %199 = tpu.matmul %169, %196, %cst_93 {dimension_numbers = #tpu.dot_dimension_numbers<[1], [1], [0], [0], [0, 0, 1, 0], [], []>} : vector<16x32xf32>, vector<64x32xf32>, vector<16x64xf32> -> vector<16x64xf32>
    %cst_94 = arith.constant 0.353553385 : f32
    %200 = vector.broadcast %cst_94 : f32 to vector<16x64xf32>
    %201 = arith.mulf %199, %200 : vector<16x64xf32>
    %202 = tpu.iota {dimensions = array<i32: 0>} : vector<16x16xi32>
    %203 = tpu.iota {dimensions = array<i32: 1>} : vector<16x16xi32>
    %204 = arith.cmpi sgt, %203, %202 : vector<16x16xi32>
    %cst_95 = arith.constant -1.000000e+30 : f32
    %cst_96 = arith.constant 0.000000e+00 : f32
    %205 = vector.broadcast %cst_95 : f32 to vector<16x16xf32>
    %206 = vector.broadcast %cst_96 : f32 to vector<16x16xf32>
    %207 = arith.select %204, %205, %206 : vector<16x16xi1>, vector<16x16xf32>
    %208 = tpu.concatenate %207, %207, %207, %207 in 1 : vector<16x16xf32>, vector<16x16xf32>, vector<16x16xf32>, vector<16x16xf32> -> vector<16x64xf32>
    %209 = arith.addf %201, %208 : vector<16x64xf32>
    %cst_97 = arith.constant dense<0xFF800000> : vector<16xf32>
    %210 = vector.multi_reduction <maximumf>, %209, %cst_97 [1] : vector<16x64xf32> to vector<16xf32>
    %211 = vector.shape_cast %210 : vector<16xf32> to vector<16x1xf32>
    %212 = vector.broadcast %211 : vector<16x1xf32> to vector<16x64xf32>
    %213 = arith.subf %209, %212 : vector<16x64xf32>
    %214 = math.exp %213 : vector<16x64xf32>
    %cst_98 = arith.constant dense<0.000000e+00> : vector<16x32xf32>
    %215 = tpu.matmul %214, %198, %cst_98 {dimension_numbers = #tpu.dot_dimension_numbers<[1], [0], [0], [1], [0, 0, 1, 1], [], []>} : vector<16x64xf32>, vector<64x32xf32>, vector<16x32xf32> -> vector<16x32xf32>
    %cst_99 = arith.constant dense<0.000000e+00> : vector<16x32xf32>
    %216 = tpu.matmul %214, %194, %cst_99 {dimension_numbers = #tpu.dot_dimension_numbers<[1], [0], [0], [1], [0, 0, 1, 1], [], []>} : vector<16x64xf32>, vector<64x32xf32>, vector<16x32xf32> -> vector<16x32xf32>
    %217 = arith.divf %215, %216 : vector<16x32xf32>
    %c1064 = arith.constant 1064 : index
    %c0_100 = arith.constant 0 : index
    %218 = vector.load %arg4[%c1064, %c0_100] : memref<1424x128xf32, #tpu.memory_space<vmem>>, vector<32x32xf32>
    %cst_101 = arith.constant dense<0.000000e+00> : vector<16x32xf32>
    %219 = tpu.matmul %217, %218, %cst_101 {dimension_numbers = #tpu.dot_dimension_numbers<[1], [0], [0], [1], [0, 0, 1, 1], [], []>} : vector<16x32xf32>, vector<32x32xf32>, vector<16x32xf32> -> vector<16x32xf32>
    %c1096 = arith.constant 1096 : index
    %c0_102 = arith.constant 0 : index
    %220 = vector.load %arg4[%c1096, %c0_102] : memref<1424x128xf32, #tpu.memory_space<vmem>>, vector<1x32xf32>
    %221 = vector.broadcast %220 : vector<1x32xf32> to vector<16x32xf32>
    %222 = arith.addf %219, %221 : vector<16x32xf32>
    %223 = arith.addf %164, %222 : vector<16x32xf32>
    %cst_103 = arith.constant dense<0.000000e+00> : vector<16xf32>
    %224 = vector.multi_reduction <add>, %223, %cst_103 [1] : vector<16x32xf32> to vector<16xf32>
    %225 = vector.shape_cast %224 : vector<16xf32> to vector<16x1xf32>
    %cst_104 = arith.constant 3.200000e+01 : f32
    %226 = vector.broadcast %cst_104 : f32 to vector<16x1xf32>
    %227 = arith.divf %225, %226 : vector<16x1xf32>
    %228 = vector.broadcast %227 : vector<16x1xf32> to vector<16x32xf32>
    %229 = arith.subf %223, %228 : vector<16x32xf32>
    %230 = arith.mulf %229, %229 : vector<16x32xf32>
    %cst_105 = arith.constant dense<0.000000e+00> : vector<16xf32>
    %231 = vector.multi_reduction <add>, %230, %cst_105 [1] : vector<16x32xf32> to vector<16xf32>
    %232 = vector.shape_cast %231 : vector<16xf32> to vector<16x1xf32>
    %cst_106 = arith.constant 3.200000e+01 : f32
    %233 = vector.broadcast %cst_106 : f32 to vector<16x1xf32>
    %234 = arith.divf %232, %233 : vector<16x1xf32>
    %235 = vector.broadcast %227 : vector<16x1xf32> to vector<16x32xf32>
    %236 = arith.subf %223, %235 : vector<16x32xf32>
    %cst_107 = arith.constant 9.99999974E-6 : f32
    %237 = vector.broadcast %cst_107 : f32 to vector<16x1xf32>
    %238 = arith.addf %234, %237 : vector<16x1xf32>
    %239 = math.rsqrt %238 : vector<16x1xf32>
    %240 = vector.broadcast %239 : vector<16x1xf32> to vector<16x32xf32>
    %241 = arith.mulf %236, %240 : vector<16x32xf32>
    %c1104 = arith.constant 1104 : index
    %c0_108 = arith.constant 0 : index
    %242 = vector.load %arg4[%c1104, %c0_108] : memref<1424x128xf32, #tpu.memory_space<vmem>>, vector<1x32xf32>
    %243 = vector.broadcast %242 : vector<1x32xf32> to vector<16x32xf32>
    %244 = arith.mulf %241, %243 : vector<16x32xf32>
    %c1112 = arith.constant 1112 : index
    %c0_109 = arith.constant 0 : index
    %245 = vector.load %arg4[%c1112, %c0_109] : memref<1424x128xf32, #tpu.memory_space<vmem>>, vector<1x32xf32>
    %246 = vector.broadcast %245 : vector<1x32xf32> to vector<16x32xf32>
    %247 = arith.addf %244, %246 : vector<16x32xf32>
    %c1120 = arith.constant 1120 : index
    %c0_110 = arith.constant 0 : index
    %248 = vector.load %arg4[%c1120, %c0_110] : memref<1424x128xf32, #tpu.memory_space<vmem>>, vector<32x32xf32>
    %cst_111 = arith.constant dense<0.000000e+00> : vector<16x32xf32>
    %249 = tpu.matmul %247, %248, %cst_111 {dimension_numbers = #tpu.dot_dimension_numbers<[1], [0], [0], [1], [0, 0, 1, 1], [], []>} : vector<16x32xf32>, vector<32x32xf32>, vector<16x32xf32> -> vector<16x32xf32>
    %c1152 = arith.constant 1152 : index
    %c0_112 = arith.constant 0 : index
    %250 = vector.load %arg4[%c1152, %c0_112] : memref<1424x128xf32, #tpu.memory_space<vmem>>, vector<1x32xf32>
    %251 = vector.broadcast %250 : vector<1x32xf32> to vector<16x32xf32>
    %252 = arith.addf %249, %251 : vector<16x32xf32>
    %c1160 = arith.constant 1160 : index
    %c0_113 = arith.constant 0 : index
    %253 = vector.load %arg4[%c1160, %c0_113] : memref<1424x128xf32, #tpu.memory_space<vmem>>, vector<32x32xf32>
    %cst_114 = arith.constant dense<0.000000e+00> : vector<128x32xf32>
    %254 = tpu.matmul %151, %253, %cst_114 {dimension_numbers = #tpu.dot_dimension_numbers<[1], [0], [0], [1], [0, 0, 1, 1], [], []>} : vector<128x32xf32>, vector<32x32xf32>, vector<128x32xf32> -> vector<128x32xf32>
    %c1192 = arith.constant 1192 : index
    %c0_115 = arith.constant 0 : index
    %255 = vector.load %arg4[%c1192, %c0_115] : memref<1424x128xf32, #tpu.memory_space<vmem>>, vector<1x32xf32>
    %256 = vector.broadcast %255 : vector<1x32xf32> to vector<128x32xf32>
    %257 = arith.addf %254, %256 : vector<128x32xf32>
    %c1200 = arith.constant 1200 : index
    %c0_116 = arith.constant 0 : index
    %258 = vector.load %arg4[%c1200, %c0_116] : memref<1424x128xf32, #tpu.memory_space<vmem>>, vector<32x32xf32>
    %cst_117 = arith.constant dense<0.000000e+00> : vector<128x32xf32>
    %259 = tpu.matmul %151, %258, %cst_117 {dimension_numbers = #tpu.dot_dimension_numbers<[1], [0], [0], [1], [0, 0, 1, 1], [], []>} : vector<128x32xf32>, vector<32x32xf32>, vector<128x32xf32> -> vector<128x32xf32>
    %c1232 = arith.constant 1232 : index
    %c0_118 = arith.constant 0 : index
    %260 = vector.load %arg4[%c1232, %c0_118] : memref<1424x128xf32, #tpu.memory_space<vmem>>, vector<1x32xf32>
    %261 = vector.broadcast %260 : vector<1x32xf32> to vector<128x32xf32>
    %262 = arith.addf %259, %261 : vector<128x32xf32>
    %c0_i32_119 = arith.constant 0 : i32
    %263 = vector.broadcast %c0_i32_119 : i32 to vector<128x1xi32>
    %c1_i32_120 = arith.constant 1 : i32
    %264 = vector.broadcast %c1_i32_120 : i32 to vector<128x1xi32>
    %c2_i32_121 = arith.constant 2 : i32
    %265 = vector.broadcast %c2_i32_121 : i32 to vector<128x1xi32>
    %c3_i32_122 = arith.constant 3 : i32
    %266 = vector.broadcast %c3_i32_122 : i32 to vector<128x1xi32>
    %267 = tpu.concatenate %263, %264, %265, %266 in 0 : vector<128x1xi32>, vector<128x1xi32>, vector<128x1xi32>, vector<128x1xi32> -> vector<512x1xi32>
    %c0_i32_123 = arith.constant 0 : i32
    %268 = vector.broadcast %c0_i32_123 : i32 to vector<1x8xi32>
    %c1_i32_124 = arith.constant 1 : i32
    %269 = vector.broadcast %c1_i32_124 : i32 to vector<1x8xi32>
    %c2_i32_125 = arith.constant 2 : i32
    %270 = vector.broadcast %c2_i32_125 : i32 to vector<1x8xi32>
    %c3_i32_126 = arith.constant 3 : i32
    %271 = vector.broadcast %c3_i32_126 : i32 to vector<1x8xi32>
    %272 = tpu.concatenate %268, %269, %270, %271 in 1 : vector<1x8xi32>, vector<1x8xi32>, vector<1x8xi32>, vector<1x8xi32> -> vector<1x32xi32>
    %273 = vector.broadcast %267 : vector<512x1xi32> to vector<512x32xi32>
    %274 = vector.broadcast %272 : vector<1x32xi32> to vector<512x32xi32>
    %275 = arith.cmpi eq, %273, %274 : vector<512x32xi32>
    %276 = arith.extui %275 : vector<512x32xi1> to vector<512x32xi32>
    %277 = arith.sitofp %276 : vector<512x32xi32> to vector<512x32xf32>
    %278 = tpu.concatenate %257, %257, %257, %257 in 0 : vector<128x32xf32>, vector<128x32xf32>, vector<128x32xf32>, vector<128x32xf32> -> vector<512x32xf32>
    %279 = arith.mulf %278, %277 : vector<512x32xf32>
    %280 = tpu.concatenate %262, %262, %262, %262 in 0 : vector<128x32xf32>, vector<128x32xf32>, vector<128x32xf32>, vector<128x32xf32> -> vector<512x32xf32>
    %281 = arith.mulf %280, %277 : vector<512x32xf32>
    %cst_127 = arith.constant dense<0.000000e+00> : vector<16x512xf32>
    %282 = tpu.matmul %252, %279, %cst_127 {dimension_numbers = #tpu.dot_dimension_numbers<[1], [1], [0], [0], [0, 0, 1, 0], [], []>} : vector<16x32xf32>, vector<512x32xf32>, vector<16x512xf32> -> vector<16x512xf32>
    %cst_128 = arith.constant 0.353553385 : f32
    %283 = vector.broadcast %cst_128 : f32 to vector<16x512xf32>
    %284 = arith.mulf %282, %283 : vector<16x512xf32>
    %cst_129 = arith.constant dense<0xFF800000> : vector<16xf32>
    %285 = vector.multi_reduction <maximumf>, %284, %cst_129 [1] : vector<16x512xf32> to vector<16xf32>
    %286 = vector.shape_cast %285 : vector<16xf32> to vector<16x1xf32>
    %287 = vector.broadcast %286 : vector<16x1xf32> to vector<16x512xf32>
    %288 = arith.subf %284, %287 : vector<16x512xf32>
    %289 = math.exp %288 : vector<16x512xf32>
    %cst_130 = arith.constant dense<0.000000e+00> : vector<16x32xf32>
    %290 = tpu.matmul %289, %281, %cst_130 {dimension_numbers = #tpu.dot_dimension_numbers<[1], [0], [0], [1], [0, 0, 1, 1], [], []>} : vector<16x512xf32>, vector<512x32xf32>, vector<16x32xf32> -> vector<16x32xf32>
    %cst_131 = arith.constant dense<0.000000e+00> : vector<16x32xf32>
    %291 = tpu.matmul %289, %277, %cst_131 {dimension_numbers = #tpu.dot_dimension_numbers<[1], [0], [0], [1], [0, 0, 1, 1], [], []>} : vector<16x512xf32>, vector<512x32xf32>, vector<16x32xf32> -> vector<16x32xf32>
    %292 = arith.divf %290, %291 : vector<16x32xf32>
    %c1240 = arith.constant 1240 : index
    %c0_132 = arith.constant 0 : index
    %293 = vector.load %arg4[%c1240, %c0_132] : memref<1424x128xf32, #tpu.memory_space<vmem>>, vector<32x32xf32>
    %cst_133 = arith.constant dense<0.000000e+00> : vector<16x32xf32>
    %294 = tpu.matmul %292, %293, %cst_133 {dimension_numbers = #tpu.dot_dimension_numbers<[1], [0], [0], [1], [0, 0, 1, 1], [], []>} : vector<16x32xf32>, vector<32x32xf32>, vector<16x32xf32> -> vector<16x32xf32>
    %c1272 = arith.constant 1272 : index
    %c0_134 = arith.constant 0 : index
    %295 = vector.load %arg4[%c1272, %c0_134] : memref<1424x128xf32, #tpu.memory_space<vmem>>, vector<1x32xf32>
    %296 = vector.broadcast %295 : vector<1x32xf32> to vector<16x32xf32>
    %297 = arith.addf %294, %296 : vector<16x32xf32>
    %298 = arith.addf %247, %297 : vector<16x32xf32>
    %cst_135 = arith.constant dense<0.000000e+00> : vector<16xf32>
    %299 = vector.multi_reduction <add>, %298, %cst_135 [1] : vector<16x32xf32> to vector<16xf32>
    %300 = vector.shape_cast %299 : vector<16xf32> to vector<16x1xf32>
    %cst_136 = arith.constant 3.200000e+01 : f32
    %301 = vector.broadcast %cst_136 : f32 to vector<16x1xf32>
    %302 = arith.divf %300, %301 : vector<16x1xf32>
    %303 = vector.broadcast %302 : vector<16x1xf32> to vector<16x32xf32>
    %304 = arith.subf %298, %303 : vector<16x32xf32>
    %305 = arith.mulf %304, %304 : vector<16x32xf32>
    %cst_137 = arith.constant dense<0.000000e+00> : vector<16xf32>
    %306 = vector.multi_reduction <add>, %305, %cst_137 [1] : vector<16x32xf32> to vector<16xf32>
    %307 = vector.shape_cast %306 : vector<16xf32> to vector<16x1xf32>
    %cst_138 = arith.constant 3.200000e+01 : f32
    %308 = vector.broadcast %cst_138 : f32 to vector<16x1xf32>
    %309 = arith.divf %307, %308 : vector<16x1xf32>
    %310 = vector.broadcast %302 : vector<16x1xf32> to vector<16x32xf32>
    %311 = arith.subf %298, %310 : vector<16x32xf32>
    %cst_139 = arith.constant 9.99999974E-6 : f32
    %312 = vector.broadcast %cst_139 : f32 to vector<16x1xf32>
    %313 = arith.addf %309, %312 : vector<16x1xf32>
    %314 = math.rsqrt %313 : vector<16x1xf32>
    %315 = vector.broadcast %314 : vector<16x1xf32> to vector<16x32xf32>
    %316 = arith.mulf %311, %315 : vector<16x32xf32>
    %c1280 = arith.constant 1280 : index
    %c0_140 = arith.constant 0 : index
    %317 = vector.load %arg4[%c1280, %c0_140] : memref<1424x128xf32, #tpu.memory_space<vmem>>, vector<1x32xf32>
    %318 = vector.broadcast %317 : vector<1x32xf32> to vector<16x32xf32>
    %319 = arith.mulf %316, %318 : vector<16x32xf32>
    %c1288 = arith.constant 1288 : index
    %c0_141 = arith.constant 0 : index
    %320 = vector.load %arg4[%c1288, %c0_141] : memref<1424x128xf32, #tpu.memory_space<vmem>>, vector<1x32xf32>
    %321 = vector.broadcast %320 : vector<1x32xf32> to vector<16x32xf32>
    %322 = arith.addf %319, %321 : vector<16x32xf32>
    %c1296 = arith.constant 1296 : index
    %c0_142 = arith.constant 0 : index
    %323 = vector.load %arg4[%c1296, %c0_142] : memref<1424x128xf32, #tpu.memory_space<vmem>>, vector<32x64xf32>
    %cst_143 = arith.constant dense<0.000000e+00> : vector<16x64xf32>
    %324 = tpu.matmul %322, %323, %cst_143 {dimension_numbers = #tpu.dot_dimension_numbers<[1], [0], [0], [1], [0, 0, 1, 1], [], []>} : vector<16x32xf32>, vector<32x64xf32>, vector<16x64xf32> -> vector<16x64xf32>
    %c1328 = arith.constant 1328 : index
    %c0_144 = arith.constant 0 : index
    %325 = vector.load %arg4[%c1328, %c0_144] : memref<1424x128xf32, #tpu.memory_space<vmem>>, vector<1x64xf32>
    %326 = vector.broadcast %325 : vector<1x64xf32> to vector<16x64xf32>
    %327 = arith.addf %324, %326 : vector<16x64xf32>
    %cst_145 = arith.constant 0.000000e+00 : f32
    %328 = vector.broadcast %cst_145 : f32 to vector<16x64xf32>
    %329 = arith.maximumf %327, %328 : vector<16x64xf32>
    %c1336 = arith.constant 1336 : index
    %c0_146 = arith.constant 0 : index
    %330 = vector.load %arg4[%c1336, %c0_146] : memref<1424x128xf32, #tpu.memory_space<vmem>>, vector<64x32xf32>
    %cst_147 = arith.constant dense<0.000000e+00> : vector<16x32xf32>
    %331 = tpu.matmul %329, %330, %cst_147 {dimension_numbers = #tpu.dot_dimension_numbers<[1], [0], [0], [1], [0, 0, 1, 1], [], []>} : vector<16x64xf32>, vector<64x32xf32>, vector<16x32xf32> -> vector<16x32xf32>
    %c1400 = arith.constant 1400 : index
    %c0_148 = arith.constant 0 : index
    %332 = vector.load %arg4[%c1400, %c0_148] : memref<1424x128xf32, #tpu.memory_space<vmem>>, vector<1x32xf32>
    %333 = vector.broadcast %332 : vector<1x32xf32> to vector<16x32xf32>
    %334 = arith.addf %331, %333 : vector<16x32xf32>
    %335 = arith.addf %322, %334 : vector<16x32xf32>
    %cst_149 = arith.constant dense<0.000000e+00> : vector<16xf32>
    %336 = vector.multi_reduction <add>, %335, %cst_149 [1] : vector<16x32xf32> to vector<16xf32>
    %337 = vector.shape_cast %336 : vector<16xf32> to vector<16x1xf32>
    %cst_150 = arith.constant 3.200000e+01 : f32
    %338 = vector.broadcast %cst_150 : f32 to vector<16x1xf32>
    %339 = arith.divf %337, %338 : vector<16x1xf32>
    %340 = vector.broadcast %339 : vector<16x1xf32> to vector<16x32xf32>
    %341 = arith.subf %335, %340 : vector<16x32xf32>
    %342 = arith.mulf %341, %341 : vector<16x32xf32>
    %cst_151 = arith.constant dense<0.000000e+00> : vector<16xf32>
    %343 = vector.multi_reduction <add>, %342, %cst_151 [1] : vector<16x32xf32> to vector<16xf32>
    %344 = vector.shape_cast %343 : vector<16xf32> to vector<16x1xf32>
    %cst_152 = arith.constant 3.200000e+01 : f32
    %345 = vector.broadcast %cst_152 : f32 to vector<16x1xf32>
    %346 = arith.divf %344, %345 : vector<16x1xf32>
    %347 = vector.broadcast %339 : vector<16x1xf32> to vector<16x32xf32>
    %348 = arith.subf %335, %347 : vector<16x32xf32>
    %cst_153 = arith.constant 9.99999974E-6 : f32
    %349 = vector.broadcast %cst_153 : f32 to vector<16x1xf32>
    %350 = arith.addf %346, %349 : vector<16x1xf32>
    %351 = math.rsqrt %350 : vector<16x1xf32>
    %352 = vector.broadcast %351 : vector<16x1xf32> to vector<16x32xf32>
    %353 = arith.mulf %348, %352 : vector<16x32xf32>
    %c1408 = arith.constant 1408 : index
    %c0_154 = arith.constant 0 : index
    %354 = vector.load %arg4[%c1408, %c0_154] : memref<1424x128xf32, #tpu.memory_space<vmem>>, vector<1x32xf32>
    %355 = vector.broadcast %354 : vector<1x32xf32> to vector<16x32xf32>
    %356 = arith.mulf %353, %355 : vector<16x32xf32>
    %c1416 = arith.constant 1416 : index
    %c0_155 = arith.constant 0 : index
    %357 = vector.load %arg4[%c1416, %c0_155] : memref<1424x128xf32, #tpu.memory_space<vmem>>, vector<1x32xf32>
    %358 = vector.broadcast %357 : vector<1x32xf32> to vector<16x32xf32>
    %359 = arith.addf %356, %358 : vector<16x32xf32>
    %c368 = arith.constant 368 : index
    %c0_156 = arith.constant 0 : index
    %360 = vector.load %arg4[%c368, %c0_156] : memref<1424x128xf32, #tpu.memory_space<vmem>>, vector<32x32xf32>
    %cst_157 = arith.constant dense<0.000000e+00> : vector<16x32xf32>
    %361 = tpu.matmul %359, %360, %cst_157 {dimension_numbers = #tpu.dot_dimension_numbers<[1], [0], [0], [1], [0, 0, 1, 1], [], []>} : vector<16x32xf32>, vector<32x32xf32>, vector<16x32xf32> -> vector<16x32xf32>
    %c400 = arith.constant 400 : index
    %c0_158 = arith.constant 0 : index
    %362 = vector.load %arg4[%c400, %c0_158] : memref<1424x128xf32, #tpu.memory_space<vmem>>, vector<1x32xf32>
    %363 = vector.broadcast %362 : vector<1x32xf32> to vector<16x32xf32>
    %364 = arith.addf %361, %363 : vector<16x32xf32>
    %365 = math.tanh %364 : vector<16x32xf32>
    %c408 = arith.constant 408 : index
    %c0_159 = arith.constant 0 : index
    %366 = vector.load %arg4[%c408, %c0_159] : memref<1424x128xf32, #tpu.memory_space<vmem>>, vector<32x4xf32>
    %cst_160 = arith.constant dense<0.000000e+00> : vector<16x4xf32>
    %367 = tpu.matmul %365, %366, %cst_160 {dimension_numbers = #tpu.dot_dimension_numbers<[1], [0], [0], [1], [0, 0, 1, 1], [], []>} : vector<16x32xf32>, vector<32x4xf32>, vector<16x4xf32> -> vector<16x4xf32>
    %c440 = arith.constant 440 : index
    %c0_161 = arith.constant 0 : index
    %368 = vector.load %arg4[%c440, %c0_161] : memref<1424x128xf32, #tpu.memory_space<vmem>>, vector<1x4xf32>
    %369 = vector.broadcast %368 : vector<1x4xf32> to vector<16x4xf32>
    %370 = arith.addf %367, %369 : vector<16x4xf32>
    %c0_162 = arith.constant 0 : index
    %c0_163 = arith.constant 0 : index
    %c0_164 = arith.constant 0 : index
    %371 = vector.load %arg5[%c0_162, %c0_163, %c0_164] : memref<1x16x4xf32, #tpu.memory_space<vmem>>, vector<1x16x4xf32>
    %372 = vector.shape_cast %371 : vector<1x16x4xf32> to vector<16x4xf32>
    %373 = vector.shape_cast %370 : vector<16x4xf32> to vector<1x16x4xf32>
    tpu.vector_store %arg5[%c0_162, %c0_163, %c0_164], %373 {strides = array<i32>} : memref<1x16x4xf32, #tpu.memory_space<vmem>>, vector<1x16x4xf32>,
    return
  }
  func.func @transform_0(%arg0: i32) -> (i32, i32, i32) {
    %c0_i32 = arith.constant 0 : i32
    %c0_i32_0 = arith.constant 0 : i32
    %c0_i32_1 = arith.constant 0 : i32
    return %arg0, %c0_i32, %c0_i32_0 : i32, i32, i32
  }
  func.func @transform_1(%arg0: i32) -> (i32, i32, i32) {
    %c0_i32 = arith.constant 0 : i32
    %c0_i32_0 = arith.constant 0 : i32
    %c0_i32_1 = arith.constant 0 : i32
    return %arg0, %c0_i32, %c0_i32_0 : i32, i32, i32
  }
  func.func @transform_2(%arg0: i32) -> (i32, i32, i32) {
    %c0_i32 = arith.constant 0 : i32
    %c0_i32_0 = arith.constant 0 : i32
    %c0_i32_1 = arith.constant 0 : i32
    return %arg0, %c0_i32, %c0_i32_0 : i32, i32, i32
  }
  func.func @transform_3(%arg0: i32) -> (i32, i32) {
    %c0_i32 = arith.constant 0 : i32
    %c0_i32_0 = arith.constant 0 : i32
    %c0_i32_1 = arith.constant 0 : i32
    return %c0_i32, %c0_i32_0 : i32, i32
  }
  func.func @transform_4(%arg0: i32) -> (i32, i32, i32) {
    %c0_i32 = arith.constant 0 : i32
    %c0_i32_0 = arith.constant 0 : i32
    %c0_i32_1 = arith.constant 0 : i32
    return %arg0, %c0_i32, %c0_i32_0 : i32, i32, i32
  }
}

</mosaic_0001>

<bundles_post_ra>
// kernel: transformer_forward.1
= control target key start
LH: loop header
LB: loop body
LE: loop exit
PB: predicated region body
PF: predicated region fallthrough
CT: control target
= control target key end

     0   :  { %9 = vsyncpa [#allocation3], 0  ;;  %s7083_s15 = smov 0   ;;  %s10293_s0 = inlined_call_operand.vmem [shape: f32[2,128,4], index: 0, kind: input, shape index: {}]   ;;  %s10294_s1 = inlined_call_operand.vmem [shape: f32[2,16,4], index: 1, kind: input, shape index: {}]   ;;  %s10295_s2 = inlined_call_operand.vmem [shape: f32[2,1,2], index: 2, kind: input, shape index: {}]   ;;  %s10296_s3 = inlined_call_operand.hbm [shape: f32[1424,128], index: 3, kind: input, shape index: {}]   ;;  %s10297_s4 = inlined_call_operand.vmem [shape: f32[2,16,4], index: 4, kind: output, shape index: {}]  }
   0x1 LB: > { %s156_s18 = sshll.u32 %s10296_s3, 4  ;;  %s5950_s19 = sadd.s32 4294967295, %s7045_s15   ;;  %s7045_s15 = sphi %s7083_s15, %s15_s15   ;;  %s157_s18 = int_to_ptr.hbm [resolvable:$true] %s156_s18 }
   0x2   : > { %p5952_p0 = scmp.ge.s32.totalorder %s7045_s15, 1  ;;  %p145_p1 = scmp.lt.s32.totalorder %s7045_s15, 3 }
   0x3   : > { %p6578_p2 = scmp.eq.s32.totalorder %s5950_s19, 0  ;;  %s7047_s20 = smov [#allocation2]  }
   0x4   : > { %p146_p3 = pnand %p5952_p0, %p145_p1  ;;  %s158_s21 = sshll.u32 %s7047_s20, 4  ;;  %s159_s21 = int_to_ptr.vmem [resolvable:$true] %s158_s21 }
   0x5   : > { %s7048_s22 = smov 128   ;;  %s7049_s23 = smov 8  }
   0x6   : > { %p6574_p4 = pneg %p146_p3  ;;  %196 = sbr.rel (%p146_p3) target bundleno = 4845 (0x12ed), region = 36 }
   0x8   : > { %p6575_p5 = pnand %p6578_p2, %p6574_p4 }
   0xa   : > { %6577 = dma.hbm_to_vmem [thread:$0]  (!%p6575_p5), %s157_s18, 22784, %s159_s21, [#allocation3], %s7048_s22, %s7048_s22, %s7049_s23  }
   0xb   : > { %7040 = dma.done.wait (%p6578_p2), [#allocation3], 22784  }
   0xc   : > { %7042 = vsyncadd (%p6578_p2), [#allocation3], 4294944512  ;;  %p231_p6 = scmp.lt.s32.totalorder %s5950_s19, 1  ;;  %vm320_vm0 = vcmask 1043456   ;;  %vm271_vm1 = vcmask 31744   ;;  %v408_v14 = vld [vmem:[#allocation2 + $0x128] sm:$0xff] }
   0xd   : > { %v268_v0 = vld [vmem:[#allocation2 + $0x100] sm:$0xf]  ;;  %472 = vmatpush.msra.mxu1 %v408_v14  ;;  %v406_v16 = vld [vmem:[#allocation2 + $0x118] sm:$0xff]  ;;  %6562 = vmatpush.msra.mxu3 %v408_v14  ;;  %v405_v18 = vld [vmem:[#allocation2 + $0x110] sm:$0xff]  ;;  %vm411_vm2 = vcmask 261120   ;;  %vm818_vm3 = vcmask 64512  }
   0xe   : > { %s10446_s19 = smov (!%p231_p6, %s5950_s19), 1  ;;  %5963 = vmatpush.msk.msra.mxu0 %vm320_vm0, %v268_v0  ;;  %v407_v15 = vld [vmem:[#allocation2 + $0x120] sm:$0xff]  ;;  %v7135_v21 = vld [vmem:[#allocation2 + $0x108] ss:$0 sm:$0xff]  ;;  %v560_v60 = vld [vmem:[#allocation2 + $0x298] sm:$0xff]  ;;  %vm820_vm4 = vcmask 130048  }
   0xf   : > { %s6559_s24 = sshll.u32 %s10446_s19, 7  ;;  %473 = vmatpush.msra.mxu1 %v407_v15  ;;  %6563 = vmatpush.msra.mxu3 %v407_v15  ;;  %v679_v61 = vld [vmem:[#allocation2 + $0x2c0] sm:$0xff]  ;;  %v559_v62 = vld [vmem:[#allocation2 + $0x290] sm:$0xff]  ;;  %v678_v63 = vld [vmem:[#allocation2 + $0x2b8] sm:$0xff]  ;;  %vm822_vm5 = vcmask 195584   ;;  %s243_s30 = scalar_lea.vmem %s10295_s2, %s10446_s19 }
  0x10   : > { %s7100_s27 = scalar_lea.vmem %s10293_s0, %s6559_s24  ;;  %623 = vmatpush.msrb.mxu0 %v560_v60  ;;  %6566 = vmatpush.msra.mxu2 %v560_v60  ;;  %v535_v60 = vld [vmem:[#allocation2 + $0x50] sm:$0xff]  ;;  %s6560_s5 = sshll.u32 %s10446_s19, 4 }
  0x11   : > { %v249_v1 = vld [vmem:[%s7100_s27] sm:$0xff]  ;;  %v250_v2 = vld [vmem:[%s7100_s27 + $0x8] sm:$0xff]  ;;  %v251_v3 = vld [vmem:[%s7100_s27 + $0x10] sm:$0xff]  ;;  %474 = vmatpush.msra.mxu1 %v406_v16  ;;  %6564 = vmatpush.msra.mxu3 %v406_v16  ;;  %s8868_s8 = scalar_lea.vmem %s10294_s1, %s6560_s5  ;;  %s7054_s9 = smov 16  }
  0x12   : > { %5964 = vmatmul.msk.f32.vlgmr.msra.gmra.mxu0 %vm271_vm1, %v249_v1  ;;  %v252_v4 = vld [vmem:[%s7100_s27 + $0x18] sm:$0xff]  ;;  %v253_v5 = vld [vmem:[%s7100_s27 + $0x20] sm:$0xff]  ;;  %v254_v6 = vld [vmem:[%s7100_s27 + $0x28] sm:$0xff]  ;;  %6567 = vmatpush.msra.mxu2 %v559_v62  ;;  %s7055_s10 = smov 48   ;;  %s7056_s11 = smov 32  }
  0x13   : > { %v255_v7 = vld [vmem:[%s7100_s27 + $0x30] sm:$0xff]  ;;  %v256_v8 = vld [vmem:[%s7100_s27 + $0x38] sm:$0xff]  ;;  %v257_v9 = vld [vmem:[%s7100_s27 + $0x40] sm:$0xff]  ;;  %475 = vmatpush.msra.mxu1 %v405_v18  ;;  %6565 = vmatpush.msra.mxu3 %v405_v18  ;;  %s248_s14 = scalar_lea.vmem %s10297_s4, %s6560_s5 }
  0x14   : > { %v258_v10 = vld [vmem:[%s7100_s27 + $0x48] sm:$0xff]  ;;  %v259_v11 = vld [vmem:[%s7100_s27 + $0x50] sm:$0xff]  ;;  %v260_v12 = vld [vmem:[%s7100_s27 + $0x58] sm:$0xff]  ;;  %624 = vmatpush.msrb.mxu0 %v559_v62 }
  0x15   : > { %v261_v13 = vld [vmem:[%s7100_s27 + $0x60] sm:$0xff]  ;;  %v262_v17 = vld [vmem:[%s7100_s27 + $0x68] sm:$0xff]  ;;  %v263_v19 = vld [vmem:[%s7100_s27 + $0x70] sm:$0xff]  ;;  %694 = vmatpush.msrb.mxu3 %v679_v61 }
  0x16   : > { %v264_v20 = vld [vmem:[%s7100_s27 + $0x78] sm:$0xff]  ;;  %v558_v1 = vld [vmem:[#allocation2 + $0x288] sm:$0xff]  ;;  %v7169_v18 = vld [vmem:[#allocation2 + $0x130] ss:$0 sm:$0xff] }
  0x17   : > { %695 = vmatpush.msrb.mxu3 %v678_v63  ;;  %625 = vmatpush.msrb.mxu0 %v558_v1 }
  0x18   : > { %6568 = vmatpush.msra.mxu2 %v558_v1 }
  0x1a   : > { %5965 = vmatmul.msk.f32.gmra.mxu0 %vm271_vm1, %v250_v2  ;;  %v677_v2 = vld [vmem:[#allocation2 + $0x2b0] sm:$0xff] }
  0x1b   : > { %696 = vmatpush.msrb.mxu3 %v677_v2 }
  0x22   : > { %5966 = vmatmul.msk.f32.gmra.mxu0 %vm271_vm1, %v251_v3 }
  0x2a   : > { %5967 = vmatmul.msk.f32.gmra.mxu0 %vm271_vm1, %v252_v4 }
  0x32   : > { %5968 = vmatmul.msk.f32.gmra.mxu0 %vm271_vm1, %v253_v5  ;;  %v557_v5 = vld [vmem:[#allocation2 + $0x280] sm:$0xff] }
  0x33   : > { %626 = vmatpush.msrb.mxu0 %v557_v5  ;;  %6569 = vmatpush.msra.mxu2 %v557_v5 }
  0x3a   : > { %5969 = vmatmul.msk.f32.gmra.mxu0 %vm271_vm1, %v254_v6  ;;  %v676_v6 = vld [vmem:[#allocation2 + $0x2a8] sm:$0xff] }
  0x3b   : > { %697 = vmatpush.msrb.mxu3 %v676_v6 }
  0x42   : > { %5970 = vmatmul.msk.f32.gmra.mxu0 %vm271_vm1, %v255_v7  ;;  %v750_v7 = vld [vmem:[#allocation2 + $0x2e8] sm:$0xff] }
  0x43   : > { %765 = vmatpush.msra.mxu0 %v750_v7 }
  0x4a   : > { %5971 = vmatmul.msk.f32.gmra.mxu0 %vm271_vm1, %v256_v8  ;;  %v749_v8 = vld [vmem:[#allocation2 + $0x2e0] sm:$0xff] }
  0x4b   : > { %766 = vmatpush.msra.mxu0 %v749_v8  ;;  %v538_v8 = vld [vmem:[#allocation2 + $0x68] sm:$0xff] }
  0x52   : > { %5972 = vmatmul.msk.f32.gmra.mxu0 %vm271_vm1, %v257_v9 }
  0x5a   : > { %5973 = vmatmul.msk.f32.gmra.mxu0 %vm271_vm1, %v258_v10  ;;  %v748_v10 = vld [vmem:[#allocation2 + $0x2d8] sm:$0xff] }
  0x5b   : > { %767 = vmatpush.msra.mxu0 %v748_v10 }
  0x62   : > { %5974 = vmatmul.msk.f32.gmra.mxu0 %vm271_vm1, %v259_v11 }
  0x6a   : > { %5975 = vmatmul.msk.f32.gmra.mxu0 %vm271_vm1, %v260_v12 }
  0x72   : > { %5976 = vmatmul.msk.f32.gmra.mxu0 %vm271_vm1, %v261_v13  ;;  %v747_v13 = vld [vmem:[#allocation2 + $0x2d0] sm:$0xff] }
  0x73   : > { %768 = vmatpush.msra.mxu0 %v747_v13 }
  0x7a   : > { %5977 = vmatmul.msk.f32.gmra.mxu0 %vm271_vm1, %v262_v17 }
  0x82   : > { %5978 = vmatmul.msk.f32.gmra.mxu0 %vm271_vm1, %v263_v19 }
  0x8a   : > { %5979 = vmatmul.msk.f32.gmra.mxu0 %vm271_vm1, %v264_v20  ;;  %v525_v20 = vld [vmem:[#allocation2] sm:$0xff] }
  0x8f   : > { %v341_v22 = vpop.f32.mrf.mxu0 }
  0x90   : > { %v342_v23 = vadd.f32 %v7135_v21, %v341_v22 }
  0x92   : > { %6635 = vtanh.f32 %v342_v23 }
  0x97   : > { %v344_v24 = vpop.f32.mrf.mxu0 }
  0x98   : > { %v6636_v25 = vpop.eup %6635  ;;  %v345_v26 = vadd.f32 %v7135_v21, %v344_v24  ;;  %v526_v24 = vld [vmem:[#allocation2 + $0x8] sm:$0xff] }
  0x99   : > { %5980 = vmatmul.msk.f32.vlgmr.msra.gmra.mxu1 %vm411_vm2, %v6636_v25 }
  0x9a   : > { %6637 = vtanh.f32 %v345_v26 }
  0x9f   : > { %v347_v27 = vpop.f32.mrf.mxu0 }
  0xa0   : > { %v6638_v28 = vpop.eup %6637  ;;  %v348_v29 = vadd.f32 %v7135_v21, %v347_v27 }
  0xa1   : > { %5981 = vmatmul.msk.f32.gmra.mxu1 %vm411_vm2, %v6638_v28  ;;  %v527_v28 = vld [vmem:[#allocation2 + $0x10] sm:$0xff] }
  0xa2   : > { %6639 = vtanh.f32 %v348_v29 }
  0xa7   : > { %v350_v30 = vpop.f32.mrf.mxu0 }
  0xa8   : > { %v6640_v31 = vpop.eup %6639  ;;  %v351_v32 = vadd.f32 %v7135_v21, %v350_v30 }
  0xa9   : > { %5982 = vmatmul.msk.f32.gmra.mxu1 %vm411_vm2, %v6640_v31 }
  0xaa   : > { %6641 = vtanh.f32 %v351_v32  ;;  %v528_v32 = vld [vmem:[#allocation2 + $0x18] sm:$0xff] }
  0xaf   : > { %v353_v33 = vpop.f32.mrf.mxu0 }
  0xb0   : > { %v6642_v34 = vpop.eup %6641  ;;  %v354_v35 = vadd.f32 %v7135_v21, %v353_v33 }
  0xb1   : > { %5983 = vmatmul.msk.f32.gmra.mxu1 %vm411_vm2, %v6642_v34 }
  0xb2   : > { %6643 = vtanh.f32 %v354_v35 }
  0xb7   : > { %v356_v36 = vpop.f32.mrf.mxu0 }
  0xb8   : > { %v6644_v37 = vpop.eup %6643  ;;  %v357_v38 = vadd.f32 %v7135_v21, %v356_v36  ;;  %v529_v36 = vld [vmem:[#allocation2 + $0x20] sm:$0xff] }
  0xb9   : > { %5984 = vmatmul.msk.f32.gmra.mxu1 %vm411_vm2, %v6644_v37 }
  0xba   : > { %6645 = vtanh.f32 %v357_v38 }
  0xbf   : > { %v359_v39 = vpop.f32.mrf.mxu0 }
  0xc0   : > { %v6646_v40 = vpop.eup %6645  ;;  %v360_v41 = vadd.f32 %v7135_v21, %v359_v39 }
  0xc1   : > { %5985 = vmatmul.msk.f32.gmra.mxu1 %vm411_vm2, %v6646_v40  ;;  %v530_v40 = vld [vmem:[#allocation2 + $0x28] sm:$0xff] }
  0xc2   : > { %6647 = vtanh.f32 %v360_v41 }
  0xc7   : > { %v362_v42 = vpop.f32.mrf.mxu0 }
  0xc8   : > { %v6648_v43 = vpop.eup %6647  ;;  %v363_v44 = vadd.f32 %v7135_v21, %v362_v42 }
  0xc9   : > { %5986 = vmatmul.msk.f32.gmra.mxu1 %vm411_vm2, %v6648_v43 }
  0xca   : > { %6649 = vtanh.f32 %v363_v44  ;;  %v531_v44 = vld [vmem:[#allocation2 + $0x30] sm:$0xff] }
  0xcf   : > { %v365_v45 = vpop.f32.mrf.mxu0 }
  0xd0   : > { %v6650_v46 = vpop.eup %6649  ;;  %v366_v47 = vadd.f32 %v7135_v21, %v365_v45 }
  0xd1   : > { %5987 = vmatmul.msk.f32.gmra.mxu1 %vm411_vm2, %v6650_v46 }
  0xd2   : > { %6651 = vtanh.f32 %v366_v47 }
  0xd7   : > { %v368_v48 = vpop.f32.mrf.mxu0 }
  0xd8   : > { %v6652_v49 = vpop.eup %6651  ;;  %v369_v50 = vadd.f32 %v7135_v21, %v368_v48  ;;  %v532_v48 = vld [vmem:[#allocation2 + $0x38] sm:$0xff] }
  0xd9   : > { %5988 = vmatmul.msk.f32.gmra.mxu1 %vm411_vm2, %v6652_v49 }
  0xda   : > { %6653 = vtanh.f32 %v369_v50 }
  0xdf   : > { %v371_v51 = vpop.f32.mrf.mxu0 }
  0xe0   : > { %v6654_v52 = vpop.eup %6653  ;;  %v372_v53 = vadd.f32 %v7135_v21, %v371_v51 }
  0xe1   : > { %5989 = vmatmul.msk.f32.gmra.mxu1 %vm411_vm2, %v6654_v52  ;;  %v533_v52 = vld [vmem:[#allocation2 + $0x40] sm:$0xff] }
  0xe2   : > { %6655 = vtanh.f32 %v372_v53 }
  0xe7   : > { %v374_v54 = vpop.f32.mrf.mxu0 }
  0xe8   : > { %v6656_v55 = vpop.eup %6655  ;;  %v375_v56 = vadd.f32 %v7135_v21, %v374_v54 }
  0xe9   : > { %5990 = vmatmul.msk.f32.gmra.mxu1 %vm411_vm2, %v6656_v55 }
  0xea   : > { %6657 = vtanh.f32 %v375_v56  ;;  %v534_v56 = vld [vmem:[#allocation2 + $0x48] sm:$0xff] }
  0xef   : > { %v377_v57 = vpop.f32.mrf.mxu0 }
  0xf0   : > { %v6658_v58 = vpop.eup %6657  ;;  %v378_v59 = vadd.f32 %v7135_v21, %v377_v57 }
  0xf1   : > { %5991 = vmatmul.msk.f32.gmra.mxu1 %vm411_vm2, %v6658_v58 }
  0xf2   : > { %6659 = vtanh.f32 %v378_v59 }
  0xf7   : > { %v380_v0 = vpop.f32.mrf.mxu0 }
  0xf8   : > { %v6660_v3 = vpop.eup %6659  ;;  %v381_v4 = vadd.f32 %v7135_v21, %v380_v0  ;;  %v536_v0 = vld [vmem:[#allocation2 + $0x58] sm:$0xff] }
  0xf9   : > { %5992 = vmatmul.msk.f32.gmra.mxu1 %vm411_vm2, %v6660_v3 }
  0xfa   : > { %6661 = vtanh.f32 %v381_v4  ;;  %v537_v4 = vld [vmem:[#allocation2 + $0x60] sm:$0xff] }
  0xff   : > { %v383_v9 = vpop.f32.mrf.mxu0 }
 0x100   : > { %v6662_v11 = vpop.eup %6661  ;;  %v384_v12 = vadd.f32 %v7135_v21, %v383_v9 }
 0x101   : > { %5993 = vmatmul.msk.f32.gmra.mxu1 %vm411_vm2, %v6662_v11 }
 0x102   : > { %6663 = vtanh.f32 %v384_v12  ;;  %v539_v12 = vld [vmem:[#allocation2 + $0x70] sm:$0xff] }
 0x107   : > { %v386_v14 = vpop.f32.mrf.mxu0 }
 0x108   : > { %v6664_v15 = vpop.eup %6663  ;;  %v387_v16 = vadd.f32 %v7135_v21, %v386_v14 }
 0x109   : > { %5994 = vmatmul.msk.f32.gmra.mxu1 %vm411_vm2, %v6664_v15 }
 0x10a   : > { %6665 = vtanh.f32 %v387_v16  ;;  %v540_v16 = vld [vmem:[#allocation2 + $0x78] sm:$0xff] }
 0x110   : > { %v6666_v17 = vpop.eup %6665 }
 0x111   : > { %5995 = vmatmul.msk.f32.vlgmr.msra.gmra.mxu3 %vm411_vm2, %v6666_v17 }
 0x116   : > { %v477_v19 = vpop.f32.mrf.mxu1 }
 0x117   : > { %v478_v22 = vadd.f32 %v7169_v18, %v477_v19 }
 0x119   : > { %v7172_v23 = vadd.f32 %v525_v20, %v478_v22 }
 0x11b   : > { %10349 = vst [vmem:[#allocation5_spill] sm:$0xff] %v7172_v23  ;;  %5996 = vmatmul.msk.f32.vlgmr.msrb.gmra.mxu0 %vm411_vm2, %v7172_v23  ;;  %6012 = vmatmul.msk.f32.vlgmr.msrb.gmra.mxu3 %vm411_vm2, %v7172_v23 }
 0x11e   : > { %v480_v21 = vpop.f32.mrf.mxu1 }
 0x11f   : > { %v481_v25 = vadd.f32 %v7169_v18, %v480_v21 }
 0x121   : > { %v7179_v26 = vadd.f32 %v526_v24, %v481_v25 }
 0x123   : > { %10350 = vst [vmem:[#allocation6_spill] sm:$0xff] %v7179_v26  ;;  %5997 = vmatmul.msk.f32.vlgmr.msra.gmra.mxu2 %vm411_vm2, %v7179_v26  ;;  %6013 = vmatmul.msk.f32.gmra.mxu3 %vm411_vm2, %v7179_v26 }
 0x124   : > { %6028 = vmatmul.msk.f32.vlgmr.msra.gmra.mxu0 %vm411_vm2, %v7172_v23 }
 0x126   : > { %v483_v27 = vpop.f32.mrf.mxu1 }
 0x127   : > { %v484_v29 = vadd.f32 %v7169_v18, %v483_v27 }
 0x129   : > { %v7188_v30 = vadd.f32 %v527_v28, %v484_v29 }
 0x12b   : > { %10351 = vst [vmem:[#allocation7_spill] sm:$0xff] %v7188_v30  ;;  %5998 = vmatmul.msk.f32.gmra.mxu2 %vm411_vm2, %v7188_v30  ;;  %6014 = vmatmul.msk.f32.gmra.mxu3 %vm411_vm2, %v7188_v30 }
 0x12c   : > { %6029 = vmatmul.msk.f32.gmra.mxu0 %vm411_vm2, %v7179_v26 }
 0x12e   : > { %v486_v31 = vpop.f32.mrf.mxu1 }
 0x12f   : > { %v487_v33 = vadd.f32 %v7169_v18, %v486_v31 }
 0x131   : > { %v7197_v34 = vadd.f32 %v528_v32, %v487_v33 }
 0x133   : > { %10352 = vst [vmem:[#allocation8_spill] sm:$0xff] %v7197_v34  ;;  %5999 = vmatmul.msk.f32.gmra.mxu2 %vm411_vm2, %v7197_v34  ;;  %6015 = vmatmul.msk.f32.gmra.mxu3 %vm411_vm2, %v7197_v34 }
 0x134   : > { %6030 = vmatmul.msk.f32.gmra.mxu0 %vm411_vm2, %v7188_v30 }
 0x136   : > { %v489_v35 = vpop.f32.mrf.mxu1 }
 0x137   : > { %v490_v37 = vadd.f32 %v7169_v18, %v489_v35 }
 0x139   : > { %v7206_v38 = vadd.f32 %v529_v36, %v490_v37 }
 0x13b   : > { %10353 = vst [vmem:[#allocation9_spill] sm:$0xff] %v7206_v38  ;;  %6000 = vmatmul.msk.f32.gmra.mxu2 %vm411_vm2, %v7206_v38  ;;  %6016 = vmatmul.msk.f32.gmra.mxu3 %vm411_vm2, %v7206_v38 }
 0x13c   : > { %6031 = vmatmul.msk.f32.gmra.mxu0 %vm411_vm2, %v7197_v34 }
 0x13e   : > { %v492_v39 = vpop.f32.mrf.mxu1 }
 0x13f   : > { %v493_v41 = vadd.f32 %v7169_v18, %v492_v39 }
 0x141   : > { %v7215_v42 = vadd.f32 %v530_v40, %v493_v41 }
 0x143   : > { %10354 = vst [vmem:[#allocation10_spill] sm:$0xff] %v7215_v42  ;;  %6001 = vmatmul.msk.f32.gmra.mxu2 %vm411_vm2, %v7215_v42  ;;  %6017 = vmatmul.msk.f32.gmra.mxu3 %vm411_vm2, %v7215_v42 }
 0x144   : > { %6032 = vmatmul.msk.f32.gmra.mxu0 %vm411_vm2, %v7206_v38 }
 0x146   : > { %v495_v43 = vpop.f32.mrf.mxu1 }
 0x147   : > { %v496_v45 = vadd.f32 %v7169_v18, %v495_v43 }
 0x149   : > { %v7224_v46 = vadd.f32 %v531_v44, %v496_v45 }
 0x14b   : > { %10355 = vst [vmem:[#allocation11_spill] sm:$0xff] %v7224_v46  ;;  %6002 = vmatmul.msk.f32.gmra.mxu2 %vm411_vm2, %v7224_v46  ;;  %6018 = vmatmul.msk.f32.gmra.mxu3 %vm411_vm2, %v7224_v46 }
 0x14c   : > { %6033 = vmatmul.msk.f32.gmra.mxu0 %vm411_vm2, %v7215_v42 }
 0x14e   : > { %v498_v47 = vpop.f32.mrf.mxu1 }
 0x14f   : > { %v499_v49 = vadd.f32 %v7169_v18, %v498_v47 }
 0x151   : > { %v7233_v50 = vadd.f32 %v532_v48, %v499_v49  ;;  %v7050_v49 = vmov 1  }
 0x153   : > { %10356 = vst [vmem:[#allocation12_spill] sm:$0xff] %v7233_v50  ;;  %6003 = vmatmul.msk.f32.gmra.mxu2 %vm411_vm2, %v7233_v50  ;;  %6019 = vmatmul.msk.f32.gmra.mxu3 %vm411_vm2, %v7233_v50 }
 0x154   : > { %6034 = vmatmul.msk.f32.gmra.mxu0 %vm411_vm2, %v7224_v46 }
 0x156   : > { %v501_v51 = vpop.f32.mrf.mxu1 }
 0x157   : > { %v502_v53 = vadd.f32 %v7169_v18, %v501_v51  ;;  %v819_v51 = vsel %vm818_vm3, 0, %v7050_v49 }
 0x159   : > { %v7242_v54 = vadd.f32 %v533_v52, %v502_v53  ;;  %v821_v53 = vsel %vm820_vm4, %v819_v51, 2 }
 0x15b   : > { %10357 = vst [vmem:[#allocation13_spill] sm:$0xff] %v7242_v54  ;;  %6004 = vmatmul.msk.f32.gmra.mxu2 %vm411_vm2, %v7242_v54  ;;  %6020 = vmatmul.msk.f32.gmra.mxu3 %vm411_vm2, %v7242_v54 }
 0x15c   : > { %6035 = vmatmul.msk.f32.gmra.mxu0 %vm411_vm2, %v7233_v50 }
 0x15e   : > { %v504_v55 = vpop.f32.mrf.mxu1 }
 0x15f   : > { %v505_v57 = vadd.f32 %v7169_v18, %v504_v55  ;;  %v823_v55 = vsel %vm822_vm5, %v821_v53, 3 }
 0x161   : > { %v7251_v58 = vadd.f32 %v534_v56, %v505_v57  ;;  %v7358_v57 = vperm.slane %v823_v55, 0 }
 0x163   : > { %10358 = vst [vmem:[#allocation14_spill] sm:$0xff] %v7251_v58  ;;  %6005 = vmatmul.msk.f32.gmra.mxu2 %vm411_vm2, %v7251_v58  ;;  %6021 = vmatmul.msk.f32.gmra.mxu3 %vm411_vm2, %v7251_v58  ;;  %vm6046_vm6 = vcmp.eq.s32.totalorder %v7358_v57, 2  ;;  %vm6047_vm7 = vcmp.eq.s32.totalorder %v7358_v57, 3  ;;  %vm6044_vm8 = vcmp.eq.s32.totalorder %v7358_v57, 0  ;;  %vm6045_vm9 = vcmp.eq.s32.totalorder %v7358_v57, 1 }
 0x164   : > { %6036 = vmatmul.msk.f32.gmra.mxu0 %vm411_vm2, %v7242_v54  ;;  %10365 = vst [vmem:[#allocation21_spill] sm:$0xff] %v7358_v57 }
 0x166   : > { %v507_v59 = vpop.f32.mrf.mxu1 }
 0x167   : > { %v508_v61 = vadd.f32 %v7169_v18, %v507_v59 }
 0x169   : > { %v7260_v62 = vadd.f32 %v535_v60, %v508_v61  ;;  %v7363_v60 = vld [vmem:[#allocation2 + $0x2c8] ss:$0 sm:$0xff] }
 0x16b   : > { %10359 = vst [vmem:[#allocation15_spill] sm:$0xff] %v7260_v62  ;;  %6006 = vmatmul.msk.f32.gmra.mxu2 %vm411_vm2, %v7260_v62  ;;  %6022 = vmatmul.msk.f32.gmra.mxu3 %vm411_vm2, %v7260_v62 }
 0x16c   : > { %6037 = vmatmul.msk.f32.gmra.mxu0 %vm411_vm2, %v7251_v58 }
 0x16e   : > { %v510_v63 = vpop.f32.mrf.mxu1 }
 0x16f   : > { %v511_v1 = vadd.f32 %v7169_v18, %v510_v63 }
 0x171   : > { %v7269_v2 = vadd.f32 %v536_v0, %v511_v1  ;;  %v10298_v0 = vmov 0.0  }
 0x172   : > { %v7372_v1 = vsel %vm6046_vm6, 1.0, %v10298_v0 }
 0x173   : > { %10360 = vst [vmem:[#allocation16_spill] sm:$0xff] %v7269_v2  ;;  %6007 = vmatmul.msk.f32.gmra.mxu2 %vm411_vm2, %v7269_v2  ;;  %6023 = vmatmul.msk.f32.gmra.mxu3 %vm411_vm2, %v7269_v2 }
 0x174   : > { %6038 = vmatmul.msk.f32.gmra.mxu0 %vm411_vm2, %v7260_v62  ;;  %10366 = vst [vmem:[#allocation22_spill] sm:$0xff] %v7372_v1 }
 0x176   : > { %v513_v3 = vpop.f32.mrf.mxu1 }
 0x177   : > { %v514_v5 = vadd.f32 %v7169_v18, %v513_v3 }
 0x179   : > { %v7278_v6 = vadd.f32 %v537_v4, %v514_v5  ;;  %v7378_v4 = vsel %vm6047_vm7, 1.0, %v10298_v0  ;;  %v7383_v5 = vsel %vm6044_vm8, 1.0, %v10298_v0 }
 0x17a   : > { %10367 = vst [vmem:[#allocation23_spill] sm:$0xff] %v7378_v4 }
 0x17b   : > { %10361 = vst [vmem:[#allocation17_spill] sm:$0xff] %v7278_v6  ;;  %6008 = vmatmul.msk.f32.gmra.mxu2 %vm411_vm2, %v7278_v6  ;;  %6024 = vmatmul.msk.f32.gmra.mxu3 %vm411_vm2, %v7278_v6 }
 0x17c   : > { %6039 = vmatmul.msk.f32.gmra.mxu0 %vm411_vm2, %v7269_v2  ;;  %10368 = vst [vmem:[#allocation24_spill] sm:$0xff] %v7383_v5 }
 0x17e   : > { %v516_v7 = vpop.f32.mrf.mxu1 }
 0x17f   : > { %v517_v9 = vadd.f32 %v7169_v18, %v516_v7  ;;  %v7388_v7 = vsel %vm6045_vm9, 1.0, %v10298_v0 }
 0x180   : > { %10369 = vst [vmem:[#allocation25_spill] sm:$0xff] %v7388_v7 }
 0x181   : > { %v7287_v10 = vadd.f32 %v538_v8, %v517_v9 }
 0x183   : > { %10362 = vst [vmem:[#allocation18_spill] sm:$0xff] %v7287_v10  ;;  %6009 = vmatmul.msk.f32.gmra.mxu2 %vm411_vm2, %v7287_v10  ;;  %6025 = vmatmul.msk.f32.gmra.mxu3 %vm411_vm2, %v7287_v10 }
 0x184   : > { %6040 = vmatmul.msk.f32.gmra.mxu0 %vm411_vm2, %v7278_v6 }
 0x186   : > { %v519_v11 = vpop.f32.mrf.mxu1 }
 0x187   : > { %v520_v13 = vadd.f32 %v7169_v18, %v519_v11 }
 0x189   : > { %v7296_v14 = vadd.f32 %v539_v12, %v520_v13 }
 0x18b   : > { %10363 = vst [vmem:[#allocation19_spill] sm:$0xff] %v7296_v14  ;;  %6010 = vmatmul.msk.f32.gmra.mxu2 %vm411_vm2, %v7296_v14  ;;  %6026 = vmatmul.msk.f32.gmra.mxu3 %vm411_vm2, %v7296_v14 }
 0x18c   : > { %6041 = vmatmul.msk.f32.gmra.mxu0 %vm411_vm2, %v7287_v10 }
 0x194   : > { %6042 = vmatmul.msk.f32.gmra.mxu0 %vm411_vm2, %v7296_v14  ;;  %v522_v15 = vpop.f32.mrf.mxu3 }
 0x195   : > { %v523_v17 = vadd.f32 %v7169_v18, %v522_v15 }
 0x197   : > { %v7307_v19 = vadd.f32 %v540_v16, %v523_v17 }
 0x198   : > { %v7321_v24 = vpop.f32.mrf.mxu0 }
 0x199   : > { %10364 = vst [vmem:[#allocation20_spill] sm:$0xff] %v7307_v19  ;;  %6011 = vmatmul.msk.f32.gmra.mxu2 %vm411_vm2, %v7307_v19  ;;  %6027 = vmatmul.msk.f32.gmra.mxu3 %vm411_vm2, %v7307_v19 }
 0x19c   : > { %6043 = vmatmul.msk.f32.gmra.mxu0 %vm411_vm2, %v7307_v19 }
 0x19e   : > { %v7315_v20 = vpop.f32.mrf.mxu3 }
 0x1a1   : > { %v7327_v27 = vpop.f32.mrf.mxu0 }
 0x1a6   : > { %v7317_v22 = vpop.f32.mrf.mxu3 }
 0x1a9   : > { %v7331_v29 = vpop.f32.mrf.mxu0 }
 0x1ae   : > { %v7319_v21 = vpop.f32.mrf.mxu3 }
 0x1b1   : > { %v7335_v32 = vpop.f32.mrf.mxu0 }
 0x1b6   : > { %v7323_v18 = vpop.f32.mrf.mxu3 }
 0x1b9   : > { %v7339_v35 = vpop.f32.mrf.mxu0 }
 0x1be   : > { %v7325_v25 = vpop.f32.mrf.mxu3 }
 0x1c1   : > { %v7345_v39 = vpop.f32.mrf.mxu0 }
 0x1c6   : > { %v7329_v28 = vpop.f32.mrf.mxu3 }
 0x1c9   : > { %v7349_v41 = vpop.f32.mrf.mxu0 }
 0x1ce   : > { %v7333_v31 = vpop.f32.mrf.mxu3 }
 0x1d1   : > { %v7351_v44 = vpop.f32.mrf.mxu0 }
 0x1d6   : > { %v7337_v33 = vpop.f32.mrf.mxu3 }
 0x1d9   : > { %v7353_v47 = vpop.f32.mrf.mxu0 }
 0x1de   : > { %v7341_v36 = vpop.f32.mrf.mxu3 }
 0x1e1   : > { %v7355_v52 = vpop.f32.mrf.mxu0 }
 0x1e6   : > { %v7343_v37 = vpop.f32.mrf.mxu3 }
 0x1e9   : > { %v7360_v59 = vpop.f32.mrf.mxu0 }
 0x1ee   : > { %v7347_v40 = vpop.f32.mrf.mxu3 }
 0x1f1   : > { %v7401_v17 = vpop.f32.mrf.mxu0 }
 0x1f6   : > { %v732_v43 = vpop.f32.mrf.mxu3 }
 0x1fe   : > { %v735_v45 = vpop.f32.mrf.mxu3 }
 0x206   : > { %v738_v48 = vpop.f32.mrf.mxu3 }
 0x207   : > { %v739_v13 = vadd.f32 %v7363_v60, %v738_v48  ;;  %v736_v48 = vadd.f32 %v7363_v60, %v735_v45 }
 0x209   : > { %v862_v53 = vmul.f32 %v7383_v5, %v739_v13  ;;  %v878_v55 = vmul.f32 %v7388_v7, %v739_v13  ;;  %v861_v45 = vmul.f32 %v7383_v5, %v736_v48 }
 0x20e   : > { %v741_v56 = vpop.f32.mrf.mxu3 }
 0x20f   : > { %v742_v3 = vadd.f32 %v7363_v60, %v741_v56  ;;  %v894_v56 = vmul.f32 %v7372_v1, %v739_v13 }
 0x211   : > { %v863_v15 = vmul.f32 %v7383_v5, %v742_v3  ;;  %v879_v16 = vmul.f32 %v7388_v7, %v742_v3  ;;  %v895_v49 = vmul.f32 %v7372_v1, %v742_v3  ;;  %v911_v51 = vmul.f32 %v7378_v4, %v742_v3 }
 0x212   : > { %v877_v3 = vmul.f32 %v7388_v7, %v736_v48 }
 0x21c   : > { %v744_v61 = vpop.f32.mrf.mxu3 }
 0x21d   : > { %v745_v63 = vadd.f32 %v7363_v60, %v744_v61  ;;  %v910_v61 = vmul.f32 %v7378_v4, %v739_v13 }
 0x21f   : > { %v896_v8 = vmul.f32 %v7372_v1, %v745_v63  ;;  %v912_v9 = vmul.f32 %v7378_v4, %v745_v63  ;;  %v864_v11 = vmul.f32 %v7383_v5, %v745_v63  ;;  %v880_v12 = vmul.f32 %v7388_v7, %v745_v63 }
 0x220   : > { %v733_v63 = vadd.f32 %v7363_v60, %v732_v43  ;;  %v730_v43 = vadd.f32 %v7363_v60, %v7347_v40 }
 0x221   : > { %6052 = vmatpush.xpose.msk.msrb.mxu1 %vm411_vm2, %v864_v11  ;;  %6084 = vmatpush.xpose.msk.msrb.mxu2 %vm411_vm2, %v880_v12  ;;  %v7425_v11 = vpop.f32.mrf.mxu0 }
 0x222   : > { %6116 = vmatpush.xpose.msk.msra.mxu3 %vm411_vm2, %v896_v8  ;;  %6148 = vmatpush.xpose.msk.msrb.mxu0 %vm411_vm2, %v912_v9  ;;  %v893_v8 = vmul.f32 %v7372_v1, %v736_v48  ;;  %v909_v9 = vmul.f32 %v7378_v4, %v736_v48  ;;  %v860_v12 = vmul.f32 %v7383_v5, %v733_v63 }
 0x223   : > { %v876_v13 = vmul.f32 %v7388_v7, %v733_v63  ;;  %v859_v40 = vmul.f32 %v7383_v5, %v730_v43  ;;  %v891_v48 = vmul.f32 %v7372_v1, %v730_v43 }
 0x225   : > { %6053 = vmatpush.xpose.msk.msrb.mxu1 %vm411_vm2, %v863_v15  ;;  %6085 = vmatpush.xpose.msk.msrb.mxu2 %vm411_vm2, %v879_v16  ;;  %v892_v15 = vmul.f32 %v7372_v1, %v733_v63  ;;  %v908_v16 = vmul.f32 %v7378_v4, %v733_v63 }
 0x226   : > { %6117 = vmatpush.xpose.msk.msra.mxu3 %vm411_vm2, %v895_v49  ;;  %6149 = vmatpush.xpose.msk.msrb.mxu0 %vm411_vm2, %v911_v51  ;;  %v727_v49 = vadd.f32 %v7363_v60, %v7343_v37  ;;  %v875_v51 = vmul.f32 %v7388_v7, %v730_v43 }
 0x228   : > { %v858_v37 = vmul.f32 %v7383_v5, %v727_v49  ;;  %v890_v63 = vmul.f32 %v7372_v1, %v727_v49 }
 0x229   : > { %6054 = vmatpush.xpose.msk.msrb.mxu1 %vm411_vm2, %v862_v53  ;;  %6086 = vmatpush.xpose.msk.msrb.mxu2 %vm411_vm2, %v878_v55  ;;  %v907_v53 = vmul.f32 %v7378_v4, %v730_v43  ;;  %v724_v55 = vadd.f32 %v7363_v60, %v7341_v36  ;;  %v721_v36 = vadd.f32 %v7363_v60, %v7337_v33 }
 0x22a   : > { %6118 = vmatpush.xpose.msk.msra.mxu3 %vm411_vm2, %v894_v56  ;;  %6150 = vmatpush.xpose.msk.msrb.mxu0 %vm411_vm2, %v910_v61  ;;  %v874_v56 = vmul.f32 %v7388_v7, %v727_v49  ;;  %v7453_v61 = vpop.f32.mrf.mxu0 }
 0x22b   : > { %v905_v43 = vmul.f32 %v7378_v4, %v724_v55  ;;  %v856_v33 = vmul.f32 %v7383_v5, %v721_v36 }
 0x22d   : > { %6055 = vmatpush.xpose.msk.msrb.mxu1 %vm411_vm2, %v861_v45  ;;  %6087 = vmatpush.xpose.msk.msrb.mxu2 %vm411_vm2, %v877_v3  ;;  %v906_v45 = vmul.f32 %v7378_v4, %v727_v49  ;;  %v857_v3 = vmul.f32 %v7383_v5, %v724_v55 }
 0x22e   : > { %6119 = vmatpush.xpose.msk.msra.mxu3 %vm411_vm2, %v893_v8  ;;  %6151 = vmatpush.xpose.msk.msrb.mxu0 %vm411_vm2, %v909_v9  ;;  %v873_v8 = vmul.f32 %v7388_v7, %v724_v55  ;;  %v889_v9 = vmul.f32 %v7372_v1, %v724_v55  ;;  %v712_v55 = vadd.f32 %v7363_v60, %v7325_v25 }
 0x230   : > { %v853_v25 = vmul.f32 %v7383_v5, %v712_v55 }
 0x231   : > { %6056 = vmatpush.xpose.msk.msrb.mxu1 %vm411_vm2, %v860_v12  ;;  %6088 = vmatpush.xpose.msk.msrb.mxu2 %vm411_vm2, %v876_v13  ;;  %v718_v12 = vadd.f32 %v7363_v60, %v7333_v31  ;;  %v872_v13 = vmul.f32 %v7388_v7, %v721_v36  ;;  %v715_v31 = vadd.f32 %v7363_v60, %v7329_v28 }
 0x232   : > { %6120 = vmatpush.xpose.msk.msra.mxu3 %vm411_vm2, %v892_v15  ;;  %6152 = vmatpush.xpose.msk.msrb.mxu0 %vm411_vm2, %v908_v16  ;;  %v888_v15 = vmul.f32 %v7372_v1, %v721_v36  ;;  %v904_v16 = vmul.f32 %v7378_v4, %v721_v36  ;;  %v7479_v49 = vpop.f32.mrf.mxu0  ;;  %v869_v36 = vmul.f32 %v7388_v7, %v712_v55 }
 0x233   : > { %v854_v28 = vmul.f32 %v7383_v5, %v715_v31 }
 0x235   : > { %6057 = vmatpush.xpose.msk.msrb.mxu1 %vm411_vm2, %v859_v40  ;;  %6089 = vmatpush.xpose.msk.msrb.mxu2 %vm411_vm2, %v875_v51  ;;  %v855_v40 = vmul.f32 %v7383_v5, %v718_v12  ;;  %v871_v51 = vmul.f32 %v7388_v7, %v718_v12 }
 0x236   : > { %6121 = vmatpush.xpose.msk.msra.mxu3 %vm411_vm2, %v891_v48  ;;  %6153 = vmatpush.xpose.msk.msrb.mxu0 %vm411_vm2, %v907_v53  ;;  %v887_v48 = vmul.f32 %v7372_v1, %v718_v12  ;;  %v903_v53 = vmul.f32 %v7378_v4, %v718_v12 }
 0x239   : > { %6058 = vmatpush.xpose.msk.msrb.mxu1 %vm411_vm2, %v858_v37  ;;  %6090 = vmatpush.xpose.msk.msrb.mxu2 %vm411_vm2, %v874_v56  ;;  %v870_v37 = vmul.f32 %v7388_v7, %v715_v31  ;;  %v886_v56 = vmul.f32 %v7372_v1, %v715_v31 }
 0x23a   : > { %6122 = vmatpush.xpose.msk.msra.mxu3 %vm411_vm2, %v890_v63  ;;  %6154 = vmatpush.xpose.msk.msrb.mxu0 %vm411_vm2, %v906_v45  ;;  %v902_v63 = vmul.f32 %v7378_v4, %v715_v31  ;;  %v709_v45 = vadd.f32 %v7363_v60, %v7323_v18  ;;  %v706_v18 = vadd.f32 %v7363_v60, %v7319_v21 }
 0x23b   : > { %v703_v21 = vadd.f32 %v7363_v60, %v7317_v22  ;;  %v700_v22 = vadd.f32 %v7363_v60, %v7315_v20  ;;  %v7550_v20 = vld [vmem:[#allocation2 + $0x2a0] ss:$0 sm:$0xff] }
 0x23c   : > { %v868_v12 = vmul.f32 %v7388_v7, %v709_v45  ;;  %v867_v31 = vmul.f32 %v7388_v7, %v706_v18 }
 0x23d   : > { %6059 = vmatpush.xpose.msk.msrb.mxu1 %vm411_vm2, %v857_v3  ;;  %6091 = vmatpush.xpose.msk.msrb.mxu2 %vm411_vm2, %v873_v8  ;;  %v812_v3 = vpop.f32.mrf.mxu0  ;;  %v885_v8 = vmul.f32 %v7372_v1, %v712_v55  ;;  %v849_v60 = vmul.f32 %v7383_v5, %v700_v22 }
 0x23e   : > { %6123 = vmatpush.xpose.msk.msra.mxu3 %vm411_vm2, %v889_v9  ;;  %6155 = vmatpush.xpose.msk.msrb.mxu0 %vm411_vm2, %v905_v43  ;;  %v901_v9 = vmul.f32 %v7378_v4, %v712_v55  ;;  %v852_v43 = vmul.f32 %v7383_v5, %v709_v45  ;;  %v850_v55 = vmul.f32 %v7383_v5, %v703_v21 }
 0x241   : > { %6060 = vmatpush.xpose.msk.msrb.mxu1 %vm411_vm2, %v856_v33  ;;  %6092 = vmatpush.xpose.msk.msrb.mxu2 %vm411_vm2, %v872_v13  ;;  %v7517_v33 = vpop.f32.mrf.mxu2  ;;  %v884_v13 = vmul.f32 %v7372_v1, %v709_v45 }
 0x242   : > { %6124 = vmatpush.xpose.msk.msra.mxu3 %vm411_vm2, %v888_v15  ;;  %6156 = vmatpush.xpose.msk.msrb.mxu0 %vm411_vm2, %v904_v16  ;;  %v900_v15 = vmul.f32 %v7378_v4, %v709_v45  ;;  %v851_v16 = vmul.f32 %v7383_v5, %v706_v18 }
 0x245   : > { %6061 = vmatpush.xpose.msk.msrb.mxu1 %vm411_vm2, %v855_v40  ;;  %6093 = vmatpush.xpose.msk.msrb.mxu2 %vm411_vm2, %v871_v51  ;;  %v883_v40 = vmul.f32 %v7372_v1, %v706_v18  ;;  %v899_v51 = vmul.f32 %v7378_v4, %v706_v18 }
 0x246   : > { %6125 = vmatpush.xpose.msk.msra.mxu3 %vm411_vm2, %v887_v48  ;;  %6157 = vmatpush.xpose.msk.msrb.mxu0 %vm411_vm2, %v903_v53  ;;  %v815_v48 = vpop.f32.mrf.mxu0  ;;  %v7537_v53 = vld [vmem:[#allocation2 + $0x2f0] ss:$0 sm:$0xff] }
 0x249   : > { %6062 = vmatpush.xpose.msk.msrb.mxu1 %vm411_vm2, %v854_v28  ;;  %6094 = vmatpush.xpose.msk.msrb.mxu2 %vm411_vm2, %v870_v37  ;;  %v866_v28 = vmul.f32 %v7388_v7, %v703_v21  ;;  %v882_v37 = vmul.f32 %v7372_v1, %v703_v21  ;;  %v7546_v45 = vpop.f32.mrf.mxu2 }
 0x24a   : > { %6126 = vmatpush.xpose.msk.msra.mxu3 %vm411_vm2, %v886_v56  ;;  %6158 = vmatpush.xpose.msk.msrb.mxu0 %vm411_vm2, %v902_v63  ;;  %v898_v56 = vmul.f32 %v7378_v4, %v703_v21  ;;  %v816_v63 = vadd.f32 %v7537_v53, %v815_v48  ;;  %v807_v21 = vadd.f32 %v7537_v53, %v7453_v61 }
 0x24c   : > { %v928_v18 = vmul.f32 %v7383_v5, %v816_v63 }
 0x24d   : > { %6063 = vmatpush.xpose.msk.msrb.mxu1 %vm411_vm2, %v853_v25  ;;  %6095 = vmatpush.xpose.msk.msrb.mxu2 %vm411_vm2, %v869_v36  ;;  %v865_v25 = vmul.f32 %v7388_v7, %v700_v22  ;;  %v881_v36 = vmul.f32 %v7372_v1, %v700_v22 }
 0x24e   : > { %6127 = vmatpush.xpose.msk.msra.mxu3 %vm411_vm2, %v885_v8  ;;  %6159 = vmatpush.xpose.msk.msrb.mxu0 %vm411_vm2, %v901_v9  ;;  %v897_v8 = vmul.f32 %v7378_v4, %v700_v22  ;;  %v813_v9 = vadd.f32 %v7537_v53, %v812_v3  ;;  %v810_v3 = vadd.f32 %v7537_v53, %v7479_v49 }
 0x250   : > { %v975_v49 = vmul.f32 %v7378_v4, %v813_v9  ;;  %v926_v61 = vmul.f32 %v7383_v5, %v810_v3  ;;  %v958_v22 = vmul.f32 %v7372_v1, %v810_v3 }
 0x251   : > { %6064 = vmatpush.xpose.msk.msrb.mxu1 %vm411_vm2, %v852_v43  ;;  %6096 = vmatpush.xpose.msk.msrb.mxu2 %vm411_vm2, %v868_v12  ;;  %v944_v43 = vmul.f32 %v7388_v7, %v816_v63  ;;  %v960_v12 = vmul.f32 %v7372_v1, %v816_v63  ;;  %v7583_v48 = vpop.f32.mrf.mxu2 }
 0x252   : > { %6128 = vmatpush.xpose.msk.msra.mxu3 %vm411_vm2, %v884_v13  ;;  %6160 = vmatpush.xpose.msk.msrb.mxu0 %vm411_vm2, %v900_v15  ;;  %v976_v13 = vmul.f32 %v7378_v4, %v816_v63  ;;  %v629_v15 = vadd.f32 %v7550_v20, %v7321_v24  ;;  %v959_v24 = vmul.f32 %v7372_v1, %v813_v9 }
 0x253   : > { %v801_v63 = vadd.f32 %v7537_v53, %v7401_v17  ;;  %v795_v17 = vadd.f32 %v7537_v53, %v7355_v52 }
 0x255   : > { %6065 = vmatpush.xpose.msk.msrb.mxu1 %vm411_vm2, %v851_v16  ;;  %6097 = vmatpush.xpose.msk.msrb.mxu2 %vm411_vm2, %v867_v31  ;;  %v927_v16 = vmul.f32 %v7383_v5, %v813_v9  ;;  %v943_v31 = vmul.f32 %v7388_v7, %v813_v9  ;;  %v632_v9 = vadd.f32 %v7550_v20, %v7517_v33 }
 0x256   : > { %6129 = vmatpush.xpose.msk.msra.mxu3 %vm411_vm2, %v883_v40  ;;  %6161 = vmatpush.xpose.msk.msrb.mxu0 %vm411_vm2, %v899_v51  ;;  %v804_v40 = vadd.f32 %v7537_v53, %v7425_v11  ;;  %v942_v51 = vmul.f32 %v7388_v7, %v810_v3  ;;  %v941_v11 = vmul.f32 %v7388_v7, %v807_v21 }
 0x257   : > { %v971_v33 = vmul.f32 %v7378_v4, %v801_v63 }
 0x259   : > { %6066 = vmatpush.xpose.msk.msrb.mxu1 %vm411_vm2, %v850_v55  ;;  %6098 = vmatpush.xpose.msk.msrb.mxu2 %vm411_vm2, %v866_v28  ;;  %v974_v55 = vmul.f32 %v7378_v4, %v810_v3  ;;  %v925_v28 = vmul.f32 %v7383_v5, %v807_v21  ;;  %v7615_v3 = vpop.f32.mrf.mxu2 }
 0x25a   : > { %6130 = vmatpush.xpose.msk.msra.mxu3 %vm411_vm2, %v882_v37  ;;  %6162 = vmatpush.xpose.msk.msrb.mxu0 %vm411_vm2, %v898_v56  ;;  %v957_v37 = vmul.f32 %v7372_v1, %v807_v21  ;;  %v973_v56 = vmul.f32 %v7378_v4, %v807_v21 }
 0x25d   : > { %6067 = vmatpush.xpose.msk.msrb.mxu1 %vm411_vm2, %v849_v60  ;;  %6099 = vmatpush.xpose.msk.msrb.mxu2 %vm411_vm2, %v865_v25  ;;  %v924_v60 = vmul.f32 %v7383_v5, %v804_v40  ;;  %v940_v25 = vmul.f32 %v7388_v7, %v804_v40 }
 0x25e   : > { %6131 = vmatpush.xpose.msk.msra.mxu3 %vm411_vm2, %v881_v36  ;;  %6163 = vmatpush.xpose.msk.msrb.mxu0 %vm411_vm2, %v897_v8  ;;  %v956_v36 = vmul.f32 %v7372_v1, %v804_v40  ;;  %v972_v8 = vmul.f32 %v7378_v4, %v804_v40  ;;  %v789_v40 = vadd.f32 %v7537_v53, %v7351_v44 }
 0x25f   : > { %v783_v44 = vadd.f32 %v7537_v53, %v7345_v39 }
 0x260   : > { %6068 = vmatmul.msk.f32.vlgmr.msrb.gmra.mxu1 %vm411_vm2, %v629_v15  ;;  %6100 = vmatmul.msk.f32.vlgmr.msrb.gmra.mxu2 %vm411_vm2, %v629_v15 }
 0x261   : > { %1813 = vmatpush.msra.mxu1 %v928_v18  ;;  %1878 = vmatpush.msra.mxu2 %v944_v43  ;;  %v798_v18 = vadd.f32 %v7537_v53, %v7360_v59  ;;  %v923_v43 = vmul.f32 %v7383_v5, %v801_v63  ;;  %v955_v59 = vmul.f32 %v7372_v1, %v801_v63 }
 0x262   : > { %1943 = vmatpush.msrb.mxu3 %v960_v12  ;;  %2008 = vmatpush.msra.mxu0 %v976_v13  ;;  %v939_v12 = vmul.f32 %v7388_v7, %v801_v63  ;;  %v792_v13 = vadd.f32 %v7537_v53, %v7353_v47  ;;  %v937_v47 = vmul.f32 %v7388_v7, %v795_v17 }
 0x263   : > { %6132 = vmatmul.msk.f32.vlgmr.msra.gmra.mxu3 %vm411_vm2, %v629_v15  ;;  %6164 = vmatmul.msk.f32.vlgmr.msrb.gmra.mxu0 %vm411_vm2, %v629_v15  ;;  %v922_v52 = vmul.f32 %v7383_v5, %v798_v18  ;;  %v938_v15 = vmul.f32 %v7388_v7, %v798_v18  ;;  %v954_v21 = vmul.f32 %v7372_v1, %v798_v18 }
 0x264   : > { %1814 = vmatpush.msra.mxu1 %v927_v16  ;;  %1879 = vmatpush.msra.mxu2 %v943_v31  ;;  %v970_v16 = vmul.f32 %v7378_v4, %v798_v18  ;;  %v921_v31 = vmul.f32 %v7383_v5, %v795_v17  ;;  %v780_v63 = vadd.f32 %v7537_v53, %v7339_v35 }
 0x265   : > { %1944 = vmatpush.msrb.mxu3 %v959_v24  ;;  %2009 = vmatpush.msra.mxu0 %v975_v49  ;;  %v953_v24 = vmul.f32 %v7372_v1, %v795_v17  ;;  %v969_v49 = vmul.f32 %v7378_v4, %v795_v17  ;;  %v933_v35 = vmul.f32 %v7388_v7, %v783_v44 }
 0x266   : > { %1815 = vmatpush.msra.mxu1 %v926_v61  ;;  %1880 = vmatpush.msra.mxu2 %v942_v51  ;;  %v920_v61 = vmul.f32 %v7383_v5, %v792_v13  ;;  %v936_v51 = vmul.f32 %v7388_v7, %v792_v13  ;;  %v949_v18 = vmul.f32 %v7372_v1, %v783_v44 }
 0x267   : > { %1945 = vmatpush.msrb.mxu3 %v958_v22  ;;  %2010 = vmatpush.msra.mxu0 %v974_v55  ;;  %v952_v22 = vmul.f32 %v7372_v1, %v792_v13  ;;  %v968_v55 = vmul.f32 %v7378_v4, %v792_v13  ;;  %v965_v17 = vmul.f32 %v7378_v4, %v783_v44 }
 0x268   : > { %1816 = vmatpush.msra.mxu1 %v925_v28  ;;  %1881 = vmatpush.msra.mxu2 %v941_v11  ;;  %v635_v28 = vadd.f32 %v7550_v20, %v7546_v45  ;;  %v786_v11 = vadd.f32 %v7537_v53, %v7349_v41  ;;  %v951_v41 = vmul.f32 %v7372_v1, %v789_v40 }
 0x269   : > { %1946 = vmatpush.msrb.mxu3 %v957_v37  ;;  %2011 = vmatpush.msra.mxu0 %v973_v56  ;;  %v919_v37 = vmul.f32 %v7383_v5, %v789_v40  ;;  %v935_v56 = vmul.f32 %v7388_v7, %v789_v40  ;;  %v967_v45 = vmul.f32 %v7378_v4, %v789_v40 }
 0x26a   : > { %1817 = vmatpush.msra.mxu1 %v924_v60  ;;  %1882 = vmatpush.msra.mxu2 %v940_v25  ;;  %v918_v39 = vmul.f32 %v7383_v5, %v786_v11  ;;  %v934_v60 = vmul.f32 %v7388_v7, %v786_v11  ;;  %v7647_v25 = vpop.f32.mrf.mxu2  ;;  %v964_v13 = vmul.f32 %v7378_v4, %v780_v63 }
 0x26b   : > { %1947 = vmatpush.msrb.mxu3 %v956_v36  ;;  %2012 = vmatpush.msra.mxu0 %v972_v8  ;;  %v950_v36 = vmul.f32 %v7372_v1, %v786_v11  ;;  %v966_v8 = vmul.f32 %v7378_v4, %v786_v11 }
 0x26c   : > { %6069 = vmatmul.msk.f32.gmra.mxu1 %vm411_vm2, %v632_v9  ;;  %6101 = vmatmul.msk.f32.gmra.mxu2 %vm411_vm2, %v632_v9 }
 0x26d   : > { %6133 = vmatmul.msk.f32.gmra.mxu3 %vm411_vm2, %v632_v9  ;;  %6165 = vmatmul.msk.f32.gmra.mxu0 %vm411_vm2, %v632_v9  ;;  %v917_v9 = vmul.f32 %v7383_v5, %v783_v44 }
 0x26e   : > { %1818 = vmatpush.msra.mxu1 %v923_v43  ;;  %1883 = vmatpush.msra.mxu2 %v939_v12  ;;  %v777_v43 = vadd.f32 %v7537_v53, %v7335_v32  ;;  %v916_v12 = vmul.f32 %v7383_v5, %v780_v63  ;;  %v771_v32 = vadd.f32 %v7537_v53, %v7327_v27 }
 0x26f   : > { %1948 = vmatpush.msrb.mxu3 %v955_v59  ;;  %2013 = vmatpush.msra.mxu0 %v971_v33  ;;  %v932_v59 = vmul.f32 %v7388_v7, %v780_v63  ;;  %v948_v33 = vmul.f32 %v7372_v1, %v780_v63 }
 0x270   : > { %1819 = vmatpush.msra.mxu1 %v922_v52  ;;  %1884 = vmatpush.msra.mxu2 %v938_v15  ;;  %v774_v52 = vadd.f32 %v7537_v53, %v7331_v29  ;;  %v638_v15 = vadd.f32 %v7550_v20, %v7583_v48  ;;  %v947_v29 = vmul.f32 %v7372_v1, %v777_v43 }
 0x271   : > { %1949 = vmatpush.msrb.mxu3 %v954_v21  ;;  %2014 = vmatpush.msra.mxu0 %v970_v16  ;;  %v915_v21 = vmul.f32 %v7383_v5, %v777_v43  ;;  %v931_v16 = vmul.f32 %v7388_v7, %v777_v43  ;;  %v963_v48 = vmul.f32 %v7378_v4, %v777_v43 }
 0x272   : > { %1820 = vmatpush.msra.mxu1 %v921_v31  ;;  %1885 = vmatpush.msra.mxu2 %v937_v47  ;;  %v914_v27 = vmul.f32 %v7383_v5, %v774_v52  ;;  %v930_v53 = vmul.f32 %v7388_v7, %v774_v52  ;;  %v646_v31 = vpop.f32.mrf.mxu2  ;;  %v946_v47 = vmul.f32 %v7372_v1, %v774_v52 }
 0x273   : > { %1950 = vmatpush.msrb.mxu3 %v953_v24  ;;  %2015 = vmatpush.msra.mxu0 %v969_v49  ;;  %v962_v24 = vmul.f32 %v7378_v4, %v774_v52  ;;  %v913_v49 = vmul.f32 %v7383_v5, %v771_v32  ;;  %v929_v40 = vmul.f32 %v7388_v7, %v771_v32 }
 0x274   : > { %1821 = vmatpush.msra.mxu1 %v920_v61  ;;  %1886 = vmatpush.msra.mxu2 %v936_v51  ;;  %v945_v61 = vmul.f32 %v7372_v1, %v771_v32  ;;  %v961_v51 = vmul.f32 %v7378_v4, %v771_v32 }
 0x275   : > { %1951 = vmatpush.msrb.mxu3 %v952_v22  ;;  %2016 = vmatpush.msra.mxu0 %v968_v55  ;;  %v641_v22 = vadd.f32 %v7550_v20, %v7615_v3  ;;  %v647_v3 = vadd.f32 %v7550_v20, %v646_v31 }
 0x276   : > { %6070 = vmatmul.msk.f32.gmra.mxu1 %vm411_vm2, %v635_v28  ;;  %6102 = vmatmul.msk.f32.gmra.mxu2 %vm411_vm2, %v635_v28 }
 0x277   : > { %6134 = vmatmul.msk.f32.gmra.mxu3 %vm411_vm2, %v635_v28  ;;  %6166 = vmatmul.msk.f32.gmra.mxu0 %vm411_vm2, %v635_v28  ;;  %v644_v28 = vadd.f32 %v7550_v20, %v7647_v25 }
 0x278   : > { %1822 = vmatpush.msra.mxu1 %v919_v37  ;;  %1887 = vmatpush.msra.mxu2 %v935_v56 }
 0x279   : > { %1952 = vmatpush.msrb.mxu3 %v951_v41  ;;  %2017 = vmatpush.msra.mxu0 %v967_v45 }
 0x27a   : > { %1823 = vmatpush.msra.mxu1 %v918_v39  ;;  %1888 = vmatpush.msra.mxu2 %v934_v60  ;;  %v649_v55 = vpop.f32.mrf.mxu2 }
 0x27b   : > { %1953 = vmatpush.msrb.mxu3 %v950_v36  ;;  %2018 = vmatpush.msra.mxu0 %v966_v8  ;;  %v650_v44 = vadd.f32 %v7550_v20, %v649_v55 }
 0x27c   : > { %1824 = vmatpush.msra.mxu1 %v917_v9  ;;  %1889 = vmatpush.msra.mxu2 %v933_v35 }
 0x27d   : > { %1954 = vmatpush.msrb.mxu3 %v949_v18  ;;  %2019 = vmatpush.msra.mxu0 %v965_v17 }
 0x27e   : > { %1825 = vmatpush.msra.mxu1 %v916_v12  ;;  %1890 = vmatpush.msra.mxu2 %v932_v59 }
 0x27f   : > { %1955 = vmatpush.msrb.mxu3 %v948_v33  ;;  %2020 = vmatpush.msra.mxu0 %v964_v13 }
 0x280   : > { %6071 = vmatmul.msk.f32.gmra.mxu1 %vm411_vm2, %v638_v15  ;;  %6103 = vmatmul.msk.f32.gmra.mxu2 %vm411_vm2, %v638_v15 }
 0x281   : > { %6135 = vmatmul.msk.f32.gmra.mxu3 %vm411_vm2, %v638_v15  ;;  %6167 = vmatmul.msk.f32.gmra.mxu0 %vm411_vm2, %v638_v15 }
 0x282   : > { %1826 = vmatpush.msra.mxu1 %v915_v21  ;;  %1891 = vmatpush.msra.mxu2 %v931_v16  ;;  %v652_v11 = vpop.f32.mrf.mxu2 }
 0x283   : > { %1956 = vmatpush.msrb.mxu3 %v947_v29  ;;  %2021 = vmatpush.msra.mxu0 %v963_v48  ;;  %v653_v56 = vadd.f32 %v7550_v20, %v652_v11 }
 0x284   : > { %1827 = vmatpush.msra.mxu1 %v914_v27  ;;  %1892 = vmatpush.msra.mxu2 %v930_v53 }
 0x285   : > { %1957 = vmatpush.msrb.mxu3 %v946_v47  ;;  %2022 = vmatpush.msra.mxu0 %v962_v24 }
 0x286   : > { %1828 = vmatpush.msra.mxu1 %v913_v49  ;;  %1893 = vmatpush.msra.mxu2 %v929_v40 }
 0x287   : > { %1958 = vmatpush.msrb.mxu3 %v945_v61  ;;  %2023 = vmatpush.msra.mxu0 %v961_v51 }
 0x288   : > { %6072 = vmatmul.msk.f32.gmra.mxu1 %vm411_vm2, %v641_v22  ;;  %6104 = vmatmul.msk.f32.gmra.mxu2 %vm411_vm2, %v641_v22 }
 0x289   : > { %6136 = vmatmul.msk.f32.gmra.mxu3 %vm411_vm2, %v641_v22  ;;  %6168 = vmatmul.msk.f32.gmra.mxu0 %vm411_vm2, %v641_v22 }
 0x28a   : > { %v655_v37 = vpop.f32.mrf.mxu2 }
 0x28b   : > { %v656_v45 = vadd.f32 %v7550_v20, %v655_v37 }
 0x290   : > { %6073 = vmatmul.msk.f32.gmra.mxu1 %vm411_vm2, %v644_v28  ;;  %6105 = vmatmul.msk.f32.gmra.mxu2 %vm411_vm2, %v644_v28 }
 0x291   : > { %6137 = vmatmul.msk.f32.gmra.mxu3 %vm411_vm2, %v644_v28  ;;  %6169 = vmatmul.msk.f32.gmra.mxu0 %vm411_vm2, %v644_v28 }
 0x292   : > { %v658_v41 = vpop.f32.mrf.mxu2 }
 0x293   : > { %v659_v39 = vadd.f32 %v7550_v20, %v658_v41 }
 0x298   : > { %6074 = vmatmul.msk.f32.gmra.mxu1 %vm411_vm2, %v647_v3  ;;  %6106 = vmatmul.msk.f32.gmra.mxu2 %vm411_vm2, %v647_v3 }
 0x299   : > { %6138 = vmatmul.msk.f32.gmra.mxu3 %vm411_vm2, %v647_v3  ;;  %6170 = vmatmul.msk.f32.gmra.mxu0 %vm411_vm2, %v647_v3 }
 0x29a   : > { %v661_v63 = vpop.f32.mrf.mxu2 }
 0x29b   : > { %v662_v60 = vadd.f32 %v7550_v20, %v661_v63 }
 0x2a0   : > { %6075 = vmatmul.msk.f32.gmra.mxu1 %vm411_vm2, %v650_v44  ;;  %6107 = vmatmul.msk.f32.gmra.mxu2 %vm411_vm2, %v650_v44 }
 0x2a1   : > { %6139 = vmatmul.msk.f32.gmra.mxu3 %vm411_vm2, %v650_v44  ;;  %6171 = vmatmul.msk.f32.gmra.mxu0 %vm411_vm2, %v650_v44 }
 0x2a2   : > { %v664_v25 = vpop.f32.mrf.mxu2 }
 0x2a3   : > { %v665_v36 = vadd.f32 %v7550_v20, %v664_v25 }
 0x2a8   : > { %6076 = vmatmul.msk.f32.gmra.mxu1 %vm411_vm2, %v653_v56  ;;  %6108 = vmatmul.msk.f32.gmra.mxu2 %vm411_vm2, %v653_v56 }
 0x2a9   : > { %6140 = vmatmul.msk.f32.gmra.mxu3 %vm411_vm2, %v653_v56  ;;  %6172 = vmatmul.msk.f32.gmra.mxu0 %vm411_vm2, %v653_v56 }
 0x2aa   : > { %v667_v8 = vpop.f32.mrf.mxu2 }
 0x2ab   : > { %v668_v9 = vadd.f32 %v7550_v20, %v667_v8 }
 0x2b0   : > { %6077 = vmatmul.msk.f32.gmra.mxu1 %vm411_vm2, %v656_v45  ;;  %6109 = vmatmul.msk.f32.gmra.mxu2 %vm411_vm2, %v656_v45 }
 0x2b1   : > { %6141 = vmatmul.msk.f32.gmra.mxu3 %vm411_vm2, %v656_v45  ;;  %6173 = vmatmul.msk.f32.gmra.mxu0 %vm411_vm2, %v656_v45 }
 0x2b2   : > { %v670_v35 = vpop.f32.mrf.mxu2 }
 0x2b3   : > { %v671_v18 = vadd.f32 %v7550_v20, %v670_v35 }
 0x2b8   : > { %6078 = vmatmul.msk.f32.gmra.mxu1 %vm411_vm2, %v659_v39  ;;  %6110 = vmatmul.msk.f32.gmra.mxu2 %vm411_vm2, %v659_v39 }
 0x2b9   : > { %6142 = vmatmul.msk.f32.gmra.mxu3 %vm411_vm2, %v659_v39  ;;  %6174 = vmatmul.msk.f32.gmra.mxu0 %vm411_vm2, %v659_v39 }
 0x2ba   : > { %v673_v17 = vpop.f32.mrf.mxu2 }
 0x2bb   : > { %v674_v43 = vadd.f32 %v7550_v20, %v673_v17 }
 0x2c0   : > { %6079 = vmatmul.msk.f32.gmra.mxu1 %vm411_vm2, %v662_v60  ;;  %6111 = vmatmul.msk.f32.gmra.mxu2 %vm411_vm2, %v662_v60 }
 0x2c1   : > { %6143 = vmatmul.msk.f32.gmra.mxu3 %vm411_vm2, %v662_v60  ;;  %6175 = vmatmul.msk.f32.gmra.mxu0 %vm411_vm2, %v662_v60 }
 0x2c8   : > { %6080 = vmatmul.msk.f32.gmra.mxu1 %vm411_vm2, %v665_v36  ;;  %6112 = vmatmul.msk.f32.gmra.mxu2 %vm411_vm2, %v665_v36 }
 0x2c9   : > { %6144 = vmatmul.msk.f32.gmra.mxu3 %vm411_vm2, %v665_v36  ;;  %6176 = vmatmul.msk.f32.gmra.mxu0 %vm411_vm2, %v665_v36 }
 0x2d0   : > { %6081 = vmatmul.msk.f32.gmra.mxu1 %vm411_vm2, %v668_v9  ;;  %6113 = vmatmul.msk.f32.gmra.mxu2 %vm411_vm2, %v668_v9 }
 0x2d1   : > { %6145 = vmatmul.msk.f32.gmra.mxu3 %vm411_vm2, %v668_v9  ;;  %6177 = vmatmul.msk.f32.gmra.mxu0 %vm411_vm2, %v668_v9 }
 0x2d8   : > { %6082 = vmatmul.msk.f32.gmra.mxu1 %vm411_vm2, %v671_v18  ;;  %6114 = vmatmul.msk.f32.gmra.mxu2 %vm411_vm2, %v671_v18 }
 0x2d9   : > { %6146 = vmatmul.msk.f32.gmra.mxu3 %vm411_vm2, %v671_v18  ;;  %6178 = vmatmul.msk.f32.gmra.mxu0 %vm411_vm2, %v671_v18 }
 0x2dd   : > { %v1234_v12 = vpop.f32.mrf.mxu1 }
 0x2de   : > { %v7745_v13 = vmul.f32 0.35355338, %v1234_v12 }
 0x2e0   : > { %6083 = vmatmul.msk.f32.gmra.mxu1 %vm411_vm2, %v674_v43  ;;  %6115 = vmatmul.msk.f32.gmra.mxu2 %vm411_vm2, %v674_v43  ;;  %v1429_v59 = vpop.f32.mrf.mxu0 }
 0x2e1   : > { %6147 = vmatmul.msk.f32.gmra.mxu3 %vm411_vm2, %v674_v43  ;;  %6179 = vmatmul.msk.f32.gmra.mxu0 %vm411_vm2, %v674_v43  ;;  %v7753_v16 = vmul.f32 0.35355338, %v1429_v59 }
 0x2e3   : > { %v1299_v33 = vpop.f32.mrf.mxu2 }
 0x2e4   : > { %v7747_v52 = vmul.f32 0.35355338, %v1299_v33 }
 0x2e6   : > { %v1364_v15 = vpop.f32.mrf.mxu3  ;;  %v1541_v32 = vmax.f32 %v7745_v13, %v7747_v52 }
 0x2e7   : > { %v7751_v20 = vmul.f32 0.35355338, %v1364_v15 }
 0x2e9   : > { %v1237_v21 = vpop.f32.mrf.mxu1  ;;  %v1542_v48 = vmax.f32 %v1541_v32, %v7751_v20 }
 0x2ea   : > { %v1432_v29 = vpop.f32.mrf.mxu0  ;;  %v7757_v31 = vmul.f32 0.35355338, %v1237_v21 }
 0x2eb   : > { %v1543_v27 = vmax.f32 %v1542_v48, %v7753_v16  ;;  %v7765_v51 = vmul.f32 0.35355338, %v1432_v29 }
 0x2ed   : > { %1544 = vmax.xlane.f32.xlu0 %v1543_v27 }
 0x2ef   : > { %v1302_v53 = vpop.f32.mrf.mxu2 }
 0x2f0   : > { %v7759_v47 = vmul.f32 0.35355338, %v1302_v53  ;;  %v1367_v24 = vpop.f32.mrf.mxu3 }
 0x2f1   : > { %v7763_v40 = vmul.f32 0.35355338, %v1367_v24 }
 0x2f2   : > { %v1546_v49 = vmax.f32 %v7757_v31, %v7759_v47 }
 0x2f3   : > { %v1240_v61 = vpop.f32.mrf.mxu1 }
 0x2f4   : > { %v1435_v22 = vpop.f32.mrf.mxu0  ;;  %v1547_v55 = vmax.f32 %v1546_v49, %v7763_v40  ;;  %v7769_v11 = vmul.f32 0.35355338, %v1240_v61 }
 0x2f5   : > { %v7777_v63 = vmul.f32 0.35355338, %v1435_v22 }
 0x2f6   : > { %v1548_v28 = vmax.f32 %v1547_v55, %v7765_v51 }
 0x2f8   : > { %1549 = vmax.xlane.f32.xlu0 %v1548_v28 }
 0x2f9   : > { %v1305_v3 = vpop.f32.mrf.mxu2 }
 0x2fa   : > { %v7771_v44 = vmul.f32 0.35355338, %v1305_v3  ;;  %v1370_v37 = vpop.f32.mrf.mxu3 }
 0x2fb   : > { %v7775_v41 = vmul.f32 0.35355338, %v1370_v37 }
 0x2fc   : > { %v1551_v56 = vmax.f32 %v7769_v11, %v7771_v44 }
 0x2fd   : > { %v1243_v45 = vpop.f32.mrf.mxu1 }
 0x2fe   : > { %v1438_v39 = vpop.f32.mrf.mxu0  ;;  %v1552_v60 = vmax.f32 %v1551_v56, %v7775_v41  ;;  %v7781_v8 = vmul.f32 0.35355338, %v1243_v45 }
 0x2ff   : > { %v7789_v59 = vmul.f32 0.35355338, %v1438_v39 }
 0x300   : > { %v1553_v25 = vmax.f32 %v1552_v60, %v7777_v63 }
 0x302   : > { %1554 = vmax.xlane.f32.xlu1 %v1553_v25 }
 0x303   : > { %v1308_v36 = vpop.f32.mrf.mxu2 }
 0x304   : > { %v7783_v9 = vmul.f32 0.35355338, %v1308_v36  ;;  %v1373_v35 = vpop.f32.mrf.mxu3 }
 0x305   : > { %v1246_v18 = vpop.f32.mrf.mxu1  ;;  %v7787_v43 = vmul.f32 0.35355338, %v1373_v35 }
 0x306   : > { %v1556_v17 = vmax.f32 %v7781_v8, %v7783_v9  ;;  %v1441_v12 = vpop.f32.mrf.mxu0  ;;  %v7793_v21 = vmul.f32 0.35355338, %v1246_v18 }
 0x307   : > { %v7801_v61 = vmul.f32 0.35355338, %v1441_v12 }
 0x308   : > { %v1557_v33 = vmax.f32 %v1556_v17, %v7787_v43 }
 0x30a   : > { %v1558_v15 = vmax.f32 %v1557_v33, %v7789_v59 }
 0x30b   : > { %v1311_v32 = vpop.f32.mrf.mxu2 }
 0x30c   : > { %v7795_v29 = vmul.f32 0.35355338, %v1311_v32  ;;  %v1376_v48 = vpop.f32.mrf.mxu3  ;;  %1559 = vmax.xlane.f32.xlu1 %v1558_v15 }
 0x30d   : > { %v1249_v27 = vpop.f32.mrf.mxu1  ;;  %v7799_v24 = vmul.f32 0.35355338, %v1376_v48 }
 0x30e   : > { %v1561_v53 = vmax.f32 %v7793_v21, %v7795_v29  ;;  %v1444_v49 = vpop.f32.mrf.mxu0  ;;  %v7805_v3 = vmul.f32 0.35355338, %v1249_v27 }
 0x30f   : > { %v7813_v36 = vmul.f32 0.35355338, %v1444_v49 }
 0x310   : > { %v1562_v22 = vmax.f32 %v1561_v53, %v7799_v24 }
 0x312   : > { %v1563_v55 = vmax.f32 %v1562_v22, %v7801_v61 }
 0x313   : > { %v1314_v28 = vpop.f32.mrf.mxu2 }
 0x314   : > { %v7807_v37 = vmul.f32 0.35355338, %v1314_v28  ;;  %v1379_v56 = vpop.f32.mrf.mxu3  ;;  %1564 = vmax.xlane.f32.xlu2 %v1563_v55 }
 0x315   : > { %v1252_v45 = vpop.f32.mrf.mxu1  ;;  %v7811_v60 = vmul.f32 0.35355338, %v1379_v56 }
 0x316   : > { %v1566_v39 = vmax.f32 %v7805_v3, %v7807_v37  ;;  %v1447_v25 = vpop.f32.mrf.mxu0  ;;  %v7817_v12 = vmul.f32 0.35355338, %v1252_v45 }
 0x317   : > { %v7825_v49 = vmul.f32 0.35355338, %v1447_v25 }
 0x318   : > { %v1567_v35 = vmax.f32 %v1566_v39, %v7811_v60 }
 0x31a   : > { %v1568_v18 = vmax.f32 %v1567_v35, %v7813_v36 }
 0x31b   : > { %v1317_v17 = vpop.f32.mrf.mxu2 }
 0x31c   : > { %v7819_v33 = vmul.f32 0.35355338, %v1317_v17  ;;  %v1382_v15 = vpop.f32.mrf.mxu3  ;;  %1569 = vmax.xlane.f32.xlu2 %v1568_v18 }
 0x31d   : > { %v1255_v32 = vpop.f32.mrf.mxu1  ;;  %v7823_v27 = vmul.f32 0.35355338, %v1382_v15 }
 0x31e   : > { %v1571_v48 = vmax.f32 %v7817_v12, %v7819_v33  ;;  %v1450_v53 = vpop.f32.mrf.mxu0  ;;  %v7829_v56 = vmul.f32 0.35355338, %v1255_v32 }
 0x31f   : > { %v7837_v25 = vmul.f32 0.35355338, %v1450_v53 }
 0x320   : > { %v1572_v22 = vmax.f32 %v1571_v48, %v7823_v27 }
 0x322   : > { %v1573_v55 = vmax.f32 %v1572_v22, %v7825_v49 }
 0x323   : > { %v1320_v28 = vpop.f32.mrf.mxu2 }
 0x324   : > { %v7831_v45 = vmul.f32 0.35355338, %v1320_v28  ;;  %v1385_v39 = vpop.f32.mrf.mxu3  ;;  %1574 = vmax.xlane.f32.xlu0 %v1573_v55 }
 0x325   : > { %v1258_v35 = vpop.f32.mrf.mxu1  ;;  %v7835_v17 = vmul.f32 0.35355338, %v1385_v39 }
 0x326   : > { %v1576_v18 = vmax.f32 %v7829_v56, %v7831_v45  ;;  %v1453_v15 = vpop.f32.mrf.mxu0  ;;  %v7841_v32 = vmul.f32 0.35355338, %v1258_v35 }
 0x327   : > { %v7849_v53 = vmul.f32 0.35355338, %v1453_v15 }
 0x328   : > { %v1577_v48 = vmax.f32 %v1576_v18, %v7835_v17 }
 0x32a   : > { %v1578_v22 = vmax.f32 %v1577_v48, %v7837_v25 }
 0x32b   : > { %v1323_v0 = vpop.f32.mrf.mxu2 }
 0x32c   : > { %v7843_v28 = vmul.f32 0.35355338, %v1323_v0  ;;  %v1388_v5 = vpop.f32.mrf.mxu3  ;;  %1579 = vmax.xlane.f32.xlu1 %v1578_v22 }
 0x32d   : > { %v1261_v55 = vpop.f32.mrf.mxu1  ;;  %v7847_v39 = vmul.f32 0.35355338, %v1388_v5 }
 0x32e   : > { %v1581_v7 = vmax.f32 %v7841_v32, %v7843_v28  ;;  %v1456_v1 = vpop.f32.mrf.mxu0  ;;  %v7853_v35 = vmul.f32 0.35355338, %v1261_v55 }
 0x32f   : > { %v7861_v15 = vmul.f32 0.35355338, %v1456_v1 }
 0x330   : > { %v1582_v18 = vmax.f32 %v1581_v7, %v7847_v39 }
 0x332   : > { %v1583_v48 = vmax.f32 %v1582_v18, %v7849_v53 }
 0x333   : > { %v1326_v4 = vpop.f32.mrf.mxu2 }
 0x334   : > { %v7855_v0 = vmul.f32 0.35355338, %v1326_v4  ;;  %v1391_v19 = vpop.f32.mrf.mxu3  ;;  %1584 = vmax.xlane.f32.xlu2 %v1583_v48 }
 0x335   : > { %v1264_v22 = vpop.f32.mrf.mxu1  ;;  %v7859_v5 = vmul.f32 0.35355338, %v1391_v19 }
 0x336   : > { %v1586_v14 = vmax.f32 %v7853_v35, %v7855_v0  ;;  %v1459_v10 = vpop.f32.mrf.mxu0  ;;  %v7865_v55 = vmul.f32 0.35355338, %v1264_v22 }
 0x337   : > { %v7873_v1 = vmul.f32 0.35355338, %v1459_v10 }
 0x338   : > { %v1587_v7 = vmax.f32 %v1586_v14, %v7859_v5 }
 0x33a   : > { %v1588_v18 = vmax.f32 %v1587_v7, %v7861_v15 }
 0x33b   : > { %v1329_v6 = vpop.f32.mrf.mxu2 }
 0x33c   : > { %v7867_v4 = vmul.f32 0.35355338, %v1329_v6  ;;  %v1394_v2 = vpop.f32.mrf.mxu3  ;;  %1589 = vmax.xlane.f32.xlu0 %v1588_v18 }
 0x33d   : > { %v1267_v48 = vpop.f32.mrf.mxu1  ;;  %v7871_v19 = vmul.f32 0.35355338, %v1394_v2 }
 0x33e   : > { %v1591_v62 = vmax.f32 %v7865_v55, %v7867_v4  ;;  %v1462_v58 = vpop.f32.mrf.mxu0  ;;  %v7877_v22 = vmul.f32 0.35355338, %v1267_v48 }
 0x33f   : > { %v7885_v10 = vmul.f32 0.35355338, %v1462_v58 }
 0x340   : > { %v1592_v14 = vmax.f32 %v1591_v62, %v7871_v19 }
 0x341   : > { %10371 = vst [vmem:[#allocation27_spill] sm:$0xff] %v7885_v10 }
 0x342   : > { %v1593_v7 = vmax.f32 %v1592_v14, %v7873_v1 }
 0x343   : > { %v1332_v54 = vpop.f32.mrf.mxu2 }
 0x344   : > { %v7879_v6 = vmul.f32 0.35355338, %v1332_v54  ;;  %v1397_v50 = vpop.f32.mrf.mxu3  ;;  %1594 = vmax.xlane.f32.xlu1 %v1593_v7 }
 0x345   : > { %v1270_v18 = vpop.f32.mrf.mxu1  ;;  %v7883_v2 = vmul.f32 0.35355338, %v1397_v50 }
 0x346   : > { %v1596_v46 = vmax.f32 %v7877_v22, %v7879_v6  ;;  %v1465_v42 = vpop.f32.mrf.mxu0  ;;  %v7889_v48 = vmul.f32 0.35355338, %v1270_v18 }
 0x347   : > { %10370 = vst [vmem:[#allocation26_spill] sm:$0xff] %v7883_v2  ;;  %v7897_v26 = vmul.f32 0.35355338, %v1465_v42 }
 0x348   : > { %v1597_v62 = vmax.f32 %v1596_v46, %v7883_v2  ;;  %10372 = vst [vmem:[#allocation28_spill] sm:$0xff] %v7889_v48 }
 0x349   : > { %10375 = vst [vmem:[#allocation31_spill] sm:$0xff] %v7897_v26 }
 0x34a   : > { %v1598_v14 = vmax.f32 %v1597_v62, %v7885_v10 }
 0x34b   : > { %v1335_v38 = vpop.f32.mrf.mxu2 }
 0x34c   : > { %v7891_v54 = vmul.f32 0.35355338, %v1335_v38  ;;  %v1400_v34 = vpop.f32.mrf.mxu3  ;;  %1599 = vmax.xlane.f32.xlu2 %v1598_v14 }
 0x34d   : > { %v1273_v7 = vpop.f32.mrf.mxu1  ;;  %v7895_v50 = vmul.f32 0.35355338, %v1400_v34 }
 0x34e   : > { %10373 = vst [vmem:[#allocation29_spill] sm:$0xff] %v7891_v54  ;;  %v1601_v30 = vmax.f32 %v7889_v48, %v7891_v54  ;;  %v1468_v46 = vpop.f32.mrf.mxu0  ;;  %v7901_v18 = vmul.f32 0.35355338, %v1273_v7 }
 0x34f   : > { %10374 = vst [vmem:[#allocation30_spill] sm:$0xff] %v7895_v50  ;;  %v7909_v42 = vmul.f32 0.35355338, %v1468_v46 }
 0x350   : > { %v1602_v58 = vmax.f32 %v1601_v30, %v7895_v50  ;;  %10376 = vst [vmem:[#allocation32_spill] sm:$0xff] %v7901_v18 }
 0x351   : > { %10379 = vst [vmem:[#allocation35_spill] sm:$0xff] %v7909_v42 }
 0x352   : > { %v1603_v62 = vmax.f32 %v1602_v58, %v7897_v26 }
 0x353   : > { %v1338_v23 = vpop.f32.mrf.mxu2 }
 0x354   : > { %v7903_v38 = vmul.f32 0.35355338, %v1338_v23  ;;  %v1403_v10 = vpop.f32.mrf.mxu3  ;;  %1604 = vmax.xlane.f32.xlu0 %v1603_v62 }
 0x355   : > { %v7907_v54 = vmul.f32 0.35355338, %v1403_v10  ;;  %v1276_v34 = vpop.f32.mrf.mxu1 }
 0x356   : > { %10377 = vst [vmem:[#allocation33_spill] sm:$0xff] %v7903_v38  ;;  %v1606_v14 = vmax.f32 %v7901_v18, %v7903_v38  ;;  %v1471_v58 = vpop.f32.mrf.mxu0  ;;  %v7913_v7 = vmul.f32 0.35355338, %v1276_v34 }
 0x357   : > { %10378 = vst [vmem:[#allocation34_spill] sm:$0xff] %v7907_v54  ;;  %v7921_v38 = vmul.f32 0.35355338, %v1471_v58 }
 0x358   : > { %v1607_v30 = vmax.f32 %v1606_v14, %v7907_v54  ;;  %10380 = vst [vmem:[#allocation36_spill] sm:$0xff] %v7913_v7 }
 0x35a   : > { %v1608_v50 = vmax.f32 %v1607_v30, %v7909_v42 }
 0x35b   : > { %v1341_v26 = vpop.f32.mrf.mxu2 }
 0x35c   : > { %v7915_v23 = vmul.f32 0.35355338, %v1341_v26  ;;  %v1406_v48 = vpop.f32.mrf.mxu3  ;;  %1609 = vmax.xlane.f32.xlu1 %v1608_v50 }
 0x35d   : > { %v7919_v10 = vmul.f32 0.35355338, %v1406_v48  ;;  %v1279_v46 = vpop.f32.mrf.mxu1 }
 0x35e   : > { %10381 = vst [vmem:[#allocation37_spill] sm:$0xff] %v7915_v23  ;;  %v1611_v62 = vmax.f32 %v7913_v7, %v7915_v23  ;;  %v7928_v50 = vmul.f32 0.35355338, %v1279_v46 }
 0x35f   : > { %10382 = vst [vmem:[#allocation38_spill] sm:$0xff] %v7919_v10 }
 0x360   : > { %v1612_v14 = vmax.f32 %v1611_v62, %v7919_v10  ;;  %v1545_v54 = vpop.xlane.xlu0 %1544  ;;  %v1474_v10 = vpop.f32.mrf.mxu0 }
 0x361   : > { %v1621_v34 = vsub.f32 %v7745_v13, %v1545_v54  ;;  %v1622_v26 = vsub.f32 %v7747_v52, %v1545_v54  ;;  %v1623_v42 = vsub.f32 %v7751_v20, %v1545_v54  ;;  %v1624_v48 = vsub.f32 %v7753_v16, %v1545_v54 }
 0x362   : > { %v1613_v30 = vmax.f32 %v1612_v14, %v7921_v38  ;;  %v7937_v20 = vmul.f32 0.35355338, %v1474_v10 }
 0x363   : > { %v1344_v18 = vpop.f32.mrf.mxu2  ;;  %v1685_v7 = vmul.f32 1.442695, %v1621_v34  ;;  %v1687_v62 = vmul.f32 1.442695, %v1622_v26  ;;  %v1689_v2 = vmul.f32 1.442695, %v1623_v42 }
 0x364   : > { %v7931_v23 = vmul.f32 0.35355338, %v1344_v18  ;;  %v1409_v58 = vpop.f32.mrf.mxu3  ;;  %1614 = vmax.xlane.f32.xlu2 %v1613_v30  ;;  %v1691_v14 = vmul.f32 1.442695, %v1624_v48 }
 0x365   : > { %v7935_v52 = vmul.f32 0.35355338, %v1409_v58  ;;  %6667 = vpow2.f32 %v1685_v7 }
 0x366   : > { %v1616_v13 = vmax.f32 %v7928_v50, %v7931_v23  ;;  %6669 = vpow2.f32 %v1687_v62 }
 0x367   : > { %6671 = vpow2.f32 %v1689_v2 }
 0x368   : > { %v1617_v16 = vmax.f32 %v1616_v13, %v7935_v52  ;;  %6673 = vpow2.f32 %v1691_v14 }
 0x36a   : > { %v1618_v54 = vmax.f32 %v1617_v16, %v7937_v20 }
 0x36b   : > { %v1550_v18 = vpop.xlane.xlu0 %1549  ;;  %v7941_v46 = vpop.eup %6667 }
 0x36c   : > { %1619 = vmax.xlane.f32.xlu0 %v1618_v54  ;;  %v1625_v42 = vsub.f32 %v7757_v31, %v1550_v18  ;;  %v1626_v30 = vsub.f32 %v7759_v47, %v1550_v18  ;;  %v1627_v34 = vsub.f32 %v7763_v40, %v1550_v18  ;;  %v1628_v7 = vsub.f32 %v7765_v51, %v1550_v18  ;;  %v7947_v10 = vpop.eup %6669 }
 0x36d   : > { %1829 = vmatmul.f32.vlgmr.msra.gmra.mxu1 %v7941_v46  ;;  %v7950_v2 = vpop.eup %6671  ;;  %1894 = vmatmul.f32.vlgmr.msra.gmra.mxu2 %v7947_v10 }
 0x36e   : > { %v1693_v26 = vmul.f32 1.442695, %v1625_v42  ;;  %v1695_v48 = vmul.f32 1.442695, %v1626_v30  ;;  %v1697_v58 = vmul.f32 1.442695, %v1627_v34  ;;  %v7953_v62 = vpop.eup %6673  ;;  %1959 = vmatmul.f32.vlgmr.msrb.gmra.mxu3 %v7950_v2 }
 0x36f   : > { %v1699_v31 = vmul.f32 1.442695, %v1628_v7  ;;  %2024 = vmatmul.f32.vlgmr.msra.gmra.mxu0 %v7953_v62 }
 0x370   : > { %6675 = vpow2.f32 %v1693_v26 }
 0x371   : > { %6677 = vpow2.f32 %v1695_v48 }
 0x372   : > { %6679 = vpow2.f32 %v1697_v58 }
 0x373   : > { %6681 = vpow2.f32 %v1699_v31 }
 0x375   : > { %v1555_v47 = vpop.xlane.xlu1 %1554 }
 0x376   : > { %v7957_v40 = vpop.eup %6675  ;;  %v1629_v51 = vsub.f32 %v7769_v11, %v1555_v47  ;;  %v1630_v14 = vsub.f32 %v7771_v44, %v1555_v47  ;;  %v1631_v13 = vsub.f32 %v7775_v41, %v1555_v47  ;;  %v1632_v16 = vsub.f32 %v7777_v63, %v1555_v47 }
 0x377   : > { %v7963_v54 = vpop.eup %6677  ;;  %1832 = vmatmul.f32.gmra.mxu1 %v7957_v40 }
 0x378   : > { %v7966_v18 = vpop.eup %6679  ;;  %v1701_v42 = vmul.f32 1.442695, %v1629_v51  ;;  %v1703_v30 = vmul.f32 1.442695, %v1630_v14  ;;  %v1705_v34 = vmul.f32 1.442695, %v1631_v13  ;;  %1897 = vmatmul.f32.gmra.mxu2 %v7963_v54 }
 0x379   : > { %v7969_v7 = vpop.eup %6681  ;;  %v1707_v11 = vmul.f32 1.442695, %v1632_v16  ;;  %1962 = vmatmul.f32.gmra.mxu3 %v7966_v18 }
 0x37a   : > { %6683 = vpow2.f32 %v1701_v42  ;;  %2027 = vmatmul.f32.gmra.mxu0 %v7969_v7 }
 0x37b   : > { %6685 = vpow2.f32 %v1703_v30 }
 0x37c   : > { %6687 = vpow2.f32 %v1705_v34 }
 0x37d   : > { %6689 = vpow2.f32 %v1707_v11 }
 0x37f   : > { %v1560_v44 = vpop.xlane.xlu1 %1559 }
 0x380   : > { %v7973_v41 = vpop.eup %6683  ;;  %v1633_v63 = vsub.f32 %v7781_v8, %v1560_v44  ;;  %v1634_v26 = vsub.f32 %v7783_v9, %v1560_v44  ;;  %v1635_v48 = vsub.f32 %v7787_v43, %v1560_v44  ;;  %v1636_v58 = vsub.f32 %v7789_v59, %v1560_v44 }
 0x381   : > { %v7979_v31 = vpop.eup %6685  ;;  %1835 = vmatmul.f32.gmra.mxu1 %v7973_v41 }
 0x382   : > { %v7982_v47 = vpop.eup %6687  ;;  %v1709_v51 = vmul.f32 1.442695, %v1633_v63  ;;  %v1711_v14 = vmul.f32 1.442695, %v1634_v26  ;;  %v1713_v13 = vmul.f32 1.442695, %v1635_v48  ;;  %1900 = vmatmul.f32.gmra.mxu2 %v7979_v31 }
 0x383   : > { %v7985_v16 = vpop.eup %6689  ;;  %v1715_v8 = vmul.f32 1.442695, %v1636_v58  ;;  %1965 = vmatmul.f32.gmra.mxu3 %v7982_v47 }
 0x384   : > { %6691 = vpow2.f32 %v1709_v51  ;;  %2030 = vmatmul.f32.gmra.mxu0 %v7985_v16 }
 0x385   : > { %6693 = vpow2.f32 %v1711_v14 }
 0x386   : > { %6695 = vpow2.f32 %v1713_v13 }
 0x387   : > { %6697 = vpow2.f32 %v1715_v8  ;;  %v1565_v9 = vpop.xlane.xlu2 %1564 }
 0x388   : > { %v1637_v43 = vsub.f32 %v7793_v21, %v1565_v9  ;;  %v1638_v59 = vsub.f32 %v7795_v29, %v1565_v9  ;;  %v1639_v42 = vsub.f32 %v7799_v24, %v1565_v9  ;;  %v1640_v30 = vsub.f32 %v7801_v61, %v1565_v9 }
 0x38a   : > { %v7993_v34 = vpop.eup %6691  ;;  %v1717_v11 = vmul.f32 1.442695, %v1637_v43  ;;  %v1719_v44 = vmul.f32 1.442695, %v1638_v59  ;;  %v1721_v63 = vmul.f32 1.442695, %v1639_v42 }
 0x38b   : > { %v7995_v26 = vpop.eup %6693  ;;  %v1723_v48 = vmul.f32 1.442695, %v1640_v30  ;;  %1838 = vmatmul.f32.gmra.mxu1 %v7993_v34 }
 0x38c   : > { %v7998_v58 = vpop.eup %6695  ;;  %6699 = vpow2.f32 %v1717_v11  ;;  %1903 = vmatmul.f32.gmra.mxu2 %v7995_v26 }
 0x38d   : > { %v8001_v21 = vpop.eup %6697  ;;  %6701 = vpow2.f32 %v1719_v44  ;;  %1968 = vmatmul.f32.gmra.mxu3 %v7998_v58 }
 0x38e   : > { %6703 = vpow2.f32 %v1721_v63  ;;  %2033 = vmatmul.f32.gmra.mxu0 %v8001_v21  ;;  %v10340_v63 = vmov 1.0  }
 0x38f   : > { %6705 = vpow2.f32 %v1723_v48  ;;  %v1570_v29 = vpop.xlane.xlu2 %1569  ;;  %6196 = vmatpush.msk.msrb.mxu2 %vm6045_vm9, %v10340_v63  ;;  %6212 = vmatpush.msk.msra.mxu3 %vm6046_vm6, %v10340_v63 }
 0x390   : > { %v1641_v24 = vsub.f32 %v7805_v3, %v1570_v29  ;;  %v1642_v61 = vsub.f32 %v7807_v37, %v1570_v29  ;;  %v1643_v51 = vsub.f32 %v7811_v60, %v1570_v29  ;;  %v1644_v14 = vsub.f32 %v7813_v36, %v1570_v29  ;;  %6180 = vmatpush.msk.msrb.mxu1 %vm6044_vm8, %v10340_v63 }
 0x391   : > { %6197 = vmatpush.msk.msrb.mxu2 %vm6045_vm9, %v10340_v63  ;;  %6228 = vmatpush.msk.msrb.mxu0 %vm6047_vm7, %v10340_v63 }
 0x392   : > { %v8009_v13 = vpop.eup %6699  ;;  %v1725_v8 = vmul.f32 1.442695, %v1641_v24  ;;  %v1727_v9 = vmul.f32 1.442695, %v1642_v61  ;;  %v1729_v43 = vmul.f32 1.442695, %v1643_v51  ;;  %6213 = vmatpush.msk.msra.mxu3 %vm6046_vm6, %v10340_v63  ;;  %6181 = vmatpush.msk.msrb.mxu1 %vm6044_vm8, %v10340_v63 }
 0x393   : > { %v8011_v59 = vpop.eup %6701  ;;  %v1731_v42 = vmul.f32 1.442695, %v1644_v14  ;;  %1841 = vmatmul.f32.gmra.mxu1 %v8009_v13  ;;  %6198 = vmatpush.msk.msrb.mxu2 %vm6045_vm9, %v10340_v63 }
 0x394   : > { %v8014_v30 = vpop.eup %6703  ;;  %6707 = vpow2.f32 %v1725_v8  ;;  %1906 = vmatmul.f32.gmra.mxu2 %v8011_v59  ;;  %6214 = vmatpush.msk.msra.mxu3 %vm6046_vm6, %v10340_v63 }
 0x395   : > { %v8017_v3 = vpop.eup %6705  ;;  %6709 = vpow2.f32 %v1727_v9  ;;  %1971 = vmatmul.f32.gmra.mxu3 %v8014_v30  ;;  %6229 = vmatpush.msk.msrb.mxu0 %vm6047_vm7, %v10340_v63 }
 0x396   : > { %6711 = vpow2.f32 %v1729_v43  ;;  %2036 = vmatmul.f32.gmra.mxu0 %v8017_v3  ;;  %6182 = vmatpush.msk.msrb.mxu1 %vm6044_vm8, %v10340_v63 }
 0x397   : > { %6713 = vpow2.f32 %v1731_v42  ;;  %v1575_v37 = vpop.xlane.xlu0 %1574  ;;  %6199 = vmatpush.msk.msrb.mxu2 %vm6045_vm9, %v10340_v63  ;;  %6215 = vmatpush.msk.msra.mxu3 %vm6046_vm6, %v10340_v63 }
 0x398   : > { %v1645_v60 = vsub.f32 %v7817_v12, %v1575_v37  ;;  %v1646_v36 = vsub.f32 %v7819_v33, %v1575_v37  ;;  %v1647_v11 = vsub.f32 %v7823_v27, %v1575_v37  ;;  %v1648_v44 = vsub.f32 %v7825_v49, %v1575_v37  ;;  %6230 = vmatpush.msk.msrb.mxu0 %vm6047_vm7, %v10340_v63 }
 0x399   : > { %6183 = vmatpush.msk.msrb.mxu1 %vm6044_vm8, %v10340_v63  ;;  %6200 = vmatpush.msk.msrb.mxu2 %vm6045_vm9, %v10340_v63 }
 0x39a   : > { %v8034_v12 = vpop.eup %6707  ;;  %v1733_v33 = vmul.f32 1.442695, %v1645_v60  ;;  %v1735_v48 = vmul.f32 1.442695, %v1646_v36  ;;  %v1737_v27 = vmul.f32 1.442695, %v1647_v11  ;;  %6216 = vmatpush.msk.msra.mxu3 %vm6046_vm6, %v10340_v63  ;;  %6231 = vmatpush.msk.msrb.mxu0 %vm6047_vm7, %v10340_v63 }
 0x39b   : > { %v8042_v49 = vpop.eup %6709  ;;  %v1739_v29 = vmul.f32 1.442695, %v1648_v44  ;;  %1844 = vmatmul.f32.gmra.mxu1 %v8034_v12  ;;  %6201 = vmatpush.msk.msrb.mxu2 %vm6045_vm9, %v10340_v63 }
 0x39c   : > { %v8048_v24 = vpop.eup %6711  ;;  %6715 = vpow2.f32 %v1733_v33  ;;  %1909 = vmatmul.f32.gmra.mxu2 %v8042_v49  ;;  %6184 = vmatpush.msk.msrb.mxu1 %vm6044_vm8, %v10340_v63 }
 0x39d   : > { %v8054_v61 = vpop.eup %6713  ;;  %6717 = vpow2.f32 %v1735_v48  ;;  %1974 = vmatmul.f32.gmra.mxu3 %v8048_v24  ;;  %6232 = vmatpush.msk.msrb.mxu0 %vm6047_vm7, %v10340_v63 }
 0x39e   : > { %6719 = vpow2.f32 %v1737_v27  ;;  %2039 = vmatmul.f32.gmra.mxu0 %v8054_v61  ;;  %6217 = vmatpush.msk.msra.mxu3 %vm6046_vm6, %v10340_v63 }
 0x39f   : > { %6721 = vpow2.f32 %v1739_v29  ;;  %v1580_v51 = vpop.xlane.xlu1 %1579  ;;  %6185 = vmatpush.msk.msrb.mxu1 %vm6044_vm8, %v10340_v63  ;;  %6233 = vmatpush.msk.msrb.mxu0 %vm6047_vm7, %v10340_v63 }
 0x3a0   : > { %v1649_v14 = vsub.f32 %v7829_v56, %v1580_v51  ;;  %v1650_v8 = vsub.f32 %v7831_v45, %v1580_v51  ;;  %v1651_v9 = vsub.f32 %v7835_v17, %v1580_v51  ;;  %v1652_v43 = vsub.f32 %v7837_v25, %v1580_v51  ;;  %6202 = vmatpush.msk.msrb.mxu2 %vm6045_vm9, %v10340_v63 }
 0x3a1   : > { %6186 = vmatpush.msk.msrb.mxu1 %vm6044_vm8, %v10340_v63  ;;  %6218 = vmatpush.msk.msra.mxu3 %vm6046_vm6, %v10340_v63 }
 0x3a2   : > { %v8083_v42 = vpop.eup %6715  ;;  %v1741_v56 = vmul.f32 1.442695, %v1649_v14  ;;  %v1743_v45 = vmul.f32 1.442695, %v1650_v8  ;;  %v1745_v37 = vmul.f32 1.442695, %v1651_v9  ;;  %6234 = vmatpush.msk.msrb.mxu0 %vm6047_vm7, %v10340_v63  ;;  %6203 = vmatpush.msk.msrb.mxu2 %vm6045_vm9, %v10340_v63 }
 0x3a3   : > { %v8091_v17 = vpop.eup %6717  ;;  %v1747_v25 = vmul.f32 1.442695, %v1652_v43  ;;  %1847 = vmatmul.f32.gmra.mxu1 %v8083_v42  ;;  %6219 = vmatpush.msk.msra.mxu3 %vm6046_vm6, %v10340_v63 }
 0x3a4   : > { %v8097_v60 = vpop.eup %6719  ;;  %6723 = vpow2.f32 %v1741_v56  ;;  %1912 = vmatmul.f32.gmra.mxu2 %v8091_v17  ;;  %6187 = vmatpush.msk.msrb.mxu1 %vm6044_vm8, %v10340_v63 }
 0x3a5   : > { %v8103_v36 = vpop.eup %6721  ;;  %6725 = vpow2.f32 %v1743_v45  ;;  %1977 = vmatmul.f32.gmra.mxu3 %v8097_v60  ;;  %6235 = vmatpush.msk.msrb.mxu0 %vm6047_vm7, %v10340_v63 }
 0x3a6   : > { %6727 = vpow2.f32 %v1745_v37  ;;  %2042 = vmatmul.f32.gmra.mxu0 %v8103_v36  ;;  %6188 = vmatpush.msk.msrb.mxu1 %vm6044_vm8, %v10340_v63 }
 0x3a7   : > { %6729 = vpow2.f32 %v1747_v25  ;;  %v1585_v11 = vpop.xlane.xlu2 %1584  ;;  %6204 = vmatpush.msk.msrb.mxu2 %vm6045_vm9, %v10340_v63  ;;  %6220 = vmatpush.msk.msra.mxu3 %vm6046_vm6, %v10340_v63 }
 0x3a8   : > { %v1653_v44 = vsub.f32 %v7841_v32, %v1585_v11  ;;  %v1654_v33 = vsub.f32 %v7843_v28, %v1585_v11  ;;  %v1655_v48 = vsub.f32 %v7847_v39, %v1585_v11  ;;  %v1656_v27 = vsub.f32 %v7849_v53, %v1585_v11  ;;  %6236 = vmatpush.msk.msrb.mxu0 %vm6047_vm7, %v10340_v63 }
 0x3a9   : > { %6189 = vmatpush.msk.msrb.mxu1 %vm6044_vm8, %v10340_v63  ;;  %6205 = vmatpush.msk.msrb.mxu2 %vm6045_vm9, %v10340_v63 }
 0x3aa   : > { %v8132_v29 = vpop.eup %6723  ;;  %v1749_v32 = vmul.f32 1.442695, %v1653_v44  ;;  %v1751_v28 = vmul.f32 1.442695, %v1654_v33  ;;  %v1753_v51 = vmul.f32 1.442695, %v1655_v48  ;;  %6221 = vmatpush.msk.msra.mxu3 %vm6046_vm6, %v10340_v63  ;;  %6237 = vmatpush.msk.msrb.mxu0 %vm6047_vm7, %v10340_v63 }
 0x3ab   : > { %v8140_v39 = vpop.eup %6725  ;;  %v1755_v53 = vmul.f32 1.442695, %v1656_v27  ;;  %1850 = vmatmul.f32.gmra.mxu1 %v8132_v29  ;;  %6206 = vmatpush.msk.msrb.mxu2 %vm6045_vm9, %v10340_v63 }
 0x3ac   : > { %v8146_v14 = vpop.eup %6727  ;;  %6731 = vpow2.f32 %v1749_v32  ;;  %1915 = vmatmul.f32.gmra.mxu2 %v8140_v39  ;;  %6190 = vmatpush.msk.msrb.mxu1 %vm6044_vm8, %v10340_v63 }
 0x3ad   : > { %v8152_v8 = vpop.eup %6729  ;;  %6733 = vpow2.f32 %v1751_v28  ;;  %1980 = vmatmul.f32.gmra.mxu3 %v8146_v14  ;;  %6238 = vmatpush.msk.msrb.mxu0 %vm6047_vm7, %v10340_v63 }
 0x3ae   : > { %6735 = vpow2.f32 %v1753_v51  ;;  %2045 = vmatmul.f32.gmra.mxu0 %v8152_v8  ;;  %6222 = vmatpush.msk.msra.mxu3 %vm6046_vm6, %v10340_v63 }
 0x3af   : > { %6737 = vpow2.f32 %v1755_v53  ;;  %v1590_v9 = vpop.xlane.xlu0 %1589  ;;  %6191 = vmatpush.msk.msrb.mxu1 %vm6044_vm8, %v10340_v63  ;;  %6207 = vmatpush.msk.msrb.mxu2 %vm6045_vm9, %v10340_v63 }
 0x3b0   : > { %v1657_v43 = vsub.f32 %v7853_v35, %v1590_v9  ;;  %v1658_v56 = vsub.f32 %v7855_v0, %v1590_v9  ;;  %v1659_v45 = vsub.f32 %v7859_v5, %v1590_v9  ;;  %v1660_v37 = vsub.f32 %v7861_v15, %v1590_v9  ;;  %6223 = vmatpush.msk.msra.mxu3 %vm6046_vm6, %v10340_v63 }
 0x3b1   : > { %6239 = vmatpush.msk.msrb.mxu0 %vm6047_vm7, %v10340_v63  ;;  %6192 = vmatpush.msk.msrb.mxu1 %vm6044_vm8, %v10340_v63 }
 0x3b2   : > { %v8181_v25 = vpop.eup %6731  ;;  %v1757_v35 = vmul.f32 1.442695, %v1657_v43  ;;  %v1759_v0 = vmul.f32 1.442695, %v1658_v56  ;;  %v1761_v11 = vmul.f32 1.442695, %v1659_v45  ;;  %6208 = vmatpush.msk.msrb.mxu2 %vm6045_vm9, %v10340_v63  ;;  %6224 = vmatpush.msk.msra.mxu3 %vm6046_vm6, %v10340_v63 }
 0x3b3   : > { %v8189_v5 = vpop.eup %6733  ;;  %v1763_v15 = vmul.f32 1.442695, %v1660_v37  ;;  %1853 = vmatmul.f32.gmra.mxu1 %v8181_v25  ;;  %6240 = vmatpush.msk.msrb.mxu0 %vm6047_vm7, %v10340_v63 }
 0x3b4   : > { %v8195_v44 = vpop.eup %6735  ;;  %6739 = vpow2.f32 %v1757_v35  ;;  %1918 = vmatmul.f32.gmra.mxu2 %v8189_v5  ;;  %6193 = vmatpush.msk.msrb.mxu1 %vm6044_vm8, %v10340_v63 }
 0x3b5   : > { %v8201_v33 = vpop.eup %6737  ;;  %6741 = vpow2.f32 %v1759_v0  ;;  %1983 = vmatmul.f32.gmra.mxu3 %v8195_v44  ;;  %6209 = vmatpush.msk.msrb.mxu2 %vm6045_vm9, %v10340_v63  ;;  %v10383_v0 = vld [vmem:[#allocation26_spill] sm:$0xff] }
 0x3b6   : > { %6743 = vpow2.f32 %v1761_v11  ;;  %2048 = vmatmul.f32.gmra.mxu0 %v8201_v33  ;;  %6225 = vmatpush.msk.msra.mxu3 %vm6046_vm6, %v10340_v63 }
 0x3b7   : > { %6745 = vpow2.f32 %v1763_v15  ;;  %v1595_v48 = vpop.xlane.xlu1 %1594  ;;  %v10384_v15 = vld [vmem:[#allocation27_spill] sm:$0xff]  ;;  %6241 = vmatpush.msk.msrb.mxu0 %vm6047_vm7, %v10340_v63  ;;  %6194 = vmatpush.msk.msrb.mxu1 %vm6044_vm8, %v10340_v63 }
 0x3b8   : > { %v1661_v27 = vsub.f32 %v7865_v55, %v1595_v48  ;;  %v1662_v32 = vsub.f32 %v7867_v4, %v1595_v48  ;;  %v1663_v28 = vsub.f32 %v7871_v19, %v1595_v48  ;;  %v1664_v51 = vsub.f32 %v7873_v1, %v1595_v48  ;;  %6210 = vmatpush.msk.msrb.mxu2 %vm6045_vm9, %v10340_v63 }
 0x3b9   : > { %6226 = vmatpush.msk.msra.mxu3 %vm6046_vm6, %v10340_v63  ;;  %6242 = vmatpush.msk.msrb.mxu0 %vm6047_vm7, %v10340_v63 }
 0x3ba   : > { %v8230_v53 = vpop.eup %6739  ;;  %v1765_v55 = vmul.f32 1.442695, %v1661_v27  ;;  %v1767_v4 = vmul.f32 1.442695, %v1662_v32  ;;  %v1769_v9 = vmul.f32 1.442695, %v1663_v28  ;;  %6211 = vmatpush.msk.msrb.mxu2 %vm6045_vm9, %v10340_v63  ;;  %6195 = vmatpush.msk.msrb.mxu1 %vm6044_vm8, %v10340_v63 }
 0x3bb   : > { %v8238_v19 = vpop.eup %6741  ;;  %v1771_v1 = vmul.f32 1.442695, %v1664_v51  ;;  %1856 = vmatmul.f32.gmra.mxu1 %v8230_v53  ;;  %6243 = vmatpush.msk.msrb.mxu0 %vm6047_vm7, %v10340_v63 }
 0x3bc   : > { %v8244_v43 = vpop.eup %6743  ;;  %6747 = vpow2.f32 %v1765_v55  ;;  %1921 = vmatmul.f32.gmra.mxu2 %v8238_v19  ;;  %6227 = vmatpush.msk.msra.mxu3 %vm6046_vm6, %v10340_v63 }
 0x3bd   : > { %v8250_v56 = vpop.eup %6745  ;;  %6749 = vpow2.f32 %v1767_v4  ;;  %1986 = vmatmul.f32.gmra.mxu3 %v8244_v43 }
 0x3be   : > { %6751 = vpow2.f32 %v1769_v9  ;;  %2051 = vmatmul.f32.gmra.mxu0 %v8250_v56 }
 0x3bf   : > { %6753 = vpow2.f32 %v1771_v1  ;;  %v1600_v45 = vpop.xlane.xlu2 %1599  ;;  %v10388_v1 = vld [vmem:[#allocation28_spill] sm:$0xff] }
 0x3c0   : > { %v1665_v37 = vsub.f32 %v7877_v22, %v1600_v45  ;;  %v1666_v35 = vsub.f32 %v7879_v6, %v1600_v45  ;;  %v1667_v11 = vsub.f32 %v10383_v0, %v1600_v45  ;;  %v1668_v48 = vsub.f32 %v10384_v15, %v1600_v45  ;;  %v10390_v0 = vld [vmem:[#allocation30_spill] sm:$0xff]  ;;  %v10391_v15 = vld [vmem:[#allocation31_spill] sm:$0xff] }
 0x3c2   : > { %v8279_v27 = vpop.eup %6747  ;;  %v1773_v22 = vmul.f32 1.442695, %v1665_v37  ;;  %v1775_v6 = vmul.f32 1.442695, %v1666_v35  ;;  %v1777_v32 = vmul.f32 1.442695, %v1667_v11 }
 0x3c3   : > { %v8287_v28 = vpop.eup %6749  ;;  %v1779_v51 = vmul.f32 1.442695, %v1668_v48  ;;  %1859 = vmatmul.f32.gmra.mxu1 %v8279_v27  ;;  %v10389_v37 = vld [vmem:[#allocation29_spill] sm:$0xff] }
 0x3c4   : > { %10385 = vst [vmem:[#allocation26_spill] sm:$0xff] %v8287_v28  ;;  %v8293_v55 = vpop.eup %6751  ;;  %6755 = vpow2.f32 %v1773_v22  ;;  %1924 = vmatmul.f32.gmra.mxu2 %v8287_v28 }
 0x3c5   : > { %10386 = vst [vmem:[#allocation27_spill] sm:$0xff] %v8293_v55  ;;  %v8299_v4 = vpop.eup %6753  ;;  %6757 = vpow2.f32 %v1775_v6  ;;  %1989 = vmatmul.f32.gmra.mxu3 %v8293_v55 }
 0x3c6   : > { %10387 = vst [vmem:[#allocation39_spill] sm:$0xff] %v8299_v4  ;;  %6759 = vpow2.f32 %v1777_v32  ;;  %2054 = vmatmul.f32.gmra.mxu0 %v8299_v4 }
 0x3c7   : > { %6761 = vpow2.f32 %v1779_v51  ;;  %v1605_v9 = vpop.xlane.xlu0 %1604 }
 0x3c8   : > { %v1669_v45 = vsub.f32 %v10388_v1, %v1605_v9  ;;  %v1670_v35 = vsub.f32 %v10389_v37, %v1605_v9  ;;  %v1671_v11 = vsub.f32 %v10390_v0, %v1605_v9  ;;  %v1672_v48 = vsub.f32 %v10391_v15, %v1605_v9 }
 0x3ca   : > { %v8313_v22 = vpop.eup %6755  ;;  %v1781_v6 = vmul.f32 1.442695, %v1669_v45  ;;  %v1783_v32 = vmul.f32 1.442695, %v1670_v35  ;;  %v1785_v55 = vmul.f32 1.442695, %v1671_v11 }
 0x3cb   : > { %10392 = vst [vmem:[#allocation28_spill] sm:$0xff] %v8313_v22  ;;  %v8315_v4 = vpop.eup %6757  ;;  %v1787_v28 = vmul.f32 1.442695, %v1672_v48  ;;  %1862 = vmatmul.f32.gmra.mxu1 %v8313_v22  ;;  %v10395_v45 = vld [vmem:[#allocation32_spill] sm:$0xff]  ;;  %v10396_v35 = vld [vmem:[#allocation33_spill] sm:$0xff]  ;;  %v10397_v11 = vld [vmem:[#allocation34_spill] sm:$0xff] }
 0x3cc   : > { %10393 = vst [vmem:[#allocation29_spill] sm:$0xff] %v8315_v4  ;;  %v8318_v51 = vpop.eup %6759  ;;  %6763 = vpow2.f32 %v1781_v6  ;;  %1927 = vmatmul.f32.gmra.mxu2 %v8315_v4  ;;  %v10398_v48 = vld [vmem:[#allocation35_spill] sm:$0xff] }
 0x3cd   : > { %v8321_v1 = vpop.eup %6761  ;;  %6765 = vpow2.f32 %v1783_v32  ;;  %1992 = vmatmul.f32.gmra.mxu3 %v8318_v51 }
 0x3ce   : > { %10394 = vst [vmem:[#allocation30_spill] sm:$0xff] %v8321_v1  ;;  %6767 = vpow2.f32 %v1785_v55  ;;  %2057 = vmatmul.f32.gmra.mxu0 %v8321_v1 }
 0x3cf   : > { %6769 = vpow2.f32 %v1787_v28  ;;  %v1610_v9 = vpop.xlane.xlu1 %1609 }
 0x3d0   : > { %v1673_v37 = vsub.f32 %v10395_v45, %v1610_v9  ;;  %v1674_v0 = vsub.f32 %v10396_v35, %v1610_v9  ;;  %v1675_v15 = vsub.f32 %v10397_v11, %v1610_v9  ;;  %v1676_v6 = vsub.f32 %v10398_v48, %v1610_v9 }
 0x3d2   : > { %v8329_v63 = vpop.eup %6763  ;;  %v1789_v57 = vmul.f32 1.442695, %v1673_v37  ;;  %v1791_v4 = vmul.f32 1.442695, %v1674_v0  ;;  %v1793_v32 = vmul.f32 1.442695, %v1675_v15 }
 0x3d3   : > { %10399 = vst [vmem:[#allocation31_spill] sm:$0xff] %v8329_v63  ;;  %v8331_v22 = vpop.eup %6765  ;;  %v1795_v55 = vmul.f32 1.442695, %v1676_v6  ;;  %1865 = vmatmul.f32.gmra.mxu1 %v8329_v63  ;;  %v10401_v37 = vld [vmem:[#allocation36_spill] sm:$0xff]  ;;  %v10402_v0 = vld [vmem:[#allocation37_spill] sm:$0xff]  ;;  %v10403_v15 = vld [vmem:[#allocation38_spill] sm:$0xff] }
 0x3d4   : > { %10400 = vst [vmem:[#allocation32_spill] sm:$0xff] %v8331_v22  ;;  %v8334_v28 = vpop.eup %6767  ;;  %6771 = vpow2.f32 %v1789_v57  ;;  %1930 = vmatmul.f32.gmra.mxu2 %v8331_v22 }
 0x3d5   : > { %v8337_v45 = vpop.eup %6769  ;;  %6773 = vpow2.f32 %v1791_v4  ;;  %1995 = vmatmul.f32.gmra.mxu3 %v8334_v28 }
 0x3d6   : > { %6775 = vpow2.f32 %v1793_v32  ;;  %2060 = vmatmul.f32.gmra.mxu0 %v8337_v45 }
 0x3d7   : > { %6777 = vpow2.f32 %v1795_v55  ;;  %v1615_v9 = vpop.xlane.xlu2 %1614 }
 0x3d8   : > { %v1677_v35 = vsub.f32 %v10401_v37, %v1615_v9  ;;  %v1678_v11 = vsub.f32 %v10402_v0, %v1615_v9  ;;  %v1679_v48 = vsub.f32 %v10403_v15, %v1615_v9  ;;  %v1680_v57 = vsub.f32 %v7921_v38, %v1615_v9 }
 0x3da   : > { %v8345_v6 = vpop.eup %6771  ;;  %v1797_v22 = vmul.f32 1.442695, %v1677_v35  ;;  %v1799_v63 = vmul.f32 1.442695, %v1678_v11  ;;  %v1801_v4 = vmul.f32 1.442695, %v1679_v48 }
 0x3db   : > { %v8347_v1 = vpop.eup %6773  ;;  %v1803_v32 = vmul.f32 1.442695, %v1680_v57  ;;  %1868 = vmatmul.f32.gmra.mxu1 %v8345_v6 }
 0x3dc   : > { %v8350_v55 = vpop.eup %6775  ;;  %6779 = vpow2.f32 %v1797_v22  ;;  %1933 = vmatmul.f32.gmra.mxu2 %v8347_v1 }
 0x3dd   : > { %v8353_v37 = vpop.eup %6777  ;;  %6781 = vpow2.f32 %v1799_v63  ;;  %1998 = vmatmul.f32.gmra.mxu3 %v8350_v55 }
 0x3de   : > { %6783 = vpow2.f32 %v1801_v4  ;;  %2063 = vmatmul.f32.gmra.mxu0 %v8353_v37 }
 0x3df   : > { %6785 = vpow2.f32 %v1803_v32  ;;  %v1620_v38 = vpop.xlane.xlu0 %1619 }
 0x3e0   : > { %v1681_v9 = vsub.f32 %v7928_v50, %v1620_v38  ;;  %v1682_v35 = vsub.f32 %v7931_v23, %v1620_v38  ;;  %v1683_v0 = vsub.f32 %v7935_v52, %v1620_v38  ;;  %v1684_v22 = vsub.f32 %v7937_v20, %v1620_v38 }
 0x3e2   : > { %v8361_v11 = vpop.eup %6779  ;;  %v1805_v15 = vmul.f32 1.442695, %v1681_v9  ;;  %v1807_v48 = vmul.f32 1.442695, %v1682_v35  ;;  %v1809_v63 = vmul.f32 1.442695, %v1683_v0 }
 0x3e3   : > { %v8363_v57 = vpop.eup %6781  ;;  %v1811_v4 = vmul.f32 1.442695, %v1684_v22  ;;  %1871 = vmatmul.f32.gmra.mxu1 %v8361_v11 }
 0x3e4   : > { %v8366_v32 = vpop.eup %6783  ;;  %6787 = vpow2.f32 %v1805_v15  ;;  %1936 = vmatmul.f32.gmra.mxu2 %v8363_v57 }
 0x3e5   : > { %v8369_v23 = vpop.eup %6785  ;;  %6789 = vpow2.f32 %v1807_v48  ;;  %2001 = vmatmul.f32.gmra.mxu3 %v8366_v32 }
 0x3e6   : > { %6791 = vpow2.f32 %v1809_v63  ;;  %2066 = vmatmul.f32.gmra.mxu0 %v8369_v23 }
 0x3e7   : > { %6793 = vpow2.f32 %v1811_v4 }
 0x3ea   : > { %v8373_v50 = vpop.eup %6787  ;;  %v8375_v52 = vpop.f32.mrf.mxu1 }
 0x3eb   : > { %v8377_v20 = vpop.eup %6789  ;;  %1874 = vmatmul.f32.gmra.mxu1 %v8373_v50 }
 0x3ec   : > { %v8380_v38 = vpop.eup %6791  ;;  %1939 = vmatmul.f32.gmra.mxu2 %v8377_v20  ;;  %v8386_v35 = vpop.f32.mrf.mxu0 }
 0x3ed   : > { %v8383_v9 = vpop.eup %6793  ;;  %2004 = vmatmul.f32.gmra.mxu3 %v8380_v38  ;;  %10404 = vst [vmem:[#allocation33_spill] sm:$0xff] %v8386_v35 }
 0x3ee   : > { %2069 = vmatmul.f32.gmra.mxu0 %v8383_v9 }
 0x3f0   : > { %v8389_v0 = vpop.f32.mrf.mxu2 }
 0x3f1   : > { %10405 = vst [vmem:[#allocation34_spill] sm:$0xff] %v8389_v0  ;;  %v8391_v22 = vpop.f32.mrf.mxu3 }
 0x3f2   : > { %10406 = vst [vmem:[#allocation35_spill] sm:$0xff] %v8391_v22 }
 0x3f3   : > { %2089 = vmatmul.f32.vlgmr.msrb.gmra.mxu1 %v7941_v46 }
 0x3f4   : > { %2154 = vmatmul.f32.vlgmr.msrb.gmra.mxu2 %v7947_v10  ;;  %v1833_v15 = vpop.f32.mrf.mxu1 }
 0x3f5   : > { %2219 = vmatmul.f32.vlgmr.msra.gmra.mxu3 %v7950_v2 }
 0x3f6   : > { %2284 = vmatmul.f32.vlgmr.msrb.gmra.mxu0 %v7953_v62 }
 0x3f7   : > { %v2028_v48 = vpop.f32.mrf.mxu0 }
 0x3fb   : > { %2092 = vmatmul.f32.gmra.mxu1 %v7957_v40  ;;  %v1898_v63 = vpop.f32.mrf.mxu2 }
 0x3fc   : > { %2157 = vmatmul.f32.gmra.mxu2 %v7963_v54  ;;  %v1899_v4 = vadd.f32 %v1898_v63, %v1833_v15  ;;  %v1963_v35 = vpop.f32.mrf.mxu3 }
 0x3fd   : > { %2222 = vmatmul.f32.gmra.mxu3 %v7966_v18 }
 0x3fe   : > { %2287 = vmatmul.f32.gmra.mxu0 %v7969_v7  ;;  %v1964_v46 = vadd.f32 %v1963_v35, %v1899_v4  ;;  %v1836_v22 = vpop.f32.mrf.mxu1 }
 0x400   : > { %v8401_v10 = vadd.f32 %v2028_v48, %v1964_v46 }
 0x401   : > { %v2031_v0 = vpop.f32.mrf.mxu0 }
 0x403   : > { %2095 = vmatmul.f32.gmra.mxu1 %v7973_v41 }
 0x404   : > { %2160 = vmatmul.f32.gmra.mxu2 %v7979_v31 }
 0x405   : > { %2225 = vmatmul.f32.gmra.mxu3 %v7982_v47  ;;  %v1901_v2 = vpop.f32.mrf.mxu2 }
 0x406   : > { %2290 = vmatmul.f32.gmra.mxu0 %v7985_v16  ;;  %v1902_v62 = vadd.f32 %v1901_v2, %v1836_v22  ;;  %v1966_v40 = vpop.f32.mrf.mxu3 }
 0x408   : > { %v1967_v54 = vadd.f32 %v1966_v40, %v1902_v62  ;;  %v1839_v18 = vpop.f32.mrf.mxu1 }
 0x40a   : > { %v8407_v15 = vadd.f32 %v2031_v0, %v1967_v54 }
 0x40b   : > { %v2034_v7 = vpop.f32.mrf.mxu0  ;;  %2098 = vmatmul.f32.gmra.mxu1 %v7993_v34 }
 0x40c   : > { %2163 = vmatmul.f32.gmra.mxu2 %v7995_v26 }
 0x40d   : > { %2228 = vmatmul.f32.gmra.mxu3 %v7998_v58 }
 0x40e   : > { %2293 = vmatmul.f32.gmra.mxu0 %v8001_v21 }
 0x40f   : > { %v1904_v41 = vpop.f32.mrf.mxu2 }
 0x410   : > { %v1905_v31 = vadd.f32 %v1904_v41, %v1839_v18  ;;  %v1969_v47 = vpop.f32.mrf.mxu3  ;;  %v1842_v35 = vpop.f32.mrf.mxu1 }
 0x412   : > { %v1970_v16 = vadd.f32 %v1969_v47, %v1905_v31 }
 0x413   : > { %v2037_v22 = vpop.f32.mrf.mxu0  ;;  %2101 = vmatmul.f32.gmra.mxu1 %v8009_v13 }
 0x414   : > { %v8414_v48 = vadd.f32 %v2034_v7, %v1970_v16  ;;  %2166 = vmatmul.f32.gmra.mxu2 %v8011_v59  ;;  %v10408_v16 = vld [vmem:[#allocation27_spill] sm:$0xff] }
 0x415   : > { %2231 = vmatmul.f32.gmra.mxu3 %v8014_v30 }
 0x416   : > { %2296 = vmatmul.f32.gmra.mxu0 %v8017_v3 }
 0x417   : > { %v1907_v34 = vpop.f32.mrf.mxu2 }
 0x418   : > { %v1908_v26 = vadd.f32 %v1907_v34, %v1842_v35  ;;  %v1972_v58 = vpop.f32.mrf.mxu3  ;;  %v1845_v21 = vpop.f32.mrf.mxu1  ;;  %v10407_v35 = vld [vmem:[#allocation26_spill] sm:$0xff]  ;;  %v10410_v34 = vld [vmem:[#allocation28_spill] sm:$0xff] }
 0x41a   : > { %v1973_v0 = vadd.f32 %v1972_v58, %v1908_v26  ;;  %v10411_v26 = vld [vmem:[#allocation29_spill] sm:$0xff] }
 0x41b   : > { %v2040_v63 = vpop.f32.mrf.mxu0  ;;  %2104 = vmatmul.f32.gmra.mxu1 %v8034_v12 }
 0x41c   : > { %v8420_v4 = vadd.f32 %v2037_v22, %v1973_v0  ;;  %2169 = vmatmul.f32.gmra.mxu2 %v8042_v49 }
 0x41d   : > { %2234 = vmatmul.f32.gmra.mxu3 %v8048_v24 }
 0x41e   : > { %2299 = vmatmul.f32.gmra.mxu0 %v8054_v61 }
 0x41f   : > { %v1910_v13 = vpop.f32.mrf.mxu2 }
 0x420   : > { %v1911_v59 = vadd.f32 %v1910_v13, %v1845_v21  ;;  %v1975_v30 = vpop.f32.mrf.mxu3  ;;  %v1848_v3 = vpop.f32.mrf.mxu1  ;;  %v10413_v13 = vld [vmem:[#allocation31_spill] sm:$0xff] }
 0x422   : > { %v1976_v46 = vadd.f32 %v1975_v30, %v1911_v59  ;;  %v10414_v59 = vld [vmem:[#allocation32_spill] sm:$0xff] }
 0x423   : > { %v2043_v2 = vpop.f32.mrf.mxu0  ;;  %2107 = vmatmul.f32.gmra.mxu1 %v8083_v42  ;;  %v2575_v30 = vld [vmem:[#allocation2 + $0x308] sm:$0xff] }
 0x424   : > { %v8426_v62 = vadd.f32 %v2040_v63, %v1976_v46  ;;  %2172 = vmatmul.f32.gmra.mxu2 %v8091_v17 }
 0x425   : > { %2237 = vmatmul.f32.gmra.mxu3 %v8097_v60 }
 0x426   : > { %2302 = vmatmul.f32.gmra.mxu0 %v8103_v36 }
 0x427   : > { %v1913_v12 = vpop.f32.mrf.mxu2 }
 0x428   : > { %v1914_v49 = vadd.f32 %v1913_v12, %v1848_v3  ;;  %v1978_v24 = vpop.f32.mrf.mxu3  ;;  %v1851_v61 = vpop.f32.mrf.mxu1 }
 0x42a   : > { %v1979_v40 = vadd.f32 %v1978_v24, %v1914_v49  ;;  %v2573_v24 = vld [vmem:[#allocation2 + $0x2f8] sm:$0xff] }
 0x42b   : > { %v2046_v54 = vpop.f32.mrf.mxu0  ;;  %2110 = vmatmul.f32.gmra.mxu1 %v8132_v29  ;;  %v2576_v29 = vld [vmem:[#allocation2 + $0x310] sm:$0xff] }
 0x42c   : > { %v8432_v18 = vadd.f32 %v2043_v2, %v1979_v40  ;;  %2175 = vmatmul.f32.gmra.mxu2 %v8140_v39  ;;  %2639 = vmatpush.msra.mxu1 %v2576_v29 }
 0x42d   : > { %2240 = vmatmul.f32.gmra.mxu3 %v8146_v14 }
 0x42e   : > { %2305 = vmatmul.f32.gmra.mxu0 %v8152_v8  ;;  %2640 = vmatpush.msra.mxu1 %v2575_v30 }
 0x42f   : > { %v1916_v42 = vpop.f32.mrf.mxu2 }
 0x430   : > { %v1917_v17 = vadd.f32 %v1916_v42, %v1851_v61  ;;  %v1981_v60 = vpop.f32.mrf.mxu3  ;;  %v8437_v36 = vpop.f32.mrf.mxu1 }
 0x432   : > { %v1982_v7 = vadd.f32 %v1981_v60, %v1917_v17 }
 0x433   : > { %v8439_v41 = vpop.f32.mrf.mxu0  ;;  %2113 = vmatmul.f32.gmra.mxu1 %v8181_v25 }
 0x434   : > { %v8442_v31 = vadd.f32 %v2046_v54, %v1982_v7  ;;  %2178 = vmatmul.f32.gmra.mxu2 %v8189_v5 }
 0x435   : > { %2243 = vmatmul.f32.gmra.mxu3 %v8195_v44 }
 0x436   : > { %2308 = vmatmul.f32.gmra.mxu0 %v8201_v33 }
 0x437   : > { %v8447_v39 = vpop.f32.mrf.mxu2 }
 0x438   : > { %v8449_v14 = vpop.f32.mrf.mxu3  ;;  %v8451_v8 = vpop.f32.mrf.mxu1 }
 0x43b   : > { %v8453_v47 = vpop.f32.mrf.mxu0  ;;  %2116 = vmatmul.f32.gmra.mxu1 %v8230_v53  ;;  %v10409_v53 = vld [vmem:[#allocation39_spill] sm:$0xff] }
 0x43c   : > { %2181 = vmatmul.f32.gmra.mxu2 %v8238_v19 }
 0x43d   : > { %2246 = vmatmul.f32.gmra.mxu3 %v8244_v43 }
 0x43e   : > { %2311 = vmatmul.f32.gmra.mxu0 %v8250_v56 }
 0x43f   : > { %v8459_v25 = vpop.f32.mrf.mxu2 }
 0x440   : > { %v8461_v5 = vpop.f32.mrf.mxu3  ;;  %v8463_v44 = vpop.f32.mrf.mxu1 }
 0x443   : > { %v8465_v33 = vpop.f32.mrf.mxu0  ;;  %2119 = vmatmul.f32.gmra.mxu1 %v8279_v27  ;;  %v10412_v27 = vld [vmem:[#allocation30_spill] sm:$0xff] }
 0x444   : > { %2184 = vmatmul.f32.gmra.mxu2 %v10407_v35 }
 0x445   : > { %2249 = vmatmul.f32.gmra.mxu3 %v10408_v16 }
 0x446   : > { %2314 = vmatmul.f32.gmra.mxu0 %v10409_v53 }
 0x447   : > { %v8471_v19 = vpop.f32.mrf.mxu2 }
 0x448   : > { %v8473_v43 = vpop.f32.mrf.mxu3  ;;  %v8475_v56 = vpop.f32.mrf.mxu1 }
 0x44b   : > { %v8477_v22 = vpop.f32.mrf.mxu0  ;;  %2122 = vmatmul.f32.gmra.mxu1 %v10410_v34 }
 0x44c   : > { %2187 = vmatmul.f32.gmra.mxu2 %v10411_v26  ;;  %v10417_v26 = vld [vmem:[#allocation34_spill] sm:$0xff] }
 0x44d   : > { %2252 = vmatmul.f32.gmra.mxu3 %v8318_v51 }
 0x44e   : > { %2317 = vmatmul.f32.gmra.mxu0 %v10412_v27  ;;  %v1896_v27 = vadd.f32 %v10417_v26, %v8375_v52 }
 0x44f   : > { %v8483_v58 = vpop.f32.mrf.mxu2 }
 0x450   : > { %v8485_v21 = vpop.f32.mrf.mxu3  ;;  %v8487_v0 = vpop.f32.mrf.mxu1 }
 0x453   : > { %v8489_v63 = vpop.f32.mrf.mxu0  ;;  %2125 = vmatmul.f32.gmra.mxu1 %v10413_v13 }
 0x454   : > { %2190 = vmatmul.f32.gmra.mxu2 %v10414_v59 }
 0x455   : > { %2255 = vmatmul.f32.gmra.mxu3 %v8334_v28 }
 0x456   : > { %2320 = vmatmul.f32.gmra.mxu0 %v8337_v45 }
 0x457   : > { %v8495_v51 = vpop.f32.mrf.mxu2 }
 0x458   : > { %v8497_v3 = vpop.f32.mrf.mxu3  ;;  %v8499_v46 = vpop.f32.mrf.mxu1 }
 0x45b   : > { %v8501_v2 = vpop.f32.mrf.mxu0  ;;  %2128 = vmatmul.f32.gmra.mxu1 %v8345_v6 }
 0x45c   : > { %2193 = vmatmul.f32.gmra.mxu2 %v8347_v1 }
 0x45d   : > { %2258 = vmatmul.f32.gmra.mxu3 %v8350_v55 }
 0x45e   : > { %2323 = vmatmul.f32.gmra.mxu0 %v8353_v37 }
 0x45f   : > { %v8507_v28 = vpop.f32.mrf.mxu2 }
 0x460   : > { %v8509_v12 = vpop.f32.mrf.mxu3  ;;  %v8511_v45 = vpop.f32.mrf.mxu1 }
 0x463   : > { %v8513_v49 = vpop.f32.mrf.mxu0  ;;  %2131 = vmatmul.f32.gmra.mxu1 %v8361_v11 }
 0x464   : > { %2196 = vmatmul.f32.gmra.mxu2 %v8363_v57  ;;  %v2574_v57 = vld [vmem:[#allocation2 + $0x300] sm:$0xff] }
 0x465   : > { %2261 = vmatmul.f32.gmra.mxu3 %v8366_v32  ;;  %2641 = vmatpush.msra.mxu1 %v2574_v57 }
 0x466   : > { %2326 = vmatmul.f32.gmra.mxu0 %v8369_v23 }
 0x467   : > { %v8519_v1 = vpop.f32.mrf.mxu2  ;;  %2642 = vmatpush.msra.mxu1 %v2573_v24 }
 0x468   : > { %v8521_v6 = vpop.f32.mrf.mxu3  ;;  %v8523_v55 = vpop.f32.mrf.mxu1 }
 0x46b   : > { %v8525_v37 = vpop.f32.mrf.mxu0  ;;  %2134 = vmatmul.f32.gmra.mxu1 %v8373_v50 }
 0x46c   : > { %10415 = vst [vmem:[#allocation36_spill] sm:$0xff] %v8525_v37  ;;  %2199 = vmatmul.f32.gmra.mxu2 %v8377_v20 }
 0x46d   : > { %2264 = vmatmul.f32.gmra.mxu3 %v8380_v38 }
 0x46e   : > { %2329 = vmatmul.f32.gmra.mxu0 %v8383_v9 }
 0x46f   : > { %v8531_v11 = vpop.f32.mrf.mxu2 }
 0x470   : > { %v8533_v32 = vpop.f32.mrf.mxu3  ;;  %v2090_v23 = vpop.f32.mrf.mxu1 }
 0x471   : > { %10416 = vst [vmem:[#allocation37_spill] sm:$0xff] %v8533_v32 }
 0x473   : > { %v2285_v61 = vpop.f32.mrf.mxu0 }
 0x477   : > { %v2155_v40 = vpop.f32.mrf.mxu2 }
 0x478   : > { %v2156_v54 = vadd.f32 %v2155_v40, %v2090_v23  ;;  %v2220_v42 = vpop.f32.mrf.mxu3  ;;  %v2093_v50 = vpop.f32.mrf.mxu1  ;;  %v10418_v40 = vld [vmem:[#allocation35_spill] sm:$0xff] }
 0x47a   : > { %v2221_v17 = vadd.f32 %v2220_v42, %v2156_v54  ;;  %v1961_v54 = vadd.f32 %v10418_v40, %v1896_v27 }
 0x47b   : > { %v2288_v20 = vpop.f32.mrf.mxu0 }
 0x47c   : > { %v2286_v60 = vadd.f32 %v2285_v61, %v2221_v17 }
 0x47e   : > { %6795 = vrcp.f32 %v2286_v60  ;;  %v2344_v57 = vand.u32 2147483648, %v2286_v60  ;;  %vm2338_vm11 = vweird.f32 %v2286_v60 }
 0x47f   : > { %v2158_v38 = vpop.f32.mrf.mxu2 }
 0x480   : > { %v2159_v9 = vadd.f32 %v2158_v38, %v2093_v50  ;;  %v2223_v7 = vpop.f32.mrf.mxu3  ;;  %v2096_v29 = vpop.f32.mrf.mxu1  ;;  %v2342_v50 = vand.u32 2147483647, %v2286_v60  ;;  %v2345_v52 = vor.u32 1.1754944e-38, %v2344_v57 }
 0x482   : > { %v2224_v35 = vadd.f32 %v2223_v7, %v2159_v9  ;;  %vm2343_vm13 = vcmp.eq.f32.partialorder %v2342_v50, 8.507059e+37 }
 0x483   : > { %v2291_v16 = vpop.f32.mrf.mxu0 }
 0x484   : > { %v6796_v53 = vpop.eup %6795  ;;  %v2289_v34 = vadd.f32 %v2288_v20, %v2224_v35  ;;  %v10419_v35 = vld [vmem:[#allocation33_spill] sm:$0xff] }
 0x485   : > { %v2334_v13 = vmul.f32 %v6796_v53, %v2286_v60  ;;  %vm2339_vm10 = vweird.f32 %v6796_v53  ;;  %v2026_v26 = vadd.f32 %v10419_v35, %v1961_v54 }
 0x486   : > { %6797 = vrcp.f32 %v2289_v34  ;;  %vm2340_vm12 = vmor %vm2338_vm11, %vm2339_vm10  ;;  %v2357_v57 = vand.u32 2147483647, %v2289_v34  ;;  %vm2353_vm15 = vweird.f32 %v2289_v34 }
 0x487   : > { %v2335_v59 = vsub.f32 1.0, %v2334_v13  ;;  %v2161_v30 = vpop.f32.mrf.mxu2 }
 0x488   : > { %v2162_v23 = vadd.f32 %v2161_v30, %v2096_v29  ;;  %v2226_v24 = vpop.f32.mrf.mxu3  ;;  %v2099_v61 = vpop.f32.mrf.mxu1  ;;  %vm2358_vm5 = vcmp.eq.f32.partialorder %v2357_v57, 8.507059e+37 }
 0x489   : > { %v2336_v42 = vmul.f32 %v6796_v53, %v2335_v59 }
 0x48a   : > { %v2227_v17 = vadd.f32 %v2226_v24, %v2162_v23  ;;  %v2359_v24 = vand.u32 2147483648, %v2289_v34 }
 0x48b   : > { %v2337_v38 = vadd.f32 %v6796_v53, %v2336_v42  ;;  %v2294_v20 = vpop.f32.mrf.mxu0 }
 0x48c   : > { %v6798_v9 = vpop.eup %6797  ;;  %v2292_v7 = vadd.f32 %v2291_v16, %v2227_v17  ;;  %v2360_v17 = vor.u32 1.1754944e-38, %v2359_v24 }
 0x48d   : > { %v2341_v13 = vsel %vm2340_vm12, %v6796_v53, %v2337_v38  ;;  %v2349_v29 = vmul.f32 %v6798_v9, %v2289_v34  ;;  %vm2354_vm14 = vweird.f32 %v6798_v9 }
 0x48e   : > { %6799 = vrcp.f32 %v2292_v7  ;;  %v2346_v30 = vsel %vm2343_vm13, %v2345_v52, %v2341_v13  ;;  %vm2355_vm3 = vmor %vm2353_vm15, %vm2354_vm14  ;;  %vm2368_vm11 = vweird.f32 %v2292_v7 }
 0x48f   : > { %v2350_v37 = vsub.f32 1.0, %v2349_v29  ;;  %v2164_v27 = vpop.f32.mrf.mxu2  ;;  %v2347_v59 = vmul.f32 %v2346_v30, %v2026_v26 }
 0x490   : > { %v2165_v40 = vadd.f32 %v2164_v27, %v2099_v61  ;;  %v2229_v32 = vpop.f32.mrf.mxu3  ;;  %v2102_v23 = vpop.f32.mrf.mxu1 }
 0x491   : > { %6244 = vmatmul.msk.f32.vlgmr.msra.gmra.mxu1 %vm411_vm2, %v2347_v59  ;;  %v2351_v60 = vmul.f32 %v6798_v9, %v2350_v37 }
 0x492   : > { %v2230_v16 = vadd.f32 %v2229_v32, %v2165_v40  ;;  %v2374_v32 = vand.u32 2147483648, %v2292_v7 }
 0x493   : > { %v2297_v42 = vpop.f32.mrf.mxu0  ;;  %v2352_v54 = vadd.f32 %v6798_v9, %v2351_v60 }
 0x494   : > { %v6800_v53 = vpop.eup %6799  ;;  %v2295_v50 = vadd.f32 %v2294_v20, %v2230_v16  ;;  %v2372_v20 = vand.u32 2147483647, %v2292_v7  ;;  %v2375_v60 = vor.u32 1.1754944e-38, %v2374_v32 }
 0x495   : > { %v2364_v38 = vmul.f32 %v6800_v53, %v2292_v7  ;;  %v2356_v52 = vsel %vm2355_vm3, %v6798_v9, %v2352_v54  ;;  %vm2369_vm10 = vweird.f32 %v6800_v53 }
 0x496   : > { %6801 = vrcp.f32 %v2295_v50  ;;  %v2361_v61 = vsel %vm2358_vm5, %v2360_v17, %v2356_v52  ;;  %vm2370_vm12 = vmor %vm2368_vm11, %vm2369_vm10  ;;  %vm2373_vm13 = vcmp.eq.f32.partialorder %v2372_v20, 8.507059e+37  ;;  %vm2383_vm15 = vweird.f32 %v2295_v50 }
 0x497   : > { %v2365_v35 = vsub.f32 1.0, %v2364_v38  ;;  %v2167_v26 = vpop.f32.mrf.mxu2  ;;  %v2362_v13 = vmul.f32 %v2361_v61, %v8401_v10 }
 0x498   : > { %v2168_v37 = vadd.f32 %v2167_v26, %v2102_v23  ;;  %v2232_v29 = vpop.f32.mrf.mxu3  ;;  %v2105_v30 = vpop.f32.mrf.mxu1 }
 0x499   : > { %6245 = vmatmul.msk.f32.gmra.mxu1 %vm411_vm2, %v2362_v13  ;;  %v2366_v34 = vmul.f32 %v6800_v53, %v2365_v35  ;;  %v2389_v35 = vand.u32 2147483648, %v2295_v50 }
 0x49a   : > { %v2233_v27 = vadd.f32 %v2232_v29, %v2168_v37 }
 0x49b   : > { %v2300_v59 = vpop.f32.mrf.mxu0  ;;  %v2367_v40 = vadd.f32 %v6800_v53, %v2366_v34  ;;  %v2390_v32 = vor.u32 1.1754944e-38, %v2389_v35 }
 0x49c   : > { %v6802_v9 = vpop.eup %6801  ;;  %v2298_v24 = vadd.f32 %v2297_v42, %v2233_v27  ;;  %v2387_v42 = vand.u32 2147483647, %v2295_v50 }
 0x49d   : > { %v2379_v57 = vmul.f32 %v6802_v9, %v2295_v50  ;;  %v2371_v16 = vsel %vm2370_vm12, %v6800_v53, %v2367_v40  ;;  %vm2384_vm14 = vweird.f32 %v6802_v9 }
 0x49e   : > { %6803 = vrcp.f32 %v2298_v24  ;;  %v2376_v10 = vsel %vm2373_vm13, %v2375_v60, %v2371_v16  ;;  %vm2385_vm3 = vmor %vm2383_vm15, %vm2384_vm14  ;;  %vm2388_vm5 = vcmp.eq.f32.partialorder %v2387_v42, 8.507059e+37  ;;  %vm2398_vm11 = vweird.f32 %v2298_v24 }
 0x49f   : > { %v2380_v23 = vsub.f32 1.0, %v2379_v57  ;;  %v2170_v54 = vpop.f32.mrf.mxu2  ;;  %v2377_v17 = vmul.f32 %v2376_v10, %v8407_v15  ;;  %v2404_v10 = vand.u32 2147483648, %v2298_v24 }
 0x4a0   : > { %v2171_v38 = vadd.f32 %v2170_v54, %v2105_v30  ;;  %v2235_v52 = vpop.f32.mrf.mxu3  ;;  %v2108_v61 = vpop.f32.mrf.mxu1 }
 0x4a1   : > { %6246 = vmatmul.msk.f32.gmra.mxu1 %vm411_vm2, %v2377_v17  ;;  %v2381_v7 = vmul.f32 %v6802_v9, %v2380_v23 }
 0x4a2   : > { %v2236_v26 = vadd.f32 %v2235_v52, %v2171_v38  ;;  %v2405_v52 = vor.u32 1.1754944e-38, %v2404_v10 }
 0x4a3   : > { %v2303_v13 = vpop.f32.mrf.mxu0  ;;  %v2382_v37 = vadd.f32 %v6802_v9, %v2381_v7 }
 0x4a4   : > { %v6804_v53 = vpop.eup %6803  ;;  %v2301_v29 = vadd.f32 %v2300_v59, %v2236_v26  ;;  %v2402_v59 = vand.u32 2147483647, %v2298_v24 }
 0x4a5   : > { %v2394_v34 = vmul.f32 %v6804_v53, %v2298_v24  ;;  %v2386_v20 = vsel %vm2385_vm3, %v6802_v9, %v2382_v37  ;;  %vm2399_vm10 = vweird.f32 %v6804_v53 }
 0x4a6   : > { %6805 = vrcp.f32 %v2301_v29  ;;  %v2391_v15 = vsel %vm2388_vm5, %v2390_v32, %v2386_v20  ;;  %vm2400_vm12 = vmor %vm2398_vm11, %vm2399_vm10  ;;  %vm2403_vm13 = vcmp.eq.f32.partialorder %v2402_v59, 8.507059e+37  ;;  %v2419_v20 = vand.u32 2147483648, %v2301_v29 }
 0x4a7   : > { %v2395_v30 = vsub.f32 1.0, %v2394_v34  ;;  %v2173_v27 = vpop.f32.mrf.mxu2  ;;  %v2392_v40 = vmul.f32 %v2391_v15, %v8414_v48  ;;  %vm2413_vm15 = vweird.f32 %v2301_v29 }
 0x4a8   : > { %v2174_v60 = vadd.f32 %v2173_v27, %v2108_v61  ;;  %v2238_v57 = vpop.f32.mrf.mxu3  ;;  %v2111_v16 = vpop.f32.mrf.mxu1 }
 0x4a9   : > { %6247 = vmatmul.msk.f32.gmra.mxu1 %vm411_vm2, %v2392_v40  ;;  %v2396_v50 = vmul.f32 %v6804_v53, %v2395_v30 }
 0x4aa   : > { %v2239_v23 = vadd.f32 %v2238_v57, %v2174_v60  ;;  %v2420_v60 = vor.u32 1.1754944e-38, %v2419_v20 }
 0x4ab   : > { %v2306_v54 = vpop.f32.mrf.mxu0  ;;  %v2397_v17 = vadd.f32 %v6804_v53, %v2396_v50 }
 0x4ac   : > { %v6806_v9 = vpop.eup %6805  ;;  %v2304_v38 = vadd.f32 %v2303_v13, %v2239_v23  ;;  %v2417_v13 = vand.u32 2147483647, %v2301_v29 }
 0x4ad   : > { %v2409_v35 = vmul.f32 %v6806_v9, %v2301_v29  ;;  %v2401_v7 = vsel %vm2400_vm12, %v6804_v53, %v2397_v17  ;;  %vm2414_vm14 = vweird.f32 %v6806_v9 }
 0x4ae   : > { %6807 = vrcp.f32 %v2304_v38  ;;  %v2406_v48 = vsel %vm2403_vm13, %v2405_v52, %v2401_v7  ;;  %vm2415_vm3 = vmor %vm2413_vm15, %vm2414_vm14  ;;  %vm2418_vm5 = vcmp.eq.f32.partialorder %v2417_v13, 8.507059e+37  ;;  %vm2428_vm11 = vweird.f32 %v2304_v38 }
 0x4af   : > { %v2410_v61 = vsub.f32 1.0, %v2409_v35  ;;  %v2176_v42 = vpop.f32.mrf.mxu2  ;;  %v2407_v26 = vmul.f32 %v2406_v48, %v8420_v4  ;;  %v2434_v35 = vand.u32 2147483648, %v2304_v38 }
 0x4b0   : > { %v2177_v37 = vadd.f32 %v2176_v42, %v2111_v16  ;;  %v2241_v32 = vpop.f32.mrf.mxu3  ;;  %v2114_v34 = vpop.f32.mrf.mxu1 }
 0x4b1   : > { %6248 = vmatmul.msk.f32.gmra.mxu1 %vm411_vm2, %v2407_v26  ;;  %v2411_v24 = vmul.f32 %v6806_v9, %v2410_v61  ;;  %v2435_v26 = vor.u32 1.1754944e-38, %v2434_v35 }
 0x4b2   : > { %v2242_v15 = vadd.f32 %v2241_v32, %v2177_v37 }
 0x4b3   : > { %v2309_v30 = vpop.f32.mrf.mxu0  ;;  %v2412_v27 = vadd.f32 %v6806_v9, %v2411_v24 }
 0x4b4   : > { %v6808_v53 = vpop.eup %6807  ;;  %v2307_v40 = vadd.f32 %v2306_v54, %v2242_v15  ;;  %v2432_v54 = vand.u32 2147483647, %v2304_v38 }
 0x4b5   : > { %v2424_v57 = vmul.f32 %v6808_v53, %v2304_v38  ;;  %v2416_v10 = vsel %vm2415_vm3, %v6806_v9, %v2412_v27  ;;  %vm2429_vm10 = vweird.f32 %v6808_v53 }
 0x4b6   : > { %6809 = vrcp.f32 %v2307_v40  ;;  %v2421_v4 = vsel %vm2418_vm5, %v2420_v60, %v2416_v10  ;;  %vm2430_vm12 = vmor %vm2428_vm11, %vm2429_vm10  ;;  %vm2433_vm13 = vcmp.eq.f32.partialorder %v2432_v54, 8.507059e+37  ;;  %v2449_v60 = vand.u32 2147483648, %v2307_v40 }
 0x4b7   : > { %v2425_v16 = vsub.f32 1.0, %v2424_v57  ;;  %v2179_v50 = vpop.f32.mrf.mxu2  ;;  %v2422_v59 = vmul.f32 %v2421_v4, %v8426_v62  ;;  %vm2443_vm15 = vweird.f32 %v2307_v40 }
 0x4b8   : > { %v2180_v23 = vadd.f32 %v2179_v50, %v2114_v34  ;;  %v2244_v17 = vpop.f32.mrf.mxu3  ;;  %v2117_v52 = vpop.f32.mrf.mxu1 }
 0x4b9   : > { %6249 = vmatmul.msk.f32.gmra.mxu1 %vm411_vm2, %v2422_v59  ;;  %v2426_v29 = vmul.f32 %v6808_v53, %v2425_v16  ;;  %v1920_v16 = vadd.f32 %v8447_v39, %v8437_v36 }
 0x4ba   : > { %v2245_v7 = vadd.f32 %v2244_v17, %v2180_v23 }
 0x4bb   : > { %v2312_v48 = vpop.f32.mrf.mxu0  ;;  %v2427_v61 = vadd.f32 %v6808_v53, %v2426_v29  ;;  %v1985_v54 = vadd.f32 %v8449_v14, %v1920_v16  ;;  %v1923_v14 = vadd.f32 %v8459_v25, %v8451_v8  ;;  %v1926_v16 = vadd.f32 %v8471_v19, %v8463_v44 }
 0x4bc   : > { %v6810_v9 = vpop.eup %6809  ;;  %v2310_v42 = vadd.f32 %v2309_v30, %v2245_v7  ;;  %v2447_v30 = vand.u32 2147483647, %v2307_v40 }
 0x4bd   : > { %v2439_v37 = vmul.f32 %v6810_v9, %v2307_v40  ;;  %v2431_v32 = vsel %vm2430_vm12, %v6808_v53, %v2427_v61  ;;  %vm2444_vm14 = vweird.f32 %v6810_v9 }
 0x4be   : > { %6811 = vrcp.f32 %v2310_v42  ;;  %v2436_v62 = vsel %vm2433_vm13, %v2435_v26, %v2431_v32  ;;  %vm2445_vm3 = vmor %vm2443_vm15, %vm2444_vm14  ;;  %vm2448_vm5 = vcmp.eq.f32.partialorder %v2447_v30, 8.507059e+37  ;;  %v2464_v26 = vand.u32 2147483648, %v2310_v42 }
 0x4bf   : > { %v2440_v34 = vsub.f32 1.0, %v2439_v37  ;;  %v2182_v20 = vpop.f32.mrf.mxu2  ;;  %v2437_v24 = vmul.f32 %v2436_v62, %v8432_v18  ;;  %v2450_v18 = vor.u32 1.1754944e-38, %v2449_v60  ;;  %v2462_v39 = vand.u32 2147483647, %v2310_v42 }
 0x4c0   : > { %v2183_v13 = vadd.f32 %v2182_v20, %v2117_v52  ;;  %v2247_v15 = vpop.f32.mrf.mxu3  ;;  %v2120_v27 = vpop.f32.mrf.mxu1  ;;  %vm2458_vm11 = vweird.f32 %v2310_v42  ;;  %v2050_v62 = vadd.f32 %v8439_v41, %v1985_v54 }
 0x4c1   : > { %6250 = vmatmul.msk.f32.gmra.mxu1 %vm411_vm2, %v2437_v24  ;;  %v2441_v38 = vmul.f32 %v6810_v9, %v2440_v34  ;;  %vm2463_vm13 = vcmp.eq.f32.partialorder %v2462_v39, 8.507059e+37 }
 0x4c2   : > { %v2248_v57 = vadd.f32 %v2247_v15, %v2183_v13 }
 0x4c3   : > { %v2315_v10 = vpop.f32.mrf.mxu0  ;;  %v2442_v4 = vadd.f32 %v6810_v9, %v2441_v38 }
 0x4c4   : > { %v6812_v53 = vpop.eup %6811  ;;  %v2313_v50 = vadd.f32 %v2312_v48, %v2248_v57  ;;  %v1988_v57 = vadd.f32 %v8461_v5, %v1923_v14 }
 0x4c5   : > { %v2454_v59 = vmul.f32 %v6812_v53, %v2310_v42  ;;  %v2446_v23 = vsel %vm2445_vm3, %v6810_v9, %v2442_v4  ;;  %vm2459_vm10 = vweird.f32 %v6812_v53 }
 0x4c6   : > { %6813 = vrcp.f32 %v2313_v50  ;;  %v2451_v17 = vsel %vm2448_vm5, %v2450_v18, %v2446_v23  ;;  %vm2460_vm12 = vmor %vm2458_vm11, %vm2459_vm10  ;;  %v2479_v42 = vand.u32 2147483648, %v2313_v50  ;;  %v2477_v4 = vand.u32 2147483647, %v2313_v50 }
 0x4c7   : > { %v2455_v52 = vsub.f32 1.0, %v2454_v59  ;;  %v2185_v35 = vpop.f32.mrf.mxu2  ;;  %v2452_v29 = vmul.f32 %v2451_v17, %v8442_v31  ;;  %v2465_v31 = vor.u32 1.1754944e-38, %v2464_v26  ;;  %vm2473_vm15 = vweird.f32 %v2313_v50 }
 0x4c8   : > { %v2186_v7 = vadd.f32 %v2185_v35, %v2120_v27  ;;  %v2250_v40 = vpop.f32.mrf.mxu3  ;;  %v2123_v61 = vpop.f32.mrf.mxu1  ;;  %v2480_v59 = vor.u32 1.1754944e-38, %v2479_v42  ;;  %v2053_v23 = vadd.f32 %v8453_v47, %v1988_v57  ;;  %vm2478_vm5 = vcmp.eq.f32.partialorder %v2477_v4, 8.507059e+37 }
 0x4c9   : > { %6251 = vmatmul.msk.f32.gmra.mxu1 %vm411_vm2, %v2452_v29  ;;  %v2456_v36 = vmul.f32 %v6812_v53, %v2455_v52  ;;  %v1932_v57 = vadd.f32 %v8495_v51, %v8487_v0 }
 0x4ca   : > { %v2251_v48 = vadd.f32 %v2250_v40, %v2186_v7 }
 0x4cb   : > { %v2318_v9 = vpop.f32.mrf.mxu0  ;;  %v2457_v37 = vadd.f32 %v6812_v53, %v2456_v36 }
 0x4cc   : > { %v6814_v32 = vpop.eup %6813  ;;  %v2316_v34 = vadd.f32 %v2315_v10, %v2251_v48 }
 0x4cd   : > { %v2469_v20 = vmul.f32 %v6814_v32, %v2313_v50  ;;  %v2461_v24 = vsel %vm2460_vm12, %v6812_v53, %v2457_v37  ;;  %vm2474_vm14 = vweird.f32 %v6814_v32  ;;  %v1991_v50 = vadd.f32 %v8473_v43, %v1926_v16 }
 0x4ce   : > { %6815 = vrcp.f32 %v2316_v34  ;;  %v2466_v13 = vsel %vm2463_vm13, %v2465_v31, %v2461_v24  ;;  %vm2475_vm3 = vmor %vm2473_vm15, %vm2474_vm14  ;;  %v2494_v26 = vand.u32 2147483648, %v2316_v34  ;;  %v2492_v19 = vand.u32 2147483647, %v2316_v34 }
 0x4cf   : > { %v2470_v15 = vsub.f32 1.0, %v2469_v20  ;;  %v2188_v27 = vpop.f32.mrf.mxu2  ;;  %v2467_v60 = vmul.f32 %v2466_v13, %v2050_v62  ;;  %vm2488_vm11 = vweird.f32 %v2316_v34  ;;  %v1929_v43 = vadd.f32 %v8483_v58, %v8475_v56 }
 0x4d0   : > { %v2189_v38 = vadd.f32 %v2188_v27, %v2123_v61  ;;  %v2253_v30 = vpop.f32.mrf.mxu3  ;;  %v2126_v41 = vpop.f32.mrf.mxu1  ;;  %vm2493_vm13 = vcmp.eq.f32.partialorder %v2492_v19, 8.507059e+37 }
 0x4d1   : > { %6252 = vmatmul.msk.f32.gmra.mxu1 %vm411_vm2, %v2467_v60  ;;  %v2471_v10 = vmul.f32 %v6814_v32, %v2470_v15 }
 0x4d2   : > { %v2254_v8 = vadd.f32 %v2253_v30, %v2189_v38 }
 0x4d3   : > { %v2472_v25 = vadd.f32 %v6814_v32, %v2471_v10  ;;  %v2321_v5 = vpop.f32.mrf.mxu0 }
 0x4d4   : > { %v6816_v53 = vpop.eup %6815  ;;  %v2319_v18 = vadd.f32 %v2318_v9, %v2254_v8  ;;  %v2056_v9 = vadd.f32 %v8465_v33, %v1991_v50  ;;  %v1994_v33 = vadd.f32 %v8485_v21, %v1929_v43 }
 0x4d5   : > { %v2484_v17 = vmul.f32 %v6816_v53, %v2316_v34  ;;  %v2476_v52 = vsel %vm2475_vm3, %v6814_v32, %v2472_v25  ;;  %vm2489_vm10 = vweird.f32 %v6816_v53  ;;  %v2495_v32 = vor.u32 1.1754944e-38, %v2494_v26 }
 0x4d6   : > { %6817 = vrcp.f32 %v2319_v18  ;;  %v2481_v35 = vsel %vm2478_vm5, %v2480_v59, %v2476_v52  ;;  %vm2490_vm12 = vmor %vm2488_vm11, %vm2489_vm10  ;;  %v2509_v60 = vand.u32 2147483648, %v2319_v18  ;;  %v2507_v30 = vand.u32 2147483647, %v2319_v18 }
 0x4d7   : > { %v2485_v29 = vsub.f32 1.0, %v2484_v17  ;;  %v2191_v54 = vpop.f32.mrf.mxu2  ;;  %v2482_v7 = vmul.f32 %v2481_v35, %v2053_v23  ;;  %vm2503_vm15 = vweird.f32 %v2319_v18  ;;  %v2059_v4 = vadd.f32 %v8477_v22, %v1994_v33 }
 0x4d8   : > { %v2192_v40 = vadd.f32 %v2191_v54, %v2126_v41  ;;  %v2256_v61 = vpop.f32.mrf.mxu3  ;;  %v2129_v36 = vpop.f32.mrf.mxu1  ;;  %v2510_v10 = vor.u32 1.1754944e-38, %v2509_v60  ;;  %vm2508_vm5 = vcmp.eq.f32.partialorder %v2507_v30, 8.507059e+37 }
 0x4d9   : > { %6253 = vmatmul.msk.f32.gmra.mxu1 %vm411_vm2, %v2482_v7  ;;  %v2486_v44 = vmul.f32 %v6816_v53, %v2485_v29 }
 0x4da   : > { %v2257_v47 = vadd.f32 %v2256_v61, %v2192_v40 }
 0x4db   : > { %v2487_v39 = vadd.f32 %v6816_v53, %v2486_v44  ;;  %v2324_v24 = vpop.f32.mrf.mxu0 }
 0x4dc   : > { %v6818_v48 = vpop.eup %6817  ;;  %v2322_v37 = vadd.f32 %v2321_v5, %v2257_v47 }
 0x4dd   : > { %v2499_v62 = vmul.f32 %v6818_v48, %v2319_v18  ;;  %v2491_v31 = vsel %vm2490_vm12, %v6816_v53, %v2487_v39  ;;  %vm2504_vm14 = vweird.f32 %v6818_v48  ;;  %v1997_v18 = vadd.f32 %v8497_v3, %v1932_v57 }
 0x4de   : > { %6819 = vrcp.f32 %v2322_v37  ;;  %v2496_v14 = vsel %vm2493_vm13, %v2495_v32, %v2491_v31  ;;  %vm2505_vm3 = vmor %vm2503_vm15, %vm2504_vm14  ;;  %v2524_v52 = vand.u32 2147483648, %v2322_v37  ;;  %v2522_v22 = vand.u32 2147483647, %v2322_v37 }
 0x4df   : > { %v2500_v20 = vsub.f32 1.0, %v2499_v62  ;;  %v2194_v13 = vpop.f32.mrf.mxu2  ;;  %v2497_v15 = vmul.f32 %v2496_v14, %v2056_v9  ;;  %vm2518_vm11 = vweird.f32 %v2322_v37  ;;  %v2062_v7 = vadd.f32 %v8489_v63, %v1997_v18 }
 0x4e0   : > { %v2195_v27 = vadd.f32 %v2194_v13, %v2129_v36  ;;  %v2259_v34 = vpop.f32.mrf.mxu3  ;;  %v2132_v25 = vpop.f32.mrf.mxu1  ;;  %v2525_v40 = vor.u32 1.1754944e-38, %v2524_v52  ;;  %v1935_v3 = vadd.f32 %v8507_v28, %v8499_v46  ;;  %vm2523_vm13 = vcmp.eq.f32.partialorder %v2522_v22, 8.507059e+37 }
 0x4e1   : > { %6254 = vmatmul.msk.f32.gmra.mxu1 %vm411_vm2, %v2497_v15  ;;  %v2501_v38 = vmul.f32 %v6818_v48, %v2500_v20  ;;  %v1938_v14 = vadd.f32 %v8519_v1, %v8511_v45 }
 0x4e2   : > { %v2260_v56 = vadd.f32 %v2259_v34, %v2195_v27 }
 0x4e3   : > { %v2502_v58 = vadd.f32 %v6818_v48, %v2501_v38  ;;  %v2327_v0 = vpop.f32.mrf.mxu0  ;;  %v2003_v33 = vadd.f32 %v8521_v6, %v1938_v14 }
 0x4e4   : > { %v6820_v42 = vpop.eup %6819  ;;  %v2325_v41 = vadd.f32 %v2324_v24, %v2260_v56 }
 0x4e5   : > { %v2514_v8 = vmul.f32 %v6820_v42, %v2322_v37  ;;  %v2506_v21 = vsel %vm2505_vm3, %v6818_v48, %v2502_v58  ;;  %vm2519_vm10 = vweird.f32 %v6820_v42  ;;  %v2000_v37 = vadd.f32 %v8509_v12, %v1935_v3 }
 0x4e6   : > { %6821 = vrcp.f32 %v2325_v41  ;;  %v2511_v53 = vsel %vm2508_vm5, %v2510_v10, %v2506_v21  ;;  %vm2520_vm12 = vmor %vm2518_vm11, %vm2519_vm10  ;;  %v2539_v9 = vand.u32 2147483648, %v2325_v41  ;;  %v2537_v43 = vand.u32 2147483647, %v2325_v41 }
 0x4e7   : > { %v2515_v16 = vsub.f32 1.0, %v2514_v8  ;;  %v2197_v59 = vpop.f32.mrf.mxu2  ;;  %v2512_v23 = vmul.f32 %v2511_v53, %v2059_v4  ;;  %vm2533_vm15 = vweird.f32 %v2325_v41  ;;  %v2065_v13 = vadd.f32 %v8501_v2, %v2000_v37 }
 0x4e8   : > { %v2198_v17 = vadd.f32 %v2197_v59, %v2132_v25  ;;  %v2262_v5 = vpop.f32.mrf.mxu3  ;;  %v2135_v47 = vpop.f32.mrf.mxu1  ;;  %v2540_v24 = vor.u32 1.1754944e-38, %v2539_v9  ;;  %vm2538_vm5 = vcmp.eq.f32.partialorder %v2537_v43, 8.507059e+37  ;;  %v2068_v2 = vadd.f32 %v8513_v49, %v2003_v33  ;;  %v10420_v25 = vld [vmem:[#allocation37_spill] sm:$0xff] }
 0x4e9   : > { %6255 = vmatmul.msk.f32.gmra.mxu1 %vm411_vm2, %v2512_v23  ;;  %v2516_v51 = vmul.f32 %v6820_v42, %v2515_v16  ;;  %v10421_v23 = vld [vmem:[#allocation36_spill] sm:$0xff] }
 0x4ea   : > { %v2263_v35 = vadd.f32 %v2262_v5, %v2198_v17  ;;  %v8594_v5 = vld [vmem:[#allocation2 + $0x318] ss:$0 sm:$0xff] }
 0x4eb   : > { %v2517_v29 = vadd.f32 %v6820_v42, %v2516_v51  ;;  %v2330_v28 = vpop.f32.mrf.mxu0  ;;  %v10422_v51 = vld [vmem:[#allocation5_spill] sm:$0xff] }
 0x4ec   : > { %v6822_v54 = vpop.eup %6821  ;;  %v2328_v50 = vadd.f32 %v2327_v0, %v2263_v35 }
 0x4ed   : > { %v2529_v61 = vmul.f32 %v6822_v54, %v2325_v41  ;;  %v2521_v26 = vsel %vm2520_vm12, %v6820_v42, %v2517_v29  ;;  %vm2534_vm14 = vweird.f32 %v6822_v54  ;;  %v1941_v42 = vadd.f32 %v8531_v11, %v8523_v55 }
 0x4ee   : > { %6823 = vrcp.f32 %v2328_v50  ;;  %v2526_v44 = vsel %vm2523_vm13, %v2525_v40, %v2521_v26  ;;  %vm2535_vm3 = vmor %vm2533_vm15, %vm2534_vm14  ;;  %v2554_v38 = vand.u32 2147483648, %v2328_v50  ;;  %v2552_v45 = vand.u32 2147483647, %v2328_v50  ;;  %v10424_v26 = vld [vmem:[#allocation7_spill] sm:$0xff] }
 0x4ef   : > { %v2530_v19 = vsub.f32 1.0, %v2529_v61  ;;  %v2200_v36 = vpop.f32.mrf.mxu2  ;;  %v2527_v39 = vmul.f32 %v2526_v44, %v2062_v7  ;;  %vm2548_vm11 = vweird.f32 %v2328_v50  ;;  %v2006_v21 = vadd.f32 %v10420_v25, %v1941_v42  ;;  %v10423_v7 = vld [vmem:[#allocation6_spill] sm:$0xff] }
 0x4f0   : > { %v2201_v48 = vadd.f32 %v2200_v36, %v2135_v47  ;;  %v2265_v63 = vpop.f32.mrf.mxu3  ;;  %v2555_v58 = vor.u32 1.1754944e-38, %v2554_v38  ;;  %vm2553_vm13 = vcmp.eq.f32.partialorder %v2552_v45, 8.507059e+37 }
 0x4f1   : > { %6256 = vmatmul.msk.f32.gmra.mxu1 %vm411_vm2, %v2527_v39  ;;  %v2531_v32 = vmul.f32 %v6822_v54, %v2530_v19  ;;  %v2071_v55 = vadd.f32 %v10421_v23, %v2006_v21  ;;  %v10425_v39 = vld [vmem:[#allocation8_spill] sm:$0xff] }
 0x4f2   : > { %v2266_v46 = vadd.f32 %v2265_v63, %v2201_v48  ;;  %v10429_v21 = vld [vmem:[#allocation12_spill] sm:$0xff] }
 0x4f3   : > { %v2532_v62 = vadd.f32 %v6822_v54, %v2531_v32  ;;  %v10426_v32 = vld [vmem:[#allocation9_spill] sm:$0xff] }
 0x4f4   : > { %v6824_v31 = vpop.eup %6823  ;;  %v2331_v20 = vadd.f32 %v2330_v28, %v2266_v46 }
 0x4f5   : > { %v2544_v12 = vmul.f32 %v6824_v31, %v2328_v50  ;;  %v2536_v15 = vsel %vm2535_vm3, %v6822_v54, %v2532_v62  ;;  %vm2549_vm10 = vweird.f32 %v6824_v31 }
 0x4f6   : > { %6825 = vrcp.f32 %v2331_v20  ;;  %v2541_v27 = vsel %vm2538_vm5, %v2540_v24, %v2536_v15  ;;  %vm2550_vm12 = vmor %vm2548_vm11, %vm2549_vm10  ;;  %v2569_v8 = vand.u32 2147483648, %v2331_v20  ;;  %v2567_v16 = vand.u32 2147483647, %v2331_v20 }
 0x4f7   : > { %v2545_v34 = vsub.f32 1.0, %v2544_v12  ;;  %v2542_v60 = vmul.f32 %v2541_v27, %v2065_v13  ;;  %vm2563_vm15 = vweird.f32 %v2331_v20  ;;  %v10428_v12 = vld [vmem:[#allocation11_spill] sm:$0xff] }
 0x4f8   : > { %v2570_v59 = vor.u32 1.1754944e-38, %v2569_v8  ;;  %vm2568_vm5 = vcmp.eq.f32.partialorder %v2567_v16, 8.507059e+37 }
 0x4f9   : > { %6257 = vmatmul.msk.f32.gmra.mxu1 %vm411_vm2, %v2542_v60  ;;  %v2546_v30 = vmul.f32 %v6824_v31, %v2545_v34  ;;  %v7053_v34 = vmov 32.0  }
 0x4fa   : > { %6827 = vrcp.f32 %v7053_v34 }
 0x4fb   : > { %v2547_v1 = vadd.f32 %v6824_v31, %v2546_v30 }
 0x4fc   : > { %v6826_v56 = vpop.eup %6825 }
 0x4fd   : > { %v2559_v57 = vmul.f32 %v6826_v56, %v2331_v20  ;;  %v2551_v41 = vsel %vm2550_vm12, %v6824_v31, %v2547_v1  ;;  %vm2564_vm14 = vweird.f32 %v6826_v56  ;;  %v10427_v31 = vld [vmem:[#allocation10_spill] sm:$0xff] }
 0x4fe   : > { %v2556_v6 = vsel %vm2553_vm13, %v2555_v58, %v2551_v41  ;;  %vm2565_vm3 = vmor %vm2563_vm15, %vm2564_vm14 }
 0x4ff   : > { %v2560_v10 = vsub.f32 1.0, %v2559_v57  ;;  %v2557_v4 = vmul.f32 %v2556_v6, %v2068_v2 }
 0x500   : > { %v6828_v60 = vpop.eup %6827 }
 0x501   : > { %6258 = vmatmul.msk.f32.gmra.mxu1 %vm411_vm2, %v2557_v4  ;;  %v2561_v53 = vmul.f32 %v6826_v56, %v2560_v10  ;;  %v2757_v33 = vmul.f32 32.0, %v6828_v60  ;;  %vm2761_vm10 = vweird.f32 %v6828_v60 }
 0x503   : > { %v2562_v49 = vadd.f32 %v6826_v56, %v2561_v53  ;;  %v2758_v38 = vsub.f32 1.0, %v2757_v33 }
 0x505   : > { %v2566_v11 = vsel %vm2565_vm3, %v6826_v56, %v2562_v49  ;;  %v2759_v30 = vmul.f32 %v6828_v60, %v2758_v38 }
 0x506   : > { %v2571_v18 = vsel %vm2568_vm5, %v2570_v59, %v2566_v11 }
 0x507   : > { %v2572_v17 = vmul.f32 %v2571_v18, %v2071_v55  ;;  %v2760_v1 = vadd.f32 %v6828_v60, %v2759_v30 }
 0x509   : > { %6259 = vmatmul.msk.f32.gmra.mxu1 %vm411_vm2, %v2572_v17  ;;  %v8626_v56 = vsel %vm2761_vm10, %v6828_v60, %v2760_v1 }
 0x50e   : > { %v2644_v52 = vpop.f32.mrf.mxu1 }
 0x50f   : > { %v2645_v0 = vadd.f32 %v8594_v5, %v2644_v52  ;;  %v10430_v52 = vld [vmem:[#allocation13_spill] sm:$0xff] }
 0x511   : > { %v2692_v22 = vadd.f32 %v2645_v0, %v10422_v51 }
 0x513   : > { %v2708_v35 = vsel %vm411_vm2, %v2692_v22, 0.0 }
 0x514   : > { %2709 = vadd.xlane.f32.xlu1 %v2708_v35 }
 0x516   : > { %v2647_v29 = vpop.f32.mrf.mxu1 }
 0x517   : > { %v2648_v54 = vadd.f32 %v8594_v5, %v2647_v29 }
 0x519   : > { %v2693_v50 = vadd.f32 %v2648_v54, %v10423_v7 }
 0x51b   : > { %v2711_v40 = vsel %vm411_vm2, %v2693_v50, 0.0 }
 0x51c   : > { %2712 = vadd.xlane.f32.xlu2 %v2711_v40 }
 0x51e   : > { %v2650_v3 = vpop.f32.mrf.mxu1 }
 0x51f   : > { %v2651_v61 = vadd.f32 %v8594_v5, %v2650_v3  ;;  %v10431_v3 = vld [vmem:[#allocation14_spill] sm:$0xff] }
 0x521   : > { %v2694_v44 = vadd.f32 %v2651_v61, %v10424_v26 }
 0x523   : > { %v2714_v19 = vsel %vm411_vm2, %v2694_v44, 0.0 }
 0x524   : > { %2715 = vadd.xlane.f32.xlu0 %v2714_v19 }
 0x526   : > { %v2653_v47 = vpop.f32.mrf.mxu1 }
 0x527   : > { %v2654_v36 = vadd.f32 %v8594_v5, %v2653_v47 }
 0x529   : > { %v2695_v48 = vadd.f32 %v2654_v36, %v10425_v39 }
 0x52b   : > { %v2717_v9 = vsel %vm411_vm2, %v2695_v48, 0.0 }
 0x52c   : > { %2718 = vadd.xlane.f32.xlu1 %v2717_v9  ;;  %v3106_v9 = vld [vmem:[#allocation2 + $0x348] sm:$0xff] }
 0x52d   : > { %3169 = vmatpush.msra.mxu2 %v3106_v9 }
 0x52e   : > { %v2656_v37 = vpop.f32.mrf.mxu1 }
 0x52f   : > { %v2657_v63 = vadd.f32 %v8594_v5, %v2656_v37 }
 0x531   : > { %v8610_v43 = vadd.f32 %v2657_v63, %v10426_v32  ;;  %v10432_v32 = vld [vmem:[#allocation15_spill] sm:$0xff] }
 0x533   : > { %v2720_v46 = vsel %vm411_vm2, %v8610_v43, 0.0 }
 0x534   : > { %2721 = vadd.xlane.f32.xlu2 %v2720_v46 }
 0x536   : > { %v2659_v28 = vpop.f32.mrf.mxu1 }
 0x537   : > { %v2660_v62 = vadd.f32 %v8594_v5, %v2659_v28 }
 0x539   : > { %v8616_v14 = vadd.f32 %v2660_v62, %v10427_v31 }
 0x53b   : > { %v2723_v20 = vsel %vm411_vm2, %v8616_v14, 0.0 }
 0x53c   : > { %2724 = vadd.xlane.f32.xlu0 %v2723_v20 }
 0x53e   : > { %v2662_v24 = vpop.f32.mrf.mxu1 }
 0x53f   : > { %v2663_v13 = vadd.f32 %v8594_v5, %v2662_v24 }
 0x541   : > { %v8622_v15 = vadd.f32 %v2663_v13, %v10428_v12 }
 0x543   : > { %v2726_v27 = vsel %vm411_vm2, %v8622_v15, 0.0 }
 0x544   : > { %2727 = vadd.xlane.f32.xlu2 %v2726_v27  ;;  %v10433_v27 = vld [vmem:[#allocation16_spill] sm:$0xff] }
 0x546   : > { %v2665_v45 = vpop.f32.mrf.mxu1 }
 0x547   : > { %v2666_v6 = vadd.f32 %v8594_v5, %v2665_v45 }
 0x549   : > { %v8639_v53 = vadd.f32 %v2666_v6, %v10429_v21 }
 0x54b   : > { %v2729_v55 = vsel %vm411_vm2, %v8639_v53, 0.0 }
 0x54e   : > { %v2668_v42 = vpop.f32.mrf.mxu1 }
 0x54f   : > { %v2669_v59 = vadd.f32 %v8594_v5, %v2668_v42 }
 0x551   : > { %v8651_v0 = vadd.f32 %v2669_v59, %v10430_v52 }
 0x553   : > { %v2732_v54 = vsel %vm411_vm2, %v8651_v0, 0.0 }
 0x556   : > { %v2671_v16 = vpop.f32.mrf.mxu1 }
 0x557   : > { %v2672_v35 = vadd.f32 %v8594_v5, %v2671_v16  ;;  %v3104_v16 = vld [vmem:[#allocation2 + $0x338] sm:$0xff] }
 0x559   : > { %v8663_v61 = vadd.f32 %v2672_v35, %v10431_v3 }
 0x55b   : > { %v2735_v19 = vsel %vm411_vm2, %v8663_v61, 0.0 }
 0x587   : > { %v2710_v2 = vpop.xlane.xlu1 %2709 }
 0x588   : > { %v2763_v58 = vmul.f32 %v8626_v56, %v2710_v2  ;;  %v10434_v2 = vld [vmem:[#allocation17_spill] sm:$0xff] }
 0x58a   : > { %v8629_v57 = vsub.f32 %v2692_v22, %v2763_v58  ;;  %v2674_v22 = vpop.f32.mrf.mxu1 }
 0x58c   : > { %v2795_v41 = vmul.f32 %v8629_v57, %v8629_v57 }
 0x58e   : > { %v2811_v10 = vsel %vm411_vm2, %v2795_v41, 0.0 }
 0x58f   : > { %v2713_v4 = vpop.xlane.xlu2 %2712  ;;  %2812 = vadd.xlane.f32.xlu1 %v2811_v10 }
 0x590   : > { %v2764_v8 = vmul.f32 %v8626_v56, %v2713_v4 }
 0x592   : > { %v8636_v25 = vsub.f32 %v2693_v50, %v2764_v8  ;;  %v2677_v36 = vpop.f32.mrf.mxu1  ;;  %v10435_v8 = vld [vmem:[#allocation18_spill] sm:$0xff] }
 0x593   : > { %v2678_v62 = vadd.f32 %v8594_v5, %v2677_v36 }
 0x594   : > { %v2796_v49 = vmul.f32 %v8636_v25, %v8636_v25 }
 0x595   : > { %v8689_v34 = vadd.f32 %v2678_v62, %v10433_v27 }
 0x596   : > { %v2814_v23 = vsel %vm411_vm2, %v2796_v49, 0.0  ;;  %v3103_v49 = vld [vmem:[#allocation2 + $0x330] sm:$0xff] }
 0x597   : > { %v2716_v11 = vpop.xlane.xlu0 %2715  ;;  %2815 = vadd.xlane.f32.xlu0 %v2814_v23  ;;  %2730 = vadd.xlane.f32.xlu1 %v2729_v55  ;;  %v2741_v30 = vsel %vm411_vm2, %v8689_v34, 0.0 }
 0x598   : > { %v2765_v18 = vmul.f32 %v8626_v56, %v2716_v11 }
 0x59a   : > { %v8648_v17 = vsub.f32 %v2694_v44, %v2765_v18  ;;  %v2675_v44 = vadd.f32 %v8594_v5, %v2674_v22  ;;  %v2680_v13 = vpop.f32.mrf.mxu1 }
 0x59b   : > { %v2681_v33 = vadd.f32 %v8594_v5, %v2680_v13 }
 0x59c   : > { %v2797_v51 = vmul.f32 %v8648_v17, %v8648_v17  ;;  %v8676_v46 = vadd.f32 %v2675_v44, %v10432_v32 }
 0x59d   : > { %v8702_v58 = vadd.f32 %v2681_v33, %v10434_v2  ;;  %v8738_v33 = vld [vmem:[#allocation2 + $0x328] ss:$0 sm:$0xff] }
 0x59e   : > { %v2817_v29 = vsel %vm411_vm2, %v2797_v51, 0.0  ;;  %v2738_v20 = vsel %vm411_vm2, %v8676_v46, 0.0 }
 0x59f   : > { %2818 = vadd.xlane.f32.xlu2 %v2817_v29  ;;  %2733 = vadd.xlane.f32.xlu0 %v2732_v54  ;;  %v2719_v7 = vpop.xlane.xlu1 %2718  ;;  %v2744_v10 = vsel %vm411_vm2, %v8702_v58, 0.0 }
 0x5a0   : > { %v2766_v50 = vmul.f32 %v8626_v56, %v2719_v7 }
 0x5a2   : > { %v8660_v40 = vsub.f32 %v2695_v48, %v2766_v50  ;;  %v3105_v48 = vld [vmem:[#allocation2 + $0x340] sm:$0xff]  ;;  %v2683_v42 = vpop.f32.mrf.mxu1 }
 0x5a3   : > { %3170 = vmatpush.msra.mxu2 %v3105_v48  ;;  %v2684_v6 = vadd.f32 %v8594_v5, %v2683_v42 }
 0x5a4   : > { %v2798_v26 = vmul.f32 %v8660_v40, %v8660_v40 }
 0x5a5   : > { %v8711_v21 = vadd.f32 %v2684_v6, %v10435_v8  ;;  %3171 = vmatpush.msra.mxu2 %v3104_v16  ;;  %v10437_v16 = vld [vmem:[#allocation20_spill] sm:$0xff] }
 0x5a6   : > { %v2820_v47 = vsel %vm411_vm2, %v2798_v26, 0.0 }
 0x5a7   : > { %2736 = vadd.xlane.f32.xlu2 %v2735_v19  ;;  %v2722_v39 = vpop.xlane.xlu2 %2721  ;;  %2821 = vadd.xlane.f32.xlu1 %v2820_v47 }
 0x5a8   : > { %v2767_v37 = vmul.f32 %v8626_v56, %v2722_v39  ;;  %3172 = vmatpush.msra.mxu2 %v3103_v49 }
 0x5aa   : > { %v8673_v63 = vsub.f32 %v8610_v43, %v2767_v37  ;;  %v2686_v22 = vpop.f32.mrf.mxu1 }
 0x5ab   : > { %v2687_v26 = vadd.f32 %v8594_v5, %v2686_v22 }
 0x5ac   : > { %v2799_v28 = vmul.f32 %v8673_v63, %v8673_v63 }
 0x5ae   : > { %v2823_v31 = vsel %vm411_vm2, %v2799_v28, 0.0  ;;  %v10436_v28 = vld [vmem:[#allocation19_spill] sm:$0xff] }
 0x5af   : > { %v2725_v24 = vpop.xlane.xlu0 %2724  ;;  %2824 = vadd.xlane.f32.xlu0 %v2823_v31  ;;  %2739 = vadd.xlane.f32.xlu1 %v2738_v20  ;;  %v8731_v62 = vadd.f32 %v2687_v26, %v10436_v28 }
 0x5b0   : > { %v2768_v43 = vmul.f32 %v8626_v56, %v2725_v24 }
 0x5b2   : > { %v8686_v12 = vsub.f32 %v8616_v14, %v2768_v43  ;;  %v2689_v31 = vpop.f32.mrf.mxu1  ;;  %v8733_v43 = vld [vmem:[#allocation2 + $0x320] ss:$0 sm:$0xff] }
 0x5b4   : > { %v2800_v60 = vmul.f32 %v8686_v12, %v8686_v12 }
 0x5b6   : > { %v2826_v38 = vsel %vm411_vm2, %v2800_v60, 0.0 }
 0x5b7   : > { %2827 = vadd.xlane.f32.xlu2 %v2826_v38  ;;  %2742 = vadd.xlane.f32.xlu0 %v2741_v30  ;;  %v2728_v45 = vpop.xlane.xlu2 %2727 }
 0x5b8   : > { %v2769_v1 = vmul.f32 %v8626_v56, %v2728_v45  ;;  %v2750_v45 = vsel %vm411_vm2, %v8731_v62, 0.0 }
 0x5ba   : > { %v8699_v14 = vsub.f32 %v8622_v15, %v2769_v1  ;;  %v2747_v15 = vsel %vm411_vm2, %v8711_v21, 0.0 }
 0x5bc   : > { %v2801_v41 = vmul.f32 %v8699_v14, %v8699_v14 }
 0x5be   : > { %v2829_v4 = vsel %vm411_vm2, %v2801_v41, 0.0 }
 0x5bf   : > { %2745 = vadd.xlane.f32.xlu2 %v2744_v10  ;;  %2830 = vadd.xlane.f32.xlu1 %v2829_v4 }
 0x5c7   : > { %2748 = vadd.xlane.f32.xlu1 %v2747_v15 }
 0x602   : > { %v2813_v59 = vpop.xlane.xlu1 %2812 }
 0x603   : > { %v2859_v23 = vmul.f32 %v2813_v59, %v8626_v56 }
 0x605   : > { %v2875_v55 = vadd.f32 1e-05, %v2859_v23 }
 0x607   : > { %6829 = vrsqrt.f32 %v2875_v55  ;;  %vm2897_vm12 = vweird.f32 %v2875_v55 }
 0x60a   : > { %v2816_v11 = vpop.xlane.xlu0 %2815  ;;  %v2731_v18 = vpop.xlane.xlu1 %2730 }
 0x60b   : > { %v2860_v52 = vmul.f32 %v2816_v11, %v8626_v56  ;;  %v2770_v51 = vmul.f32 %v8626_v56, %v2731_v18 }
 0x60d   : > { %v6830_v35 = vpop.eup %6829  ;;  %v2876_v29 = vadd.f32 1e-05, %v2860_v52  ;;  %v8719_v54 = vsub.f32 %v8639_v53, %v2770_v51 }
 0x60e   : > { %v2892_v7 = vmul.f32 %v6830_v35, %v2875_v55  ;;  %vm2898_vm11 = vweird.f32 %v6830_v35 }
 0x60f   : > { %6831 = vrsqrt.f32 %v2876_v29  ;;  %v2802_v50 = vmul.f32 %v8719_v54, %v8719_v54  ;;  %vm2899_vm13 = vmor %vm2897_vm12, %vm2898_vm11  ;;  %vm2907_vm15 = vweird.f32 %v2876_v29 }
 0x610   : > { %v2893_v3 = vmul.f32 %v6830_v35, %v2892_v7 }
 0x611   : > { %v2832_v44 = vsel %vm411_vm2, %v2802_v50, 0.0 }
 0x612   : > { %v2894_v19 = vmul.f32 0.5, %v2893_v3  ;;  %v2734_v47 = vpop.xlane.xlu0 %2733  ;;  %v2819_v36 = vpop.xlane.xlu2 %2818  ;;  %2833 = vadd.xlane.f32.xlu0 %v2832_v44 }
 0x613   : > { %v2771_v39 = vmul.f32 %v8626_v56, %v2734_v47  ;;  %v2861_v9 = vmul.f32 %v2819_v36, %v8626_v56 }
 0x614   : > { %v2895_v53 = vsub.f32 1.5, %v2894_v19 }
 0x615   : > { %v6832_v48 = vpop.eup %6831  ;;  %v8728_v37 = vsub.f32 %v8651_v0, %v2771_v39  ;;  %v2877_v32 = vadd.f32 1e-05, %v2861_v9  ;;  %v2690_v0 = vadd.f32 %v8594_v5, %v2689_v31 }
 0x616   : > { %v2896_v20 = vmul.f32 %v6830_v35, %v2895_v53  ;;  %v2902_v24 = vmul.f32 %v6832_v48, %v2876_v29  ;;  %vm2908_vm14 = vweird.f32 %v6832_v48 }
 0x617   : > { %6833 = vrsqrt.f32 %v2877_v32  ;;  %v2803_v13 = vmul.f32 %v8728_v37, %v8728_v37  ;;  %v8754_v49 = vadd.f32 %v2690_v0, %v10437_v16  ;;  %vm2909_vm3 = vmor %vm2907_vm15, %vm2908_vm14  ;;  %vm2917_vm10 = vweird.f32 %v2877_v32 }
 0x618   : > { %v2900_v27 = vsel %vm2899_vm13, %v6830_v35, %v2896_v20  ;;  %v2903_v60 = vmul.f32 %v6832_v48, %v2902_v24 }
 0x619   : > { %v3051_v38 = vmul.f32 %v2900_v27, %v8629_v57  ;;  %v2835_v30 = vsel %vm411_vm2, %v2803_v13, 0.0  ;;  %v2753_v51 = vsel %vm411_vm2, %v8754_v49, 0.0 }
 0x61a   : > { %v2904_v1 = vmul.f32 0.5, %v2903_v60  ;;  %2836 = vadd.xlane.f32.xlu2 %v2835_v30  ;;  %v2737_v2 = vpop.xlane.xlu2 %2736  ;;  %2751 = vadd.xlane.f32.xlu0 %v2750_v45  ;;  %v2822_v42 = vpop.xlane.xlu1 %2821 }
 0x61b   : > { %v3069_v41 = vmul.f32 %v8733_v43, %v3051_v38  ;;  %v2772_v6 = vmul.f32 %v8626_v56, %v2737_v2  ;;  %v2862_v5 = vmul.f32 %v2822_v42, %v8626_v56  ;;  %v3245_v42 = vld [vmem:[#allocation2 + $0x390] sm:$0xff] }
 0x61c   : > { %v2905_v10 = vsub.f32 1.5, %v2904_v1  ;;  %3305 = vmatpush.msrb.mxu3 %v3245_v42  ;;  %v3241_v42 = vld [vmem:[#allocation2 + $0x370] sm:$0xff] }
 0x61d   : > { %v6834_v4 = vpop.eup %6833  ;;  %v8748_v57 = vadd.f32 %v8738_v33, %v3069_v41  ;;  %v8751_v8 = vsub.f32 %v8663_v61, %v2772_v6  ;;  %v2878_v15 = vadd.f32 1e-05, %v2862_v5  ;;  %v3244_v41 = vld [vmem:[#allocation2 + $0x388] sm:$0xff] }
 0x61e   : > { %v2906_v59 = vmul.f32 %v6832_v48, %v2905_v10  ;;  %v2912_v23 = vmul.f32 %v6834_v4, %v2877_v32  ;;  %vm2918_vm5 = vweird.f32 %v6834_v4  ;;  %3306 = vmatpush.msrb.mxu3 %v3244_v41  ;;  %v3240_v41 = vld [vmem:[#allocation2 + $0x368] sm:$0xff] }
 0x61f   : > { %6835 = vrsqrt.f32 %v2878_v15  ;;  %6260 = vmatmul.msk.f32.vlgmr.msra.gmra.mxu2 %vm411_vm2, %v8748_v57  ;;  %v2804_v55 = vmul.f32 %v8751_v8, %v8751_v8  ;;  %vm2919_vm11 = vmor %vm2917_vm10, %vm2918_vm5  ;;  %vm2927_vm13 = vweird.f32 %v2878_v15 }
 0x620   : > { %v2910_v11 = vsel %vm2909_vm3, %v6832_v48, %v2906_v59  ;;  %v2913_v18 = vmul.f32 %v6834_v4, %v2912_v23 }
 0x621   : > { %v3052_v61 = vmul.f32 %v2910_v11, %v8636_v25  ;;  %v2838_v52 = vsel %vm411_vm2, %v2804_v55, 0.0 }
 0x622   : > { %v2914_v22 = vmul.f32 0.5, %v2913_v18  ;;  %v2825_v35 = vpop.xlane.xlu0 %2824  ;;  %2839 = vadd.xlane.f32.xlu1 %v2838_v52  ;;  %v2740_v29 = vpop.xlane.xlu1 %2739  ;;  %2754 = vadd.xlane.f32.xlu2 %v2753_v51 }
 0x623   : > { %v2863_v7 = vmul.f32 %v2825_v35, %v8626_v56  ;;  %v2773_v50 = vmul.f32 %v8626_v56, %v2740_v29  ;;  %v3070_v3 = vmul.f32 %v8733_v43, %v3052_v61 }
 0x624   : > { %v2915_v26 = vsub.f32 1.5, %v2914_v22 }
 0x625   : > { %v6836_v44 = vpop.eup %6835  ;;  %v2879_v25 = vadd.f32 1e-05, %v2863_v7  ;;  %v8768_v19 = vsub.f32 %v8676_v46, %v2773_v50  ;;  %v8771_v47 = vadd.f32 %v8738_v33, %v3070_v3 }
 0x626   : > { %v2916_v36 = vmul.f32 %v6834_v4, %v2915_v26  ;;  %v2922_v39 = vmul.f32 %v6836_v44, %v2878_v15  ;;  %vm2928_vm12 = vweird.f32 %v6836_v44 }
 0x627   : > { %6837 = vrsqrt.f32 %v2879_v25  ;;  %6261 = vmatmul.msk.f32.gmra.mxu2 %vm411_vm2, %v8771_v47  ;;  %v2805_v9 = vmul.f32 %v8768_v19, %v8768_v19  ;;  %vm2929_vm14 = vmor %vm2927_vm13, %vm2928_vm12  ;;  %vm2937_vm3 = vweird.f32 %v2879_v25 }
 0x628   : > { %v2920_v53 = vsel %vm2919_vm11, %v6834_v4, %v2916_v36  ;;  %v2923_v48 = vmul.f32 %v6836_v44, %v2922_v39 }
 0x629   : > { %v3053_v28 = vmul.f32 %v2920_v53, %v8648_v17  ;;  %v2841_v46 = vsel %vm411_vm2, %v2805_v9, 0.0 }
 0x62a   : > { %v2924_v31 = vmul.f32 0.5, %v2923_v48  ;;  %v2743_v20 = vpop.xlane.xlu0 %2742  ;;  %v2828_v24 = vpop.xlane.xlu2 %2827  ;;  %2842 = vadd.xlane.f32.xlu0 %v2841_v46 }
 0x62b   : > { %v2774_v32 = vmul.f32 %v8626_v56, %v2743_v20  ;;  %v2864_v13 = vmul.f32 %v2828_v24, %v8626_v56  ;;  %v3071_v27 = vmul.f32 %v8733_v43, %v3053_v28 }
 0x62c   : > { %v2925_v60 = vsub.f32 1.5, %v2924_v31 }
 0x62d   : > { %v6838_v0 = vpop.eup %6837  ;;  %v8783_v38 = vsub.f32 %v8689_v34, %v2774_v32  ;;  %v2880_v30 = vadd.f32 1e-05, %v2864_v13  ;;  %v8786_v17 = vadd.f32 %v8738_v33, %v3071_v27 }
 0x62e   : > { %v2926_v45 = vmul.f32 %v6836_v44, %v2925_v60  ;;  %v2932_v1 = vmul.f32 %v6838_v0, %v2879_v25  ;;  %vm2938_vm15 = vweird.f32 %v6838_v0 }
 0x62f   : > { %6839 = vrsqrt.f32 %v2880_v30  ;;  %6262 = vmatmul.msk.f32.gmra.mxu2 %vm411_vm2, %v8786_v17  ;;  %v2806_v2 = vmul.f32 %v8783_v38, %v8783_v38  ;;  %vm2939_vm5 = vmor %vm2937_vm3, %vm2938_vm15  ;;  %vm2947_vm11 = vweird.f32 %v2880_v30 }
 0x630   : > { %v2930_v6 = vsel %vm2929_vm14, %v6836_v44, %v2926_v45  ;;  %v2933_v34 = vmul.f32 %v6838_v0, %v2932_v1  ;;  %v3243_v1 = vld [vmem:[#allocation2 + $0x380] sm:$0xff] }
 0x631   : > { %v3054_v5 = vmul.f32 %v2930_v6, %v8660_v40  ;;  %v2844_v10 = vsel %vm411_vm2, %v2806_v2, 0.0  ;;  %3307 = vmatpush.msrb.mxu3 %v3243_v1  ;;  %v3242_v2 = vld [vmem:[#allocation2 + $0x378] sm:$0xff] }
 0x632   : > { %v2934_v4 = vmul.f32 0.5, %v2933_v34  ;;  %v2746_v15 = vpop.xlane.xlu2 %2745  ;;  %2845 = vadd.xlane.f32.xlu1 %v2844_v10  ;;  %v2831_v16 = vpop.xlane.xlu1 %2830  ;;  %v3239_v34 = vld [vmem:[#allocation2 + $0x360] sm:$0xff] }
 0x633   : > { %v2775_v59 = vmul.f32 %v8626_v56, %v2746_v15  ;;  %v2865_v23 = vmul.f32 %v2831_v16, %v8626_v56  ;;  %v3072_v55 = vmul.f32 %v8733_v43, %v3054_v5  ;;  %3308 = vmatpush.msrb.mxu3 %v3242_v2  ;;  %v3238_v5 = vld [vmem:[#allocation2 + $0x358] sm:$0xff] }
 0x634   : > { %v2935_v11 = vsub.f32 1.5, %v2934_v4  ;;  %v4209_v2 = vld [vmem:[#allocation2 + $0x138] sm:$0xf] }
 0x635   : > { %v6840_v18 = vpop.eup %6839  ;;  %v8798_v61 = vsub.f32 %v8702_v58, %v2775_v59  ;;  %v2881_v40 = vadd.f32 1e-05, %v2865_v23  ;;  %v8801_v52 = vadd.f32 %v8738_v33, %v3072_v55  ;;  %3309 = vmatpush.msrb.mxu3 %v3241_v42 }
 0x636   : > { %v2936_v51 = vmul.f32 %v6838_v0, %v2935_v11  ;;  %v2942_v22 = vmul.f32 %v6840_v18, %v2880_v30  ;;  %vm2948_vm10 = vweird.f32 %v6840_v18 }
 0x637   : > { %6841 = vrsqrt.f32 %v2881_v40  ;;  %6263 = vmatmul.msk.f32.gmra.mxu2 %vm411_vm2, %v8801_v52  ;;  %v2807_v35 = vmul.f32 %v8798_v61, %v8798_v61  ;;  %vm2949_vm12 = vmor %vm2947_vm11, %vm2948_vm10  ;;  %vm2957_vm14 = vweird.f32 %v2881_v40  ;;  %3310 = vmatpush.msrb.mxu3 %v3240_v41  ;;  %vm3775_vm10 = vcmask 1041408   ;;  %v265_v41 = vld [vmem:[%s8868_s8] sm:$0xff] }
 0x638   : > { %v2940_v29 = vsel %vm2939_vm5, %v6838_v0, %v2936_v51  ;;  %v2943_v7 = vmul.f32 %v6840_v18, %v2942_v22 }
 0x639   : > { %v3055_v58 = vmul.f32 %v2940_v29, %v8673_v63  ;;  %v2847_v50 = vsel %vm411_vm2, %v2807_v35, 0.0  ;;  %3311 = vmatpush.msrb.mxu3 %v3239_v34 }
 0x63a   : > { %v2944_v3 = vmul.f32 0.5, %v2943_v7  ;;  %v2749_v26 = vpop.xlane.xlu1 %2748  ;;  %2848 = vadd.xlane.f32.xlu2 %v2847_v50 }
 0x63b   : > { %v2776_v44 = vmul.f32 %v8626_v56, %v2749_v26  ;;  %v3073_v25 = vmul.f32 %v8733_v43, %v3055_v58  ;;  %3312 = vmatpush.msrb.mxu3 %v3238_v5 }
 0x63c   : > { %v2945_v36 = vsub.f32 1.5, %v2944_v3 }
 0x63d   : > { %v6842_v39 = vpop.eup %6841  ;;  %v8812_v9 = vsub.f32 %v8711_v21, %v2776_v44  ;;  %v8815_v53 = vadd.f32 %v8738_v33, %v3073_v25 }
 0x63e   : > { %v2946_v48 = vmul.f32 %v6840_v18, %v2945_v36  ;;  %v2952_v63 = vmul.f32 %v6842_v39, %v2881_v40  ;;  %vm2958_vm13 = vweird.f32 %v6842_v39 }
 0x63f   : > { %6264 = vmatmul.msk.f32.gmra.mxu2 %vm411_vm2, %v8815_v53  ;;  %v2808_v28 = vmul.f32 %v8812_v9, %v8812_v9  ;;  %vm2959_vm15 = vmor %vm2957_vm14, %vm2958_vm13 }
 0x640   : > { %v2950_v46 = vsel %vm2949_vm12, %v6840_v18, %v2946_v48  ;;  %v2953_v31 = vmul.f32 %v6842_v39, %v2952_v63  ;;  %v267_v63 = vld [vmem:[%s243_s30] sm:$0x1]  ;;  %vm3771_vm12 = vcmask 15360  }
 0x641   : > { %v3056_v20 = vmul.f32 %v2950_v46, %v8686_v12  ;;  %v2850_v21 = vsel %vm411_vm2, %v2808_v28, 0.0 }
 0x642   : > { %v2954_v24 = vmul.f32 0.5, %v2953_v31  ;;  %2851 = vadd.xlane.f32.xlu0 %v2850_v21 }
 0x643   : > { %v3074_v32 = vmul.f32 %v8733_v43, %v3056_v20 }
 0x644   : > { %v2955_v13 = vsub.f32 1.5, %v2954_v24 }
 0x645   : > { %v8825_v27 = vadd.f32 %v8738_v33, %v3074_v32 }
 0x646   : > { %v2956_v60 = vmul.f32 %v6842_v39, %v2955_v13 }
 0x647   : > { %6265 = vmatmul.msk.f32.gmra.mxu2 %vm411_vm2, %v8825_v27 }
 0x648   : > { %v2960_v0 = vsel %vm2959_vm15, %v6842_v39, %v2956_v60  ;;  %v3770_v39 = vld [vmem:[#allocation2 + $0x1e0] sm:$0x3]  ;;  %v8861_v60 = vld [vmem:[#allocation2 + $0x350] ss:$0 sm:$0xff] }
 0x649   : > { %v3057_v12 = vmul.f32 %v2960_v0, %v8699_v14  ;;  %6292 = vmatpush.msk.msra.mxu0 %vm3775_vm10, %v3770_v39 }
 0x64a   : > { %6293 = vmatmul.msk.f32.vlgmr.msra.gmra.mxu0 %vm3771_vm12, %v267_v63 }
 0x64b   : > { %v3075_v30 = vmul.f32 %v8733_v43, %v3057_v12  ;;  %6342 = vmatpush.msk.msrb.mxu0 %vm320_vm0, %v4209_v2 }
 0x64d   : > { %v8832_v45 = vadd.f32 %v8738_v33, %v3075_v30 }
 0x64f   : > { %6266 = vmatmul.msk.f32.gmra.mxu2 %vm411_vm2, %v8832_v45 }
 0x652   : > { %6343 = vmatmul.msk.f32.vlgmr.msrb.gmra.mxu0 %vm271_vm1, %v265_v41 }
 0x685   : > { %v2834_v6 = vpop.xlane.xlu0 %2833 }
 0x686   : > { %v2866_v14 = vmul.f32 %v2834_v6, %v8626_v56 }
 0x688   : > { %v2882_v10 = vadd.f32 1e-05, %v2866_v14 }
 0x68a   : > { %6843 = vrsqrt.f32 %v2882_v10  ;;  %vm2967_vm5 = vweird.f32 %v2882_v10 }
 0x68d   : > { %v2837_v4 = vpop.xlane.xlu2 %2836  ;;  %v2752_v15 = vpop.xlane.xlu0 %2751 }
 0x68e   : > { %v2867_v16 = vmul.f32 %v2837_v4, %v8626_v56  ;;  %v2777_v59 = vmul.f32 %v8626_v56, %v2752_v15 }
 0x690   : > { %v6844_v23 = vpop.eup %6843  ;;  %v2883_v55 = vadd.f32 1e-05, %v2867_v16  ;;  %v8840_v11 = vsub.f32 %v8731_v62, %v2777_v59 }
 0x691   : > { %v2962_v18 = vmul.f32 %v6844_v23, %v2882_v10  ;;  %vm2968_vm3 = vweird.f32 %v6844_v23 }
 0x692   : > { %6845 = vrsqrt.f32 %v2883_v55  ;;  %v2809_v40 = vmul.f32 %v8840_v11, %v8840_v11  ;;  %vm2969_vm11 = vmor %vm2967_vm5, %vm2968_vm3  ;;  %vm2977_vm14 = vweird.f32 %v2883_v55  ;;  %vm3248_vm3 = vcmask 523264  }
 0x693   : > { %v2963_v51 = vmul.f32 %v6844_v23, %v2962_v18 }
 0x694   : > { %v2853_v22 = vsel %vm411_vm2, %v2809_v40, 0.0 }
 0x695   : > { %v2964_v35 = vmul.f32 0.5, %v2963_v51  ;;  %2854 = vadd.xlane.f32.xlu1 %v2853_v22  ;;  %v2840_v29 = vpop.xlane.xlu1 %2839  ;;  %v2755_v7 = vpop.xlane.xlu2 %2754 }
 0x696   : > { %v2868_v58 = vmul.f32 %v2840_v29, %v8626_v56  ;;  %v2778_v50 = vmul.f32 %v8626_v56, %v2755_v7 }
 0x697   : > { %v2965_v3 = vsub.f32 1.5, %v2964_v35  ;;  %v266_v35 = vld [vmem:[%s8868_s8 + $0x8] sm:$0xff] }
 0x698   : > { %v6846_v62 = vpop.eup %6845  ;;  %v2884_v26 = vadd.f32 1e-05, %v2868_v58  ;;  %v8852_v44 = vsub.f32 %v8754_v49, %v2778_v50  ;;  %6344 = vmatmul.msk.f32.gmra.mxu0 %vm271_vm1, %v266_v35 }
 0x699   : > { %v2966_v25 = vmul.f32 %v6844_v23, %v2965_v3  ;;  %v2972_v36 = vmul.f32 %v6846_v62, %v2883_v55  ;;  %vm2978_vm13 = vweird.f32 %v6846_v62 }
 0x69a   : > { %6847 = vrsqrt.f32 %v2884_v26  ;;  %v2810_v48 = vmul.f32 %v8852_v44, %v8852_v44  ;;  %vm2979_vm15 = vmor %vm2977_vm14, %vm2978_vm13  ;;  %vm2987_vm5 = vweird.f32 %v2884_v26 }
 0x69b   : > { %v2970_v28 = vsel %vm2969_vm11, %v6844_v23, %v2966_v25  ;;  %v2973_v46 = vmul.f32 %v6846_v62, %v2972_v36 }
 0x69c   : > { %v3058_v49 = vmul.f32 %v2970_v28, %v8719_v54  ;;  %v2856_v31 = vsel %vm411_vm2, %v2810_v48, 0.0 }
 0x69d   : > { %v2974_v20 = vmul.f32 0.5, %v2973_v46  ;;  %v2843_v21 = vpop.xlane.xlu0 %2842  ;;  %2857 = vadd.xlane.f32.xlu2 %v2856_v31 }
 0x69e   : > { %v2869_v24 = vmul.f32 %v2843_v21, %v8626_v56  ;;  %v3076_v32 = vmul.f32 %v8733_v43, %v3058_v49 }
 0x69f   : > { %v2975_v13 = vsub.f32 1.5, %v2974_v20 }
 0x6a0   : > { %v6848_v54 = vpop.eup %6847  ;;  %v2885_v0 = vadd.f32 1e-05, %v2869_v24  ;;  %v8871_v12 = vadd.f32 %v8738_v33, %v3076_v32 }
 0x6a1   : > { %v2976_v30 = vmul.f32 %v6846_v62, %v2975_v13  ;;  %v2982_v1 = vmul.f32 %v6848_v54, %v2884_v26  ;;  %vm2988_vm0 = vweird.f32 %v6848_v54 }
 0x6a2   : > { %6849 = vrsqrt.f32 %v2885_v0  ;;  %v3174_v42 = vpop.f32.mrf.mxu2  ;;  %6267 = vmatmul.msk.f32.gmra.mxu2 %vm411_vm2, %v8871_v12  ;;  %vm2989_vm10 = vmor %vm2987_vm5, %vm2988_vm0  ;;  %vm2997_vm12 = vweird.f32 %v2885_v0 }
 0x6a3   : > { %v2980_v6 = vsel %vm2979_vm15, %v6846_v62, %v2976_v30  ;;  %v2983_v34 = vmul.f32 %v6848_v54, %v2982_v1  ;;  %v3175_v14 = vadd.f32 %v8861_v60, %v3174_v42 }
 0x6a4   : > { %v3059_v5 = vmul.f32 %v2980_v6, %v8728_v37 }
 0x6a5   : > { %v2984_v10 = vmul.f32 0.5, %v2983_v34  ;;  %v3222_v4 = vmax.f32 %v3175_v14, 0.0  ;;  %v2846_v15 = vpop.xlane.xlu1 %2845 }
 0x6a6   : > { %v2870_v16 = vmul.f32 %v2846_v15, %v8626_v56  ;;  %v3077_v59 = vmul.f32 %v8733_v43, %v3059_v5 }
 0x6a7   : > { %v2985_v23 = vsub.f32 1.5, %v2984_v10  ;;  %6276 = vmatmul.msk.f32.vlgmr.msrb.gmra.mxu3 %vm3248_vm3, %v3222_v4 }
 0x6a8   : > { %v6850_v55 = vpop.eup %6849  ;;  %v2886_v18 = vadd.f32 1e-05, %v2870_v16  ;;  %v8884_v40 = vadd.f32 %v8738_v33, %v3077_v59 }
 0x6a9   : > { %v2986_v51 = vmul.f32 %v6848_v54, %v2985_v23  ;;  %v2992_v37 = vmul.f32 %v6850_v55, %v2885_v0  ;;  %vm2998_vm11 = vweird.f32 %v6850_v55 }
 0x6aa   : > { %6851 = vrsqrt.f32 %v2886_v18  ;;  %v3177_v22 = vpop.f32.mrf.mxu2  ;;  %6268 = vmatmul.msk.f32.gmra.mxu2 %vm411_vm2, %v8884_v40  ;;  %vm2999_vm13 = vmor %vm2997_vm12, %vm2998_vm11  ;;  %vm3007_vm15 = vweird.f32 %v2886_v18 }
 0x6ab   : > { %v2990_v29 = vsel %vm2989_vm10, %v6848_v54, %v2986_v51  ;;  %v2993_v7 = vmul.f32 %v6850_v55, %v2992_v37  ;;  %v3178_v58 = vadd.f32 %v8861_v60, %v3177_v22 }
 0x6ac   : > { %v3060_v50 = vmul.f32 %v2990_v29, %v8751_v8 }
 0x6ad   : > { %v2994_v3 = vmul.f32 0.5, %v2993_v7  ;;  %v3223_v62 = vmax.f32 %v3178_v58, 0.0  ;;  %v2849_v25 = vpop.xlane.xlu2 %2848 }
 0x6ae   : > { %v2871_v26 = vmul.f32 %v2849_v25, %v8626_v56  ;;  %v3078_v36 = vmul.f32 %v8733_v43, %v3060_v50 }
 0x6af   : > { %v2995_v39 = vsub.f32 1.5, %v2994_v3  ;;  %6277 = vmatmul.msk.f32.gmra.mxu3 %vm3248_vm3, %v3223_v62 }
 0x6b0   : > { %v6852_v48 = vpop.eup %6851  ;;  %v2887_v63 = vadd.f32 1e-05, %v2871_v26  ;;  %v8896_v28 = vadd.f32 %v8738_v33, %v3078_v36 }
 0x6b1   : > { %v2996_v46 = vmul.f32 %v6850_v55, %v2995_v39  ;;  %v3002_v49 = vmul.f32 %v6852_v48, %v2886_v18  ;;  %vm3008_vm14 = vweird.f32 %v6852_v48 }
 0x6b2   : > { %6853 = vrsqrt.f32 %v2887_v63  ;;  %v3180_v8 = vpop.f32.mrf.mxu2  ;;  %6269 = vmatmul.msk.f32.gmra.mxu2 %vm411_vm2, %v8896_v28  ;;  %vm3009_vm0 = vmor %vm3007_vm15, %vm3008_vm14  ;;  %vm3017_vm10 = vweird.f32 %v2887_v63 }
 0x6b3   : > { %v3000_v31 = vsel %vm2999_vm13, %v6850_v55, %v2996_v46  ;;  %v3003_v20 = vmul.f32 %v6852_v48, %v3002_v49  ;;  %v3181_v21 = vadd.f32 %v8861_v60, %v3180_v8 }
 0x6b4   : > { %v3061_v24 = vmul.f32 %v3000_v31, %v8768_v19 }
 0x6b5   : > { %v3004_v32 = vmul.f32 0.5, %v3003_v20  ;;  %v3224_v13 = vmax.f32 %v3181_v21, 0.0  ;;  %v2852_v54 = vpop.xlane.xlu0 %2851 }
 0x6b6   : > { %v2872_v30 = vmul.f32 %v2852_v54, %v8626_v56  ;;  %v3079_v0 = vmul.f32 %v8733_v43, %v3061_v24 }
 0x6b7   : > { %v3005_v1 = vsub.f32 1.5, %v3004_v32  ;;  %6278 = vmatmul.msk.f32.gmra.mxu3 %vm3248_vm3, %v3224_v13 }
 0x6b8   : > { %v6854_v2 = vpop.eup %6853  ;;  %v2888_v42 = vadd.f32 1e-05, %v2872_v30  ;;  %v8906_v41 = vadd.f32 %v8738_v33, %v3079_v0 }
 0x6b9   : > { %v3006_v6 = vmul.f32 %v6852_v48, %v3005_v1  ;;  %v3012_v34 = vmul.f32 %v6854_v2, %v2887_v63  ;;  %vm3018_vm5 = vweird.f32 %v6854_v2 }
 0x6ba   : > { %6855 = vrsqrt.f32 %v2888_v42  ;;  %v3183_v19 = vpop.f32.mrf.mxu2  ;;  %6270 = vmatmul.msk.f32.gmra.mxu2 %vm411_vm2, %v8906_v41  ;;  %vm3019_vm11 = vmor %vm3017_vm10, %vm3018_vm5  ;;  %vm3027_vm13 = vweird.f32 %v2888_v42 }
 0x6bb   : > { %v3010_v14 = vsel %vm3009_vm0, %v6852_v48, %v3006_v6  ;;  %v3013_v5 = vmul.f32 %v6854_v2, %v3012_v34  ;;  %v3184_v10 = vadd.f32 %v8861_v60, %v3183_v19 }
 0x6bc   : > { %v3062_v4 = vmul.f32 %v3010_v14, %v8783_v38 }
 0x6bd   : > { %v3014_v15 = vmul.f32 0.5, %v3013_v5  ;;  %v3225_v16 = vmax.f32 %v3184_v10, 0.0 }
 0x6be   : > { %v3080_v59 = vmul.f32 %v8733_v43, %v3062_v4 }
 0x6bf   : > { %v3015_v23 = vsub.f32 1.5, %v3014_v15  ;;  %6279 = vmatmul.msk.f32.gmra.mxu3 %vm3248_vm3, %v3225_v16  ;;  %v6610_v15 = vld [vmem:[#allocation2 + $0x140] ss:$0 sm:$0xff] }
 0x6c0   : > { %v6856_v55 = vpop.eup %6855  ;;  %v8915_v18 = vadd.f32 %v8738_v33, %v3080_v59 }
 0x6c1   : > { %v3016_v51 = vmul.f32 %v6854_v2, %v3015_v23  ;;  %v3022_v37 = vmul.f32 %v6856_v55, %v2888_v42  ;;  %vm3028_vm12 = vweird.f32 %v6856_v55 }
 0x6c2   : > { %v3186_v22 = vpop.f32.mrf.mxu2  ;;  %6271 = vmatmul.msk.f32.gmra.mxu2 %vm411_vm2, %v8915_v18  ;;  %vm3029_vm14 = vmor %vm3027_vm13, %vm3028_vm12 }
 0x6c3   : > { %v3020_v38 = vsel %vm3019_vm11, %v6854_v2, %v3016_v51  ;;  %v3023_v35 = vmul.f32 %v6856_v55, %v3022_v37  ;;  %v3187_v29 = vadd.f32 %v8861_v60, %v3186_v22  ;;  %v4249_v37 = vld [vmem:[#allocation2 + $0x160] sm:$0xff] }
 0x6c4   : > { %v3063_v7 = vmul.f32 %v3020_v38, %v8798_v61  ;;  %4270 = vmatpush.msra.mxu0 %v4249_v37 }
 0x6c5   : > { %v3024_v58 = vmul.f32 0.5, %v3023_v35  ;;  %v3226_v50 = vmax.f32 %v3187_v29, 0.0  ;;  %v4248_v35 = vld [vmem:[#allocation2 + $0x158] sm:$0xff] }
 0x6c6   : > { %v3081_v3 = vmul.f32 %v8733_v43, %v3063_v7  ;;  %4271 = vmatpush.msra.mxu0 %v4248_v35 }
 0x6c7   : > { %v3025_v62 = vsub.f32 1.5, %v3024_v58  ;;  %6280 = vmatmul.msk.f32.gmra.mxu3 %vm3248_vm3, %v3226_v50  ;;  %v8941_v42 = vpop.f32.mrf.mxu0  ;;  %v4247_v58 = vld [vmem:[#allocation2 + $0x150] sm:$0xff] }
 0x6c8   : > { %v8924_v25 = vadd.f32 %v8738_v33, %v3081_v3  ;;  %v8952_v3 = vld [vmem:[#allocation2 + $0x398] ss:$0 sm:$0xff]  ;;  %4272 = vmatpush.msra.mxu0 %v4247_v58 }
 0x6c9   : > { %v3026_v26 = vmul.f32 %v6856_v55, %v3025_v62 }
 0x6ca   : > { %v3189_v36 = vpop.f32.mrf.mxu2  ;;  %6272 = vmatmul.msk.f32.gmra.mxu2 %vm411_vm2, %v8924_v25 }
 0x6cb   : > { %v3030_v39 = vsel %vm3029_vm14, %v6856_v55, %v3026_v26  ;;  %v3190_v61 = vadd.f32 %v8861_v60, %v3189_v36  ;;  %v4246_v36 = vld [vmem:[#allocation2 + $0x148] sm:$0xff] }
 0x6cc   : > { %v3064_v48 = vmul.f32 %v3030_v39, %v8812_v9  ;;  %4273 = vmatpush.msra.mxu0 %v4246_v36 }
 0x6cd   : > { %v3227_v63 = vmax.f32 %v3190_v61, 0.0 }
 0x6ce   : > { %v3082_v46 = vmul.f32 %v8733_v43, %v3064_v48 }
 0x6cf   : > { %6281 = vmatmul.msk.f32.gmra.mxu3 %vm3248_vm3, %v3227_v63  ;;  %v4238_v59 = vpop.f32.mrf.mxu0 }
 0x6d0   : > { %v8933_v49 = vadd.f32 %v8738_v33, %v3082_v46  ;;  %v4239_v55 = vadd.f32 %v6610_v15, %v4238_v59 }
 0x6d2   : > { %v3192_v8 = vpop.f32.mrf.mxu2  ;;  %6273 = vmatmul.msk.f32.gmra.mxu2 %vm411_vm2, %v8933_v49 }
 0x6d3   : > { %v3193_v31 = vadd.f32 %v8861_v60, %v3192_v8 }
 0x6d5   : > { %v3228_v20 = vmax.f32 %v3193_v31, 0.0 }
 0x6d7   : > { %6282 = vmatmul.msk.f32.gmra.mxu3 %vm3248_vm3, %v3228_v20 }
 0x708   : > { %v2855_v21 = vpop.xlane.xlu1 %2854 }
 0x709   : > { %v2873_v9 = vmul.f32 %v2855_v21, %v8626_v56 }
 0x70b   : > { %v2889_v24 = vadd.f32 1e-05, %v2873_v9 }
 0x70d   : > { %6857 = vrsqrt.f32 %v2889_v24  ;;  %vm3037_vm0 = vweird.f32 %v2889_v24 }
 0x710   : > { %v2858_v32 = vpop.xlane.xlu2 %2857 }
 0x711   : > { %v2874_v13 = vmul.f32 %v2858_v32, %v8626_v56 }
 0x713   : > { %v6858_v54 = vpop.eup %6857  ;;  %v2890_v30 = vadd.f32 1e-05, %v2874_v13 }
 0x714   : > { %v3032_v0 = vmul.f32 %v6858_v54, %v2889_v24  ;;  %vm3038_vm15 = vweird.f32 %v6858_v54 }
 0x715   : > { %6859 = vrsqrt.f32 %v2890_v30  ;;  %vm3039_vm5 = vmor %vm3037_vm0, %vm3038_vm15  ;;  %vm3047_vm11 = vweird.f32 %v2890_v30  ;;  %v4241_v26 = vpop.f32.mrf.mxu0 }
 0x716   : > { %v3033_v1 = vmul.f32 %v6858_v54, %v3032_v0  ;;  %6861 = vtanh.f32 %v4239_v55  ;;  %v4242_v48 = vadd.f32 %v6610_v15, %v4241_v26 }
 0x718   : > { %v3034_v2 = vmul.f32 0.5, %v3033_v1  ;;  %6863 = vtanh.f32 %v4242_v48  ;;  %v4288_v48 = vld [vmem:[#allocation2 + $0x3c8] sm:$0xff] }
 0x719   : > { %4309 = vmatpush.msrb.mxu0 %v4288_v48 }
 0x71a   : > { %v3035_v6 = vsub.f32 1.5, %v3034_v2 }
 0x71b   : > { %v6860_v34 = vpop.eup %6859 }
 0x71c   : > { %v3036_v19 = vmul.f32 %v6858_v54, %v3035_v6  ;;  %v3042_v14 = vmul.f32 %v6860_v34, %v2890_v30  ;;  %vm3048_vm10 = vweird.f32 %v6860_v34  ;;  %v6862_v39 = vpop.eup %6861 }
 0x71d   : > { %vm3049_vm12 = vmor %vm3047_vm11, %vm3048_vm10  ;;  %6345 = vmatmul.msk.f32.vlgmr.msra.gmra.mxu0 %vm411_vm2, %v6862_v39 }
 0x71e   : > { %v3040_v5 = vsel %vm3039_vm5, %v6858_v54, %v3036_v19  ;;  %v3043_v10 = vmul.f32 %v6860_v34, %v3042_v14  ;;  %v6864_v9 = vpop.eup %6863 }
 0x71f   : > { %v3065_v4 = vmul.f32 %v3040_v5, %v8840_v11 }
 0x720   : > { %v3044_v16 = vmul.f32 0.5, %v3043_v10 }
 0x721   : > { %v3083_v23 = vmul.f32 %v8733_v43, %v3065_v4 }
 0x722   : > { %v3045_v51 = vsub.f32 1.5, %v3044_v16 }
 0x723   : > { %v8946_v22 = vadd.f32 %v8738_v33, %v3083_v23 }
 0x724   : > { %v3046_v38 = vmul.f32 %v6860_v34, %v3045_v51 }
 0x725   : > { %v3195_v29 = vpop.f32.mrf.mxu2  ;;  %6274 = vmatmul.msk.f32.gmra.mxu2 %vm411_vm2, %v8946_v22  ;;  %6346 = vmatmul.msk.f32.gmra.mxu0 %vm411_vm2, %v6864_v9  ;;  %v4286_v9 = vld [vmem:[#allocation2 + $0x3b8] sm:$0xff] }
 0x726   : > { %v3050_v11 = vsel %vm3049_vm12, %v6860_v34, %v3046_v38  ;;  %v3196_v7 = vadd.f32 %v8861_v60, %v3195_v29 }
 0x727   : > { %v3066_v50 = vmul.f32 %v3050_v11, %v8852_v44 }
 0x728   : > { %v3229_v62 = vmax.f32 %v3196_v7, 0.0 }
 0x729   : > { %v3084_v61 = vmul.f32 %v8733_v43, %v3066_v50 }
 0x72a   : > { %v3314_v63 = vpop.f32.mrf.mxu3  ;;  %6283 = vmatmul.msk.f32.gmra.mxu3 %vm3248_vm3, %v3229_v62 }
 0x72b   : > { %v3315_v46 = vadd.f32 %v8952_v3, %v3314_v63  ;;  %v8959_v44 = vadd.f32 %v8738_v33, %v3084_v61 }
 0x72d   : > { %v3198_v8 = vpop.f32.mrf.mxu2  ;;  %6275 = vmatmul.msk.f32.gmra.mxu2 %vm411_vm2, %v8959_v44  ;;  %v3362_v31 = vadd.f32 %v3315_v46, %v8748_v57  ;;  %v6611_v46 = vld [vmem:[#allocation2 + $0x168] ss:$0 sm:$0xff] }
 0x72e   : > { %v3199_v43 = vadd.f32 %v8861_v60, %v3198_v8  ;;  %v4287_v8 = vld [vmem:[#allocation2 + $0x3c0] sm:$0xff] }
 0x72f   : > { %v3378_v20 = vsel %vm411_vm2, %v3362_v31, 0.0  ;;  %4310 = vmatpush.msrb.mxu0 %v4287_v8 }
 0x730   : > { %v3230_v21 = vmax.f32 %v3199_v43, 0.0  ;;  %3379 = vadd.xlane.f32.xlu0 %v3378_v20 }
 0x731   : > { %4311 = vmatpush.msrb.mxu0 %v4286_v9 }
 0x732   : > { %v3317_v24 = vpop.f32.mrf.mxu3  ;;  %6284 = vmatmul.msk.f32.gmra.mxu3 %vm3248_vm3, %v3230_v21 }
 0x733   : > { %v3318_v33 = vadd.f32 %v8952_v3, %v3317_v24 }
 0x735   : > { %v3201_v32 = vpop.f32.mrf.mxu2  ;;  %v8970_v13 = vadd.f32 %v3318_v33, %v8771_v47  ;;  %v4281_v33 = vld [vmem:[#allocation2] sm:$0xff] }
 0x736   : > { %v3202_v57 = vadd.f32 %v8861_v60, %v3201_v32 }
 0x737   : > { %v3381_v54 = vsel %vm411_vm2, %v8970_v13, 0.0 }
 0x738   : > { %v3231_v30 = vmax.f32 %v3202_v57, 0.0  ;;  %3382 = vadd.xlane.f32.xlu1 %v3381_v54 }
 0x73a   : > { %v3320_v0 = vpop.f32.mrf.mxu3  ;;  %6285 = vmatmul.msk.f32.gmra.mxu3 %vm3248_vm3, %v3231_v30 }
 0x73b   : > { %v3321_v1 = vadd.f32 %v8952_v3, %v3320_v0 }
 0x73d   : > { %v3204_v2 = vpop.f32.mrf.mxu2  ;;  %v8978_v6 = vadd.f32 %v3321_v1, %v8786_v17 }
 0x73e   : > { %v3205_v34 = vadd.f32 %v8861_v60, %v3204_v2 }
 0x73f   : > { %v3384_v47 = vsel %vm411_vm2, %v8978_v6, 0.0 }
 0x740   : > { %v3232_v19 = vmax.f32 %v3205_v34, 0.0  ;;  %3385 = vadd.xlane.f32.xlu2 %v3384_v47 }
 0x742   : > { %v3323_v14 = vpop.f32.mrf.mxu3  ;;  %6286 = vmatmul.msk.f32.gmra.mxu3 %vm3248_vm3, %v3232_v19 }
 0x743   : > { %v3324_v5 = vadd.f32 %v8952_v3, %v3323_v14 }
 0x745   : > { %v3207_v10 = vpop.f32.mrf.mxu2  ;;  %v8986_v4 = vadd.f32 %v3324_v5, %v8801_v52 }
 0x746   : > { %v3208_v15 = vadd.f32 %v8861_v60, %v3207_v10 }
 0x747   : > { %v3387_v17 = vsel %vm411_vm2, %v8986_v4, 0.0 }
 0x748   : > { %v3233_v16 = vmax.f32 %v3208_v15, 0.0  ;;  %3388 = vadd.xlane.f32.xlu0 %v3387_v17  ;;  %v4282_v17 = vld [vmem:[#allocation2 + $0x8] sm:$0xff] }
 0x74a   : > { %v3326_v59 = vpop.f32.mrf.mxu3  ;;  %6287 = vmatmul.msk.f32.gmra.mxu3 %vm3248_vm3, %v3233_v16 }
 0x74b   : > { %v3327_v23 = vadd.f32 %v8952_v3, %v3326_v59 }
 0x74d   : > { %v3210_v55 = vpop.f32.mrf.mxu2  ;;  %v8994_v51 = vadd.f32 %v3327_v23, %v8815_v53 }
 0x74e   : > { %v3211_v37 = vadd.f32 %v8861_v60, %v3210_v55 }
 0x74f   : > { %v3390_v52 = vsel %vm411_vm2, %v8994_v51, 0.0 }
 0x750   : > { %v3234_v38 = vmax.f32 %v3211_v37, 0.0  ;;  %3391 = vadd.xlane.f32.xlu1 %v3390_v52  ;;  %v4323_v37 = vld [vmem:[#allocation2 + $0x3f0] sm:$0xff] }
 0x752   : > { %v3329_v35 = vpop.f32.mrf.mxu3  ;;  %6288 = vmatmul.msk.f32.gmra.mxu3 %vm3248_vm3, %v3234_v38 }
 0x753   : > { %v3330_v29 = vadd.f32 %v8952_v3, %v3329_v35  ;;  %v4322_v35 = vld [vmem:[#allocation2 + $0x3e8] sm:$0xff] }
 0x755   : > { %v3213_v11 = vpop.f32.mrf.mxu2  ;;  %v9002_v7 = vadd.f32 %v3330_v29, %v8825_v27 }
 0x756   : > { %v3214_v58 = vadd.f32 %v8861_v60, %v3213_v11 }
 0x757   : > { %v3393_v53 = vsel %vm411_vm2, %v9002_v7, 0.0 }
 0x758   : > { %v3235_v50 = vmax.f32 %v3214_v58, 0.0  ;;  %3394 = vadd.xlane.f32.xlu2 %v3393_v53  ;;  %v4321_v58 = vld [vmem:[#allocation2 + $0x3e0] sm:$0xff] }
 0x75a   : > { %v3332_v62 = vpop.f32.mrf.mxu3  ;;  %6289 = vmatmul.msk.f32.gmra.mxu3 %vm3248_vm3, %v3235_v50 }
 0x75b   : > { %v3333_v26 = vadd.f32 %v8952_v3, %v3332_v62  ;;  %v4320_v62 = vld [vmem:[#allocation2 + $0x3d8] sm:$0xff] }
 0x75d   : > { %v9010_v36 = vadd.f32 %v3333_v26, %v8832_v45 }
 0x75f   : > { %v3396_v39 = vsel %vm411_vm2, %v9010_v36, 0.0 }
 0x760   : > { %3397 = vadd.xlane.f32.xlu1 %v3396_v39 }
 0x79a   : > { %v4275_v43 = vpop.f32.mrf.mxu0 }
 0x79b   : > { %v4276_v21 = vadd.f32 %v6611_v46, %v4275_v43 }
 0x79d   : > { %v9021_v57 = vadd.f32 %v4281_v33, %v4276_v21 }
 0x7a2   : > { %v4278_v47 = vpop.f32.mrf.mxu0 }
 0x7a3   : > { %v3380_v27 = vpop.xlane.xlu0 %3379  ;;  %v4279_v10 = vadd.f32 %v6611_v46, %v4278_v47 }
 0x7a4   : > { %v3426_v61 = vmul.f32 %v3380_v27, %v8626_v56 }
 0x7a5   : > { %v9040_v59 = vadd.f32 %v4282_v17, %v4279_v10 }
 0x7a6   : > { %v9015_v63 = vsub.f32 %v3362_v31, %v3426_v61  ;;  %v4285_v31 = vld [vmem:[#allocation2 + $0x3b0] sm:$0xff] }
 0x7a7   : > { %4312 = vmatpush.msrb.mxu0 %v4285_v31 }
 0x7a8   : > { %v3216_v20 = vpop.f32.mrf.mxu2  ;;  %v3458_v45 = vmul.f32 %v9015_v63, %v9015_v63  ;;  %6347 = vmatmul.msk.f32.vlgmr.msrb.gmra.mxu0 %vm411_vm2, %v9021_v57 }
 0x7a9   : > { %v3217_v24 = vadd.f32 %v8861_v60, %v3216_v20  ;;  %4338 = vmatpush.msra.mxu0 %v4323_v37 }
 0x7aa   : > { %v3474_v32 = vsel %vm411_vm2, %v3458_v45, 0.0 }
 0x7ab   : > { %v3236_v54 = vmax.f32 %v3217_v24, 0.0  ;;  %3475 = vadd.xlane.f32.xlu0 %v3474_v32  ;;  %v3383_v30 = vpop.xlane.xlu1 %3382  ;;  %4339 = vmatpush.msra.mxu0 %v4322_v35  ;;  %v3768_v35 = vld [vmem:[#allocation2 + $0x1d0] sm:$0xff] }
 0x7ac   : > { %v3427_v0 = vmul.f32 %v3383_v30, %v8626_v56 }
 0x7ad   : > { %v3335_v1 = vpop.f32.mrf.mxu3  ;;  %6290 = vmatmul.msk.f32.gmra.mxu3 %vm3248_vm3, %v3236_v54  ;;  %4340 = vmatpush.msra.mxu0 %v4321_v58  ;;  %v3766_v58 = vld [vmem:[#allocation2 + $0x1c0] sm:$0xff] }
 0x7ae   : > { %v9028_v2 = vsub.f32 %v8970_v13, %v3427_v0  ;;  %v3336_v34 = vadd.f32 %v8952_v3, %v3335_v1  ;;  %v4352_v1 = vld [vmem:[#allocation2 + $0x418] sm:$0xff] }
 0x7af   : > { %4341 = vmatpush.msra.mxu0 %v4320_v62 }
 0x7b0   : > { %v3219_v19 = vpop.f32.mrf.mxu2  ;;  %v9032_v14 = vadd.f32 %v3336_v34, %v8871_v12  ;;  %v3459_v5 = vmul.f32 %v9028_v2, %v9028_v2  ;;  %6348 = vmatmul.msk.f32.gmra.mxu0 %vm411_vm2, %v9040_v59 }
 0x7b1   : > { %v3220_v15 = vadd.f32 %v8861_v60, %v3219_v19  ;;  %4367 = vmatpush.msrb.mxu0 %v4352_v1 }
 0x7b2   : > { %v3399_v16 = vsel %vm411_vm2, %v9032_v14, 0.0  ;;  %v3477_v13 = vsel %vm411_vm2, %v3459_v5, 0.0 }
 0x7b3   : > { %v3237_v23 = vmax.f32 %v3220_v15, 0.0  ;;  %3400 = vadd.xlane.f32.xlu0 %v3399_v16  ;;  %3478 = vadd.xlane.f32.xlu2 %v3477_v13  ;;  %v3386_v55 = vpop.xlane.xlu2 %3385  ;;  %v4349_v16 = vld [vmem:[#allocation2 + $0x400] sm:$0xff] }
 0x7b4   : > { %v3428_v12 = vmul.f32 %v3386_v55, %v8626_v56 }
 0x7b5   : > { %v3338_v52 = vpop.f32.mrf.mxu3  ;;  %6291 = vmatmul.msk.f32.gmra.mxu3 %vm3248_vm3, %v3237_v23 }
 0x7b6   : > { %v9047_v60 = vsub.f32 %v8978_v6, %v3428_v12  ;;  %v3339_v38 = vadd.f32 %v8952_v3, %v3338_v52 }
 0x7b8   : > { %v9051_v29 = vadd.f32 %v3339_v38, %v8884_v40  ;;  %v3460_v11 = vmul.f32 %v9047_v60, %v9047_v60  ;;  %6349 = vmatmul.msk.f32.vlgmr.msra.gmra.mxu0 %vm411_vm2, %v9021_v57  ;;  %v3769_v38 = vld [vmem:[#allocation2 + $0x1d8] sm:$0xff] }
 0x7b9   : > { %3860 = vmatpush.msrb.mxu1 %v3769_v38 }
 0x7ba   : > { %v3402_v53 = vsel %vm411_vm2, %v9051_v29, 0.0  ;;  %v3480_v50 = vsel %vm411_vm2, %v3460_v11, 0.0  ;;  %v3767_v11 = vld [vmem:[#allocation2 + $0x1c8] sm:$0xff] }
 0x7bb   : > { %v3389_v6 = vpop.xlane.xlu0 %3388  ;;  %3403 = vadd.xlane.f32.xlu2 %v3402_v53  ;;  %3481 = vadd.xlane.f32.xlu1 %v3480_v50  ;;  %v10438_v53 = vmov 1.0  }
 0x7bc   : > { %v3429_v26 = vmul.f32 %v3389_v6, %v8626_v56  ;;  %3861 = vmatpush.msrb.mxu1 %v3768_v35 }
 0x7bd   : > { %v3341_v39 = vpop.f32.mrf.mxu3 }
 0x7be   : > { %v9062_v40 = vsub.f32 %v8986_v4, %v3429_v26  ;;  %v3342_v27 = vadd.f32 %v8952_v3, %v3341_v39  ;;  %3862 = vmatpush.msrb.mxu1 %v3767_v11 }
 0x7c0   : > { %v3461_v61 = vmul.f32 %v9062_v40, %v9062_v40  ;;  %v9068_v48 = vadd.f32 %v3342_v27, %v8896_v28  ;;  %6350 = vmatmul.msk.f32.gmra.mxu0 %vm411_vm2, %v9040_v59  ;;  %3863 = vmatpush.msrb.mxu1 %v3766_v58 }
 0x7c2   : > { %v3483_v46 = vsel %vm411_vm2, %v3461_v61, 0.0  ;;  %v3405_v8 = vsel %vm411_vm2, %v9068_v48, 0.0  ;;  %6365 = vmatpush.msk.msra.mxu1 %vm6047_vm7, %v10438_v53 }
 0x7c3   : > { %3484 = vadd.xlane.f32.xlu0 %v3483_v46  ;;  %v3392_v43 = vpop.xlane.xlu1 %3391  ;;  %3406 = vadd.xlane.f32.xlu1 %v3405_v8 }
 0x7c4   : > { %v3430_v20 = vmul.f32 %v3392_v43, %v8626_v56  ;;  %6366 = vmatpush.msk.msra.mxu1 %vm6047_vm7, %v10438_v53 }
 0x7c5   : > { %v3344_v4 = vpop.f32.mrf.mxu3 }
 0x7c6   : > { %v9077_v45 = vsub.f32 %v8994_v51, %v3430_v20  ;;  %v3345_v28 = vadd.f32 %v8952_v3, %v3344_v4  ;;  %6367 = vmatpush.msk.msra.mxu1 %vm6046_vm6, %v10438_v53 }
 0x7c8   : > { %v9081_v21 = vadd.f32 %v3345_v28, %v8906_v41  ;;  %v3462_v9 = vmul.f32 %v9077_v45, %v9077_v45  ;;  %6368 = vmatpush.msk.msra.mxu1 %vm6046_vm6, %v10438_v53 }
 0x7ca   : > { %v3408_v24 = vsel %vm411_vm2, %v9081_v21, 0.0  ;;  %v3486_v33 = vsel %vm411_vm2, %v3462_v9, 0.0  ;;  %6369 = vmatpush.msk.msra.mxu1 %vm6045_vm9, %v10438_v53 }
 0x7cb   : > { %3409 = vadd.xlane.f32.xlu0 %v3408_v24  ;;  %3487 = vadd.xlane.f32.xlu2 %v3486_v33  ;;  %v3395_v32 = vpop.xlane.xlu2 %3394 }
 0x7cc   : > { %v3431_v31 = vmul.f32 %v3395_v32, %v8626_v56  ;;  %6370 = vmatpush.msk.msra.mxu1 %vm6045_vm9, %v10438_v53 }
 0x7cd   : > { %v3347_v51 = vpop.f32.mrf.mxu3 }
 0x7ce   : > { %v9090_v54 = vsub.f32 %v9002_v7, %v3431_v31  ;;  %v3348_v41 = vadd.f32 %v8952_v3, %v3347_v51  ;;  %v4351_v7 = vld [vmem:[#allocation2 + $0x410] sm:$0xff]  ;;  %6371 = vmatpush.msk.msra.mxu1 %vm6044_vm8, %v10438_v53 }
 0x7cf   : > { %4368 = vmatpush.msrb.mxu0 %v4351_v7 }
 0x7d0   : > { %v9094_v30 = vadd.f32 %v3348_v41, %v8915_v18  ;;  %v3463_v0 = vmul.f32 %v9090_v54, %v9090_v54  ;;  %v4350_v18 = vld [vmem:[#allocation2 + $0x408] sm:$0xff]  ;;  %6372 = vmatpush.msk.msra.mxu1 %vm6044_vm8, %v10438_v53 }
 0x7d1   : > { %4369 = vmatpush.msrb.mxu0 %v4350_v18  ;;  %v9169_v18 = vld [vmem:[#allocation2 + $0x3a0] ss:$0 sm:$0xff] }
 0x7d2   : > { %v3411_v34 = vsel %vm411_vm2, %v9094_v30, 0.0  ;;  %v3489_v47 = vsel %vm411_vm2, %v3463_v0, 0.0 }
 0x7d3   : > { %v3398_v19 = vpop.xlane.xlu1 %3397  ;;  %3412 = vadd.xlane.f32.xlu2 %v3411_v34  ;;  %3490 = vadd.xlane.f32.xlu1 %v3489_v47 }
 0x7d4   : > { %v3432_v5 = vmul.f32 %v3398_v19, %v8626_v56  ;;  %4370 = vmatpush.msrb.mxu0 %v4349_v16 }
 0x7d5   : > { %v3350_v10 = vpop.f32.mrf.mxu3  ;;  %6351 = vmatmul.msk.f32.vlgmr.msrb.gmra.mxu0 %vm411_vm2, %v9021_v57 }
 0x7d6   : > { %v9103_v15 = vsub.f32 %v9010_v36, %v3432_v5  ;;  %v3351_v17 = vadd.f32 %v8952_v3, %v3350_v10 }
 0x7d8   : > { %v3464_v13 = vmul.f32 %v9103_v15, %v9103_v15  ;;  %v9109_v23 = vadd.f32 %v3351_v17, %v8924_v25 }
 0x7da   : > { %v3492_v55 = vsel %vm411_vm2, %v3464_v13, 0.0  ;;  %v3414_v36 = vsel %vm411_vm2, %v9109_v23, 0.0 }
 0x7db   : > { %3493 = vadd.xlane.f32.xlu0 %v3492_v55  ;;  %3415 = vadd.xlane.f32.xlu1 %v3414_v36  ;;  %v9177_v55 = vld [vmem:[#allocation2 + $0x3a8] ss:$0 sm:$0xff] }
 0x7dd   : > { %v3353_v12 = vpop.f32.mrf.mxu3  ;;  %6352 = vmatmul.msk.f32.gmra.mxu0 %vm411_vm2, %v9040_v59 }
 0x7de   : > { %v3354_v37 = vadd.f32 %v8952_v3, %v3353_v12 }
 0x7e0   : > { %v9118_v52 = vadd.f32 %v3354_v37, %v8933_v49 }
 0x7e2   : > { %v3417_v25 = vsel %vm411_vm2, %v9118_v52, 0.0 }
 0x7e3   : > { %3418 = vadd.xlane.f32.xlu0 %v3417_v25 }
 0x81e   : > { %v3476_v49 = vpop.xlane.xlu0 %3475 }
 0x81f   : > { %v3522_v62 = vmul.f32 %v3476_v49, %v8626_v56 }
 0x821   : > { %v3538_v6 = vadd.f32 1e-05, %v3522_v62 }
 0x823   : > { %6865 = vrsqrt.f32 %v3538_v6  ;;  %vm3560_vm14 = vweird.f32 %v3538_v6 }
 0x825   : > { %v9148_v20 = vpop.f32.mrf.mxu0 }
 0x826   : > { %v3401_v26 = vpop.xlane.xlu0 %3400  ;;  %v3479_v39 = vpop.xlane.xlu2 %3478 }
 0x827   : > { %v3433_v27 = vmul.f32 %v3401_v26, %v8626_v56  ;;  %v3523_v61 = vmul.f32 %v3479_v39, %v8626_v56 }
 0x829   : > { %v6866_v46 = vpop.eup %6865  ;;  %v9146_v8 = vsub.f32 %v9032_v14, %v3433_v27  ;;  %v3539_v43 = vadd.f32 1e-05, %v3523_v61 }
 0x82a   : > { %v3555_v4 = vmul.f32 %v6866_v46, %v3538_v6  ;;  %vm3561_vm13 = vweird.f32 %v6866_v46 }
 0x82b   : > { %6867 = vrsqrt.f32 %v3539_v43  ;;  %v3465_v28 = vmul.f32 %v9146_v8, %v9146_v8  ;;  %vm3562_vm15 = vmor %vm3560_vm14, %vm3561_vm13  ;;  %vm3570_vm5 = vweird.f32 %v3539_v43 }
 0x82c   : > { %v3556_v9 = vmul.f32 %v6866_v46, %v3555_v4 }
 0x82d   : > { %v3495_v14 = vsel %vm411_vm2, %v3465_v28, 0.0  ;;  %v9167_v7 = vpop.f32.mrf.mxu0 }
 0x82e   : > { %v3557_v24 = vmul.f32 0.5, %v3556_v9  ;;  %3496 = vadd.xlane.f32.xlu2 %v3495_v14  ;;  %v3482_v33 = vpop.xlane.xlu1 %3481  ;;  %v3404_v32 = vpop.xlane.xlu2 %3403 }
 0x82f   : > { %v3524_v31 = vmul.f32 %v3482_v33, %v8626_v56  ;;  %v3434_v51 = vmul.f32 %v3404_v32, %v8626_v56 }
 0x830   : > { %v3558_v41 = vsub.f32 1.5, %v3557_v24  ;;  %v3356_v0 = vpop.f32.mrf.mxu3 }
 0x831   : > { %v6868_v1 = vpop.eup %6867  ;;  %v9161_v34 = vadd.f32 1e-05, %v3524_v31  ;;  %v9164_v47 = vsub.f32 %v9051_v29, %v3434_v51  ;;  %v3357_v19 = vadd.f32 %v8952_v3, %v3356_v0 }
 0x832   : > { %v3559_v5 = vmul.f32 %v6866_v46, %v3558_v41  ;;  %v3565_v10 = vmul.f32 %v6868_v1, %v3539_v43  ;;  %vm3571_vm0 = vweird.f32 %v6868_v1 }
 0x833   : > { %6869 = vrsqrt.f32 %v9161_v34  ;;  %v9173_v17 = vadd.f32 %v3357_v19, %v8946_v22  ;;  %v3466_v16 = vmul.f32 %v9164_v47, %v9164_v47  ;;  %vm3572_vm10 = vmor %vm3570_vm5, %vm3571_vm0  ;;  %vm3580_vm12 = vweird.f32 %v9161_v34 }
 0x834   : > { %v3563_v29 = vsel %vm3562_vm15, %v6866_v46, %v3559_v5  ;;  %v3566_v13 = vmul.f32 %v6868_v1, %v3565_v10 }
 0x835   : > { %v3714_v36 = vmul.f32 %v3563_v29, %v9015_v63  ;;  %v3420_v12 = vsel %vm411_vm2, %v9173_v17, 0.0  ;;  %v3498_v37 = vsel %vm411_vm2, %v3466_v16, 0.0  ;;  %v4343_v4 = vpop.f32.mrf.mxu0 }
 0x836   : > { %v3567_v25 = vmul.f32 0.5, %v3566_v13  ;;  %v3485_v38 = vpop.xlane.xlu0 %3484  ;;  %3421 = vadd.xlane.f32.xlu2 %v3420_v12  ;;  %v3407_v35 = vpop.xlane.xlu1 %3406  ;;  %3499 = vadd.xlane.f32.xlu1 %v3498_v37 }
 0x837   : > { %v3732_v22 = vmul.f32 %v9169_v18, %v3714_v36  ;;  %v3525_v11 = vmul.f32 %v3485_v38, %v8626_v56  ;;  %v3435_v58 = vmul.f32 %v3407_v35, %v8626_v56 }
 0x838   : > { %v3568_v49 = vsub.f32 1.5, %v3567_v25  ;;  %v3359_v62 = vpop.f32.mrf.mxu3 }
 0x839   : > { %v6870_v63 = vpop.eup %6869  ;;  %v3750_v6 = vadd.f32 %v9177_v55, %v3732_v22  ;;  %v9187_v26 = vadd.f32 1e-05, %v3525_v11  ;;  %v9190_v39 = vsub.f32 %v9068_v48, %v3435_v58  ;;  %v3360_v27 = vadd.f32 %v8952_v3, %v3359_v62 }
 0x83a   : > { %v3569_v61 = vmul.f32 %v6868_v1, %v3568_v49  ;;  %v3575_v46 = vmul.f32 %v6870_v63, %v9161_v34  ;;  %vm3581_vm11 = vweird.f32 %v6870_v63  ;;  %v10440_v34 = vld [vmem:[#allocation23_spill] sm:$0xff] }
 0x83b   : > { %6871 = vrsqrt.f32 %v9187_v26  ;;  %6294 = vmatmul.msk.f32.vlgmr.msrb.gmra.mxu1 %vm411_vm2, %v3750_v6  ;;  %v3467_v28 = vmul.f32 %v9190_v39, %v9190_v39  ;;  %v9199_v9 = vadd.f32 %v3360_v27, %v8959_v44  ;;  %vm3582_vm13 = vmor %vm3580_vm12, %vm3581_vm11  ;;  %vm3590_vm15 = vweird.f32 %v9187_v26 }
 0x83c   : > { %v3573_v48 = vsel %vm3572_vm10, %v6868_v1, %v3569_v61  ;;  %v3576_v14 = vmul.f32 %v6870_v63, %v3575_v46  ;;  %v6615_v1 = vld [vmem:[#allocation2 + $0x3f8] ss:$0 sm:$0xff] }
 0x83d   : > { %v3715_v3 = vmul.f32 %v3573_v48, %v9028_v2  ;;  %v3501_v43 = vsel %vm411_vm2, %v3467_v28, 0.0  ;;  %v3423_v24 = vsel %vm411_vm2, %v9199_v9, 0.0  ;;  %v4346_v13 = vpop.f32.mrf.mxu0  ;;  %v9226_v49 = vadd.f32 %v6615_v1, %v4343_v4 }
 0x83e   : > { %v3577_v33 = vmul.f32 0.5, %v3576_v14  ;;  %v3410_v32 = vpop.xlane.xlu0 %3409  ;;  %3502 = vadd.xlane.f32.xlu0 %v3501_v43  ;;  %3424 = vadd.xlane.f32.xlu1 %v3423_v24  ;;  %v3488_v31 = vpop.xlane.xlu2 %3487 }
 0x83f   : > { %v3436_v51 = vmul.f32 %v3410_v32, %v8626_v56  ;;  %v3526_v41 = vmul.f32 %v3488_v31, %v8626_v56  ;;  %v3733_v44 = vmul.f32 %v9169_v18, %v3715_v3  ;;  %v4384_v27 = vmul.f32 %v10440_v34, %v9226_v49 }
 0x840   : > { %v3578_v0 = vsub.f32 1.5, %v3577_v33 }
 0x841   : > { %v6872_v2 = vpop.eup %6871  ;;  %v9209_v19 = vsub.f32 %v9081_v21, %v3436_v51  ;;  %v9211_v5 = vadd.f32 1e-05, %v3526_v41  ;;  %v3751_v10 = vadd.f32 %v9177_v55, %v3733_v44  ;;  %v9220_v21 = vadd.f32 %v6615_v1, %v4346_v13 }
 0x842   : > { %v3579_v16 = vmul.f32 %v6870_v63, %v3578_v0  ;;  %v3585_v29 = vmul.f32 %v6872_v2, %v9187_v26  ;;  %vm3591_vm14 = vweird.f32 %v6872_v2 }
 0x843   : > { %6873 = vrsqrt.f32 %v9211_v5  ;;  %6295 = vmatmul.msk.f32.gmra.mxu1 %vm411_vm2, %v3751_v10  ;;  %v3468_v36 = vmul.f32 %v9209_v19, %v9209_v19  ;;  %v4385_v35 = vmul.f32 %v10440_v34, %v9220_v21  ;;  %vm3592_vm0 = vmor %vm3590_vm15, %vm3591_vm14  ;;  %vm3600_vm10 = vweird.f32 %v9211_v5 }
 0x844   : > { %v3583_v12 = vsel %vm3582_vm13, %v6870_v63, %v3579_v16  ;;  %v3586_v37 = vmul.f32 %v6872_v2, %v3585_v29 }
 0x845   : > { %v3716_v25 = vmul.f32 %v3583_v12, %v9047_v60  ;;  %v3504_v38 = vsel %vm411_vm2, %v3468_v36, 0.0  ;;  %6353 = vmatpush.xpose.msk.msra.mxu0 %vm411_vm2, %v4385_v35 }
 0x846   : > { %v3587_v22 = vmul.f32 0.5, %v3586_v37  ;;  %3505 = vadd.xlane.f32.xlu2 %v3504_v38  ;;  %v3491_v11 = vpop.xlane.xlu1 %3490  ;;  %v3413_v58 = vpop.xlane.xlu2 %3412 }
 0x847   : > { %v3527_v62 = vmul.f32 %v3491_v11, %v8626_v56  ;;  %v3437_v6 = vmul.f32 %v3413_v58, %v8626_v56  ;;  %v3734_v63 = vmul.f32 %v9169_v18, %v3716_v25 }
 0x848   : > { %v3588_v60 = vsub.f32 1.5, %v3587_v22 }
 0x849   : > { %v6874_v61 = vpop.eup %6873  ;;  %v3543_v46 = vadd.f32 1e-05, %v3527_v62  ;;  %v9235_v28 = vsub.f32 %v9094_v30, %v3437_v6  ;;  %v3752_v4 = vadd.f32 %v9177_v55, %v3734_v63  ;;  %6354 = vmatpush.xpose.msk.msra.mxu0 %vm411_vm2, %v4384_v27  ;;  %v10441_v30 = vld [vmem:[#allocation22_spill] sm:$0xff] }
 0x84a   : > { %v3589_v48 = vmul.f32 %v6872_v2, %v3588_v60  ;;  %v3595_v14 = vmul.f32 %v6874_v61, %v9211_v5  ;;  %v4383_v33 = vmul.f32 %v10441_v30, %v9220_v21  ;;  %vm3601_vm5 = vweird.f32 %v6874_v61 }
 0x84b   : > { %6875 = vrsqrt.f32 %v3543_v46  ;;  %6296 = vmatmul.msk.f32.gmra.mxu1 %vm411_vm2, %v3752_v4  ;;  %v3469_v3 = vmul.f32 %v9235_v28, %v9235_v28  ;;  %v4382_v10 = vmul.f32 %v10441_v30, %v9226_v49  ;;  %vm3602_vm11 = vmor %vm3600_vm10, %vm3601_vm5  ;;  %vm3610_vm13 = vweird.f32 %v3543_v46 }
 0x84c   : > { %v3593_v43 = vsel %vm3592_vm0, %v6872_v2, %v3589_v48  ;;  %v3596_v24 = vmul.f32 %v6874_v61, %v3595_v14 }
 0x84d   : > { %v3717_v32 = vmul.f32 %v3593_v43, %v9062_v40  ;;  %v3507_v26 = vsel %vm411_vm2, %v3469_v3, 0.0  ;;  %6355 = vmatpush.xpose.msk.msra.mxu0 %vm411_vm2, %v4383_v33  ;;  %v10443_v33 = vld [vmem:[#allocation24_spill] sm:$0xff] }
 0x84e   : > { %v3597_v31 = vmul.f32 0.5, %v3596_v24  ;;  %v3494_v51 = vpop.xlane.xlu0 %3493  ;;  %v3416_v41 = vpop.xlane.xlu1 %3415  ;;  %3508 = vadd.xlane.f32.xlu0 %v3507_v26 }
 0x84f   : > { %v3528_v44 = vmul.f32 %v3494_v51, %v8626_v56  ;;  %v3438_v0 = vmul.f32 %v3416_v41, %v8626_v56  ;;  %v3735_v1 = vmul.f32 %v9169_v18, %v3717_v32  ;;  %v4379_v32 = vmul.f32 %v10443_v33, %v9220_v21  ;;  %v6614_v51 = vld [vmem:[#allocation2 + $0x3d0] ss:$0 sm:$0xff] }
 0x850   : > { %v3598_v2 = vsub.f32 1.5, %v3597_v31  ;;  %v6616_v31 = vld [vmem:[#allocation2 + $0x420] ss:$0 sm:$0xff] }
 0x851   : > { %v6876_v40 = vpop.eup %6875  ;;  %v3544_v16 = vadd.f32 1e-05, %v3528_v44  ;;  %v9255_v29 = vsub.f32 %v9109_v23, %v3438_v0  ;;  %v3753_v13 = vadd.f32 %v9177_v55, %v3735_v1  ;;  %6356 = vmatpush.xpose.msk.msra.mxu0 %vm411_vm2, %v4382_v10  ;;  %v10442_v23 = vld [vmem:[#allocation25_spill] sm:$0xff] }
 0x852   : > { %v3599_v36 = vmul.f32 %v6874_v61, %v3598_v2  ;;  %v3605_v12 = vmul.f32 %v6876_v40, %v3543_v46  ;;  %v4381_v35 = vmul.f32 %v10442_v23, %v9220_v21  ;;  %v4372_v62 = vpop.f32.mrf.mxu0  ;;  %vm3611_vm12 = vweird.f32 %v6876_v40 }
 0x853   : > { %6877 = vrsqrt.f32 %v3544_v16  ;;  %6297 = vmatmul.msk.f32.gmra.mxu1 %vm411_vm2, %v3753_v13  ;;  %v3470_v37 = vmul.f32 %v9255_v29, %v9255_v29  ;;  %v4380_v27 = vmul.f32 %v10442_v23, %v9226_v49  ;;  %vm3612_vm14 = vmor %vm3610_vm13, %vm3611_vm12  ;;  %v4378_v2 = vmul.f32 %v10443_v33, %v9226_v49 }
 0x854   : > { %v3603_v25 = vsel %vm3602_vm11, %v6874_v61, %v3599_v36  ;;  %v3606_v38 = vmul.f32 %v6876_v40, %v3605_v12  ;;  %vm3620_vm0 = vweird.f32 %v3544_v16  ;;  %v4315_v13 = vadd.f32 %v6614_v51, %v9148_v20 }
 0x855   : > { %v3718_v22 = vmul.f32 %v3603_v25, %v9077_v45  ;;  %v3510_v11 = vsel %vm411_vm2, %v3470_v37, 0.0  ;;  %6357 = vmatpush.xpose.msk.msra.mxu0 %vm411_vm2, %v4381_v35  ;;  %v4318_v35 = vadd.f32 %v6614_v51, %v9167_v7  ;;  %v3952_v7 = vld [vmem:[#allocation2 + $0x218] sm:$0xff] }
 0x856   : > { %v3607_v5 = vmul.f32 0.5, %v3606_v38  ;;  %v3419_v58 = vpop.xlane.xlu0 %3418  ;;  %3511 = vadd.xlane.f32.xlu1 %v3510_v11 }
 0x857   : > { %v3439_v6 = vmul.f32 %v3419_v58, %v8626_v56  ;;  %v3736_v63 = vmul.f32 %v9169_v18, %v3718_v22  ;;  %v3953_v58 = vld [vmem:[#allocation2 + $0x220] sm:$0xff] }
 0x858   : > { %v3608_v60 = vsub.f32 1.5, %v3607_v5  ;;  %v3954_v5 = vld [vmem:[#allocation2 + $0x228] sm:$0xff] }
 0x859   : > { %v6878_v61 = vpop.eup %6877  ;;  %v9273_v45 = vsub.f32 %v9118_v52, %v3439_v6  ;;  %v3754_v4 = vadd.f32 %v9177_v55, %v3736_v63  ;;  %6358 = vmatpush.xpose.msk.msra.mxu0 %vm411_vm2, %v4380_v27  ;;  %4013 = vmatpush.msrb.mxu2 %v3954_v5  ;;  %v3950_v6 = vld [vmem:[#allocation2 + $0x208] sm:$0xff]  ;;  %v3949_v63 = vld [vmem:[#allocation2 + $0x200] sm:$0xff]  ;;  %v4449_v27 = vlaneseq }
 0x85a   : > { %v3609_v48 = vmul.f32 %v6876_v40, %v3608_v60  ;;  %v3615_v14 = vmul.f32 %v6878_v61, %v3544_v16  ;;  %v4375_v41 = vpop.f32.mrf.mxu0  ;;  %vm3621_vm15 = vweird.f32 %v6878_v61  ;;  %v9334_v5 = vld [vmem:[#allocation2 + $0x1e8] ss:$0 sm:$0xff] }
 0x85b   : > { %6298 = vmatmul.msk.f32.gmra.mxu1 %vm411_vm2, %v3754_v4  ;;  %v3471_v3 = vmul.f32 %v9273_v45, %v9273_v45  ;;  %v4376_v0 = vadd.f32 %v6616_v31, %v4375_v41  ;;  %vm3622_vm5 = vmor %vm3620_vm0, %vm3621_vm15  ;;  %4014 = vmatpush.msrb.mxu2 %v3953_v58  ;;  %v3948_v4 = vld [vmem:[#allocation2 + $0x1f8] sm:$0xff] }
 0x85c   : > { %v3613_v43 = vsel %vm3612_vm14, %v6876_v40, %v3609_v48  ;;  %v3616_v24 = vmul.f32 %v6878_v61, %v3615_v14  ;;  %v4450_v48 = vshrl.u32 %v4449_v27, 7  ;;  %v4453_v14 = vand.u32 127, %v4449_v27 }
 0x85d   : > { %v3719_v52 = vmul.f32 %v3613_v43, %v9090_v54  ;;  %v3513_v26 = vsel %vm411_vm2, %v3471_v3, 0.0  ;;  %6359 = vmatpush.xpose.msk.msra.mxu0 %vm411_vm2, %v4379_v32  ;;  %v4373_v54 = vadd.f32 %v6616_v31, %v4372_v62  ;;  %v4393_v10 = vmul.f32 %v10440_v34, %v4376_v0  ;;  %4015 = vmatpush.msrb.mxu2 %v3952_v7  ;;  %v3951_v62 = vld [vmem:[#allocation2 + $0x210] sm:$0xff] }
 0x85e   : > { %v3617_v46 = vmul.f32 0.5, %v3616_v24  ;;  %3514 = vadd.xlane.f32.xlu2 %v3513_v26  ;;  %v4391_v37 = vmul.f32 %v10441_v30, %v4376_v0  ;;  %v4389_v38 = vmul.f32 %v10442_v23, %v4376_v0  ;;  %v4387_v22 = vmul.f32 %v10443_v33, %v4376_v0  ;;  %v3947_v43 = vld [vmem:[#allocation2 + $0x1f0] sm:$0xff] }
 0x85f   : > { %v3737_v44 = vmul.f32 %v9169_v18, %v3719_v52  ;;  %v4392_v36 = vmul.f32 %v10440_v34, %v4373_v54  ;;  %v4390_v20 = vmul.f32 %v10441_v30, %v4373_v54  ;;  %v4386_v11 = vmul.f32 %v10443_v33, %v4373_v54  ;;  %4016 = vmatpush.msrb.mxu2 %v3951_v62 }
 0x860   : > { %v3618_v1 = vsub.f32 1.5, %v3617_v46  ;;  %vm4454_vm10 = vcmp.gt.s32.totalorder %v4453_v14, %v4450_v48  ;;  %v10444_v24 = vmov 0.0   ;;  %v4451_v51 = vadd.s32 8, %v4450_v48 }
 0x861   : > { %v3755_v21 = vadd.f32 %v9177_v55, %v3737_v44  ;;  %6360 = vmatpush.xpose.msk.msra.mxu0 %vm411_vm2, %v4378_v2  ;;  %4017 = vmatpush.msrb.mxu2 %v3950_v6  ;;  %v9309_v32 = vsel %vm4454_vm10, -1e+30, %v10444_v24 }
 0x862   : > { %v3619_v40 = vmul.f32 %v6878_v61, %v3618_v1  ;;  %vm4455_vm11 = vcmp.gt.s32.totalorder %v4453_v14, %v4451_v51 }
 0x863   : > { %6299 = vmatmul.msk.f32.gmra.mxu1 %vm411_vm2, %v3755_v21  ;;  %4018 = vmatpush.msrb.mxu2 %v3949_v63  ;;  %v9320_v21 = vsel %vm4455_vm11, -1e+30, %v10444_v24 }
 0x864   : > { %v3623_v12 = vsel %vm3622_vm5, %v6878_v61, %v3619_v40  ;;  %6361 = vmatmul.msk.f32.vlgmr.msra.gmra.mxu0 %vm411_vm2, %v4315_v13 }
 0x865   : > { %4513 = vmatpush.msrb.mxu0 %v4393_v10  ;;  %v3720_v49 = vmul.f32 %v3623_v12, %v9103_v15  ;;  %v4388_v15 = vmul.f32 %v10442_v23, %v4373_v54  ;;  %4019 = vmatpush.msrb.mxu2 %v3948_v4 }
 0x867   : > { %v3738_v25 = vmul.f32 %v9169_v18, %v3720_v49  ;;  %4514 = vmatpush.msrb.mxu0 %v4392_v36  ;;  %4020 = vmatpush.msrb.mxu2 %v3947_v43 }
 0x869   : > { %v3756_v16 = vadd.f32 %v9177_v55, %v3738_v25  ;;  %4515 = vmatpush.msrb.mxu0 %v4391_v37 }
 0x86b   : > { %6300 = vmatmul.msk.f32.gmra.mxu1 %vm411_vm2, %v3756_v16  ;;  %4516 = vmatpush.msrb.mxu0 %v4390_v20 }
 0x86c   : > { %6362 = vmatmul.msk.f32.gmra.mxu0 %vm411_vm2, %v4318_v35 }
 0x86d   : > { %4517 = vmatpush.msrb.mxu0 %v4389_v38 }
 0x86f   : > { %4518 = vmatpush.msrb.mxu0 %v4388_v15  ;;  %v9332_v15 = vperm.slane %v8941_v42, 0 }
 0x871   : > { %4519 = vmatpush.msrb.mxu0 %v4387_v22 }
 0x873   : > { %4520 = vmatpush.msrb.mxu0 %v4386_v11 }
 0x876   : > { %4460 = vrot.lane.b32.xlu2 %v9309_v32, %s7054_s9 }
 0x87e   : > { %4462 = vrot.lane.b32.xlu2 %v9320_v21, %s7054_s9 }
 0x886   : > { %4474 = vrot.lane.b32.xlu2 %v9320_v21, %s7055_s10 }
 0x8a1   : > { %v3497_v60 = vpop.xlane.xlu2 %3496 }
 0x8a2   : > { %v3529_v61 = vmul.f32 %v3497_v60, %v8626_v56 }
 0x8a4   : > { %v3545_v3 = vadd.f32 1e-05, %v3529_v61 }
 0x8a6   : > { %6879 = vrsqrt.f32 %v3545_v3  ;;  %vm3630_vm13 = vweird.f32 %v3545_v3 }
 0x8a9   : > { %v3500_v52 = vpop.xlane.xlu1 %3499  ;;  %v3422_v26 = vpop.xlane.xlu2 %3421 }
 0x8aa   : > { %v3530_v31 = vmul.f32 %v3500_v52, %v8626_v56  ;;  %v3440_v46 = vmul.f32 %v3422_v26, %v8626_v56 }
 0x8ac   : > { %v6880_v41 = vpop.eup %6879  ;;  %v3546_v44 = vadd.f32 1e-05, %v3530_v31  ;;  %v9315_v0 = vsub.f32 %v9173_v17, %v3440_v46 }
 0x8ad   : > { %v3625_v1 = vmul.f32 %v6880_v41, %v3545_v3  ;;  %vm3631_vm12 = vweird.f32 %v6880_v41 }
 0x8ae   : > { %6881 = vrsqrt.f32 %v3546_v44  ;;  %v3472_v2 = vmul.f32 %v9315_v0, %v9315_v0  ;;  %vm3632_vm14 = vmor %vm3630_vm13, %vm3631_vm12  ;;  %vm3640_vm0 = vweird.f32 %v3546_v44 }
 0x8af   : > { %v3626_v54 = vmul.f32 %v6880_v41, %v3625_v1 }
 0x8b0   : > { %v3516_v10 = vsel %vm411_vm2, %v3472_v2, 0.0 }
 0x8b1   : > { %v3627_v40 = vmul.f32 0.5, %v3626_v54  ;;  %v3503_v13 = vpop.xlane.xlu0 %3502  ;;  %v3425_v36 = vpop.xlane.xlu1 %3424  ;;  %3517 = vadd.xlane.f32.xlu0 %v3516_v10 }
 0x8b2   : > { %v3531_v17 = vmul.f32 %v3503_v13, %v8626_v56  ;;  %v3441_v12 = vmul.f32 %v3425_v36, %v8626_v56 }
 0x8b3   : > { %v3628_v49 = vsub.f32 1.5, %v3627_v40 }
 0x8b4   : > { %v6882_v37 = vpop.eup %6881  ;;  %v3547_v25 = vadd.f32 1e-05, %v3531_v17  ;;  %v9327_v20 = vsub.f32 %v9199_v9, %v3441_v12 }
 0x8b5   : > { %v3629_v16 = vmul.f32 %v6880_v41, %v3628_v49  ;;  %v3635_v38 = vmul.f32 %v6882_v37, %v3546_v44  ;;  %vm3641_vm15 = vweird.f32 %v6882_v37 }
 0x8b6   : > { %6883 = vrsqrt.f32 %v3547_v25  ;;  %v3473_v35 = vmul.f32 %v9327_v20, %v9327_v20  ;;  %vm3642_vm5 = vmor %vm3640_vm0, %vm3641_vm15  ;;  %vm3650_vm11 = vweird.f32 %v3547_v25 }
 0x8b7   : > { %v3633_v22 = vsel %vm3632_vm14, %v6880_v41, %v3629_v16  ;;  %v3636_v11 = vmul.f32 %v6882_v37, %v3635_v38 }
 0x8b8   : > { %v3721_v9 = vmul.f32 %v3633_v22, %v9146_v8  ;;  %v3865_v58 = vpop.f32.mrf.mxu1  ;;  %v3519_v7 = vsel %vm411_vm2, %v3473_v35, 0.0 }
 0x8b9   : > { %v3637_v62 = vmul.f32 0.5, %v3636_v11  ;;  %v3866_v6 = vadd.f32 %v3865_v58, %v9332_v15  ;;  %3520 = vadd.xlane.f32.xlu1 %v3519_v7  ;;  %v3506_v63 = vpop.xlane.xlu2 %3505 }
 0x8ba   : > { %v3532_v42 = vmul.f32 %v3506_v63, %v8626_v56  ;;  %v3739_v60 = vmul.f32 %v9169_v18, %v3721_v9 }
 0x8bb   : > { %v3638_v27 = vsub.f32 1.5, %v3637_v62  ;;  %v3915_v61 = vadd.f32 %v9334_v5, %v3866_v6 }
 0x8bc   : > { %v6884_v4 = vpop.eup %6883  ;;  %v3548_v48 = vadd.f32 1e-05, %v3532_v42  ;;  %v3757_v8 = vadd.f32 %v9177_v55, %v3739_v60 }
 0x8bd   : > { %v3639_v14 = vmul.f32 %v6882_v37, %v3638_v27  ;;  %v3645_v3 = vmul.f32 %v6884_v4, %v3547_v25  ;;  %6885 = vtanh.f32 %v3915_v61  ;;  %vm3651_vm10 = vweird.f32 %v6884_v4 }
 0x8be   : > { %6887 = vrsqrt.f32 %v3548_v48  ;;  %6301 = vmatmul.msk.f32.gmra.mxu1 %vm411_vm2, %v3757_v8  ;;  %vm3652_vm12 = vmor %vm3650_vm11, %vm3651_vm10  ;;  %vm3660_vm14 = vweird.f32 %v3548_v48 }
 0x8bf   : > { %v3643_v43 = vsel %vm3642_vm5, %v6882_v37, %v3639_v14  ;;  %v3646_v24 = vmul.f32 %v6884_v4, %v3645_v3 }
 0x8c0   : > { %v3722_v52 = vmul.f32 %v3643_v43, %v9164_v47  ;;  %v3868_v26 = vpop.f32.mrf.mxu1 }
 0x8c1   : > { %v3647_v31 = vmul.f32 0.5, %v3646_v24  ;;  %v3869_v46 = vadd.f32 %v3868_v26, %v9332_v15  ;;  %v3509_v51 = vpop.xlane.xlu0 %3508 }
 0x8c2   : > { %v3533_v41 = vmul.f32 %v3509_v51, %v8626_v56  ;;  %v3740_v1 = vmul.f32 %v9169_v18, %v3722_v52 }
 0x8c3   : > { %v6886_v44 = vpop.eup %6885  ;;  %v3648_v2 = vsub.f32 1.5, %v3647_v31  ;;  %v3916_v54 = vadd.f32 %v9334_v5, %v3869_v46 }
 0x8c4   : > { %v6888_v10 = vpop.eup %6887  ;;  %v3549_v40 = vadd.f32 1e-05, %v3533_v41  ;;  %6310 = vmatmul.msk.f32.vlgmr.msrb.gmra.mxu2 %vm3248_vm3, %v6886_v44  ;;  %v3758_v47 = vadd.f32 %v9177_v55, %v3740_v1 }
 0x8c5   : > { %v3649_v13 = vmul.f32 %v6884_v4, %v3648_v2  ;;  %v3655_v36 = vmul.f32 %v6888_v10, %v3548_v48  ;;  %6889 = vtanh.f32 %v3916_v54  ;;  %4466 = vrot.lane.b32.xlu0 %v9309_v32, %s7056_s11  ;;  %vm3661_vm13 = vweird.f32 %v6888_v10 }
 0x8c6   : > { %6891 = vrsqrt.f32 %v3549_v40  ;;  %6302 = vmatmul.msk.f32.gmra.mxu1 %vm411_vm2, %v3758_v47  ;;  %vm3662_vm15 = vmor %vm3660_vm14, %vm3661_vm13  ;;  %vm3670_vm5 = vweird.f32 %v3549_v40 }
 0x8c7   : > { %v3653_v17 = vsel %vm3652_vm12, %v6884_v4, %v3649_v13  ;;  %v3656_v12 = vmul.f32 %v6888_v10, %v3655_v36 }
 0x8c8   : > { %v3723_v49 = vmul.f32 %v3653_v17, %v9190_v39  ;;  %v3871_v37 = vpop.f32.mrf.mxu1 }
 0x8c9   : > { %v3657_v16 = vmul.f32 0.5, %v3656_v12  ;;  %v3872_v38 = vadd.f32 %v3871_v37, %v9332_v15  ;;  %v3512_v35 = vpop.xlane.xlu1 %3511 }
 0x8ca   : > { %v3534_v25 = vmul.f32 %v3512_v35, %v8626_v56  ;;  %v3741_v22 = vmul.f32 %v9169_v18, %v3723_v49 }
 0x8cb   : > { %v6890_v11 = vpop.eup %6889  ;;  %v3658_v9 = vsub.f32 1.5, %v3657_v16  ;;  %v3917_v58 = vadd.f32 %v9334_v5, %v3872_v38 }
 0x8cc   : > { %v6892_v7 = vpop.eup %6891  ;;  %v3550_v62 = vadd.f32 1e-05, %v3534_v25  ;;  %6311 = vmatmul.msk.f32.gmra.mxu2 %vm3248_vm3, %v6890_v11  ;;  %v3759_v39 = vadd.f32 %v9177_v55, %v3741_v22 }
 0x8cd   : > { %v3659_v6 = vmul.f32 %v6888_v10, %v3658_v9  ;;  %v3665_v63 = vmul.f32 %v6892_v7, %v3549_v40  ;;  %6893 = vtanh.f32 %v3917_v58  ;;  %4468 = vrot.lane.b32.xlu0 %v9320_v21, %s7056_s11  ;;  %vm3671_vm0 = vweird.f32 %v6892_v7 }
 0x8ce   : > { %6895 = vrsqrt.f32 %v3550_v62  ;;  %6303 = vmatmul.msk.f32.gmra.mxu1 %vm411_vm2, %v3759_v39  ;;  %vm3672_vm10 = vmor %vm3670_vm5, %vm3671_vm0  ;;  %vm3680_vm12 = vweird.f32 %v3550_v62 }
 0x8cf   : > { %v3663_v42 = vsel %vm3662_vm15, %v6888_v10, %v3659_v6  ;;  %v3666_v60 = vmul.f32 %v6892_v7, %v3665_v63 }
 0x8d0   : > { %v3724_v27 = vmul.f32 %v3663_v42, %v9209_v19  ;;  %v3874_v61 = vpop.f32.mrf.mxu1 }
 0x8d1   : > { %v3667_v4 = vmul.f32 0.5, %v3666_v60  ;;  %v3875_v8 = vadd.f32 %v3874_v61, %v9332_v15  ;;  %v3515_v14 = vpop.xlane.xlu2 %3514 }
 0x8d2   : > { %v3535_v3 = vmul.f32 %v3515_v14, %v8626_v56  ;;  %4472 = vrot.lane.b32.xlu1 %v9309_v32, %s7055_s10  ;;  %v3742_v48 = vmul.f32 %v9169_v18, %v3724_v27  ;;  %v4093_v14 = vld [vmem:[#allocation2 + $0x270] sm:$0xff] }
 0x8d3   : > { %v6894_v43 = vpop.eup %6893  ;;  %v3668_v24 = vsub.f32 1.5, %v3667_v4  ;;  %v3918_v52 = vadd.f32 %v9334_v5, %v3875_v8  ;;  %4152 = vmatpush.msra.mxu3 %v4093_v14 }
 0x8d4   : > { %v6896_v26 = vpop.eup %6895  ;;  %v3551_v31 = vadd.f32 1e-05, %v3535_v3  ;;  %6312 = vmatmul.msk.f32.gmra.mxu2 %vm3248_vm3, %v6894_v43  ;;  %v3760_v19 = vadd.f32 %v9177_v55, %v3742_v48  ;;  %v4092_v48 = vld [vmem:[#allocation2 + $0x268] sm:$0xff] }
 0x8d5   : > { %v3669_v46 = vmul.f32 %v6892_v7, %v3668_v24  ;;  %v3675_v51 = vmul.f32 %v6896_v26, %v3550_v62  ;;  %6897 = vtanh.f32 %v3918_v52  ;;  %vm3681_vm11 = vweird.f32 %v6896_v26  ;;  %4153 = vmatpush.msra.mxu3 %v4092_v48  ;;  %v4091_v24 = vld [vmem:[#allocation2 + $0x260] sm:$0xff]  ;;  %v4090_v52 = vld [vmem:[#allocation2 + $0x258] sm:$0xff] }
 0x8d6   : > { %6899 = vrsqrt.f32 %v3551_v31  ;;  %6304 = vmatmul.msk.f32.gmra.mxu1 %vm411_vm2, %v3760_v19  ;;  %vm3682_vm13 = vmor %vm3680_vm12, %vm3681_vm11  ;;  %vm3690_vm15 = vweird.f32 %v3551_v31 }
 0x8d7   : > { %v3673_v41 = vsel %vm3672_vm10, %v6892_v7, %v3669_v46  ;;  %v3676_v1 = vmul.f32 %v6896_v26, %v3675_v51  ;;  %4154 = vmatpush.msra.mxu3 %v4091_v24  ;;  %v4088_v51 = vld [vmem:[#allocation2 + $0x248] sm:$0xff] }
 0x8d8   : > { %v3725_v44 = vmul.f32 %v3673_v41, %v9235_v28  ;;  %v3877_v2 = vpop.f32.mrf.mxu1 }
 0x8d9   : > { %v3677_v54 = vmul.f32 0.5, %v3676_v1  ;;  %v3878_v10 = vadd.f32 %v3877_v2, %v9332_v15  ;;  %4155 = vmatpush.msra.mxu3 %v4090_v52 }
 0x8da   : > { %v3743_v47 = vmul.f32 %v9169_v18, %v3725_v44  ;;  %v4087_v44 = vld [vmem:[#allocation2 + $0x240] sm:$0xff] }
 0x8db   : > { %v6898_v13 = vpop.eup %6897  ;;  %v3678_v36 = vsub.f32 1.5, %v3677_v54  ;;  %v3919_v40 = vadd.f32 %v9334_v5, %v3878_v10  ;;  %v4086_v54 = vld [vmem:[#allocation2 + $0x238] sm:$0xff] }
 0x8dc   : > { %v6900_v17 = vpop.eup %6899  ;;  %6313 = vmatmul.msk.f32.gmra.mxu2 %vm3248_vm3, %v6898_v13  ;;  %v3761_v12 = vadd.f32 %v9177_v55, %v3743_v47 }
 0x8dd   : > { %v3679_v49 = vmul.f32 %v6896_v26, %v3678_v36  ;;  %v3685_v37 = vmul.f32 %v6900_v17, %v3551_v31  ;;  %6901 = vtanh.f32 %v3919_v40  ;;  %vm3691_vm14 = vweird.f32 %v6900_v17  ;;  %v4089_v31 = vld [vmem:[#allocation2 + $0x250] sm:$0xff] }
 0x8de   : > { %6305 = vmatmul.msk.f32.gmra.mxu1 %vm411_vm2, %v3761_v12  ;;  %vm3692_vm0 = vmor %vm3690_vm15, %vm3691_vm14  ;;  %4156 = vmatpush.msra.mxu3 %v4089_v31 }
 0x8df   : > { %v3683_v28 = vsel %vm3682_vm13, %v6896_v26, %v3679_v49  ;;  %v3686_v16 = vmul.f32 %v6900_v17, %v3685_v37  ;;  %v4461_v26 = vpop.permute.xlu2 %4460  ;;  %vm4482_vm13 = vcmask 392192  }
 0x8e0   : > { %v3726_v38 = vmul.f32 %v3683_v28, %v9255_v29  ;;  %v3880_v35 = vpop.f32.mrf.mxu1  ;;  %4157 = vmatpush.msra.mxu3 %v4088_v51 }
 0x8e1   : > { %v3687_v25 = vmul.f32 0.5, %v3686_v16  ;;  %v3881_v22 = vadd.f32 %v3880_v35, %v9332_v15  ;;  %v4441_v47 = vpop.f32.mrf.mxu0 }
 0x8e2   : > { %v3744_v11 = vmul.f32 %v9169_v18, %v3726_v38  ;;  %4158 = vmatpush.msra.mxu3 %v4087_v44  ;;  %v4447_v14 = vmul.f32 0.35355338, %v4441_v47 }
 0x8e3   : > { %v6902_v9 = vpop.eup %6901  ;;  %v3688_v58 = vsub.f32 1.5, %v3687_v25  ;;  %v3920_v7 = vadd.f32 %v9334_v5, %v3881_v22 }
 0x8e4   : > { %6314 = vmatmul.msk.f32.gmra.mxu2 %vm3248_vm3, %v6902_v9  ;;  %v3762_v62 = vadd.f32 %v9177_v55, %v3744_v11  ;;  %4159 = vmatpush.msra.mxu3 %v4086_v54 }
 0x8e5   : > { %v3689_v39 = vmul.f32 %v6900_v17, %v3688_v58  ;;  %6903 = vtanh.f32 %v3920_v7 }
 0x8e6   : > { %6306 = vmatmul.msk.f32.gmra.mxu1 %vm411_vm2, %v3762_v62 }
 0x8e7   : > { %v3693_v29 = vsel %vm3692_vm0, %v6900_v17, %v3689_v39  ;;  %v4463_v36 = vpop.permute.xlu2 %4462 }
 0x8e8   : > { %v3727_v6 = vmul.f32 %v3693_v29, %v9273_v45  ;;  %v3883_v63 = vpop.f32.mrf.mxu1  ;;  %v4479_v9 = vsel %vm820_vm4, %v9320_v21, %v4463_v36  ;;  %v4478_v21 = vsel %vm820_vm4, %v9309_v32, %v4461_v26  ;;  %v9417_v32 = vld [vmem:[#allocation2 + $0x230] ss:$0 sm:$0xff] }
 0x8e9   : > { %v3884_v42 = vadd.f32 %v3883_v63, %v9332_v15  ;;  %v4444_v11 = vpop.f32.mrf.mxu0 }
 0x8ea   : > { %v3745_v60 = vmul.f32 %v9169_v18, %v3727_v6  ;;  %v4448_v29 = vmul.f32 0.35355338, %v4444_v11 }
 0x8eb   : > { %v6904_v27 = vpop.eup %6903  ;;  %v3921_v61 = vadd.f32 %v9334_v5, %v3884_v42 }
 0x8ec   : > { %6315 = vmatmul.msk.f32.gmra.mxu2 %vm3248_vm3, %v6904_v27  ;;  %v3763_v4 = vadd.f32 %v9177_v55, %v3745_v60 }
 0x8ed   : > { %6905 = vtanh.f32 %v3921_v61 }
 0x8ee   : > { %6307 = vmatmul.msk.f32.gmra.mxu1 %vm411_vm2, %v3763_v4 }
 0x8ef   : > { %v4475_v39 = vpop.permute.xlu2 %4474 }
 0x8f3   : > { %v6906_v8 = vpop.eup %6905 }
 0x8f4   : > { %6316 = vmatmul.msk.f32.gmra.mxu2 %vm3248_vm3, %v6906_v8 }
 0x924   : > { %v3518_v45 = vpop.xlane.xlu0 %3517 }
 0x925   : > { %v3536_v3 = vmul.f32 %v3518_v45, %v8626_v56 }
 0x927   : > { %v3552_v43 = vadd.f32 1e-05, %v3536_v3 }
 0x929   : > { %6907 = vrsqrt.f32 %v3552_v43  ;;  %vm3700_vm10 = vweird.f32 %v3552_v43 }
 0x92c   : > { %v3521_v19 = vpop.xlane.xlu1 %3520 }
 0x92d   : > { %v3537_v46 = vmul.f32 %v3521_v19, %v8626_v56 }
 0x92f   : > { %v6908_v41 = vpop.eup %6907  ;;  %v3553_v1 = vadd.f32 1e-05, %v3537_v46 }
 0x930   : > { %v3695_v2 = vmul.f32 %v6908_v41, %v3552_v43  ;;  %vm3701_vm5 = vweird.f32 %v6908_v41 }
 0x931   : > { %6909 = vrsqrt.f32 %v3553_v1  ;;  %vm3702_vm11 = vmor %vm3700_vm10, %vm3701_vm5  ;;  %vm3710_vm14 = vweird.f32 %v3553_v1 }
 0x932   : > { %v3696_v10 = vmul.f32 %v6908_v41, %v3695_v2 }
 0x934   : > { %v3697_v13 = vmul.f32 0.5, %v3696_v10 }
 0x936   : > { %v3698_v40 = vsub.f32 1.5, %v3697_v13 }
 0x937   : > { %v6910_v17 = vpop.eup %6909  ;;  %v4467_v12 = vpop.permute.xlu0 %4466 }
 0x938   : > { %v3699_v49 = vmul.f32 %v6908_v41, %v3698_v40  ;;  %v3705_v37 = vmul.f32 %v6910_v17, %v3553_v1  ;;  %vm3711_vm12 = vweird.f32 %v6910_v17  ;;  %v4480_v45 = vsel %vm411_vm2, %v4478_v21, %v4467_v12 }
 0x939   : > { %vm3712_vm15 = vmor %vm3710_vm14, %vm3711_vm12 }
 0x93a   : > { %v3703_v28 = vsel %vm3702_vm11, %v6908_v41, %v3699_v49  ;;  %v3706_v16 = vmul.f32 %v6910_v17, %v3705_v37 }
 0x93b   : > { %v3728_v38 = vmul.f32 %v3703_v28, %v9315_v0  ;;  %v3886_v35 = vpop.f32.mrf.mxu1 }
 0x93c   : > { %v3707_v25 = vmul.f32 0.5, %v3706_v16  ;;  %v3887_v22 = vadd.f32 %v3886_v35, %v9332_v15 }
 0x93d   : > { %v3746_v58 = vmul.f32 %v9169_v18, %v3728_v38 }
 0x93e   : > { %v3708_v7 = vsub.f32 1.5, %v3707_v25  ;;  %v3922_v62 = vadd.f32 %v9334_v5, %v3887_v22 }
 0x93f   : > { %v4469_v6 = vpop.permute.xlu0 %4468  ;;  %v3764_v0 = vadd.f32 %v9177_v55, %v3746_v58 }
 0x940   : > { %v3709_v63 = vmul.f32 %v6910_v17, %v3708_v7  ;;  %6911 = vtanh.f32 %v3922_v62  ;;  %v4481_v42 = vsel %vm411_vm2, %v4479_v9, %v4469_v6 }
 0x941   : > { %v4484_v60 = vsel %vm4482_vm13, %v4481_v42, %v4475_v39  ;;  %6308 = vmatmul.msk.f32.gmra.mxu1 %vm411_vm2, %v3764_v0 }
 0x942   : > { %v3713_v27 = vsel %vm3712_vm15, %v6910_v17, %v3709_v63  ;;  %v9410_v61 = vadd.f32 %v4484_v60, %v4448_v29 }
 0x943   : > { %v3729_v4 = vmul.f32 %v3713_v27, %v9327_v20  ;;  %v3889_v8 = vpop.f32.mrf.mxu1 }
 0x944   : > { %v3890_v3 = vadd.f32 %v3889_v8, %v9332_v15  ;;  %v4473_v48 = vpop.permute.xlu1 %4472  ;;  %v4490_v43 = vsel %vm3248_vm3, %v9410_v61, -inf }
 0x945   : > { %v4483_v24 = vsel %vm4482_vm13, %v4480_v45, %v4473_v48  ;;  %4491 = vmax.xlane.f32.xlu0 %v4490_v43  ;;  %v3747_v52 = vmul.f32 %v9169_v18, %v3729_v4  ;;  %v4708_v48 = vld [vmem:[#allocation2 + $0x4a0] sm:$0xff]  ;;  %v4827_v43 = vld [vmem:[#allocation2 + $0x4c8] sm:$0xff] }
 0x946   : > { %v6912_v26 = vpop.eup %6911  ;;  %v3923_v20 = vadd.f32 %v9334_v5, %v3890_v3  ;;  %v9422_v31 = vadd.f32 %v4483_v24, %v4447_v14  ;;  %4771 = vmatpush.msra.mxu0 %v4708_v48  ;;  %4842 = vmatpush.msrb.mxu1 %v4827_v43  ;;  %v4707_v24 = vld [vmem:[#allocation2 + $0x498] sm:$0xff] }
 0x947   : > { %v4022_v19 = vpop.f32.mrf.mxu2  ;;  %6317 = vmatmul.msk.f32.gmra.mxu2 %vm3248_vm3, %v6912_v26  ;;  %v3765_v46 = vadd.f32 %v9177_v55, %v3747_v52  ;;  %v4826_v52 = vld [vmem:[#allocation2 + $0x4c0] sm:$0xff]  ;;  %v4706_v26 = vld [vmem:[#allocation2 + $0x490] sm:$0xff] }
 0x948   : > { %6913 = vtanh.f32 %v3923_v20  ;;  %v4023_v51 = vadd.f32 %v9417_v32, %v4022_v19  ;;  %v4487_v41 = vsel %vm3248_vm3, %v9422_v31, -inf  ;;  %4772 = vmatpush.msra.mxu0 %v4707_v24  ;;  %4843 = vmatpush.msrb.mxu1 %v4826_v52  ;;  %v4825_v20 = vld [vmem:[#allocation2 + $0x4b8] sm:$0xff]  ;;  %v4705_v19 = vld [vmem:[#allocation2 + $0x488] sm:$0xff] }
 0x949   : > { %6309 = vmatmul.msk.f32.gmra.mxu1 %vm411_vm2, %v3765_v46  ;;  %4488 = vmax.xlane.f32.xlu1 %v4487_v41  ;;  %v4824_v46 = vld [vmem:[#allocation2 + $0x4b0] sm:$0xff] }
 0x94a   : > { %6915 = vtanh.f32 %v4023_v51  ;;  %4773 = vmatpush.msra.mxu0 %v4706_v26  ;;  %4844 = vmatpush.msrb.mxu1 %v4825_v20 }
 0x94b   : > { %v3892_v18 = vpop.f32.mrf.mxu1 }
 0x94c   : > { %v3893_v1 = vadd.f32 %v3892_v18, %v9332_v15  ;;  %4774 = vmatpush.msra.mxu0 %v4705_v19  ;;  %4845 = vmatpush.msrb.mxu1 %v4824_v46 }
 0x94e   : > { %v6914_v44 = vpop.eup %6913  ;;  %v3924_v2 = vadd.f32 %v9334_v5, %v3893_v1 }
 0x94f   : > { %v4025_v54 = vpop.f32.mrf.mxu2  ;;  %6318 = vmatmul.msk.f32.gmra.mxu2 %vm3248_vm3, %v6914_v44 }
 0x950   : > { %v6916_v55 = vpop.eup %6915  ;;  %6917 = vtanh.f32 %v3924_v2  ;;  %v4026_v10 = vadd.f32 %v9417_v32, %v4025_v54 }
 0x951   : > { %6326 = vmatmul.msk.f32.vlgmr.msra.gmra.mxu3 %vm3248_vm3, %v6916_v55 }
 0x952   : > { %6919 = vtanh.f32 %v4026_v10 }
 0x953   : > { %v3895_v47 = vpop.f32.mrf.mxu1 }
 0x954   : > { %v3896_v13 = vadd.f32 %v3895_v47, %v9332_v15 }
 0x956   : > { %v6918_v36 = vpop.eup %6917  ;;  %v3925_v40 = vadd.f32 %v9334_v5, %v3896_v13 }
 0x957   : > { %v4028_v17 = vpop.f32.mrf.mxu2  ;;  %6319 = vmatmul.msk.f32.gmra.mxu2 %vm3248_vm3, %v6918_v36 }
 0x958   : > { %v6920_v12 = vpop.eup %6919  ;;  %6921 = vtanh.f32 %v3925_v40  ;;  %v4029_v49 = vadd.f32 %v9417_v32, %v4028_v17 }
 0x959   : > { %6327 = vmatmul.msk.f32.gmra.mxu3 %vm3248_vm3, %v6920_v12 }
 0x95a   : > { %6923 = vtanh.f32 %v4029_v49  ;;  %v9471_v49 = vld [vmem:[#allocation2 + $0x278] ss:$0 sm:$0xff] }
 0x95b   : > { %v3898_v37 = vpop.f32.mrf.mxu1 }
 0x95c   : > { %v3899_v28 = vadd.f32 %v3898_v37, %v9332_v15 }
 0x95e   : > { %v6922_v16 = vpop.eup %6921  ;;  %v3926_v38 = vadd.f32 %v9334_v5, %v3899_v28 }
 0x95f   : > { %v4031_v35 = vpop.f32.mrf.mxu2  ;;  %6320 = vmatmul.msk.f32.gmra.mxu2 %vm3248_vm3, %v6922_v16 }
 0x960   : > { %v6924_v25 = vpop.eup %6923  ;;  %6925 = vtanh.f32 %v3926_v38  ;;  %v4032_v22 = vadd.f32 %v9417_v32, %v4031_v35 }
 0x961   : > { %6328 = vmatmul.msk.f32.gmra.mxu3 %vm3248_vm3, %v6924_v25 }
 0x962   : > { %6927 = vtanh.f32 %v4032_v22 }
 0x963   : > { %v3901_v11 = vpop.f32.mrf.mxu1 }
 0x964   : > { %v3902_v9 = vadd.f32 %v3901_v11, %v9332_v15 }
 0x966   : > { %v6926_v58 = vpop.eup %6925  ;;  %v3927_v7 = vadd.f32 %v9334_v5, %v3902_v9 }
 0x967   : > { %v4034_v62 = vpop.f32.mrf.mxu2  ;;  %6321 = vmatmul.msk.f32.gmra.mxu2 %vm3248_vm3, %v6926_v58 }
 0x968   : > { %v6928_v39 = vpop.eup %6927  ;;  %6929 = vtanh.f32 %v3927_v7  ;;  %v4035_v29 = vadd.f32 %v9417_v32, %v4034_v62 }
 0x969   : > { %6329 = vmatmul.msk.f32.gmra.mxu3 %vm3248_vm3, %v6928_v39 }
 0x96a   : > { %6931 = vtanh.f32 %v4035_v29 }
 0x96b   : > { %v3904_v6 = vpop.f32.mrf.mxu1 }
 0x96c   : > { %v3905_v0 = vadd.f32 %v3904_v6, %v9332_v15  ;;  %v4584_v6 = vld [vmem:[#allocation2 + $0x440] sm:$0xff] }
 0x96d   : > { %4605 = vmatpush.msra.mxu2 %v4584_v6 }
 0x96e   : > { %v6930_v63 = vpop.eup %6929  ;;  %v3928_v42 = vadd.f32 %v9334_v5, %v3905_v0  ;;  %v4583_v0 = vld [vmem:[#allocation2 + $0x438] sm:$0xff] }
 0x96f   : > { %v4037_v21 = vpop.f32.mrf.mxu2  ;;  %6322 = vmatmul.msk.f32.gmra.mxu2 %vm3248_vm3, %v6930_v63 }
 0x970   : > { %v6932_v60 = vpop.eup %6931  ;;  %6933 = vtanh.f32 %v3928_v42  ;;  %v4038_v27 = vadd.f32 %v9417_v32, %v4037_v21  ;;  %4606 = vmatpush.msra.mxu2 %v4583_v0 }
 0x971   : > { %6330 = vmatmul.msk.f32.gmra.mxu3 %vm3248_vm3, %v6932_v60 }
 0x972   : > { %6935 = vtanh.f32 %v4038_v27 }
 0x976   : > { %v6934_v4 = vpop.eup %6933 }
 0x977   : > { %v4040_v8 = vpop.f32.mrf.mxu2  ;;  %6323 = vmatmul.msk.f32.gmra.mxu2 %vm3248_vm3, %v6934_v4 }
 0x978   : > { %v6936_v14 = vpop.eup %6935  ;;  %v4041_v45 = vadd.f32 %v9417_v32, %v4040_v8 }
 0x979   : > { %6331 = vmatmul.msk.f32.gmra.mxu3 %vm3248_vm3, %v6936_v14 }
 0x97a   : > { %6937 = vtanh.f32 %v4041_v45 }
 0x980   : > { %v6938_v3 = vpop.eup %6937 }
 0x981   : > { %6332 = vmatmul.msk.f32.gmra.mxu3 %vm3248_vm3, %v6938_v3 }
 0x9b8   : > { %v4492_v18 = vpop.xlane.xlu0 %4491 }
 0x9b9   : > { %v4494_v54 = vsub.f32 %v9410_v61, %v4492_v18 }
 0x9bb   : > { %v4497_v10 = vmul.f32 1.442695, %v4494_v54 }
 0x9bc   : > { %v4489_v51 = vpop.xlane.xlu1 %4488 }
 0x9bd   : > { %v4493_v41 = vsub.f32 %v9422_v31, %v4489_v51  ;;  %v4582_v51 = vld [vmem:[#allocation2 + $0x430] sm:$0xff] }
 0x9be   : > { %v3907_v1 = vpop.f32.mrf.mxu1  ;;  %4607 = vmatpush.msra.mxu2 %v4582_v51 }
 0x9bf   : > { %v4495_v44 = vmul.f32 1.442695, %v4493_v41  ;;  %v3908_v2 = vadd.f32 %v3907_v1, %v9332_v15  ;;  %v4581_v41 = vld [vmem:[#allocation2 + $0x428] sm:$0xff] }
 0x9c0   : > { %4608 = vmatpush.msra.mxu2 %v4581_v41 }
 0x9c1   : > { %6939 = vpow2.f32 %v4495_v44  ;;  %v3929_v55 = vadd.f32 %v9334_v5, %v3908_v2 }
 0x9c3   : > { %6941 = vtanh.f32 %v3929_v55 }
 0x9c4   : > { %6943 = vpow2.f32 %v4497_v10 }
 0x9c6   : > { %v3910_v47 = vpop.f32.mrf.mxu1 }
 0x9c7   : > { %v6940_v13 = vpop.eup %6939  ;;  %v3911_v36 = vadd.f32 %v3910_v47, %v9332_v15 }
 0x9c8   : > { %6363 = vmatmul.msk.f32.vlgmr.msrb.gmra.mxu0 %vm3248_vm3, %v6940_v13  ;;  %6373 = vmatmul.msk.f32.vlgmr.msra.gmra.mxu1 %vm3248_vm3, %v6940_v13 }
 0x9c9   : > { %v6942_v31 = vpop.eup %6941  ;;  %v3930_v40 = vadd.f32 %v9334_v5, %v3911_v36 }
 0x9ca   : > { %v4043_v17 = vpop.f32.mrf.mxu2  ;;  %6324 = vmatmul.msk.f32.gmra.mxu2 %vm3248_vm3, %v6942_v31  ;;  %v6944_v12 = vpop.eup %6943 }
 0x9cb   : > { %6945 = vtanh.f32 %v3930_v40  ;;  %v4044_v61 = vadd.f32 %v9417_v32, %v4043_v17 }
 0x9cd   : > { %6947 = vtanh.f32 %v4044_v61 }
 0x9d0   : > { %6364 = vmatmul.msk.f32.gmra.mxu0 %vm3248_vm3, %v6944_v12  ;;  %6374 = vmatmul.msk.f32.gmra.mxu1 %vm3248_vm3, %v6944_v12 }
 0x9d1   : > { %v6946_v15 = vpop.eup %6945 }
 0x9d2   : > { %v4046_v37 = vpop.f32.mrf.mxu2  ;;  %6325 = vmatmul.msk.f32.gmra.mxu2 %vm3248_vm3, %v6946_v15 }
 0x9d3   : > { %v6948_v28 = vpop.eup %6947  ;;  %v4047_v5 = vadd.f32 %v9417_v32, %v4046_v37 }
 0x9d4   : > { %v4161_v16 = vpop.f32.mrf.mxu3  ;;  %6333 = vmatmul.msk.f32.gmra.mxu3 %vm3248_vm3, %v6948_v28 }
 0x9d5   : > { %6949 = vtanh.f32 %v4047_v5  ;;  %v4162_v38 = vadd.f32 %v9471_v49, %v4161_v16 }
 0x9d8   : > { %6379 = vmatmul.msk.f32.vlgmr.msra.gmra.mxu0 %vm411_vm2, %v4162_v38  ;;  %6395 = vmatmul.msk.f32.vlgmr.msrb.gmra.mxu1 %vm411_vm2, %v4162_v38 }
 0x9da   : > { %v4049_v35 = vpop.f32.mrf.mxu2 }
 0x9db   : > { %v6950_v25 = vpop.eup %6949  ;;  %v4050_v22 = vadd.f32 %v9417_v32, %v4049_v35 }
 0x9dc   : > { %v4164_v11 = vpop.f32.mrf.mxu3  ;;  %6334 = vmatmul.msk.f32.gmra.mxu3 %vm3248_vm3, %v6950_v25 }
 0x9dd   : > { %6951 = vtanh.f32 %v4050_v22  ;;  %v4165_v9 = vadd.f32 %v9471_v49, %v4164_v11 }
 0x9e0   : > { %6380 = vmatmul.msk.f32.gmra.mxu0 %vm411_vm2, %v4165_v9  ;;  %6396 = vmatmul.msk.f32.gmra.mxu1 %vm411_vm2, %v4165_v9 }
 0x9e2   : > { %v4052_v58 = vpop.f32.mrf.mxu2 }
 0x9e3   : > { %v6952_v7 = vpop.eup %6951  ;;  %v4053_v62 = vadd.f32 %v9417_v32, %v4052_v58 }
 0x9e4   : > { %v4167_v39 = vpop.f32.mrf.mxu3  ;;  %6335 = vmatmul.msk.f32.gmra.mxu3 %vm3248_vm3, %v6952_v7 }
 0x9e5   : > { %6953 = vtanh.f32 %v4053_v62  ;;  %v4168_v29 = vadd.f32 %v9471_v49, %v4167_v39 }
 0x9e8   : > { %6381 = vmatmul.msk.f32.gmra.mxu0 %vm411_vm2, %v4168_v29  ;;  %6397 = vmatmul.msk.f32.gmra.mxu1 %vm411_vm2, %v4168_v29 }
 0x9ea   : > { %v4055_v63 = vpop.f32.mrf.mxu2 }
 0x9eb   : > { %v6954_v42 = vpop.eup %6953  ;;  %v4056_v21 = vadd.f32 %v9417_v32, %v4055_v63 }
 0x9ec   : > { %v4170_v60 = vpop.f32.mrf.mxu3  ;;  %6336 = vmatmul.msk.f32.gmra.mxu3 %vm3248_vm3, %v6954_v42 }
 0x9ed   : > { %6955 = vtanh.f32 %v4056_v21  ;;  %v4171_v27 = vadd.f32 %v9471_v49, %v4170_v60 }
 0x9f0   : > { %6382 = vmatmul.msk.f32.gmra.mxu0 %vm411_vm2, %v4171_v27  ;;  %6398 = vmatmul.msk.f32.gmra.mxu1 %vm411_vm2, %v4171_v27 }
 0x9f2   : > { %v4058_v4 = vpop.f32.mrf.mxu2 }
 0x9f3   : > { %v6956_v8 = vpop.eup %6955  ;;  %v4059_v14 = vadd.f32 %v9417_v32, %v4058_v4 }
 0x9f4   : > { %v4173_v45 = vpop.f32.mrf.mxu3  ;;  %6337 = vmatmul.msk.f32.gmra.mxu3 %vm3248_vm3, %v6956_v8 }
 0x9f5   : > { %6957 = vtanh.f32 %v4059_v14  ;;  %v4174_v3 = vadd.f32 %v9471_v49, %v4173_v45 }
 0x9f8   : > { %6383 = vmatmul.msk.f32.gmra.mxu0 %vm411_vm2, %v4174_v3  ;;  %6399 = vmatmul.msk.f32.gmra.mxu1 %vm411_vm2, %v4174_v3 }
 0x9fa   : > { %v4061_v48 = vpop.f32.mrf.mxu2 }
 0x9fb   : > { %v6958_v43 = vpop.eup %6957  ;;  %v4062_v24 = vadd.f32 %v9417_v32, %v4061_v48 }
 0x9fc   : > { %v4176_v52 = vpop.f32.mrf.mxu3  ;;  %6338 = vmatmul.msk.f32.gmra.mxu3 %vm3248_vm3, %v6958_v43 }
 0x9fd   : > { %6959 = vtanh.f32 %v4062_v24  ;;  %v4177_v26 = vadd.f32 %v9471_v49, %v4176_v52 }
 0xa00   : > { %6384 = vmatmul.msk.f32.gmra.mxu0 %vm411_vm2, %v4177_v26  ;;  %6400 = vmatmul.msk.f32.gmra.mxu1 %vm411_vm2, %v4177_v26  ;;  %v6622_v26 = vld [vmem:[#allocation2 + $0x448] ss:$0 sm:$0xff] }
 0xa03   : > { %v6960_v20 = vpop.eup %6959 }
 0xa04   : > { %v4179_v19 = vpop.f32.mrf.mxu3  ;;  %6339 = vmatmul.msk.f32.gmra.mxu3 %vm3248_vm3, %v6960_v20 }
 0xa05   : > { %v4180_v46 = vadd.f32 %v9471_v49, %v4179_v19 }
 0xa08   : > { %6385 = vmatmul.msk.f32.gmra.mxu0 %vm411_vm2, %v4180_v46  ;;  %6401 = vmatmul.msk.f32.gmra.mxu1 %vm411_vm2, %v4180_v46 }
 0xa45   : > { %v4545_v18 = vpop.f32.mrf.mxu1  ;;  %v4522_v61 = vpop.f32.mrf.mxu0 }
 0xa46   : > { %6961 = vrcp.f32 %v4545_v18  ;;  %v4562_v47 = vand.u32 2147483648, %v4545_v18  ;;  %v4560_v36 = vand.u32 2147483647, %v4545_v18  ;;  %vm4556_vm0 = vweird.f32 %v4545_v18 }
 0xa48   : > { %v4563_v40 = vor.u32 1.1754944e-38, %v4562_v47  ;;  %vm4561_vm10 = vcmp.eq.f32.partialorder %v4560_v36, 8.507059e+37 }
 0xa4c   : > { %v6962_v1 = vpop.eup %6961 }
 0xa4d   : > { %v4552_v44 = vmul.f32 %v6962_v1, %v4545_v18  ;;  %v4064_v2 = vpop.f32.mrf.mxu2  ;;  %v4548_v55 = vpop.f32.mrf.mxu1  ;;  %vm4557_vm4 = vweird.f32 %v6962_v1 }
 0xa4e   : > { %v4065_v54 = vadd.f32 %v9417_v32, %v4064_v2  ;;  %6963 = vrcp.f32 %v4548_v55  ;;  %vm4558_vm5 = vmor %vm4556_vm0, %vm4557_vm4  ;;  %v4577_v11 = vand.u32 2147483648, %v4548_v55  ;;  %v4575_v58 = vand.u32 2147483647, %v4548_v55  ;;  %v4525_v29 = vpop.f32.mrf.mxu0 }
 0xa4f   : > { %v4553_v10 = vsub.f32 1.0, %v4552_v44  ;;  %vm4571_vm12 = vweird.f32 %v4548_v55 }
 0xa50   : > { %6965 = vtanh.f32 %v4065_v54  ;;  %v4578_v7 = vor.u32 1.1754944e-38, %v4577_v11  ;;  %vm4576_vm14 = vcmp.eq.f32.partialorder %v4575_v58, 8.507059e+37  ;;  %v4673_v58 = vld [vmem:[#allocation2 + $0x478] sm:$0xff] }
 0xa51   : > { %v4554_v13 = vmul.f32 %v6962_v1, %v4553_v10  ;;  %4694 = vmatpush.msrb.mxu3 %v4673_v58 }
 0xa53   : > { %v4555_v31 = vadd.f32 %v6962_v1, %v4554_v13 }
 0xa54   : > { %v6964_v17 = vpop.eup %6963 }
 0xa55   : > { %v4559_v12 = vsel %vm4558_vm5, %v6962_v1, %v4555_v31  ;;  %v4067_v15 = vpop.f32.mrf.mxu2  ;;  %v4567_v5 = vmul.f32 %v6964_v17, %v4548_v55  ;;  %vm4572_vm11 = vweird.f32 %v6964_v17  ;;  %v9537_v52 = vpop.f32.mrf.mxu1 }
 0xa56   : > { %v6966_v37 = vpop.eup %6965  ;;  %v4564_v28 = vsel %vm4561_vm10, %v4563_v40, %v4559_v12  ;;  %v4068_v16 = vadd.f32 %v9417_v32, %v4067_v15  ;;  %vm4573_vm13 = vmor %vm4571_vm12, %vm4572_vm11  ;;  %v9535_v24 = vpop.f32.mrf.mxu0 }
 0xa57   : > { %v4565_v38 = vmul.f32 %v4564_v28, %v4522_v61  ;;  %v4182_v35 = vpop.f32.mrf.mxu3  ;;  %6340 = vmatmul.msk.f32.gmra.mxu3 %vm3248_vm3, %v6966_v37  ;;  %v4568_v25 = vsub.f32 1.0, %v4567_v5 }
 0xa58   : > { %6967 = vtanh.f32 %v4068_v16  ;;  %v4183_v22 = vadd.f32 %v9471_v49, %v4182_v35 }
 0xa59   : > { %6375 = vmatmul.msk.f32.vlgmr.msra.gmra.mxu2 %vm411_vm2, %v4565_v38  ;;  %v4569_v9 = vmul.f32 %v6964_v17, %v4568_v25 }
 0xa5a   : > { %6386 = vmatmul.msk.f32.gmra.mxu0 %vm411_vm2, %v4183_v22  ;;  %6402 = vmatmul.msk.f32.gmra.mxu1 %vm411_vm2, %v4183_v22 }
 0xa5b   : > { %v4570_v32 = vadd.f32 %v6964_v17, %v4569_v9 }
 0xa5d   : > { %v4574_v39 = vsel %vm4573_vm13, %v6964_v17, %v4570_v32  ;;  %v9542_v51 = vpop.f32.mrf.mxu1  ;;  %v4672_v32 = vld [vmem:[#allocation2 + $0x470] sm:$0xff] }
 0xa5e   : > { %v6968_v62 = vpop.eup %6967  ;;  %v4579_v0 = vsel %vm4576_vm14, %v4578_v7, %v4574_v39  ;;  %v9539_v19 = vpop.f32.mrf.mxu0  ;;  %4695 = vmatpush.msrb.mxu3 %v4672_v32  ;;  %v4671_v7 = vld [vmem:[#allocation2 + $0x468] sm:$0xff] }
 0xa5f   : > { %v4185_v6 = vpop.f32.mrf.mxu3  ;;  %6341 = vmatmul.msk.f32.gmra.mxu3 %vm3248_vm3, %v6968_v62  ;;  %v4580_v42 = vmul.f32 %v4579_v0, %v4525_v29  ;;  %v4670_v62 = vld [vmem:[#allocation2 + $0x460] sm:$0xff] }
 0xa60   : > { %v4186_v63 = vadd.f32 %v9471_v49, %v4185_v6  ;;  %4696 = vmatpush.msrb.mxu3 %v4671_v7 }
 0xa61   : > { %6376 = vmatmul.msk.f32.gmra.mxu2 %vm411_vm2, %v4580_v42 }
 0xa62   : > { %6387 = vmatmul.msk.f32.gmra.mxu0 %vm411_vm2, %v4186_v63  ;;  %6403 = vmatmul.msk.f32.gmra.mxu1 %vm411_vm2, %v4186_v63 }
 0xa63   : > { %4697 = vmatpush.msrb.mxu3 %v4670_v62 }
 0xa65   : > { %v9553_v47 = vpop.f32.mrf.mxu1 }
 0xa66   : > { %v9551_v10 = vpop.f32.mrf.mxu0 }
 0xa67   : > { %v4188_v21 = vpop.f32.mrf.mxu3 }
 0xa68   : > { %v4189_v60 = vadd.f32 %v9471_v49, %v4188_v21 }
 0xa6a   : > { %6388 = vmatmul.msk.f32.gmra.mxu0 %vm411_vm2, %v4189_v60  ;;  %6404 = vmatmul.msk.f32.gmra.mxu1 %vm411_vm2, %v4189_v60 }
 0xa6d   : > { %v9559_v40 = vpop.f32.mrf.mxu1 }
 0xa6e   : > { %v9557_v31 = vpop.f32.mrf.mxu0 }
 0xa6f   : > { %v4191_v27 = vpop.f32.mrf.mxu3 }
 0xa70   : > { %v4192_v4 = vadd.f32 %v9471_v49, %v4191_v27 }
 0xa72   : > { %6389 = vmatmul.msk.f32.gmra.mxu0 %vm411_vm2, %v4192_v4  ;;  %6405 = vmatmul.msk.f32.gmra.mxu1 %vm411_vm2, %v4192_v4 }
 0xa75   : > { %v9563_v17 = vpop.f32.mrf.mxu1 }
 0xa77   : > { %v4194_v8 = vpop.f32.mrf.mxu3 }
 0xa78   : > { %v4195_v14 = vadd.f32 %v9471_v49, %v4194_v8 }
 0xa7a   : > { %6390 = vmatmul.msk.f32.gmra.mxu0 %vm411_vm2, %v4195_v14  ;;  %6406 = vmatmul.msk.f32.gmra.mxu1 %vm411_vm2, %v4195_v14 }
 0xa7d   : > { %v9567_v12 = vpop.f32.mrf.mxu1 }
 0xa7f   : > { %v4197_v45 = vpop.f32.mrf.mxu3 }
 0xa80   : > { %v4198_v3 = vadd.f32 %v9471_v49, %v4197_v45 }
 0xa82   : > { %6391 = vmatmul.msk.f32.gmra.mxu0 %vm411_vm2, %v4198_v3  ;;  %6407 = vmatmul.msk.f32.gmra.mxu1 %vm411_vm2, %v4198_v3  ;;  %v9596_v3 = vld [vmem:[#allocation2 + $0x4a8] ss:$0 sm:$0xff] }
 0xa85   : > { %v9571_v37 = vpop.f32.mrf.mxu1 }
 0xa87   : > { %v4200_v48 = vpop.f32.mrf.mxu3 }
 0xa88   : > { %v4201_v43 = vadd.f32 %v9471_v49, %v4200_v48  ;;  %v9598_v48 = vld [vmem:[#allocation2 + $0x4d0] ss:$0 sm:$0xff] }
 0xa8a   : > { %6392 = vmatmul.msk.f32.gmra.mxu0 %vm411_vm2, %v4201_v43  ;;  %6408 = vmatmul.msk.f32.gmra.mxu1 %vm411_vm2, %v4201_v43 }
 0xad7   : > { %v9575_v28 = vpop.f32.mrf.mxu1 }
 0xada   : > { %v4203_v20 = vpop.f32.mrf.mxu3 }
 0xadb   : > { %v4204_v46 = vadd.f32 %v9471_v49, %v4203_v20 }
 0xadc   : > { %v4610_v41 = vpop.f32.mrf.mxu2 }
 0xadd   : > { %v4611_v18 = vadd.f32 %v6622_v26, %v4610_v41  ;;  %6393 = vmatmul.msk.f32.gmra.mxu0 %vm411_vm2, %v4204_v46  ;;  %6409 = vmatmul.msk.f32.gmra.mxu1 %vm411_vm2, %v4204_v46 }
 0xadf   : > { %v4616_v1 = vadd.f32 %v4611_v18, %v9021_v57  ;;  %v9579_v16 = vpop.f32.mrf.mxu1 }
 0xae1   : > { %v4618_v44 = vsel %vm411_vm2, %v4616_v1, 0.0 }
 0xae2   : > { %v4206_v2 = vpop.f32.mrf.mxu3  ;;  %4619 = vadd.xlane.f32.xlu2 %v4618_v44 }
 0xae3   : > { %v4207_v54 = vadd.f32 %v9471_v49, %v4206_v2  ;;  %v9561_v49 = vpop.f32.mrf.mxu0 }
 0xae4   : > { %v4613_v55 = vpop.f32.mrf.mxu2 }
 0xae5   : > { %6394 = vmatmul.msk.f32.gmra.mxu0 %vm411_vm2, %v4207_v54  ;;  %6410 = vmatmul.msk.f32.gmra.mxu1 %vm411_vm2, %v4207_v54  ;;  %v4614_v13 = vadd.f32 %v6622_v26, %v4613_v55 }
 0xae7   : > { %v4617_v36 = vadd.f32 %v4614_v13, %v9040_v59  ;;  %v9583_v35 = vpop.f32.mrf.mxu1 }
 0xae9   : > { %v4621_v57 = vsel %vm411_vm2, %v4617_v36, 0.0 }
 0xaea   : > { %4622 = vadd.xlane.f32.xlu1 %v4621_v57 }
 0xaeb   : > { %v9565_v61 = vpop.f32.mrf.mxu0 }
 0xaef   : > { %v4877_v22 = vpop.f32.mrf.mxu1 }
 0xaf3   : > { %v9569_v15 = vpop.f32.mrf.mxu0 }
 0xaf7   : > { %v4880_v9 = vpop.f32.mrf.mxu1 }
 0xafb   : > { %v9573_v59 = vpop.f32.mrf.mxu0 }
 0xaff   : > { %v4883_v29 = vpop.f32.mrf.mxu1 }
 0xb00   : > { %v9630_v58 = vadd.f32 %v9598_v48, %v4883_v29 }
 0xb03   : > { %v9577_v5 = vpop.f32.mrf.mxu0 }
 0xb07   : > { %v4886_v0 = vpop.f32.mrf.mxu1 }
 0xb08   : > { %v9621_v55 = vadd.f32 %v9598_v48, %v4886_v0 }
 0xb0b   : > { %v9581_v38 = vpop.f32.mrf.mxu0 }
 0xb13   : > { %v9585_v25 = vpop.f32.mrf.mxu0 }
 0xb1b   : > { %v9587_v11 = vpop.f32.mrf.mxu0 }
 0xb23   : > { %v4812_v39 = vpop.f32.mrf.mxu0 }
 0xb2b   : > { %v4815_v6 = vpop.f32.mrf.mxu0 }
 0xb2c   : > { %v9636_v7 = vadd.f32 %v9596_v3, %v4815_v6  ;;  %v4988_v6 = vmul.f32 %v10442_v23, %v9621_v55 }
 0xb55   : > { %v4620_v63 = vpop.xlane.xlu2 %4619 }
 0xb56   : > { %v4624_v42 = vmul.f32 %v4620_v63, %v8626_v56  ;;  %v9643_v63 = vadd.f32 %v9598_v48, %v4880_v9  ;;  %v4971_v9 = vmul.f32 %v10443_v33, %v9630_v58 }
 0xb58   : > { %v9590_v21 = vsub.f32 %v4616_v1, %v4624_v42  ;;  %v4972_v42 = vmul.f32 %v10443_v33, %v9621_v55 }
 0xb5a   : > { %v4818_v60 = vpop.f32.mrf.mxu0  ;;  %v4889_v27 = vpop.f32.mrf.mxu1  ;;  %v4628_v4 = vmul.f32 %v9590_v21, %v9590_v21 }
 0xb5b   : > { %v9611_v1 = vadd.f32 %v9598_v48, %v4889_v27  ;;  %v9614_v44 = vadd.f32 %v9596_v3, %v4818_v60  ;;  %v9653_v60 = vadd.f32 %v9598_v48, %v4877_v22  ;;  %v9659_v27 = vadd.f32 %v9596_v3, %v4812_v39 }
 0xb5c   : > { %v4630_v8 = vsel %vm411_vm2, %v4628_v4, 0.0  ;;  %v4987_v4 = vmul.f32 %v10442_v23, %v9630_v58  ;;  %v9667_v22 = vadd.f32 %v9598_v48, %v9583_v35  ;;  %v4986_v39 = vmul.f32 %v10442_v23, %v9643_v63 }
 0xb5d   : > { %4631 = vadd.xlane.f32.xlu0 %v4630_v8  ;;  %v4623_v14 = vpop.xlane.xlu1 %4622  ;;  %v4973_v32 = vmul.f32 %v10443_v33, %v9611_v1  ;;  %v4989_v62 = vmul.f32 %v10442_v23, %v9611_v1  ;;  %v4909_v0 = vmul.f32 %v10443_v33, %v9614_v44  ;;  %v4925_v29 = vmul.f32 %v10442_v23, %v9614_v44 }
 0xb5e   : > { %v4625_v45 = vmul.f32 %v4623_v14, %v8626_v56  ;;  %v4908_v8 = vmul.f32 %v10443_v33, %v9636_v7  ;;  %v4924_v14 = vmul.f32 %v10442_v23, %v9636_v7  ;;  %v4969_v35 = vmul.f32 %v10443_v33, %v9653_v60 }
 0xb60   : > { %v9600_v43 = vsub.f32 %v4617_v36, %v4625_v45  ;;  %v4970_v45 = vmul.f32 %v10443_v33, %v9643_v63 }
 0xb62   : > { %v4821_v26 = vpop.f32.mrf.mxu0  ;;  %v4892_v20 = vpop.f32.mrf.mxu1  ;;  %v4629_v18 = vmul.f32 %v9600_v43, %v9600_v43 }
 0xb63   : > { %v9603_v46 = vadd.f32 %v9596_v3, %v4821_v26  ;;  %v9606_v41 = vadd.f32 %v9598_v48, %v4892_v20  ;;  %v9678_v26 = vadd.f32 %v9598_v48, %v9579_v16  ;;  %v9685_v20 = vadd.f32 %v9596_v3, %v9587_v11 }
 0xb64   : > { %v4633_v13 = vsel %vm411_vm2, %v4629_v18, 0.0  ;;  %v4985_v18 = vmul.f32 %v10442_v23, %v9653_v60  ;;  %v9693_v16 = vadd.f32 %v9598_v48, %v9575_v28  ;;  %v4984_v11 = vmul.f32 %v10442_v23, %v9667_v22 }
 0xb65   : > { %v4910_v2 = vmul.f32 %v10443_v33, %v9603_v46  ;;  %v4926_v54 = vmul.f32 %v10442_v23, %v9603_v46  ;;  %v4974_v36 = vmul.f32 %v10443_v33, %v9606_v41  ;;  %v4990_v57 = vmul.f32 %v10442_v23, %v9606_v41  ;;  %4634 = vadd.xlane.f32.xlu2 %v4633_v13 }
 0xb66   : > { %v4968_v13 = vmul.f32 %v10443_v33, %v9667_v22  ;;  %v4967_v28 = vmul.f32 %v10443_v33, %v9678_v26 }
 0xb67   : > { %6411 = vmatpush.xpose.msk.msrb.mxu2 %vm411_vm2, %v4910_v2  ;;  %6429 = vmatpush.xpose.msk.msra.mxu3 %vm411_vm2, %v4926_v54  ;;  %v4907_v2 = vmul.f32 %v10443_v33, %v9659_v27  ;;  %v4923_v54 = vmul.f32 %v10442_v23, %v9659_v27 }
 0xb68   : > { %5355 = vmatpush.msrb.mxu0 %v4974_v36  ;;  %5378 = vmatpush.msra.mxu1 %v4990_v57  ;;  %v9704_v36 = vadd.f32 %v9598_v48, %v9571_v37  ;;  %v9711_v57 = vadd.f32 %v9596_v3, %v9585_v25  ;;  %v9719_v37 = vadd.f32 %v9598_v48, %v9567_v12 }
 0xb69   : > { %v4982_v25 = vmul.f32 %v10442_v23, %v9693_v16 }
 0xb6a   : > { %5356 = vmatpush.msrb.mxu0 %v4973_v32  ;;  %5379 = vmatpush.msra.mxu1 %v4989_v62  ;;  %v4983_v32 = vmul.f32 %v10442_v23, %v9678_v26  ;;  %v4906_v62 = vmul.f32 %v10443_v33, %v9685_v20  ;;  %v4965_v12 = vmul.f32 %v10443_v33, %v9704_v36 }
 0xb6b   : > { %6412 = vmatpush.xpose.msk.msrb.mxu2 %vm411_vm2, %v4909_v0  ;;  %6430 = vmatpush.xpose.msk.msra.mxu3 %vm411_vm2, %v4925_v29  ;;  %v4922_v0 = vmul.f32 %v10442_v23, %v9685_v20  ;;  %v4966_v29 = vmul.f32 %v10443_v33, %v9693_v16 }
 0xb6c   : > { %5357 = vmatpush.msrb.mxu0 %v4972_v42  ;;  %5380 = vmatpush.msra.mxu1 %v4988_v6  ;;  %v9730_v42 = vadd.f32 %v9598_v48, %v9563_v17  ;;  %v9737_v6 = vadd.f32 %v9596_v3, %v9581_v38  ;;  %v9745_v17 = vadd.f32 %v9598_v48, %v9559_v40 }
 0xb6d   : > { %v4980_v38 = vmul.f32 %v10442_v23, %v9719_v37 }
 0xb6e   : > { %5358 = vmatpush.msrb.mxu0 %v4971_v9  ;;  %5381 = vmatpush.msra.mxu1 %v4987_v4  ;;  %v4981_v9 = vmul.f32 %v10442_v23, %v9704_v36  ;;  %v4905_v4 = vmul.f32 %v10443_v33, %v9711_v57  ;;  %v4963_v40 = vmul.f32 %v10443_v33, %v9730_v42 }
 0xb6f   : > { %6413 = vmatpush.xpose.msk.msrb.mxu2 %vm411_vm2, %v4908_v8  ;;  %6431 = vmatpush.xpose.msk.msra.mxu3 %vm411_vm2, %v4924_v14  ;;  %v4921_v8 = vmul.f32 %v10442_v23, %v9711_v57  ;;  %v4964_v14 = vmul.f32 %v10443_v33, %v9719_v37 }
 0xb70   : > { %5359 = vmatpush.msrb.mxu0 %v4970_v45  ;;  %5382 = vmatpush.msra.mxu1 %v4986_v39  ;;  %v9756_v45 = vadd.f32 %v9598_v48, %v9553_v47  ;;  %v9763_v39 = vadd.f32 %v9596_v3, %v9577_v5  ;;  %v9771_v47 = vadd.f32 %v9598_v48, %v9542_v51 }
 0xb71   : > { %v4978_v5 = vmul.f32 %v10442_v23, %v9745_v17 }
 0xb72   : > { %5360 = vmatpush.msrb.mxu0 %v4969_v35  ;;  %5383 = vmatpush.msra.mxu1 %v4985_v18  ;;  %v4979_v35 = vmul.f32 %v10442_v23, %v9730_v42  ;;  %v4904_v18 = vmul.f32 %v10443_v33, %v9737_v6  ;;  %v4961_v51 = vmul.f32 %v10443_v33, %v9756_v45 }
 0xb73   : > { %6414 = vmatpush.xpose.msk.msrb.mxu2 %vm411_vm2, %v4907_v2  ;;  %6432 = vmatpush.xpose.msk.msra.mxu3 %vm411_vm2, %v4923_v54  ;;  %v4920_v2 = vmul.f32 %v10442_v23, %v9737_v6  ;;  %v4962_v54 = vmul.f32 %v10443_v33, %v9745_v17 }
 0xb74   : > { %5361 = vmatpush.msrb.mxu0 %v4968_v13  ;;  %5384 = vmatpush.msra.mxu1 %v4984_v11  ;;  %v9782_v13 = vadd.f32 %v9598_v48, %v9537_v52  ;;  %v9789_v11 = vadd.f32 %v9596_v3, %v9573_v59  ;;  %v4919_v52 = vmul.f32 %v10442_v23, %v9763_v39 }
 0xb75   : > { %v4960_v48 = vmul.f32 %v10443_v33, %v9771_v47  ;;  %v4976_v59 = vmul.f32 %v10442_v23, %v9771_v47 }
 0xb76   : > { %5362 = vmatpush.msrb.mxu0 %v4967_v28  ;;  %5385 = vmatpush.msra.mxu1 %v4983_v32  ;;  %v4977_v28 = vmul.f32 %v10442_v23, %v9756_v45  ;;  %v4903_v32 = vmul.f32 %v10443_v33, %v9763_v39 }
 0xb77   : > { %6415 = vmatpush.xpose.msk.msrb.mxu2 %vm411_vm2, %v4906_v62  ;;  %6433 = vmatpush.xpose.msk.msra.mxu3 %vm411_vm2, %v4922_v0  ;;  %v4959_v62 = vmul.f32 %v10443_v33, %v9782_v13  ;;  %v9807_v0 = vadd.f32 %v9596_v3, %v9569_v15  ;;  %v9822_v15 = vadd.f32 %v9596_v3, %v9565_v61 }
 0xb78   : > { %5363 = vmatpush.msrb.mxu0 %v4966_v29  ;;  %5386 = vmatpush.msra.mxu1 %v4982_v25  ;;  %v4975_v29 = vmul.f32 %v10442_v23, %v9782_v13  ;;  %v4902_v25 = vmul.f32 %v10443_v33, %v9789_v11  ;;  %v9844_v61 = vadd.f32 %v9596_v3, %v9561_v49 }
 0xb79   : > { %v9866_v49 = vadd.f32 %v9596_v3, %v9557_v31  ;;  %v9888_v31 = vadd.f32 %v9596_v3, %v9551_v10  ;;  %v9910_v10 = vadd.f32 %v9596_v3, %v9539_v19  ;;  %v9932_v19 = vadd.f32 %v9596_v3, %v9535_v24 }
 0xb7a   : > { %5364 = vmatpush.msrb.mxu0 %v4965_v12  ;;  %5387 = vmatpush.msra.mxu1 %v4981_v9  ;;  %v4918_v12 = vmul.f32 %v10442_v23, %v9789_v11  ;;  %v4901_v9 = vmul.f32 %v10443_v33, %v9807_v0  ;;  %v4942_v3 = vmul.f32 %v10441_v30, %v9603_v46 }
 0xb7b   : > { %6416 = vmatpush.xpose.msk.msrb.mxu2 %vm411_vm2, %v4905_v4  ;;  %6434 = vmatpush.xpose.msk.msra.mxu3 %vm411_vm2, %v4921_v8  ;;  %v4917_v4 = vmul.f32 %v10442_v23, %v9807_v0  ;;  %v4900_v8 = vmul.f32 %v10443_v33, %v9822_v15  ;;  %v4895_v24 = vmul.f32 %v10443_v33, %v9932_v19 }
 0xb7c   : > { %5365 = vmatpush.msrb.mxu0 %v4964_v14  ;;  %5388 = vmatpush.msra.mxu1 %v4980_v38  ;;  %v4916_v14 = vmul.f32 %v10442_v23, %v9822_v15  ;;  %v4899_v38 = vmul.f32 %v10443_v33, %v9844_v61 }
 0xb7e   : > { %5366 = vmatpush.msrb.mxu0 %v4963_v40  ;;  %5389 = vmatpush.msra.mxu1 %v4979_v35  ;;  %v4915_v40 = vmul.f32 %v10442_v23, %v9844_v61  ;;  %v4898_v35 = vmul.f32 %v10443_v33, %v9866_v49 }
 0xb7f   : > { %6417 = vmatpush.xpose.msk.msrb.mxu2 %vm411_vm2, %v4904_v18  ;;  %6435 = vmatpush.xpose.msk.msra.mxu3 %vm411_vm2, %v4920_v2  ;;  %v4914_v18 = vmul.f32 %v10442_v23, %v9866_v49  ;;  %v4897_v2 = vmul.f32 %v10443_v33, %v9888_v31 }
 0xb80   : > { %5367 = vmatpush.msrb.mxu0 %v4962_v54  ;;  %5390 = vmatpush.msra.mxu1 %v4978_v5  ;;  %v4913_v54 = vmul.f32 %v10442_v23, %v9888_v31  ;;  %v4896_v5 = vmul.f32 %v10443_v33, %v9910_v10  ;;  %v4940_v33 = vmul.f32 %v10441_v30, %v9636_v7 }
 0xb82   : > { %5368 = vmatpush.msrb.mxu0 %v4961_v51  ;;  %5391 = vmatpush.msra.mxu1 %v4977_v28  ;;  %v4912_v51 = vmul.f32 %v10442_v23, %v9910_v10  ;;  %v4911_v28 = vmul.f32 %v10442_v23, %v9932_v19  ;;  %v4941_v23 = vmul.f32 %v10441_v30, %v9614_v44 }
 0xb83   : > { %6418 = vmatpush.xpose.msk.msrb.mxu2 %vm411_vm2, %v4903_v32  ;;  %6436 = vmatpush.xpose.msk.msra.mxu3 %vm411_vm2, %v4919_v52  ;;  %v4939_v32 = vmul.f32 %v10441_v30, %v9659_v27  ;;  %v4938_v52 = vmul.f32 %v10441_v30, %v9685_v20 }
 0xb84   : > { %5369 = vmatpush.msrb.mxu0 %v4960_v48  ;;  %5392 = vmatpush.msra.mxu1 %v4976_v59  ;;  %v4937_v48 = vmul.f32 %v10441_v30, %v9711_v57  ;;  %v4936_v59 = vmul.f32 %v10441_v30, %v9737_v6 }
 0xb86   : > { %5370 = vmatpush.msrb.mxu0 %v4959_v62  ;;  %5393 = vmatpush.msra.mxu1 %v4975_v29  ;;  %v4935_v62 = vmul.f32 %v10441_v30, %v9763_v39  ;;  %v4934_v29 = vmul.f32 %v10441_v30, %v9789_v11 }
 0xb87   : > { %6419 = vmatpush.xpose.msk.msrb.mxu2 %vm411_vm2, %v4902_v25  ;;  %6437 = vmatpush.xpose.msk.msra.mxu3 %vm411_vm2, %v4918_v12  ;;  %v4933_v25 = vmul.f32 %v10441_v30, %v9807_v0  ;;  %v4932_v12 = vmul.f32 %v10441_v30, %v9822_v15 }
 0xb88   : > { %6483 = vmatpush.msk.msra.mxu0 %vm6044_vm8, %v10438_v53  ;;  %6499 = vmatpush.msk.msrb.mxu1 %vm6045_vm9, %v10438_v53 }
 0xb8a   : > { %6484 = vmatpush.msk.msra.mxu0 %vm6044_vm8, %v10438_v53  ;;  %6500 = vmatpush.msk.msrb.mxu1 %vm6045_vm9, %v10438_v53 }
 0xb8b   : > { %6420 = vmatpush.xpose.msk.msrb.mxu2 %vm411_vm2, %v4901_v9  ;;  %6438 = vmatpush.xpose.msk.msra.mxu3 %vm411_vm2, %v4917_v4  ;;  %v4931_v9 = vmul.f32 %v10441_v30, %v9844_v61 }
 0xb8c   : > { %6485 = vmatpush.msk.msra.mxu0 %vm6044_vm8, %v10438_v53  ;;  %6501 = vmatpush.msk.msrb.mxu1 %vm6045_vm9, %v10438_v53 }
 0xb8e   : > { %6486 = vmatpush.msk.msra.mxu0 %vm6044_vm8, %v10438_v53  ;;  %6502 = vmatpush.msk.msrb.mxu1 %vm6045_vm9, %v10438_v53 }
 0xb8f   : > { %6421 = vmatpush.xpose.msk.msrb.mxu2 %vm411_vm2, %v4900_v8  ;;  %6439 = vmatpush.xpose.msk.msra.mxu3 %vm411_vm2, %v4916_v14  ;;  %v4930_v14 = vmul.f32 %v10441_v30, %v9866_v49 }
 0xb90   : > { %6487 = vmatpush.msk.msra.mxu0 %vm6044_vm8, %v10438_v53  ;;  %6503 = vmatpush.msk.msrb.mxu1 %vm6045_vm9, %v10438_v53 }
 0xb92   : > { %6488 = vmatpush.msk.msra.mxu0 %vm6044_vm8, %v10438_v53  ;;  %6504 = vmatpush.msk.msrb.mxu1 %vm6045_vm9, %v10438_v53 }
 0xb93   : > { %6422 = vmatpush.xpose.msk.msrb.mxu2 %vm411_vm2, %v4899_v38  ;;  %6440 = vmatpush.xpose.msk.msra.mxu3 %vm411_vm2, %v4915_v40  ;;  %v4929_v40 = vmul.f32 %v10441_v30, %v9888_v31 }
 0xb94   : > { %6489 = vmatpush.msk.msra.mxu0 %vm6044_vm8, %v10438_v53  ;;  %6505 = vmatpush.msk.msrb.mxu1 %vm6045_vm9, %v10438_v53 }
 0xb96   : > { %6490 = vmatpush.msk.msra.mxu0 %vm6044_vm8, %v10438_v53  ;;  %6506 = vmatpush.msk.msrb.mxu1 %vm6045_vm9, %v10438_v53 }
 0xb97   : > { %6423 = vmatpush.xpose.msk.msrb.mxu2 %vm411_vm2, %v4898_v35  ;;  %6441 = vmatpush.xpose.msk.msra.mxu3 %vm411_vm2, %v4914_v18  ;;  %v4928_v18 = vmul.f32 %v10441_v30, %v9910_v10 }
 0xb98   : > { %6491 = vmatpush.msk.msra.mxu0 %vm6044_vm8, %v10438_v53  ;;  %6507 = vmatpush.msk.msrb.mxu1 %vm6045_vm9, %v10438_v53 }
 0xb9a   : > { %6492 = vmatpush.msk.msra.mxu0 %vm6044_vm8, %v10438_v53  ;;  %6508 = vmatpush.msk.msrb.mxu1 %vm6045_vm9, %v10438_v53 }
 0xb9b   : > { %6424 = vmatpush.xpose.msk.msrb.mxu2 %vm411_vm2, %v4897_v2  ;;  %6442 = vmatpush.xpose.msk.msra.mxu3 %vm411_vm2, %v4913_v54 }
 0xb9c   : > { %6493 = vmatpush.msk.msra.mxu0 %vm6044_vm8, %v10438_v53  ;;  %6509 = vmatpush.msk.msrb.mxu1 %vm6045_vm9, %v10438_v53 }
 0xb9e   : > { %6494 = vmatpush.msk.msra.mxu0 %vm6044_vm8, %v10438_v53  ;;  %6510 = vmatpush.msk.msrb.mxu1 %vm6045_vm9, %v10438_v53 }
 0xb9f   : > { %6425 = vmatpush.xpose.msk.msrb.mxu2 %vm411_vm2, %v4896_v5  ;;  %6443 = vmatpush.xpose.msk.msra.mxu3 %vm411_vm2, %v4912_v51 }
 0xba0   : > { %6495 = vmatpush.msk.msra.mxu0 %vm6044_vm8, %v10438_v53  ;;  %6511 = vmatpush.msk.msrb.mxu1 %vm6045_vm9, %v10438_v53 }
 0xba2   : > { %6496 = vmatpush.msk.msra.mxu0 %vm6044_vm8, %v10438_v53  ;;  %6512 = vmatpush.msk.msrb.mxu1 %vm6045_vm9, %v10438_v53 }
 0xba3   : > { %6426 = vmatpush.xpose.msk.msrb.mxu2 %vm411_vm2, %v4895_v24  ;;  %6444 = vmatpush.xpose.msk.msra.mxu3 %vm411_vm2, %v4911_v28 }
 0xba4   : > { %6497 = vmatpush.msk.msra.mxu0 %vm6044_vm8, %v10438_v53  ;;  %6513 = vmatpush.msk.msrb.mxu1 %vm6045_vm9, %v10438_v53 }
 0xba6   : > { %6498 = vmatpush.msk.msra.mxu0 %vm6044_vm8, %v10438_v53  ;;  %6514 = vmatpush.msk.msrb.mxu1 %vm6045_vm9, %v10438_v53 }
 0xba7   : > { %6447 = vmatpush.xpose.msk.msra.mxu2 %vm411_vm2, %v4942_v3  ;;  %v4927_v3 = vmul.f32 %v10441_v30, %v9932_v19 }
 0xbab   : > { %6448 = vmatpush.xpose.msk.msra.mxu2 %vm411_vm2, %v4941_v23 }
 0xbaf   : > { %6449 = vmatpush.xpose.msk.msra.mxu2 %vm411_vm2, %v4940_v33 }
 0xbb3   : > { %6450 = vmatpush.xpose.msk.msra.mxu2 %vm411_vm2, %v4939_v32 }
 0xbb7   : > { %6451 = vmatpush.xpose.msk.msra.mxu2 %vm411_vm2, %v4938_v52  ;;  %v6623_v52 = vld [vmem:[#allocation2 + $0x450] ss:$0 sm:$0xff] }
 0xbbb   : > { %6452 = vmatpush.xpose.msk.msra.mxu2 %vm411_vm2, %v4937_v48 }
 0xbbf   : > { %6453 = vmatpush.xpose.msk.msra.mxu2 %vm411_vm2, %v4936_v59 }
 0xbc3   : > { %6454 = vmatpush.xpose.msk.msra.mxu2 %vm411_vm2, %v4935_v62  ;;  %v6624_v62 = vld [vmem:[#allocation2 + $0x458] ss:$0 sm:$0xff] }
 0xbc7   : > { %6455 = vmatpush.xpose.msk.msra.mxu2 %vm411_vm2, %v4934_v29 }
 0xbcb   : > { %6456 = vmatpush.xpose.msk.msra.mxu2 %vm411_vm2, %v4933_v25 }
 0xbcf   : > { %6457 = vmatpush.xpose.msk.msra.mxu2 %vm411_vm2, %v4932_v12 }
 0xbd0   : > { %v4632_v4 = vpop.xlane.xlu0 %4631 }
 0xbd1   : > { %v4636_v8 = vmul.f32 %v4632_v4, %v8626_v56 }
 0xbd3   : > { %6458 = vmatpush.xpose.msk.msra.mxu2 %vm411_vm2, %v4931_v9  ;;  %v4638_v38 = vadd.f32 1e-05, %v4636_v8  ;;  %v4958_v8 = vmul.f32 %v10440_v34, %v9603_v46  ;;  %v4956_v46 = vmul.f32 %v10440_v34, %v9636_v7  ;;  %v4952_v7 = vmul.f32 %v10440_v34, %v9737_v6 }
 0xbd4   : > { %v4948_v6 = vmul.f32 %v10440_v34, %v9822_v15  ;;  %v4944_v15 = vmul.f32 %v10440_v34, %v9910_v10  ;;  %v5005_v10 = vmul.f32 %v10441_v30, %v9611_v1 }
 0xbd5   : > { %6969 = vrsqrt.f32 %v4638_v38  ;;  %vm4646_vm9 = vweird.f32 %v4638_v38 }
 0xbd7   : > { %6459 = vmatpush.xpose.msk.msra.mxu2 %vm411_vm2, %v4930_v14 }
 0xbd8   : > { %v4635_v35 = vpop.xlane.xlu2 %4634 }
 0xbd9   : > { %v4637_v54 = vmul.f32 %v4635_v35, %v8626_v56 }
 0xbdb   : > { %6460 = vmatpush.xpose.msk.msra.mxu2 %vm411_vm2, %v4929_v40  ;;  %v6970_v2 = vpop.eup %6969  ;;  %v4639_v51 = vadd.f32 1e-05, %v4637_v54  ;;  %v4955_v54 = vmul.f32 %v10440_v34, %v9659_v27  ;;  %v4951_v27 = vmul.f32 %v10440_v34, %v9763_v39  ;;  %v4947_v39 = vmul.f32 %v10440_v34, %v9844_v61 }
 0xbdc   : > { %v4641_v5 = vmul.f32 %v6970_v2, %v4638_v38  ;;  %vm4647_vm8 = vweird.f32 %v6970_v2  ;;  %v4943_v61 = vmul.f32 %v10440_v34, %v9932_v19  ;;  %v5021_v19 = vmul.f32 %v10440_v34, %v9611_v1 }
 0xbdd   : > { %6971 = vrsqrt.f32 %v4639_v51  ;;  %vm4648_vm15 = vmor %vm4646_vm9, %vm4647_vm8  ;;  %vm4656_vm0 = vweird.f32 %v4639_v51  ;;  %v5002_v1 = vmul.f32 %v10441_v30, %v9643_v63 }
 0xbde   : > { %v4642_v24 = vmul.f32 %v6970_v2, %v4641_v5  ;;  %v6625_v5 = vld [vmem:[#allocation2 + $0x480] ss:$0 sm:$0xff] }
 0xbdf   : > { %6461 = vmatpush.xpose.msk.msra.mxu2 %vm411_vm2, %v4928_v18 }
 0xbe0   : > { %v4643_v28 = vmul.f32 0.5, %v4642_v24  ;;  %v5006_v24 = vmul.f32 %v10441_v30, %v9606_v41 }
 0xbe2   : > { %v4644_v23 = vsub.f32 1.5, %v4643_v28  ;;  %v5003_v28 = vmul.f32 %v10441_v30, %v9630_v58 }
 0xbe3   : > { %6462 = vmatpush.xpose.msk.msra.mxu2 %vm411_vm2, %v4927_v3  ;;  %v6972_v32 = vpop.eup %6971  ;;  %v5004_v3 = vmul.f32 %v10441_v30, %v9621_v55 }
 0xbe4   : > { %v4645_v33 = vmul.f32 %v6970_v2, %v4644_v23  ;;  %v4651_v59 = vmul.f32 %v6972_v32, %v4639_v51  ;;  %vm4657_vm4 = vweird.f32 %v6972_v32  ;;  %v5019_v23 = vmul.f32 %v10440_v34, %v9630_v58 }
 0xbe5   : > { %vm4658_vm5 = vmor %vm4656_vm0, %vm4657_vm4  ;;  %v5000_v58 = vmul.f32 %v10441_v30, %v9667_v22 }
 0xbe6   : > { %v4649_v48 = vsel %vm4648_vm15, %v6970_v2, %v4645_v33  ;;  %v4652_v25 = vmul.f32 %v6972_v32, %v4651_v59  ;;  %v4999_v59 = vmul.f32 %v10441_v30, %v9678_v26 }
 0xbe7   : > { %v4660_v29 = vmul.f32 %v4649_v48, %v9590_v21  ;;  %v4957_v21 = vmul.f32 %v10440_v34, %v9614_v44  ;;  %v4953_v44 = vmul.f32 %v10440_v34, %v9711_v57  ;;  %v4949_v57 = vmul.f32 %v10440_v34, %v9807_v0 }
 0xbe8   : > { %v4653_v9 = vmul.f32 0.5, %v4652_v25  ;;  %v4945_v0 = vmul.f32 %v10440_v34, %v9888_v31  ;;  %v5022_v31 = vmul.f32 %v10440_v34, %v9606_v41  ;;  %v5020_v41 = vmul.f32 %v10440_v34, %v9621_v55 }
 0xbe9   : > { %v4664_v12 = vmul.f32 %v6623_v52, %v4660_v29  ;;  %v5001_v55 = vmul.f32 %v10441_v30, %v9653_v60  ;;  %v5017_v48 = vmul.f32 %v10440_v34, %v9653_v60  ;;  %v5015_v60 = vmul.f32 %v10440_v34, %v9678_v26 }
 0xbea   : > { %v4654_v14 = vsub.f32 1.5, %v4653_v9  ;;  %v5014_v29 = vmul.f32 %v10440_v34, %v9693_v16  ;;  %v5013_v25 = vmul.f32 %v10440_v34, %v9704_v36  ;;  %v4996_v26 = vmul.f32 %v10441_v30, %v9719_v37 }
 0xbeb   : > { %v10030_v4 = vadd.f32 %v6624_v62, %v4664_v12  ;;  %v4995_v12 = vmul.f32 %v10441_v30, %v9730_v42  ;;  %v4994_v9 = vmul.f32 %v10441_v30, %v9745_v17 }
 0xbec   : > { %v4655_v38 = vmul.f32 %v6972_v32, %v4654_v14  ;;  %v5009_v14 = vmul.f32 %v10440_v34, %v9756_v45 }
 0xbed   : > { %6377 = vmatmul.msk.f32.vlgmr.msrb.gmra.mxu3 %vm411_vm2, %v10030_v4 }
 0xbee   : > { %6465 = vmatpush.xpose.msk.msrb.mxu3 %vm411_vm2, %v4958_v8  ;;  %v4659_v40 = vsel %vm4658_vm5, %v6972_v32, %v4655_v38  ;;  %v5018_v32 = vmul.f32 %v10440_v34, %v9643_v63  ;;  %v5016_v63 = vmul.f32 %v10440_v34, %v9667_v22  ;;  %v4997_v22 = vmul.f32 %v10441_v30, %v9704_v36 }
 0xbef   : > { %v4661_v35 = vmul.f32 %v4659_v40, %v9600_v43  ;;  %v4954_v43 = vmul.f32 %v10440_v34, %v9685_v20  ;;  %v4950_v20 = vmul.f32 %v10440_v34, %v9789_v11  ;;  %v4946_v11 = vmul.f32 %v10440_v34, %v9866_v49 }
 0xbf0   : > { %v5011_v36 = vmul.f32 %v10440_v34, %v9730_v42  ;;  %v5010_v8 = vmul.f32 %v10440_v34, %v9745_v17  ;;  %v4992_v42 = vmul.f32 %v10441_v30, %v9771_v47  ;;  %v5008_v17 = vmul.f32 %v10440_v34, %v9771_v47 }
 0xbf1   : > { %v4665_v18 = vmul.f32 %v6623_v52, %v4661_v35  ;;  %v4991_v38 = vmul.f32 %v10441_v30, %v9782_v13 }
 0xbf2   : > { %6466 = vmatpush.xpose.msk.msrb.mxu3 %vm411_vm2, %v4957_v21 }
 0xbf3   : > { %v10043_v2 = vadd.f32 %v6624_v62, %v4665_v18  ;;  %v4998_v62 = vmul.f32 %v10441_v30, %v9693_v16  ;;  %v5012_v16 = vmul.f32 %v10440_v34, %v9719_v37  ;;  %v4993_v37 = vmul.f32 %v10441_v30, %v9756_v45 }
 0xbf4   : > { %v5007_v45 = vmul.f32 %v10440_v34, %v9782_v13 }
 0xbf5   : > { %6378 = vmatmul.msk.f32.gmra.mxu3 %vm411_vm2, %v10043_v2 }
 0xbf6   : > { %6467 = vmatpush.xpose.msk.msrb.mxu3 %vm411_vm2, %v4956_v46 }
 0xbfa   : > { %6468 = vmatpush.xpose.msk.msrb.mxu3 %vm411_vm2, %v4955_v54 }
 0xbfe   : > { %6469 = vmatpush.xpose.msk.msrb.mxu3 %vm411_vm2, %v4954_v43 }
 0xc02   : > { %6470 = vmatpush.xpose.msk.msrb.mxu3 %vm411_vm2, %v4953_v44 }
 0xc06   : > { %6471 = vmatpush.xpose.msk.msrb.mxu3 %vm411_vm2, %v4952_v7 }
 0xc0a   : > { %6472 = vmatpush.xpose.msk.msrb.mxu3 %vm411_vm2, %v4951_v27 }
 0xc0e   : > { %6473 = vmatpush.xpose.msk.msrb.mxu3 %vm411_vm2, %v4950_v20 }
 0xc12   : > { %6474 = vmatpush.xpose.msk.msrb.mxu3 %vm411_vm2, %v4949_v57 }
 0xc16   : > { %6475 = vmatpush.xpose.msk.msrb.mxu3 %vm411_vm2, %v4948_v6 }
 0xc1a   : > { %6476 = vmatpush.xpose.msk.msrb.mxu3 %vm411_vm2, %v4947_v39 }
 0xc1e   : > { %6477 = vmatpush.xpose.msk.msrb.mxu3 %vm411_vm2, %v4946_v11 }
 0xc22   : > { %6478 = vmatpush.xpose.msk.msrb.mxu3 %vm411_vm2, %v4945_v0 }
 0xc26   : > { %6479 = vmatpush.xpose.msk.msrb.mxu3 %vm411_vm2, %v4944_v15 }
 0xc2a   : > { %6480 = vmatpush.xpose.msk.msrb.mxu3 %vm411_vm2, %v4943_v61 }
 0xc70   : > { %v4699_v51 = vpop.f32.mrf.mxu3 }
 0xc71   : > { %v4700_v49 = vadd.f32 %v6625_v5, %v4699_v51 }
 0xc73   : > { %6427 = vmatmul.msk.f32.vlgmr.msrb.gmra.mxu2 %vm411_vm2, %v4700_v49  ;;  %6445 = vmatmul.msk.f32.vlgmr.msra.gmra.mxu3 %vm411_vm2, %v4700_v49 }
 0xc74   : > { %5401 = vmatpush.msrb.mxu2 %v5006_v24  ;;  %5424 = vmatpush.msra.mxu3 %v5022_v31 }
 0xc76   : > { %5402 = vmatpush.msrb.mxu2 %v5005_v10  ;;  %5425 = vmatpush.msra.mxu3 %v5021_v19 }
 0xc78   : > { %5403 = vmatpush.msrb.mxu2 %v5004_v3  ;;  %5426 = vmatpush.msra.mxu3 %v5020_v41  ;;  %v4702_v33 = vpop.f32.mrf.mxu3 }
 0xc79   : > { %v4703_v52 = vadd.f32 %v6625_v5, %v4702_v33 }
 0xc7a   : > { %5404 = vmatpush.msrb.mxu2 %v5003_v28  ;;  %5427 = vmatpush.msra.mxu3 %v5019_v23 }
 0xc7b   : > { %6428 = vmatmul.msk.f32.gmra.mxu2 %vm411_vm2, %v4703_v52  ;;  %6446 = vmatmul.msk.f32.gmra.mxu3 %vm411_vm2, %v4703_v52 }
 0xc7c   : > { %5405 = vmatpush.msrb.mxu2 %v5002_v1  ;;  %5428 = vmatpush.msra.mxu3 %v5018_v32 }
 0xc7e   : > { %5406 = vmatpush.msrb.mxu2 %v5001_v55  ;;  %5429 = vmatpush.msra.mxu3 %v5017_v48 }
 0xc80   : > { %5407 = vmatpush.msrb.mxu2 %v5000_v58  ;;  %5430 = vmatpush.msra.mxu3 %v5016_v63 }
 0xc82   : > { %5408 = vmatpush.msrb.mxu2 %v4999_v59  ;;  %5431 = vmatpush.msra.mxu3 %v5015_v60 }
 0xc83   : > { %6463 = vmatmul.msk.f32.vlgmr.msra.gmra.mxu2 %vm411_vm2, %v4700_v49  ;;  %6481 = vmatmul.msk.f32.vlgmr.msrb.gmra.mxu3 %vm411_vm2, %v4700_v49 }
 0xc84   : > { %5409 = vmatpush.msrb.mxu2 %v4998_v62  ;;  %5432 = vmatpush.msra.mxu3 %v5014_v29 }
 0xc86   : > { %5410 = vmatpush.msrb.mxu2 %v4997_v22  ;;  %5433 = vmatpush.msra.mxu3 %v5013_v25 }
 0xc88   : > { %5411 = vmatpush.msrb.mxu2 %v4996_v26  ;;  %5434 = vmatpush.msra.mxu3 %v5012_v16 }
 0xc8a   : > { %5412 = vmatpush.msrb.mxu2 %v4995_v12  ;;  %5435 = vmatpush.msra.mxu3 %v5011_v36 }
 0xc8b   : > { %6464 = vmatmul.msk.f32.gmra.mxu2 %vm411_vm2, %v4703_v52  ;;  %6482 = vmatmul.msk.f32.gmra.mxu3 %vm411_vm2, %v4703_v52 }
 0xc8c   : > { %5413 = vmatpush.msrb.mxu2 %v4994_v9  ;;  %5436 = vmatpush.msra.mxu3 %v5010_v8  ;;  %v5572_v8 = vld [vmem:[#allocation2 + $0x4f0] sm:$0xff] }
 0xc8e   : > { %5414 = vmatpush.msrb.mxu2 %v4993_v37  ;;  %5437 = vmatpush.msra.mxu3 %v5009_v14  ;;  %v5571_v37 = vld [vmem:[#allocation2 + $0x4e8] sm:$0xff]  ;;  %v5570_v14 = vld [vmem:[#allocation2 + $0x4e0] sm:$0xff] }
 0xc90   : > { %5415 = vmatpush.msrb.mxu2 %v4992_v42  ;;  %5438 = vmatpush.msra.mxu3 %v5008_v17  ;;  %v5569_v42 = vld [vmem:[#allocation2 + $0x4d8] sm:$0xff] }
 0xc92   : > { %5416 = vmatpush.msrb.mxu2 %v4991_v38  ;;  %5439 = vmatpush.msra.mxu3 %v5007_v45 }
 0xc94   : > { %6515 = vmatpush.msk.msra.mxu2 %vm6046_vm6, %v10438_v53  ;;  %6531 = vmatpush.msk.msrb.mxu3 %vm6047_vm7, %v10438_v53 }
 0xc96   : > { %6516 = vmatpush.msk.msra.mxu2 %vm6046_vm6, %v10438_v53  ;;  %6532 = vmatpush.msk.msrb.mxu3 %vm6047_vm7, %v10438_v53 }
 0xc98   : > { %6517 = vmatpush.msk.msra.mxu2 %vm6046_vm6, %v10438_v53  ;;  %6533 = vmatpush.msk.msrb.mxu3 %vm6047_vm7, %v10438_v53 }
 0xc9a   : > { %6518 = vmatpush.msk.msra.mxu2 %vm6046_vm6, %v10438_v53  ;;  %6534 = vmatpush.msk.msrb.mxu3 %vm6047_vm7, %v10438_v53 }
 0xc9c   : > { %6519 = vmatpush.msk.msra.mxu2 %vm6046_vm6, %v10438_v53  ;;  %6535 = vmatpush.msk.msrb.mxu3 %vm6047_vm7, %v10438_v53 }
 0xc9e   : > { %6520 = vmatpush.msk.msra.mxu2 %vm6046_vm6, %v10438_v53  ;;  %6536 = vmatpush.msk.msrb.mxu3 %vm6047_vm7, %v10438_v53 }
 0xca0   : > { %6521 = vmatpush.msk.msra.mxu2 %vm6046_vm6, %v10438_v53  ;;  %6537 = vmatpush.msk.msrb.mxu3 %vm6047_vm7, %v10438_v53 }
 0xca2   : > { %6522 = vmatpush.msk.msra.mxu2 %vm6046_vm6, %v10438_v53  ;;  %6538 = vmatpush.msk.msrb.mxu3 %vm6047_vm7, %v10438_v53 }
 0xca4   : > { %6523 = vmatpush.msk.msra.mxu2 %vm6046_vm6, %v10438_v53  ;;  %6539 = vmatpush.msk.msrb.mxu3 %vm6047_vm7, %v10438_v53 }
 0xca6   : > { %6524 = vmatpush.msk.msra.mxu2 %vm6046_vm6, %v10438_v53  ;;  %6540 = vmatpush.msk.msrb.mxu3 %vm6047_vm7, %v10438_v53 }
 0xca8   : > { %6525 = vmatpush.msk.msra.mxu2 %vm6046_vm6, %v10438_v53  ;;  %6541 = vmatpush.msk.msrb.mxu3 %vm6047_vm7, %v10438_v53 }
 0xcaa   : > { %6526 = vmatpush.msk.msra.mxu2 %vm6046_vm6, %v10438_v53  ;;  %6542 = vmatpush.msk.msrb.mxu3 %vm6047_vm7, %v10438_v53 }
 0xcac   : > { %6527 = vmatpush.msk.msra.mxu2 %vm6046_vm6, %v10438_v53  ;;  %6543 = vmatpush.msk.msrb.mxu3 %vm6047_vm7, %v10438_v53 }
 0xcae   : > { %6528 = vmatpush.msk.msra.mxu2 %vm6046_vm6, %v10438_v53  ;;  %6544 = vmatpush.msk.msrb.mxu3 %vm6047_vm7, %v10438_v53 }
 0xcb0   : > { %6529 = vmatpush.msk.msra.mxu2 %vm6046_vm6, %v10438_v53  ;;  %6545 = vmatpush.msk.msrb.mxu3 %vm6047_vm7, %v10438_v53 }
 0xcb2   : > { %6530 = vmatpush.msk.msra.mxu2 %vm6046_vm6, %v10438_v53  ;;  %6546 = vmatpush.msk.msrb.mxu3 %vm6047_vm7, %v10438_v53 }
 0xcf6   : > { %v5238_v34 = vpop.f32.mrf.mxu2  ;;  %v5261_v30 = vpop.f32.mrf.mxu3 }
 0xcf7   : > { %v5313_v40 = vmul.f32 0.35355338, %v5238_v34  ;;  %v5314_v18 = vmul.f32 0.35355338, %v5261_v30 }
 0xcfe   : > { %v5241_v47 = vpop.f32.mrf.mxu2  ;;  %v5264_v13 = vpop.f32.mrf.mxu3 }
 0xcff   : > { %v5317_v27 = vmul.f32 0.35355338, %v5241_v47  ;;  %v5318_v6 = vmul.f32 0.35355338, %v5264_v13 }
 0xd06   : > { %v5284_v21 = vpop.f32.mrf.mxu2  ;;  %v5307_v35 = vpop.f32.mrf.mxu3 }
 0xd07   : > { %v5315_v46 = vmul.f32 0.35355338, %v5284_v21  ;;  %v5316_v54 = vmul.f32 0.35355338, %v5307_v35 }
 0xd09   : > { %v5321_v43 = vmax.f32 %v5313_v40, %v5315_v46  ;;  %v5322_v44 = vmax.f32 %v5314_v18, %v5316_v54 }
 0xd0b   : > { %v5323_v7 = vmax.f32 %v5321_v43, %v5322_v44 }
 0xd0d   : > { %5324 = vmax.xlane.f32.xlu1 %v5323_v7 }
 0xd0e   : > { %v5287_v20 = vpop.f32.mrf.mxu2  ;;  %v5310_v57 = vpop.f32.mrf.mxu3 }
 0xd0f   : > { %v5319_v50 = vmul.f32 0.35355338, %v5287_v20  ;;  %v5320_v53 = vmul.f32 0.35355338, %v5310_v57 }
 0xd11   : > { %v5326_v39 = vmax.f32 %v5317_v27, %v5319_v50  ;;  %v5327_v11 = vmax.f32 %v5318_v6, %v5320_v53 }
 0xd13   : > { %v5328_v0 = vmax.f32 %v5326_v39, %v5327_v11 }
 0xd15   : > { %5329 = vmax.xlane.f32.xlu0 %v5328_v0 }
 0xd80   : > { %v5325_v15 = vpop.xlane.xlu1 %5324 }
 0xd81   : > { %v5331_v61 = vsub.f32 %v5313_v40, %v5325_v15  ;;  %v5332_v5 = vsub.f32 %v5314_v18, %v5325_v15  ;;  %v5333_v51 = vsub.f32 %v5315_v46, %v5325_v15  ;;  %v5334_v49 = vsub.f32 %v5316_v54, %v5325_v15 }
 0xd83   : > { %v5339_v24 = vmul.f32 1.442695, %v5331_v61  ;;  %v5341_v31 = vmul.f32 1.442695, %v5332_v5  ;;  %v5343_v10 = vmul.f32 1.442695, %v5333_v51 }
 0xd84   : > { %v5345_v19 = vmul.f32 1.442695, %v5334_v49 }
 0xd85   : > { %6973 = vpow2.f32 %v5339_v24 }
 0xd86   : > { %6975 = vpow2.f32 %v5341_v31 }
 0xd87   : > { %6977 = vpow2.f32 %v5343_v10 }
 0xd88   : > { %6979 = vpow2.f32 %v5345_v19  ;;  %v5330_v3 = vpop.xlane.xlu0 %5329 }
 0xd89   : > { %v5335_v41 = vsub.f32 %v5317_v27, %v5330_v3  ;;  %v5336_v28 = vsub.f32 %v5318_v6, %v5330_v3  ;;  %v5337_v23 = vsub.f32 %v5319_v50, %v5330_v3  ;;  %v5338_v33 = vsub.f32 %v5320_v53, %v5330_v3 }
 0xd8b   : > { %v6974_v1 = vpop.eup %6973  ;;  %v5347_v32 = vmul.f32 1.442695, %v5335_v41  ;;  %v5349_v52 = vmul.f32 1.442695, %v5336_v28  ;;  %v5351_v55 = vmul.f32 1.442695, %v5337_v23 }
 0xd8c   : > { %v6976_v48 = vpop.eup %6975  ;;  %v5353_v58 = vmul.f32 1.442695, %v5338_v33  ;;  %5371 = vmatmul.f32.vlgmr.msrb.gmra.mxu0 %v6974_v1 }
 0xd8d   : > { %v6978_v63 = vpop.eup %6977  ;;  %6981 = vpow2.f32 %v5347_v32  ;;  %5394 = vmatmul.f32.vlgmr.msra.gmra.mxu1 %v6976_v48  ;;  %5593 = vmatpush.msrb.mxu0 %v5572_v8 }
 0xd8e   : > { %v6980_v59 = vpop.eup %6979  ;;  %6983 = vpow2.f32 %v5349_v52  ;;  %5417 = vmatmul.f32.vlgmr.msrb.gmra.mxu2 %v6978_v63 }
 0xd8f   : > { %6985 = vpow2.f32 %v5351_v55  ;;  %5440 = vmatmul.f32.vlgmr.msra.gmra.mxu3 %v6980_v59  ;;  %5594 = vmatpush.msrb.mxu0 %v5571_v37 }
 0xd90   : > { %6987 = vpow2.f32 %v5353_v58  ;;  %v6626_v58 = vld [vmem:[#allocation2 + $0x4f8] ss:$0 sm:$0xff] }
 0xd91   : > { %5595 = vmatpush.msrb.mxu0 %v5570_v14 }
 0xd93   : > { %v6982_v60 = vpop.eup %6981  ;;  %5596 = vmatpush.msrb.mxu0 %v5569_v42 }
 0xd94   : > { %v6984_v62 = vpop.eup %6983  ;;  %5374 = vmatmul.f32.gmra.mxu0 %v6982_v60 }
 0xd95   : > { %v6986_v29 = vpop.eup %6985  ;;  %5397 = vmatmul.f32.gmra.mxu1 %v6984_v62 }
 0xd96   : > { %v6988_v22 = vpop.eup %6987  ;;  %5420 = vmatmul.f32.gmra.mxu2 %v6986_v29 }
 0xd97   : > { %5443 = vmatmul.f32.gmra.mxu3 %v6988_v22 }
 0xd9c   : > { %5463 = vmatmul.f32.vlgmr.msra.gmra.mxu0 %v6974_v1 }
 0xd9d   : > { %5486 = vmatmul.f32.vlgmr.msrb.gmra.mxu1 %v6976_v48 }
 0xd9e   : > { %5509 = vmatmul.f32.vlgmr.msra.gmra.mxu2 %v6978_v63 }
 0xd9f   : > { %5532 = vmatmul.f32.vlgmr.msrb.gmra.mxu3 %v6980_v59 }
 0xda4   : > { %5466 = vmatmul.f32.gmra.mxu0 %v6982_v60 }
 0xda5   : > { %5489 = vmatmul.f32.gmra.mxu1 %v6984_v62 }
 0xda6   : > { %5512 = vmatmul.f32.gmra.mxu2 %v6986_v29 }
 0xda7   : > { %5535 = vmatmul.f32.gmra.mxu3 %v6988_v22 }
 0xe09   : > { %v5372_v25 = vpop.f32.mrf.mxu0 }
 0xe0a   : > { %v5395_v26 = vpop.f32.mrf.mxu1 }
 0xe0b   : > { %v5396_v57 = vadd.f32 %v5395_v26, %v5372_v25 }
 0xe11   : > { %v5418_v16 = vpop.f32.mrf.mxu2  ;;  %v5375_v12 = vpop.f32.mrf.mxu0 }
 0xe12   : > { %v5441_v36 = vpop.f32.mrf.mxu3  ;;  %v5398_v9 = vpop.f32.mrf.mxu1  ;;  %v5419_v53 = vadd.f32 %v5418_v16, %v5396_v57 }
 0xe13   : > { %v5399_v31 = vadd.f32 %v5398_v9, %v5375_v12 }
 0xe14   : > { %v5442_v5 = vadd.f32 %v5441_v36, %v5419_v53 }
 0xe19   : > { %v5421_v17 = vpop.f32.mrf.mxu2  ;;  %v5464_v45 = vpop.f32.mrf.mxu0 }
 0xe1a   : > { %v5444_v38 = vpop.f32.mrf.mxu3  ;;  %v5487_v34 = vpop.f32.mrf.mxu1  ;;  %v5422_v41 = vadd.f32 %v5421_v17, %v5399_v31 }
 0xe1b   : > { %v5488_v30 = vadd.f32 %v5487_v34, %v5464_v45  ;;  %v5659_v45 = vld [vmem:[#allocation2 + $0x518] sm:$0xff]  ;;  %v5658_v34 = vld [vmem:[#allocation2 + $0x510] sm:$0xff] }
 0xe1c   : > { %v5445_v32 = vadd.f32 %v5444_v38, %v5422_v41  ;;  %v5660_v38 = vld [vmem:[#allocation2 + $0x520] sm:$0xff] }
 0xe21   : > { %v5510_v47 = vpop.f32.mrf.mxu2  ;;  %v5467_v35 = vpop.f32.mrf.mxu0 }
 0xe22   : > { %v5511_v13 = vadd.f32 %v5510_v47, %v5488_v30  ;;  %v5533_v40 = vpop.f32.mrf.mxu3  ;;  %v5490_v18 = vpop.f32.mrf.mxu1 }
 0xe23   : > { %v5491_v46 = vadd.f32 %v5490_v18, %v5467_v35  ;;  %v5700_v35 = vld [vmem:[#allocation2 + $0x560] sm:$0xff] }
 0xe24   : > { %v5534_v21 = vadd.f32 %v5533_v40, %v5511_v13  ;;  %v5702_v40 = vld [vmem:[#allocation2 + $0x570] sm:$0xff] }
 0xe25   : > { %5719 = vmatpush.msra.mxu0 %v5702_v40 }
 0xe26   : > { %6989 = vrcp.f32 %v5534_v21  ;;  %v5550_v50 = vand.u32 2147483648, %v5534_v21  ;;  %v5548_v11 = vand.u32 2147483647, %v5534_v21  ;;  %vm5544_vm7 = vweird.f32 %v5534_v21 }
 0xe28   : > { %v5551_v61 = vor.u32 1.1754944e-38, %v5550_v50  ;;  %vm5549_vm11 = vcmp.eq.f32.partialorder %v5548_v11, 8.507059e+37  ;;  %v6627_v11 = vld [vmem:[#allocation2 + $0x500] ss:$0 sm:$0xff] }
 0xe29   : > { %v5513_v54 = vpop.f32.mrf.mxu2 }
 0xe2a   : > { %v5514_v43 = vadd.f32 %v5513_v54, %v5491_v46  ;;  %v5536_v44 = vpop.f32.mrf.mxu3  ;;  %v5699_v54 = vld [vmem:[#allocation2 + $0x558] sm:$0xff] }
 0xe2c   : > { %v6990_v7 = vpop.eup %6989  ;;  %v5537_v27 = vadd.f32 %v5536_v44, %v5514_v43 }
 0xe2d   : > { %v5540_v20 = vmul.f32 %v6990_v7, %v5534_v21  ;;  %vm5545_vm6 = vweird.f32 %v6990_v7  ;;  %v5701_v21 = vld [vmem:[#allocation2 + $0x568] sm:$0xff] }
 0xe2e   : > { %6991 = vrcp.f32 %v5537_v27  ;;  %vm5546_vm10 = vmor %vm5544_vm7, %vm5545_vm6  ;;  %v5565_v3 = vand.u32 2147483648, %v5537_v27  ;;  %v5563_v23 = vand.u32 2147483647, %v5537_v27  ;;  %vm5559_vm13 = vweird.f32 %v5537_v27  ;;  %5720 = vmatpush.msra.mxu0 %v5701_v21 }
 0xe2f   : > { %v5541_v6 = vsub.f32 1.0, %v5540_v20 }
 0xe30   : > { %v5566_v1 = vor.u32 1.1754944e-38, %v5565_v3  ;;  %vm5564_vm8 = vcmp.eq.f32.partialorder %v5563_v23, 8.507059e+37  ;;  %5721 = vmatpush.msra.mxu0 %v5700_v35  ;;  %v5697_v23 = vld [vmem:[#allocation2 + $0x548] sm:$0xff] }
 0xe31   : > { %v5542_v39 = vmul.f32 %v6990_v7, %v5541_v6 }
 0xe32   : > { %5722 = vmatpush.msra.mxu0 %v5699_v54 }
 0xe33   : > { %v5543_v0 = vadd.f32 %v6990_v7, %v5542_v39 }
 0xe34   : > { %v6992_v15 = vpop.eup %6991 }
 0xe35   : > { %v5547_v51 = vsel %vm5546_vm10, %v6990_v7, %v5543_v0  ;;  %v5555_v49 = vmul.f32 %v6992_v15, %v5537_v27  ;;  %vm5560_vm12 = vweird.f32 %v6992_v15  ;;  %v5698_v7 = vld [vmem:[#allocation2 + $0x550] sm:$0xff] }
 0xe36   : > { %v5552_v24 = vsel %vm5549_vm11, %v5551_v61, %v5547_v51  ;;  %vm5561_vm14 = vmor %vm5559_vm13, %vm5560_vm12  ;;  %5723 = vmatpush.msra.mxu0 %v5698_v7  ;;  %v6628_v61 = vld [vmem:[#allocation2 + $0x508] ss:$0 sm:$0xff] }
 0xe37   : > { %v5553_v10 = vmul.f32 %v5552_v24, %v5442_v5  ;;  %v5556_v19 = vsub.f32 1.0, %v5555_v49 }
 0xe38   : > { %5724 = vmatpush.msra.mxu0 %v5697_v23  ;;  %v5825_v23 = vld [vmem:[#allocation2 + $0x198] sm:$0xff] }
 0xe39   : > { %v5557_v28 = vmul.f32 %v6992_v15, %v5556_v19  ;;  %6547 = vmatmul.msk.f32.vlgmr.msrb.gmra.mxu0 %vm411_vm2, %v5553_v10 }
 0xe3b   : > { %v5558_v33 = vadd.f32 %v6992_v15, %v5557_v28 }
 0xe3d   : > { %v5562_v52 = vsel %vm5561_vm14, %v6992_v15, %v5558_v33  ;;  %v5696_v33 = vld [vmem:[#allocation2 + $0x540] sm:$0xff] }
 0xe3e   : > { %v5567_v55 = vsel %vm5564_vm8, %v5566_v1, %v5562_v52  ;;  %5725 = vmatpush.msra.mxu0 %v5696_v33  ;;  %v5695_v1 = vld [vmem:[#allocation2 + $0x538] sm:$0xff]  ;;  %v6633_v33 = vld [vmem:[#allocation2 + $0x190] ss:$0 sm:$0xff] }
 0xe3f   : > { %v5568_v48 = vmul.f32 %v5567_v55, %v5445_v32  ;;  %v6629_v32 = vld [vmem:[#allocation2 + $0x530] ss:$0 sm:$0xff] }
 0xe40   : > { %5726 = vmatpush.msra.mxu0 %v5695_v1 }
 0xe41   : > { %6548 = vmatmul.msk.f32.gmra.mxu0 %vm411_vm2, %v5568_v48 }
 0xeb6   : > { %v5598_v63 = vpop.f32.mrf.mxu0 }
 0xeb7   : > { %v5599_v59 = vadd.f32 %v6626_v58, %v5598_v63 }
 0xeb9   : > { %v5604_v60 = vadd.f32 %v5599_v59, %v10030_v4 }
 0xebb   : > { %v5606_v62 = vsel %vm411_vm2, %v5604_v60, 0.0 }
 0xebc   : > { %5607 = vadd.xlane.f32.xlu2 %v5606_v62 }
 0xebe   : > { %v5601_v29 = vpop.f32.mrf.mxu0 }
 0xebf   : > { %v5602_v22 = vadd.f32 %v6626_v58, %v5601_v29 }
 0xec1   : > { %v5605_v25 = vadd.f32 %v5602_v22, %v10043_v2  ;;  %v5661_v2 = vld [vmem:[#allocation2 + $0x528] sm:$0xff] }
 0xec2   : > { %5682 = vmatpush.msra.mxu1 %v5661_v2 }
 0xec3   : > { %v5609_v26 = vsel %vm411_vm2, %v5605_v25, 0.0 }
 0xec4   : > { %5610 = vadd.xlane.f32.xlu1 %v5609_v26  ;;  %5683 = vmatpush.msra.mxu1 %v5660_v38 }
 0xec6   : > { %5684 = vmatpush.msra.mxu1 %v5659_v45 }
 0xec8   : > { %5685 = vmatpush.msra.mxu1 %v5658_v34  ;;  %v5791_v34 = vld [vmem:[#allocation2 + $0x188] sm:$0xff] }
 0xeca   : > { %5812 = vmatpush.msrb.mxu1 %v5791_v34 }
 0xf2f   : > { %v5608_v16 = vpop.xlane.xlu2 %5607 }
 0xf30   : > { %v5612_v12 = vmul.f32 %v5608_v16, %v8626_v56 }
 0xf32   : > { %v5614_v36 = vsub.f32 %v5604_v60, %v5612_v12  ;;  %v6630_v60 = vld [vmem:[#allocation2 + $0x578] ss:$0 sm:$0xff] }
 0xf34   : > { %v5616_v9 = vmul.f32 %v5614_v36, %v5614_v36 }
 0xf36   : > { %v5618_v8 = vsel %vm411_vm2, %v5616_v9, 0.0 }
 0xf37   : > { %5619 = vadd.xlane.f32.xlu0 %v5618_v8  ;;  %v5611_v37 = vpop.xlane.xlu1 %5610 }
 0xf38   : > { %v5613_v4 = vmul.f32 %v5611_v37, %v8626_v56 }
 0xf3a   : > { %v5615_v14 = vsub.f32 %v5605_v25, %v5613_v4 }
 0xf3c   : > { %v5617_v42 = vmul.f32 %v5615_v14, %v5615_v14 }
 0xf3e   : > { %v5621_v17 = vsel %vm411_vm2, %v5617_v42, 0.0 }
 0xf3f   : > { %5622 = vadd.xlane.f32.xlu2 %v5621_v17 }
 0xfaa   : > { %v5620_v30 = vpop.xlane.xlu0 %5619 }
 0xfab   : > { %v5624_v47 = vmul.f32 %v5620_v30, %v8626_v56  ;;  %v5790_v30 = vld [vmem:[#allocation2 + $0x180] sm:$0xff] }
 0xfac   : > { %5813 = vmatpush.msrb.mxu1 %v5790_v30 }
 0xfad   : > { %v5626_v13 = vadd.f32 1e-05, %v5624_v47  ;;  %v5789_v47 = vld [vmem:[#allocation2 + $0x178] sm:$0xff] }
 0xfae   : > { %5814 = vmatpush.msrb.mxu1 %v5789_v47 }
 0xfaf   : > { %6993 = vrsqrt.f32 %v5626_v13  ;;  %vm5634_vm15 = vweird.f32 %v5626_v13 }
 0xfb2   : > { %v5623_v18 = vpop.xlane.xlu2 %5622 }
 0xfb3   : > { %v5625_v46 = vmul.f32 %v5623_v18, %v8626_v56 }
 0xfb5   : > { %v6994_v43 = vpop.eup %6993  ;;  %v5627_v44 = vadd.f32 1e-05, %v5625_v46 }
 0xfb6   : > { %v5629_v27 = vmul.f32 %v6994_v43, %v5626_v13  ;;  %vm5635_vm9 = vweird.f32 %v6994_v43  ;;  %v5788_v13 = vld [vmem:[#allocation2 + $0x170] sm:$0xff] }
 0xfb7   : > { %6995 = vrsqrt.f32 %v5627_v44  ;;  %vm5636_vm4 = vmor %vm5634_vm15, %vm5635_vm9  ;;  %vm5644_vm5 = vweird.f32 %v5627_v44  ;;  %5815 = vmatpush.msrb.mxu1 %v5788_v13 }
 0xfb8   : > { %v5630_v20 = vmul.f32 %v6994_v43, %v5629_v27 }
 0xfba   : > { %v5631_v57 = vmul.f32 0.5, %v5630_v20 }
 0xfbc   : > { %v5632_v6 = vsub.f32 1.5, %v5631_v57 }
 0xfbd   : > { %v6996_v50 = vpop.eup %6995 }
 0xfbe   : > { %v5633_v53 = vmul.f32 %v6994_v43, %v5632_v6  ;;  %v5639_v39 = vmul.f32 %v6996_v50, %v5627_v44  ;;  %vm5645_vm0 = vweird.f32 %v6996_v50 }
 0xfbf   : > { %vm5646_vm6 = vmor %vm5644_vm5, %vm5645_vm0 }
 0xfc0   : > { %v5637_v0 = vsel %vm5636_vm4, %v6994_v43, %v5633_v53  ;;  %v5640_v15 = vmul.f32 %v6996_v50, %v5639_v39  ;;  %v6631_v53 = vld [vmem:[#allocation2 + $0x580] ss:$0 sm:$0xff] }
 0xfc1   : > { %v5648_v5 = vmul.f32 %v5637_v0, %v5614_v36  ;;  %v6632_v0 = vld [vmem:[#allocation2 + $0x588] ss:$0 sm:$0xff] }
 0xfc2   : > { %v5641_v51 = vmul.f32 0.5, %v5640_v15 }
 0xfc3   : > { %v5652_v49 = vmul.f32 %v6627_v11, %v5648_v5 }
 0xfc4   : > { %v5642_v24 = vsub.f32 1.5, %v5641_v51 }
 0xfc5   : > { %v5656_v31 = vadd.f32 %v6628_v61, %v5652_v49 }
 0xfc6   : > { %v5643_v10 = vmul.f32 %v6996_v50, %v5642_v24 }
 0xfc7   : > { %6549 = vmatmul.msk.f32.vlgmr.msra.gmra.mxu1 %vm411_vm2, %v5656_v31 }
 0xfc8   : > { %v5647_v19 = vsel %vm5646_vm6, %v6996_v50, %v5643_v10 }
 0xfc9   : > { %v5649_v3 = vmul.f32 %v5647_v19, %v5615_v14 }
 0xfcb   : > { %v5653_v41 = vmul.f32 %v6627_v11, %v5649_v3  ;;  %v5828_v3 = vld [vmem:[#allocation2 + $0x1b0] sm:$0xff] }
 0xfcc   : > { %5849 = vmatpush.msrb.mxu2 %v5828_v3 }
 0xfcd   : > { %v5657_v28 = vadd.f32 %v6628_v61, %v5653_v41  ;;  %v5827_v41 = vld [vmem:[#allocation2 + $0x1a8] sm:$0xff] }
 0xfce   : > { %5850 = vmatpush.msrb.mxu2 %v5827_v41 }
 0xfcf   : > { %6550 = vmatmul.msk.f32.gmra.mxu1 %vm411_vm2, %v5657_v28 }
0x1044   : > { %v5687_v52 = vpop.f32.mrf.mxu1 }
0x1045   : > { %v5688_v55 = vadd.f32 %v6629_v32, %v5687_v52 }
0x1047   : > { %v5693_v48 = vmax.f32 %v5688_v55, 0.0 }
0x1049   : > { %6551 = vmatmul.msk.f32.vlgmr.msra.gmra.mxu0 %vm3248_vm3, %v5693_v48 }
0x104c   : > { %v5690_v58 = vpop.f32.mrf.mxu1 }
0x104d   : > { %v5691_v63 = vadd.f32 %v6629_v32, %v5690_v58 }
0x104f   : > { %v5694_v59 = vmax.f32 %v5691_v63, 0.0  ;;  %v7057_v63 = vmov 0  }
0x1050   : > { %6599 = vset.pattern.permute.xlu0 %v7057_v63 }
0x1051   : > { %6552 = vmatmul.msk.f32.gmra.mxu0 %vm3248_vm3, %v5694_v59  ;;  %v6634_v59 = vld [vmem:[#allocation2 + $0x1b8] ss:$0 sm:$0xff] }
0x10c6   : > { %v5728_v62 = vpop.f32.mrf.mxu0 }
0x10c7   : > { %v5729_v29 = vadd.f32 %v6630_v60, %v5728_v62 }
0x10c9   : > { %v5734_v22 = vadd.f32 %v5729_v29, %v5656_v31 }
0x10cb   : > { %v5736_v25 = vsel %vm411_vm2, %v5734_v22, 0.0 }
0x10cc   : > { %5737 = vadd.xlane.f32.xlu1 %v5736_v25 }
0x10ce   : > { %v5731_v26 = vpop.f32.mrf.mxu0 }
0x10cf   : > { %v5732_v16 = vadd.f32 %v6630_v60, %v5731_v26 }
0x10d1   : > { %v5735_v12 = vadd.f32 %v5732_v16, %v5657_v28  ;;  %v5826_v28 = vld [vmem:[#allocation2 + $0x1a0] sm:$0xff] }
0x10d2   : > { %5851 = vmatpush.msrb.mxu2 %v5826_v28 }
0x10d3   : > { %v5739_v36 = vsel %vm411_vm2, %v5735_v12, 0.0 }
0x10d4   : > { %5740 = vadd.xlane.f32.xlu0 %v5739_v36  ;;  %5852 = vmatpush.msrb.mxu2 %v5825_v23 }
0x113f   : > { %v5738_v9 = vpop.xlane.xlu1 %5737 }
0x1140   : > { %v5742_v8 = vmul.f32 %v5738_v9, %v8626_v56 }
0x1142   : > { %v5744_v37 = vsub.f32 %v5734_v22, %v5742_v8 }
0x1144   : > { %v5746_v4 = vmul.f32 %v5744_v37, %v5744_v37 }
0x1146   : > { %v5748_v14 = vsel %vm411_vm2, %v5746_v4, 0.0 }
0x1147   : > { %v5741_v42 = vpop.xlane.xlu0 %5740  ;;  %5749 = vadd.xlane.f32.xlu2 %v5748_v14 }
0x1148   : > { %v5743_v17 = vmul.f32 %v5741_v42, %v8626_v56 }
0x114a   : > { %v5745_v2 = vsub.f32 %v5735_v12, %v5743_v17 }
0x114c   : > { %v5747_v38 = vmul.f32 %v5745_v2, %v5745_v2 }
0x114e   : > { %v5751_v45 = vsel %vm411_vm2, %v5747_v38, 0.0 }
0x114f   : > { %5752 = vadd.xlane.f32.xlu1 %v5751_v45 }
0x11ba   : > { %v5750_v40 = vpop.xlane.xlu2 %5749 }
0x11bb   : > { %v5754_v21 = vmul.f32 %v5750_v40, %v8626_v56 }
0x11bd   : > { %v5756_v35 = vadd.f32 1e-05, %v5754_v21 }
0x11bf   : > { %6997 = vrsqrt.f32 %v5756_v35  ;;  %vm5764_vm7 = vweird.f32 %v5756_v35 }
0x11c2   : > { %v5753_v18 = vpop.xlane.xlu1 %5752 }
0x11c3   : > { %v5755_v46 = vmul.f32 %v5753_v18, %v8626_v56 }
0x11c5   : > { %v6998_v54 = vpop.eup %6997  ;;  %v5757_v43 = vadd.f32 1e-05, %v5755_v46 }
0x11c6   : > { %v5759_v44 = vmul.f32 %v6998_v54, %v5756_v35  ;;  %vm5765_vm3 = vweird.f32 %v6998_v54 }
0x11c7   : > { %6999 = vrsqrt.f32 %v5757_v43  ;;  %vm5766_vm10 = vmor %vm5764_vm7, %vm5765_vm3  ;;  %vm5774_vm12 = vweird.f32 %v5757_v43 }
0x11c8   : > { %v5760_v7 = vmul.f32 %v6998_v54, %v5759_v44 }
0x11ca   : > { %v5761_v27 = vmul.f32 0.5, %v5760_v7 }
0x11cc   : > { %v5762_v20 = vsub.f32 1.5, %v5761_v27 }
0x11cd   : > { %v7000_v57 = vpop.eup %6999 }
0x11ce   : > { %v5763_v6 = vmul.f32 %v6998_v54, %v5762_v20  ;;  %v5769_v50 = vmul.f32 %v7000_v57, %v5757_v43  ;;  %vm5775_vm11 = vweird.f32 %v7000_v57 }
0x11cf   : > { %vm5776_vm13 = vmor %vm5774_vm12, %vm5775_vm11 }
0x11d0   : > { %v5767_v39 = vsel %vm5766_vm10, %v6998_v54, %v5763_v6  ;;  %v5770_v11 = vmul.f32 %v7000_v57, %v5769_v50 }
0x11d1   : > { %v5778_v15 = vmul.f32 %v5767_v39, %v5744_v37 }
0x11d2   : > { %v5771_v61 = vmul.f32 0.5, %v5770_v11 }
0x11d3   : > { %v5782_v56 = vmul.f32 %v6631_v53, %v5778_v15 }
0x11d4   : > { %v5772_v5 = vsub.f32 1.5, %v5771_v61 }
0x11d5   : > { %v5786_v51 = vadd.f32 %v6632_v0, %v5782_v56 }
0x11d6   : > { %v5773_v49 = vmul.f32 %v7000_v57, %v5772_v5 }
0x11d7   : > { %6553 = vmatmul.msk.f32.vlgmr.msrb.gmra.mxu1 %vm411_vm2, %v5786_v51 }
0x11d8   : > { %v5777_v24 = vsel %vm5776_vm13, %v7000_v57, %v5773_v49 }
0x11d9   : > { %v5779_v31 = vmul.f32 %v5777_v24, %v5745_v2 }
0x11db   : > { %v5783_v10 = vmul.f32 %v6631_v53, %v5779_v31 }
0x11dd   : > { %v5787_v19 = vadd.f32 %v6632_v0, %v5783_v10 }
0x11df   : > { %6554 = vmatmul.msk.f32.gmra.mxu1 %vm411_vm2, %v5787_v19 }
0x1254   : > { %v5817_v1 = vpop.f32.mrf.mxu1 }
0x1255   : > { %v5818_v32 = vadd.f32 %v6633_v33, %v5817_v1 }
0x1257   : > { %7001 = vtanh.f32 %v5818_v32 }
0x125c   : > { %v5820_v52 = vpop.f32.mrf.mxu1 }
0x125d   : > { %v7002_v55 = vpop.eup %7001  ;;  %v5821_v48 = vadd.f32 %v6633_v33, %v5820_v52 }
0x125e   : > { %6555 = vmatmul.msk.f32.vlgmr.msrb.gmra.mxu2 %vm411_vm2, %v7002_v55 }
0x125f   : > { %7003 = vtanh.f32 %v5821_v48 }
0x1265   : > { %v7004_v58 = vpop.eup %7003 }
0x1266   : > { %6556 = vmatmul.msk.f32.gmra.mxu2 %vm411_vm2, %v7004_v58 }
0x12e1   : > { %v5854_v60 = vpop.f32.mrf.mxu2 }
0x12e2   : > { %v5855_v62 = vadd.f32 %v6634_v59, %v5854_v60 }
0x12e4   : > { %5860 = vst.msk [vmem:[%s248_s14] sm:$0xff] %vm271_vm1, %v5855_v62 }
0x12e9   : > { %v5857_v29 = vpop.f32.mrf.mxu2 }
0x12ea   : > { %v5858_v22 = vadd.f32 %v6634_v59, %v5857_v29 }
0x12ec   : > { %5861 = vst.msk [vmem:[%s248_s14 + $0x8] sm:$0xff] %vm271_vm1, %v5858_v22 }
0x12ed PF: > { %s15_s15 = sadd.s32 1, %s7045_s15  }
0x12ee   : > { %p12_p7 = scmp.ge.s32.totalorder %s15_s15, 4  }
0x12f0   :  { %14 = sbr.rel (!%p12_p7) target bundleno = 1 (0x1), region = 77 }
0x12f5   :  { %5883 = vsyncpa [#allocation3], 1 }
0x12f6   :  { %5885 = vsyncpa [#allocation3 + $0x1], 1 }

</bundles_post_ra>
